<compile_context>
chip_gen: v7x
topology: tpu7x:2x2x1
jax: 0.10.0
libtpu: 0.0.40
codegen_flags: <defaults>
</compile_context>

<pallas_src>
import functools

import jax
import jax.numpy as jnp
from jax import lax
from jax.experimental import pallas as pl
from jax.experimental.pallas import tpu as pltpu


# -----------------------------------------------------------------------------
# Fused kernel: conv block + LSTM stack + final FC, one batch TILE per grid step.
# -----------------------------------------------------------------------------
def fused_cnn_lstm_kernel(*refs, num_layers, hidden, seq_len, block_b):
    (x_ref, w1_ref, s1_ref, b1_ref, w2_ref, s2_ref, b2_ref) = refs[:7]
    idx = 7
    lstm_refs = []
    for _ in range(num_layers):
        lstm_refs.append(refs[idx:idx + 3])
        idx += 3
    fcw_ref, fcb_ref = refs[idx], refs[idx + 1]
    out_ref = refs[idx + 2]
    xw_ref, hseq_ref = refs[idx + 3], refs[idx + 4]

    T, H, Bt = seq_len, hidden, block_b
    TB = T * Bt                                             # rows: t*Bt + b (time-major)

    # ---- conv1 (k=3, pad=1) + bn1 + relu: wrapper-side im2col -> one matmul ----
    x = x_ref[0]                                            # (TB, 3*Cin)
    y1 = jnp.dot(x, w1_ref[...], preferred_element_type=jnp.float32)
    y1 = jnp.maximum(y1 * s1_ref[...] + b1_ref[...], 0.0)   # (TB, 64)

    # ---- conv2 (k=3, pad=1) + bn2 + relu ----
    # Boundary taps y1[t-1], y1[t+1] (per batch row) via small (TB, TB) shift
    # matmuls: aligned MXU operands, boundary rows come out zero automatically.
    ii = lax.broadcasted_iota(jnp.int32, (TB, TB), 0)
    jj = lax.broadcasted_iota(jnp.int32, (TB, TB), 1)
    shift_down = jnp.where(ii == jj + Bt, 1.0, 0.0)         # prev[t*Bt+b] = y1[(t-1)*Bt+b]
    shift_up = jnp.where(jj == ii + Bt, 1.0, 0.0)           # nxt[t*Bt+b]  = y1[(t+1)*Bt+b]
    prev = jnp.dot(shift_down, y1, preferred_element_type=jnp.float32)
    nxt = jnp.dot(shift_up, y1, preferred_element_type=jnp.float32)
    y2 = (jnp.dot(prev, w2_ref[0], preferred_element_type=jnp.float32)
          + jnp.dot(y1, w2_ref[1], preferred_element_type=jnp.float32)
          + jnp.dot(nxt, w2_ref[2], preferred_element_type=jnp.float32))
    y2 = jnp.maximum(y2 * s2_ref[...] + b2_ref[...], 0.0)   # (TB, 128)
    # TODO(synk): nn.Dropout after the conv block is identity in eval mode (not applied).

    # ---- LSTM stack (PyTorch gate order i, f, g, o), input projection hoisted ----
    layer_in = y2
    h_last = None
    for l in range(num_layers):
        wih_ref, whh_ref, bias_ref = lstm_refs[l]
        # One (TB, Din) x (Din, 4H) matmul covers every timestep; bias folded in.
        xw_ref[...] = (jnp.dot(layer_in, wih_ref[...],
                               preferred_element_type=jnp.float32) + bias_ref[...])
        last_layer = (l == num_layers - 1)

        h = jnp.zeros((Bt, H), jnp.float32)
        c = jnp.zeros((Bt, H), jnp.float32)
        for t in range(T):                                   # static unroll (T small)
            gates = (xw_ref[pl.ds(t * Bt, Bt), :]
                     + jnp.dot(h, whh_ref[...], preferred_element_type=jnp.float32))
            i = jax.nn.sigmoid(gates[:, 0:H])
            f = jax.nn.sigmoid(gates[:, H:2 * H])
            g = jnp.tanh(gates[:, 2 * H:3 * H])
            o = jax.nn.sigmoid(gates[:, 3 * H:4 * H])
            c = f * c + i * g
            h = o * jnp.tanh(c)
            if not last_layer:
                hseq_ref[pl.ds(t * Bt, Bt), :] = h           # VMEM only, never HBM
        h_last = h
        if not last_layer:
            layer_in = hseq_ref[...]                         # (TB, H) input to next layer
        # TODO(synk): inter-layer LSTM dropout is identity in eval mode (not applied).

    # ---- final Linear fused on the last timestep's hidden state ----
    out_ref[0] = (jnp.dot(h_last, fcw_ref[...],
                          preferred_element_type=jnp.float32) + fcb_ref[...])


def cnn_lstm_forward(x_ncl, params, *, block_b=8):
    B, Cin, T = x_ncl.shape
    Bt = min(block_b, B)
    nb = pl.cdiv(B, Bt)
    Bp = nb * Bt
    TB = T * Bt

    x = jnp.transpose(x_ncl, (0, 2, 1))                      # (B, T, Cin)
    # Wrapper-side im2col for conv1 (kernel=3, padding=1): columns [x[t-1], x[t], x[t+1]].
    xp = jnp.pad(x, ((0, Bp - B), (1, 1), (0, 0)))           # pad batch to tile, pad time
    x_im2col = jnp.concatenate([xp[:, 0:T], xp[:, 1:T + 1], xp[:, 2:T + 2]], axis=-1)
    # Per-tile time-major layout: row index inside a tile = t*Bt + b.
    x_tiles = (x_im2col
               .reshape(nb, Bt, T, 3 * Cin)
               .transpose(0, 2, 1, 3)
               .reshape(nb, TB, 3 * Cin))

    w1 = params["w1"].reshape(3 * Cin, 64)                   # tap-major rows
    w2 = params["w2"]                                        # (3, 64, 128)
    lstm = params["lstm"]
    num_layers = len(lstm)
    H = lstm[0]["whhT"].shape[0]
    C = params["fcT"].shape[1]

    in_specs = [
        pl.BlockSpec((1, TB, 3 * Cin), lambda b: (b, 0, 0)),
        pl.BlockSpec((3 * Cin, 64), lambda b: (0, 0)),
        pl.BlockSpec((1, 64), lambda b: (0, 0)),
        pl.BlockSpec((1, 64), lambda b: (0, 0)),
        pl.BlockSpec((3, 64, 128), lambda b: (0, 0, 0)),
        pl.BlockSpec((1, 128), lambda b: (0, 0)),
        pl.BlockSpec((1, 128), lambda b: (0, 0)),
    ]
    args = [x_tiles, w1, params["s1"], params["b1"], w2, params["s2"], params["b2"]]
    for layer in lstm:
        din = layer["wihT"].shape[0]
        in_specs += [
            pl.BlockSpec((din, 4 * H), lambda b: (0, 0)),
            pl.BlockSpec((H, 4 * H), lambda b: (0, 0)),
            pl.BlockSpec((1, 4 * H), lambda b: (0, 0)),
        ]
        args += [layer["wihT"], layer["whhT"], layer["b"]]
    in_specs += [
        pl.BlockSpec((H, C), lambda b: (0, 0)),
        pl.BlockSpec((1, C), lambda b: (0, 0)),
    ]
    args += [params["fcT"], params["fcb"]]

    kernel = functools.partial(fused_cnn_lstm_kernel,
                               num_layers=num_layers, hidden=H, seq_len=T,
                               block_b=Bt)

    out = pl.pallas_call(
        kernel,
        out_shape=jax.ShapeDtypeStruct((nb, Bt, C), jnp.float32),
        grid=(nb,),
        in_specs=in_specs,
        out_specs=pl.BlockSpec((1, Bt, C), lambda b: (b, 0, 0)),
        scratch_shapes=[
            pltpu.VMEM((TB, 4 * H), jnp.float32),   # hoisted LSTM input projection
            pltpu.VMEM((TB, H), jnp.float32),       # inter-layer hidden sequence
        ],
        compiler_params=pltpu.CompilerParams(
            dimension_semantics=("parallel",),      # batch-tile axis feeds both v7x TCs
        ),
    )(*args)
    return out.reshape(Bp, C)[:B]


# -----------------------------------------------------------------------------
# Pure-JAX reference for validation.
# -----------------------------------------------------------------------------
def ref_forward(x_ncl, params):
    x = jnp.transpose(x_ncl, (0, 2, 1))

    def conv3(xp, w):
        T = xp.shape[1] - 2
        return xp[:, 0:T] @ w[0] + xp[:, 1:T + 1] @ w[1] + xp[:, 2:T + 2] @ w[2]

    xp = jnp.pad(x, ((0, 0), (1, 1), (0, 0)))
    y1 = jnp.maximum(conv3(xp, params["w1"]) * params["s1"] + params["b1"], 0.0)
    y1p = jnp.pad(y1, ((0, 0), (1, 1), (0, 0)))
    h = jnp.maximum(conv3(y1p, params["w2"]) * params["s2"] + params["b2"], 0.0)

    for layer in params["lstm"]:
        H = layer["whhT"].shape[0]
        wihT, whhT, b = layer["wihT"], layer["whhT"], layer["b"][0]

        def step(carry, x_t, wihT=wihT, whhT=whhT, b=b, H=H):
            hh, cc = carry
            gates = x_t @ wihT + hh @ whhT + b
            i = jax.nn.sigmoid(gates[:, 0:H])
            f = jax.nn.sigmoid(gates[:, H:2 * H])
            g = jnp.tanh(gates[:, 2 * H:3 * H])
            o = jax.nn.sigmoid(gates[:, 3 * H:4 * H])
            cc = f * cc + i * g
            hh = o * jnp.tanh(cc)
            return (hh, cc), hh

        B, T, _ = h.shape
        init = (jnp.zeros((B, H), jnp.float32), jnp.zeros((B, H), jnp.float32))
        _, hs = lax.scan(step, init, jnp.transpose(h, (1, 0, 2)))
        h = jnp.transpose(hs, (1, 0, 2))

    return h[:, -1, :] @ params["fcT"] + params["fcb"][0]


def make_params(key, input_channels, hidden_size, num_layers, num_classes):
    eps = 1e-5
    ks = iter(jax.random.split(key, 32))

    def rand(shape, scale=0.1):
        return scale * jax.random.normal(next(ks), shape, dtype=jnp.float32)

    def fold_bn(c):
        gamma = 1.0 + rand((1, c))
        beta = rand((1, c))
        running_mean = rand((1, c))
        running_var = 1.0 + 0.1 * jnp.abs(jax.random.normal(next(ks), (1, c)))
        scale = gamma / jnp.sqrt(running_var + eps)
        bias = beta - running_mean * scale
        return scale.astype(jnp.float32), bias.astype(jnp.float32)

    # conv weights stored as (tap, Cin, Cout): w[k][c, o] == torch_conv.weight[o, c, k]
    w1 = rand((3, input_channels, 64))
    s1, b1 = fold_bn(64)
    w2 = rand((3, 64, 128))
    s2, b2 = fold_bn(128)

    lstm_params = []
    din = 128
    for _ in range(num_layers):
        wihT = rand((din, 4 * hidden_size))                  # W_ih^T
        whhT = rand((hidden_size, 4 * hidden_size))          # W_hh^T
        b = rand((1, 4 * hidden_size)) + rand((1, 4 * hidden_size))   # b_ih + b_hh
        lstm_params.append({"wihT": wihT, "whhT": whhT, "b": b})
        din = hidden_size

    fcT = rand((hidden_size, num_classes))                   # fc.weight^T
    fcb = rand((1, num_classes))

    return {"w1": w1, "s1": s1, "b1": b1, "w2": w2, "s2": s2, "b2": b2,
            "lstm": lstm_params, "fcT": fcT, "fcb": fcb}


if __name__ == "__main__":
    # Full-precision f32 matmuls on both the kernel and the reference path so the
    # correctness check can be tight.
    jax.config.update("jax_default_matmul_precision", "highest")

    B, C_IN, T = 2, 4, 16
    HIDDEN, NUM_LAYERS, NUM_CLASSES = 32, 2, 8

    key = jax.random.PRNGKey(0)
    k_x, k_p = jax.random.split(key)
    x = jax.random.normal(k_x, (B, C_IN, T), dtype=jnp.float32)   # NCL like PyTorch
    params = make_params(k_p, C_IN, HIDDEN, NUM_LAYERS, NUM_CLASSES)

    out = jax.block_until_ready(cnn_lstm_forward(x, params))
    assert out.shape == (B, NUM_CLASSES)

    ref = jax.block_until_ready(ref_forward(x, params))
    err = float(jnp.max(jnp.abs(out - ref)))
    assert err < 1e-3, f"Pallas output mismatch vs reference: {err}"

    print("KERNEL_OK")
</pallas_src>

<mosaic_0001>
module attributes {stable_mosaic.version = 11 : i64} {
  func.func @fused_cnn_lstm_kernel(%arg0: i32, %arg1: memref<1x32x12xf32, #tpu.memory_space<vmem>>, %arg2: memref<12x64xf32, #tpu.memory_space<vmem>>, %arg3: memref<1x64xf32, #tpu.memory_space<vmem>>, %arg4: memref<1x64xf32, #tpu.memory_space<vmem>>, %arg5: memref<3x64x128xf32, #tpu.memory_space<vmem>>, %arg6: memref<1x128xf32, #tpu.memory_space<vmem>>, %arg7: memref<1x128xf32, #tpu.memory_space<vmem>>, %arg8: memref<128x128xf32, #tpu.memory_space<vmem>>, %arg9: memref<32x128xf32, #tpu.memory_space<vmem>>, %arg10: memref<1x128xf32, #tpu.memory_space<vmem>>, %arg11: memref<32x128xf32, #tpu.memory_space<vmem>>, %arg12: memref<32x128xf32, #tpu.memory_space<vmem>>, %arg13: memref<1x128xf32, #tpu.memory_space<vmem>>, %arg14: memref<32x8xf32, #tpu.memory_space<vmem>>, %arg15: memref<1x8xf32, #tpu.memory_space<vmem>>, %arg16: memref<1x2x8xf32, #tpu.memory_space<vmem>>, %arg17: memref<32x128xf32, #tpu.memory_space<vmem>>, %arg18: memref<32x32xf32, #tpu.memory_space<vmem>>) attributes {dimension_semantics = [#tpu.dimension_semantics<parallel>], iteration_bounds = array<i64: 1>, scalar_prefetch = 0 : i64, scratch_operands = 2 : i64, tpu.core_type = #tpu.core_type<tc>, window_params = [{transform_indices = @transform_0, window_bounds = array<i64: 1, 32, 12>}, {pipeline_mode = #tpu.pipeline_mode<synchronous>, transform_indices = @transform_1, window_bounds = array<i64: 12, 64>}, {pipeline_mode = #tpu.pipeline_mode<synchronous>, transform_indices = @transform_2, window_bounds = array<i64: 1, 64>}, {pipeline_mode = #tpu.pipeline_mode<synchronous>, transform_indices = @transform_3, window_bounds = array<i64: 1, 64>}, {pipeline_mode = #tpu.pipeline_mode<synchronous>, transform_indices = @transform_4, window_bounds = array<i64: 3, 64, 128>}, {pipeline_mode = #tpu.pipeline_mode<synchronous>, transform_indices = @transform_5, window_bounds = array<i64: 1, 128>}, {pipeline_mode = #tpu.pipeline_mode<synchronous>, transform_indices = @transform_6, window_bounds = array<i64: 1, 128>}, {pipeline_mode = #tpu.pipeline_mode<synchronous>, transform_indices = @transform_7, window_bounds = array<i64: 128, 128>}, {pipeline_mode = #tpu.pipeline_mode<synchronous>, transform_indices = @transform_8, window_bounds = array<i64: 32, 128>}, {pipeline_mode = #tpu.pipeline_mode<synchronous>, transform_indices = @transform_9, window_bounds = array<i64: 1, 128>}, {pipeline_mode = #tpu.pipeline_mode<synchronous>, transform_indices = @transform_10, window_bounds = array<i64: 32, 128>}, {pipeline_mode = #tpu.pipeline_mode<synchronous>, transform_indices = @transform_11, window_bounds = array<i64: 32, 128>}, {pipeline_mode = #tpu.pipeline_mode<synchronous>, transform_indices = @transform_12, window_bounds = array<i64: 1, 128>}, {pipeline_mode = #tpu.pipeline_mode<synchronous>, transform_indices = @transform_13, window_bounds = array<i64: 32, 8>}, {pipeline_mode = #tpu.pipeline_mode<synchronous>, transform_indices = @transform_14, window_bounds = array<i64: 1, 8>}, {transform_indices = @transform_15, window_bounds = array<i64: 1, 2, 8>}]} {
    %c0 = arith.constant 0 : index
    %c0_0 = arith.constant 0 : index
    %c0_1 = arith.constant 0 : index
    %0 = vector.load %arg1[%c0, %c0_0, %c0_1] : memref<1x32x12xf32, #tpu.memory_space<vmem>>, vector<1x32x12xf32>
    %1 = vector.shape_cast %0 : vector<1x32x12xf32> to vector<32x12xf32>
    %c0_2 = arith.constant 0 : index
    %c0_3 = arith.constant 0 : index
    %2 = vector.load %arg2[%c0_2, %c0_3] : memref<12x64xf32, #tpu.memory_space<vmem>>, vector<12x64xf32>
    %cst = arith.constant dense<0.000000e+00> : vector<32x64xf32>
    %3 = tpu.matmul %1, %2, %cst {dimension_numbers = #tpu.dot_dimension_numbers<[1], [0], [0], [1], [0, 0, 1, 1], [], []>, precision = #tpu.contract_precision<fp32>} : vector<32x12xf32>, vector<12x64xf32>, vector<32x64xf32> -> vector<32x64xf32>
    %c0_4 = arith.constant 0 : index
    %c0_5 = arith.constant 0 : index
    %4 = vector.load %arg3[%c0_4, %c0_5] : memref<1x64xf32, #tpu.memory_space<vmem>>, vector<1x64xf32>
    %5 = vector.broadcast %4 : vector<1x64xf32> to vector<32x64xf32>
    %6 = arith.mulf %3, %5 : vector<32x64xf32>
    %c0_6 = arith.constant 0 : index
    %c0_7 = arith.constant 0 : index
    %7 = vector.load %arg4[%c0_6, %c0_7] : memref<1x64xf32, #tpu.memory_space<vmem>>, vector<1x64xf32>
    %8 = vector.broadcast %7 : vector<1x64xf32> to vector<32x64xf32>
    %9 = arith.addf %6, %8 : vector<32x64xf32>
    %cst_8 = arith.constant 0.000000e+00 : f32
    %10 = vector.broadcast %cst_8 : f32 to vector<32x64xf32>
    %11 = arith.maximumf %9, %10 : vector<32x64xf32>
    %12 = tpu.iota {dimensions = array<i32: 0>} : vector<32x32xi32>
    %13 = tpu.iota {dimensions = array<i32: 1>} : vector<32x32xi32>
    %c2_i32 = arith.constant 2 : i32
    %14 = vector.broadcast %c2_i32 : i32 to vector<32x32xi32>
    %15 = arith.addi %13, %14 : vector<32x32xi32>
    %16 = arith.cmpi eq, %12, %15 : vector<32x32xi32>
    %cst_9 = arith.constant 1.000000e+00 : f32
    %cst_10 = arith.constant 0.000000e+00 : f32
    %17 = vector.broadcast %cst_9 : f32 to vector<32x32xf32>
    %18 = vector.broadcast %cst_10 : f32 to vector<32x32xf32>
    %19 = arith.select %16, %17, %18 : vector<32x32xi1>, vector<32x32xf32>
    %c2_i32_11 = arith.constant 2 : i32
    %20 = vector.broadcast %c2_i32_11 : i32 to vector<32x32xi32>
    %21 = arith.addi %12, %20 : vector<32x32xi32>
    %22 = arith.cmpi eq, %13, %21 : vector<32x32xi32>
    %cst_12 = arith.constant 1.000000e+00 : f32
    %cst_13 = arith.constant 0.000000e+00 : f32
    %23 = vector.broadcast %cst_12 : f32 to vector<32x32xf32>
    %24 = vector.broadcast %cst_13 : f32 to vector<32x32xf32>
    %25 = arith.select %22, %23, %24 : vector<32x32xi1>, vector<32x32xf32>
    %cst_14 = arith.constant dense<0.000000e+00> : vector<32x64xf32>
    %26 = tpu.matmul %19, %11, %cst_14 {dimension_numbers = #tpu.dot_dimension_numbers<[1], [0], [0], [1], [0, 0, 1, 1], [], []>, precision = #tpu.contract_precision<fp32>} : vector<32x32xf32>, vector<32x64xf32>, vector<32x64xf32> -> vector<32x64xf32>
    %cst_15 = arith.constant dense<0.000000e+00> : vector<32x64xf32>
    %27 = tpu.matmul %25, %11, %cst_15 {dimension_numbers = #tpu.dot_dimension_numbers<[1], [0], [0], [1], [0, 0, 1, 1], [], []>, precision = #tpu.contract_precision<fp32>} : vector<32x32xf32>, vector<32x64xf32>, vector<32x64xf32> -> vector<32x64xf32>
    %c0_16 = arith.constant 0 : index
    %c0_17 = arith.constant 0 : index
    %c0_18 = arith.constant 0 : index
    %28 = vector.load %arg5[%c0_16, %c0_17, %c0_18] : memref<3x64x128xf32, #tpu.memory_space<vmem>>, vector<1x64x128xf32>
    %29 = vector.shape_cast %28 : vector<1x64x128xf32> to vector<64x128xf32>
    %cst_19 = arith.constant dense<0.000000e+00> : vector<32x128xf32>
    %30 = tpu.matmul %26, %29, %cst_19 {dimension_numbers = #tpu.dot_dimension_numbers<[1], [0], [0], [1], [0, 0, 1, 1], [], []>, precision = #tpu.contract_precision<fp32>} : vector<32x64xf32>, vector<64x128xf32>, vector<32x128xf32> -> vector<32x128xf32>
    %c1 = arith.constant 1 : index
    %c0_20 = arith.constant 0 : index
    %c0_21 = arith.constant 0 : index
    %31 = vector.load %arg5[%c1, %c0_20, %c0_21] : memref<3x64x128xf32, #tpu.memory_space<vmem>>, vector<1x64x128xf32>
    %32 = vector.shape_cast %31 : vector<1x64x128xf32> to vector<64x128xf32>
    %cst_22 = arith.constant dense<0.000000e+00> : vector<32x128xf32>
    %33 = tpu.matmul %11, %32, %cst_22 {dimension_numbers = #tpu.dot_dimension_numbers<[1], [0], [0], [1], [0, 0, 1, 1], [], []>, precision = #tpu.contract_precision<fp32>} : vector<32x64xf32>, vector<64x128xf32>, vector<32x128xf32> -> vector<32x128xf32>
    %34 = arith.addf %30, %33 : vector<32x128xf32>
    %c2 = arith.constant 2 : index
    %c0_23 = arith.constant 0 : index
    %c0_24 = arith.constant 0 : index
    %35 = vector.load %arg5[%c2, %c0_23, %c0_24] : memref<3x64x128xf32, #tpu.memory_space<vmem>>, vector<1x64x128xf32>
    %36 = vector.shape_cast %35 : vector<1x64x128xf32> to vector<64x128xf32>
    %cst_25 = arith.constant dense<0.000000e+00> : vector<32x128xf32>
    %37 = tpu.matmul %27, %36, %cst_25 {dimension_numbers = #tpu.dot_dimension_numbers<[1], [0], [0], [1], [0, 0, 1, 1], [], []>, precision = #tpu.contract_precision<fp32>} : vector<32x64xf32>, vector<64x128xf32>, vector<32x128xf32> -> vector<32x128xf32>
    %38 = arith.addf %34, %37 : vector<32x128xf32>
    %c0_26 = arith.constant 0 : index
    %c0_27 = arith.constant 0 : index
    %39 = vector.load %arg6[%c0_26, %c0_27] : memref<1x128xf32, #tpu.memory_space<vmem>>, vector<1x128xf32>
    %40 = vector.broadcast %39 : vector<1x128xf32> to vector<32x128xf32>
    %41 = arith.mulf %38, %40 : vector<32x128xf32>
    %c0_28 = arith.constant 0 : index
    %c0_29 = arith.constant 0 : index
    %42 = vector.load %arg7[%c0_28, %c0_29] : memref<1x128xf32, #tpu.memory_space<vmem>>, vector<1x128xf32>
    %43 = vector.broadcast %42 : vector<1x128xf32> to vector<32x128xf32>
    %44 = arith.addf %41, %43 : vector<32x128xf32>
    %cst_30 = arith.constant 0.000000e+00 : f32
    %45 = vector.broadcast %cst_30 : f32 to vector<32x128xf32>
    %46 = arith.maximumf %44, %45 : vector<32x128xf32>
    %c0_31 = arith.constant 0 : index
    %c0_32 = arith.constant 0 : index
    %47 = vector.load %arg8[%c0_31, %c0_32] : memref<128x128xf32, #tpu.memory_space<vmem>>, vector<128x128xf32>
    %cst_33 = arith.constant dense<0.000000e+00> : vector<32x128xf32>
    %48 = tpu.matmul %46, %47, %cst_33 {dimension_numbers = #tpu.dot_dimension_numbers<[1], [0], [0], [1], [0, 0, 1, 1], [], []>, precision = #tpu.contract_precision<fp32>} : vector<32x128xf32>, vector<128x128xf32>, vector<32x128xf32> -> vector<32x128xf32>
    %c0_34 = arith.constant 0 : index
    %c0_35 = arith.constant 0 : index
    %49 = vector.load %arg10[%c0_34, %c0_35] : memref<1x128xf32, #tpu.memory_space<vmem>>, vector<1x128xf32>
    %50 = vector.broadcast %49 : vector<1x128xf32> to vector<32x128xf32>
    %51 = arith.addf %48, %50 : vector<32x128xf32>
    %c0_36 = arith.constant 0 : index
    %c0_37 = arith.constant 0 : index
    %52 = vector.load %arg17[%c0_36, %c0_37] : memref<32x128xf32, #tpu.memory_space<vmem>>, vector<32x128xf32>
    tpu.vector_store %arg17[%c0_36, %c0_37], %51 {strides = array<i32>} : memref<32x128xf32, #tpu.memory_space<vmem>>, vector<32x128xf32>,
    %cst_38 = arith.constant 0.000000e+00 : f32
    %53 = vector.broadcast %cst_38 : f32 to vector<2x32xf32>
    %cst_39 = arith.constant 0.000000e+00 : f32
    %54 = vector.broadcast %cst_39 : f32 to vector<2x32xf32>
    %c0_40 = arith.constant 0 : index
    %c0_41 = arith.constant 0 : index
    %55 = vector.load %arg17[%c0_40, %c0_41] : memref<32x128xf32, #tpu.memory_space<vmem>>, vector<2x128xf32>
    %c0_42 = arith.constant 0 : index
    %c0_43 = arith.constant 0 : index
    %56 = vector.load %arg9[%c0_42, %c0_43] : memref<32x128xf32, #tpu.memory_space<vmem>>, vector<32x128xf32>
    %cst_44 = arith.constant dense<0.000000e+00> : vector<2x128xf32>
    %57 = tpu.matmul %53, %56, %cst_44 {dimension_numbers = #tpu.dot_dimension_numbers<[1], [0], [0], [1], [0, 0, 1, 1], [], []>, precision = #tpu.contract_precision<fp32>} : vector<2x32xf32>, vector<32x128xf32>, vector<2x128xf32> -> vector<2x128xf32>
    %58 = arith.addf %55, %57 : vector<2x128xf32>
    %59 = vector.extract_strided_slice %58 {offsets = [0, 0], sizes = [2, 32], strides = [1, 1]} : vector<2x128xf32> to vector<2x32xf32>
    %60 = arith.negf %59 : vector<2x32xf32>
    %61 = math.exp %60 : vector<2x32xf32>
    %cst_45 = arith.constant 1.000000e+00 : f32
    %62 = vector.broadcast %cst_45 : f32 to vector<2x32xf32>
    %63 = arith.addf %62, %61 : vector<2x32xf32>
    %64 = arith.divf %62, %63 : vector<2x32xf32>
    %65 = vector.extract_strided_slice %58 {offsets = [0, 32], sizes = [2, 32], strides = [1, 1]} : vector<2x128xf32> to vector<2x32xf32>
    %66 = arith.negf %65 : vector<2x32xf32>
    %67 = math.exp %66 : vector<2x32xf32>
    %cst_46 = arith.constant 1.000000e+00 : f32
    %68 = vector.broadcast %cst_46 : f32 to vector<2x32xf32>
    %69 = arith.addf %68, %67 : vector<2x32xf32>
    %70 = arith.divf %68, %69 : vector<2x32xf32>
    %71 = vector.extract_strided_slice %58 {offsets = [0, 64], sizes = [2, 32], strides = [1, 1]} : vector<2x128xf32> to vector<2x32xf32>
    %72 = math.tanh %71 : vector<2x32xf32>
    %73 = vector.extract_strided_slice %58 {offsets = [0, 96], sizes = [2, 32], strides = [1, 1]} : vector<2x128xf32> to vector<2x32xf32>
    %74 = arith.negf %73 : vector<2x32xf32>
    %75 = math.exp %74 : vector<2x32xf32>
    %cst_47 = arith.constant 1.000000e+00 : f32
    %76 = vector.broadcast %cst_47 : f32 to vector<2x32xf32>
    %77 = arith.addf %76, %75 : vector<2x32xf32>
    %78 = arith.divf %76, %77 : vector<2x32xf32>
    %79 = arith.mulf %70, %54 : vector<2x32xf32>
    %80 = arith.mulf %64, %72 : vector<2x32xf32>
    %81 = arith.addf %79, %80 : vector<2x32xf32>
    %82 = math.tanh %81 : vector<2x32xf32>
    %83 = arith.mulf %78, %82 : vector<2x32xf32>
    %c0_48 = arith.constant 0 : index
    %c0_49 = arith.constant 0 : index
    %84 = vector.load %arg18[%c0_48, %c0_49] : memref<32x32xf32, #tpu.memory_space<vmem>>, vector<2x32xf32>
    tpu.vector_store %arg18[%c0_48, %c0_49], %83 {strides = array<i32>} : memref<32x32xf32, #tpu.memory_space<vmem>>, vector<2x32xf32>,
    %c2_50 = arith.constant 2 : index
    %c0_51 = arith.constant 0 : index
    %85 = vector.load %arg17[%c2_50, %c0_51] : memref<32x128xf32, #tpu.memory_space<vmem>>, vector<2x128xf32>
    %c0_52 = arith.constant 0 : index
    %c0_53 = arith.constant 0 : index
    %86 = vector.load %arg9[%c0_52, %c0_53] : memref<32x128xf32, #tpu.memory_space<vmem>>, vector<32x128xf32>
    %cst_54 = arith.constant dense<0.000000e+00> : vector<2x128xf32>
    %87 = tpu.matmul %83, %86, %cst_54 {dimension_numbers = #tpu.dot_dimension_numbers<[1], [0], [0], [1], [0, 0, 1, 1], [], []>, precision = #tpu.contract_precision<fp32>} : vector<2x32xf32>, vector<32x128xf32>, vector<2x128xf32> -> vector<2x128xf32>
    %88 = arith.addf %85, %87 : vector<2x128xf32>
    %89 = vector.extract_strided_slice %88 {offsets = [0, 0], sizes = [2, 32], strides = [1, 1]} : vector<2x128xf32> to vector<2x32xf32>
    %90 = arith.negf %89 : vector<2x32xf32>
    %91 = math.exp %90 : vector<2x32xf32>
    %cst_55 = arith.constant 1.000000e+00 : f32
    %92 = vector.broadcast %cst_55 : f32 to vector<2x32xf32>
    %93 = arith.addf %92, %91 : vector<2x32xf32>
    %94 = arith.divf %92, %93 : vector<2x32xf32>
    %95 = vector.extract_strided_slice %88 {offsets = [0, 32], sizes = [2, 32], strides = [1, 1]} : vector<2x128xf32> to vector<2x32xf32>
    %96 = arith.negf %95 : vector<2x32xf32>
    %97 = math.exp %96 : vector<2x32xf32>
    %cst_56 = arith.constant 1.000000e+00 : f32
    %98 = vector.broadcast %cst_56 : f32 to vector<2x32xf32>
    %99 = arith.addf %98, %97 : vector<2x32xf32>
    %100 = arith.divf %98, %99 : vector<2x32xf32>
    %101 = vector.extract_strided_slice %88 {offsets = [0, 64], sizes = [2, 32], strides = [1, 1]} : vector<2x128xf32> to vector<2x32xf32>
    %102 = math.tanh %101 : vector<2x32xf32>
    %103 = vector.extract_strided_slice %88 {offsets = [0, 96], sizes = [2, 32], strides = [1, 1]} : vector<2x128xf32> to vector<2x32xf32>
    %104 = arith.negf %103 : vector<2x32xf32>
    %105 = math.exp %104 : vector<2x32xf32>
    %cst_57 = arith.constant 1.000000e+00 : f32
    %106 = vector.broadcast %cst_57 : f32 to vector<2x32xf32>
    %107 = arith.addf %106, %105 : vector<2x32xf32>
    %108 = arith.divf %106, %107 : vector<2x32xf32>
    %109 = arith.mulf %100, %81 : vector<2x32xf32>
    %110 = arith.mulf %94, %102 : vector<2x32xf32>
    %111 = arith.addf %109, %110 : vector<2x32xf32>
    %112 = math.tanh %111 : vector<2x32xf32>
    %113 = arith.mulf %108, %112 : vector<2x32xf32>
    %c2_58 = arith.constant 2 : index
    %c0_59 = arith.constant 0 : index
    %114 = vector.load %arg18[%c2_58, %c0_59] : memref<32x32xf32, #tpu.memory_space<vmem>>, vector<2x32xf32>
    tpu.vector_store %arg18[%c2_58, %c0_59], %113 {strides = array<i32>} : memref<32x32xf32, #tpu.memory_space<vmem>>, vector<2x32xf32>,
    %c4 = arith.constant 4 : index
    %c0_60 = arith.constant 0 : index
    %115 = vector.load %arg17[%c4, %c0_60] : memref<32x128xf32, #tpu.memory_space<vmem>>, vector<2x128xf32>
    %c0_61 = arith.constant 0 : index
    %c0_62 = arith.constant 0 : index
    %116 = vector.load %arg9[%c0_61, %c0_62] : memref<32x128xf32, #tpu.memory_space<vmem>>, vector<32x128xf32>
    %cst_63 = arith.constant dense<0.000000e+00> : vector<2x128xf32>
    %117 = tpu.matmul %113, %116, %cst_63 {dimension_numbers = #tpu.dot_dimension_numbers<[1], [0], [0], [1], [0, 0, 1, 1], [], []>, precision = #tpu.contract_precision<fp32>} : vector<2x32xf32>, vector<32x128xf32>, vector<2x128xf32> -> vector<2x128xf32>
    %118 = arith.addf %115, %117 : vector<2x128xf32>
    %119 = vector.extract_strided_slice %118 {offsets = [0, 0], sizes = [2, 32], strides = [1, 1]} : vector<2x128xf32> to vector<2x32xf32>
    %120 = arith.negf %119 : vector<2x32xf32>
    %121 = math.exp %120 : vector<2x32xf32>
    %cst_64 = arith.constant 1.000000e+00 : f32
    %122 = vector.broadcast %cst_64 : f32 to vector<2x32xf32>
    %123 = arith.addf %122, %121 : vector<2x32xf32>
    %124 = arith.divf %122, %123 : vector<2x32xf32>
    %125 = vector.extract_strided_slice %118 {offsets = [0, 32], sizes = [2, 32], strides = [1, 1]} : vector<2x128xf32> to vector<2x32xf32>
    %126 = arith.negf %125 : vector<2x32xf32>
    %127 = math.exp %126 : vector<2x32xf32>
    %cst_65 = arith.constant 1.000000e+00 : f32
    %128 = vector.broadcast %cst_65 : f32 to vector<2x32xf32>
    %129 = arith.addf %128, %127 : vector<2x32xf32>
    %130 = arith.divf %128, %129 : vector<2x32xf32>
    %131 = vector.extract_strided_slice %118 {offsets = [0, 64], sizes = [2, 32], strides = [1, 1]} : vector<2x128xf32> to vector<2x32xf32>
    %132 = math.tanh %131 : vector<2x32xf32>
    %133 = vector.extract_strided_slice %118 {offsets = [0, 96], sizes = [2, 32], strides = [1, 1]} : vector<2x128xf32> to vector<2x32xf32>
    %134 = arith.negf %133 : vector<2x32xf32>
    %135 = math.exp %134 : vector<2x32xf32>
    %cst_66 = arith.constant 1.000000e+00 : f32
    %136 = vector.broadcast %cst_66 : f32 to vector<2x32xf32>
    %137 = arith.addf %136, %135 : vector<2x32xf32>
    %138 = arith.divf %136, %137 : vector<2x32xf32>
    %139 = arith.mulf %130, %111 : vector<2x32xf32>
    %140 = arith.mulf %124, %132 : vector<2x32xf32>
    %141 = arith.addf %139, %140 : vector<2x32xf32>
    %142 = math.tanh %141 : vector<2x32xf32>
    %143 = arith.mulf %138, %142 : vector<2x32xf32>
    %c4_67 = arith.constant 4 : index
    %c0_68 = arith.constant 0 : index
    %144 = vector.load %arg18[%c4_67, %c0_68] : memref<32x32xf32, #tpu.memory_space<vmem>>, vector<2x32xf32>
    tpu.vector_store %arg18[%c4_67, %c0_68], %143 {strides = array<i32>} : memref<32x32xf32, #tpu.memory_space<vmem>>, vector<2x32xf32>,
    %c6 = arith.constant 6 : index
    %c0_69 = arith.constant 0 : index
    %145 = vector.load %arg17[%c6, %c0_69] : memref<32x128xf32, #tpu.memory_space<vmem>>, vector<2x128xf32>
    %c0_70 = arith.constant 0 : index
    %c0_71 = arith.constant 0 : index
    %146 = vector.load %arg9[%c0_70, %c0_71] : memref<32x128xf32, #tpu.memory_space<vmem>>, vector<32x128xf32>
    %cst_72 = arith.constant dense<0.000000e+00> : vector<2x128xf32>
    %147 = tpu.matmul %143, %146, %cst_72 {dimension_numbers = #tpu.dot_dimension_numbers<[1], [0], [0], [1], [0, 0, 1, 1], [], []>, precision = #tpu.contract_precision<fp32>} : vector<2x32xf32>, vector<32x128xf32>, vector<2x128xf32> -> vector<2x128xf32>
    %148 = arith.addf %145, %147 : vector<2x128xf32>
    %149 = vector.extract_strided_slice %148 {offsets = [0, 0], sizes = [2, 32], strides = [1, 1]} : vector<2x128xf32> to vector<2x32xf32>
    %150 = arith.negf %149 : vector<2x32xf32>
    %151 = math.exp %150 : vector<2x32xf32>
    %cst_73 = arith.constant 1.000000e+00 : f32
    %152 = vector.broadcast %cst_73 : f32 to vector<2x32xf32>
    %153 = arith.addf %152, %151 : vector<2x32xf32>
    %154 = arith.divf %152, %153 : vector<2x32xf32>
    %155 = vector.extract_strided_slice %148 {offsets = [0, 32], sizes = [2, 32], strides = [1, 1]} : vector<2x128xf32> to vector<2x32xf32>
    %156 = arith.negf %155 : vector<2x32xf32>
    %157 = math.exp %156 : vector<2x32xf32>
    %cst_74 = arith.constant 1.000000e+00 : f32
    %158 = vector.broadcast %cst_74 : f32 to vector<2x32xf32>
    %159 = arith.addf %158, %157 : vector<2x32xf32>
    %160 = arith.divf %158, %159 : vector<2x32xf32>
    %161 = vector.extract_strided_slice %148 {offsets = [0, 64], sizes = [2, 32], strides = [1, 1]} : vector<2x128xf32> to vector<2x32xf32>
    %162 = math.tanh %161 : vector<2x32xf32>
    %163 = vector.extract_strided_slice %148 {offsets = [0, 96], sizes = [2, 32], strides = [1, 1]} : vector<2x128xf32> to vector<2x32xf32>
    %164 = arith.negf %163 : vector<2x32xf32>
    %165 = math.exp %164 : vector<2x32xf32>
    %cst_75 = arith.constant 1.000000e+00 : f32
    %166 = vector.broadcast %cst_75 : f32 to vector<2x32xf32>
    %167 = arith.addf %166, %165 : vector<2x32xf32>
    %168 = arith.divf %166, %167 : vector<2x32xf32>
    %169 = arith.mulf %160, %141 : vector<2x32xf32>
    %170 = arith.mulf %154, %162 : vector<2x32xf32>
    %171 = arith.addf %169, %170 : vector<2x32xf32>
    %172 = math.tanh %171 : vector<2x32xf32>
    %173 = arith.mulf %168, %172 : vector<2x32xf32>
    %c6_76 = arith.constant 6 : index
    %c0_77 = arith.constant 0 : index
    %174 = vector.load %arg18[%c6_76, %c0_77] : memref<32x32xf32, #tpu.memory_space<vmem>>, vector<2x32xf32>
    tpu.vector_store %arg18[%c6_76, %c0_77], %173 {strides = array<i32>} : memref<32x32xf32, #tpu.memory_space<vmem>>, vector<2x32xf32>,
    %c8 = arith.constant 8 : index
    %c0_78 = arith.constant 0 : index
    %175 = vector.load %arg17[%c8, %c0_78] : memref<32x128xf32, #tpu.memory_space<vmem>>, vector<2x128xf32>
    %c0_79 = arith.constant 0 : index
    %c0_80 = arith.constant 0 : index
    %176 = vector.load %arg9[%c0_79, %c0_80] : memref<32x128xf32, #tpu.memory_space<vmem>>, vector<32x128xf32>
    %cst_81 = arith.constant dense<0.000000e+00> : vector<2x128xf32>
    %177 = tpu.matmul %173, %176, %cst_81 {dimension_numbers = #tpu.dot_dimension_numbers<[1], [0], [0], [1], [0, 0, 1, 1], [], []>, precision = #tpu.contract_precision<fp32>} : vector<2x32xf32>, vector<32x128xf32>, vector<2x128xf32> -> vector<2x128xf32>
    %178 = arith.addf %175, %177 : vector<2x128xf32>
    %179 = vector.extract_strided_slice %178 {offsets = [0, 0], sizes = [2, 32], strides = [1, 1]} : vector<2x128xf32> to vector<2x32xf32>
    %180 = arith.negf %179 : vector<2x32xf32>
    %181 = math.exp %180 : vector<2x32xf32>
    %cst_82 = arith.constant 1.000000e+00 : f32
    %182 = vector.broadcast %cst_82 : f32 to vector<2x32xf32>
    %183 = arith.addf %182, %181 : vector<2x32xf32>
    %184 = arith.divf %182, %183 : vector<2x32xf32>
    %185 = vector.extract_strided_slice %178 {offsets = [0, 32], sizes = [2, 32], strides = [1, 1]} : vector<2x128xf32> to vector<2x32xf32>
    %186 = arith.negf %185 : vector<2x32xf32>
    %187 = math.exp %186 : vector<2x32xf32>
    %cst_83 = arith.constant 1.000000e+00 : f32
    %188 = vector.broadcast %cst_83 : f32 to vector<2x32xf32>
    %189 = arith.addf %188, %187 : vector<2x32xf32>
    %190 = arith.divf %188, %189 : vector<2x32xf32>
    %191 = vector.extract_strided_slice %178 {offsets = [0, 64], sizes = [2, 32], strides = [1, 1]} : vector<2x128xf32> to vector<2x32xf32>
    %192 = math.tanh %191 : vector<2x32xf32>
    %193 = vector.extract_strided_slice %178 {offsets = [0, 96], sizes = [2, 32], strides = [1, 1]} : vector<2x128xf32> to vector<2x32xf32>
    %194 = arith.negf %193 : vector<2x32xf32>
    %195 = math.exp %194 : vector<2x32xf32>
    %cst_84 = arith.constant 1.000000e+00 : f32
    %196 = vector.broadcast %cst_84 : f32 to vector<2x32xf32>
    %197 = arith.addf %196, %195 : vector<2x32xf32>
    %198 = arith.divf %196, %197 : vector<2x32xf32>
    %199 = arith.mulf %190, %171 : vector<2x32xf32>
    %200 = arith.mulf %184, %192 : vector<2x32xf32>
    %201 = arith.addf %199, %200 : vector<2x32xf32>
    %202 = math.tanh %201 : vector<2x32xf32>
    %203 = arith.mulf %198, %202 : vector<2x32xf32>
    %c8_85 = arith.constant 8 : index
    %c0_86 = arith.constant 0 : index
    %204 = vector.load %arg18[%c8_85, %c0_86] : memref<32x32xf32, #tpu.memory_space<vmem>>, vector<2x32xf32>
    tpu.vector_store %arg18[%c8_85, %c0_86], %203 {strides = array<i32>} : memref<32x32xf32, #tpu.memory_space<vmem>>, vector<2x32xf32>,
    %c10 = arith.constant 10 : index
    %c0_87 = arith.constant 0 : index
    %205 = vector.load %arg17[%c10, %c0_87] : memref<32x128xf32, #tpu.memory_space<vmem>>, vector<2x128xf32>
    %c0_88 = arith.constant 0 : index
    %c0_89 = arith.constant 0 : index
    %206 = vector.load %arg9[%c0_88, %c0_89] : memref<32x128xf32, #tpu.memory_space<vmem>>, vector<32x128xf32>
    %cst_90 = arith.constant dense<0.000000e+00> : vector<2x128xf32>
    %207 = tpu.matmul %203, %206, %cst_90 {dimension_numbers = #tpu.dot_dimension_numbers<[1], [0], [0], [1], [0, 0, 1, 1], [], []>, precision = #tpu.contract_precision<fp32>} : vector<2x32xf32>, vector<32x128xf32>, vector<2x128xf32> -> vector<2x128xf32>
    %208 = arith.addf %205, %207 : vector<2x128xf32>
    %209 = vector.extract_strided_slice %208 {offsets = [0, 0], sizes = [2, 32], strides = [1, 1]} : vector<2x128xf32> to vector<2x32xf32>
    %210 = arith.negf %209 : vector<2x32xf32>
    %211 = math.exp %210 : vector<2x32xf32>
    %cst_91 = arith.constant 1.000000e+00 : f32
    %212 = vector.broadcast %cst_91 : f32 to vector<2x32xf32>
    %213 = arith.addf %212, %211 : vector<2x32xf32>
    %214 = arith.divf %212, %213 : vector<2x32xf32>
    %215 = vector.extract_strided_slice %208 {offsets = [0, 32], sizes = [2, 32], strides = [1, 1]} : vector<2x128xf32> to vector<2x32xf32>
    %216 = arith.negf %215 : vector<2x32xf32>
    %217 = math.exp %216 : vector<2x32xf32>
    %cst_92 = arith.constant 1.000000e+00 : f32
    %218 = vector.broadcast %cst_92 : f32 to vector<2x32xf32>
    %219 = arith.addf %218, %217 : vector<2x32xf32>
    %220 = arith.divf %218, %219 : vector<2x32xf32>
    %221 = vector.extract_strided_slice %208 {offsets = [0, 64], sizes = [2, 32], strides = [1, 1]} : vector<2x128xf32> to vector<2x32xf32>
    %222 = math.tanh %221 : vector<2x32xf32>
    %223 = vector.extract_strided_slice %208 {offsets = [0, 96], sizes = [2, 32], strides = [1, 1]} : vector<2x128xf32> to vector<2x32xf32>
    %224 = arith.negf %223 : vector<2x32xf32>
    %225 = math.exp %224 : vector<2x32xf32>
    %cst_93 = arith.constant 1.000000e+00 : f32
    %226 = vector.broadcast %cst_93 : f32 to vector<2x32xf32>
    %227 = arith.addf %226, %225 : vector<2x32xf32>
    %228 = arith.divf %226, %227 : vector<2x32xf32>
    %229 = arith.mulf %220, %201 : vector<2x32xf32>
    %230 = arith.mulf %214, %222 : vector<2x32xf32>
    %231 = arith.addf %229, %230 : vector<2x32xf32>
    %232 = math.tanh %231 : vector<2x32xf32>
    %233 = arith.mulf %228, %232 : vector<2x32xf32>
    %c10_94 = arith.constant 10 : index
    %c0_95 = arith.constant 0 : index
    %234 = vector.load %arg18[%c10_94, %c0_95] : memref<32x32xf32, #tpu.memory_space<vmem>>, vector<2x32xf32>
    tpu.vector_store %arg18[%c10_94, %c0_95], %233 {strides = array<i32>} : memref<32x32xf32, #tpu.memory_space<vmem>>, vector<2x32xf32>,
    %c12 = arith.constant 12 : index
    %c0_96 = arith.constant 0 : index
    %235 = vector.load %arg17[%c12, %c0_96] : memref<32x128xf32, #tpu.memory_space<vmem>>, vector<2x128xf32>
    %c0_97 = arith.constant 0 : index
    %c0_98 = arith.constant 0 : index
    %236 = vector.load %arg9[%c0_97, %c0_98] : memref<32x128xf32, #tpu.memory_space<vmem>>, vector<32x128xf32>
    %cst_99 = arith.constant dense<0.000000e+00> : vector<2x128xf32>
    %237 = tpu.matmul %233, %236, %cst_99 {dimension_numbers = #tpu.dot_dimension_numbers<[1], [0], [0], [1], [0, 0, 1, 1], [], []>, precision = #tpu.contract_precision<fp32>} : vector<2x32xf32>, vector<32x128xf32>, vector<2x128xf32> -> vector<2x128xf32>
    %238 = arith.addf %235, %237 : vector<2x128xf32>
    %239 = vector.extract_strided_slice %238 {offsets = [0, 0], sizes = [2, 32], strides = [1, 1]} : vector<2x128xf32> to vector<2x32xf32>
    %240 = arith.negf %239 : vector<2x32xf32>
    %241 = math.exp %240 : vector<2x32xf32>
    %cst_100 = arith.constant 1.000000e+00 : f32
    %242 = vector.broadcast %cst_100 : f32 to vector<2x32xf32>
    %243 = arith.addf %242, %241 : vector<2x32xf32>
    %244 = arith.divf %242, %243 : vector<2x32xf32>
    %245 = vector.extract_strided_slice %238 {offsets = [0, 32], sizes = [2, 32], strides = [1, 1]} : vector<2x128xf32> to vector<2x32xf32>
    %246 = arith.negf %245 : vector<2x32xf32>
    %247 = math.exp %246 : vector<2x32xf32>
    %cst_101 = arith.constant 1.000000e+00 : f32
    %248 = vector.broadcast %cst_101 : f32 to vector<2x32xf32>
    %249 = arith.addf %248, %247 : vector<2x32xf32>
    %250 = arith.divf %248, %249 : vector<2x32xf32>
    %251 = vector.extract_strided_slice %238 {offsets = [0, 64], sizes = [2, 32], strides = [1, 1]} : vector<2x128xf32> to vector<2x32xf32>
    %252 = math.tanh %251 : vector<2x32xf32>
    %253 = vector.extract_strided_slice %238 {offsets = [0, 96], sizes = [2, 32], strides = [1, 1]} : vector<2x128xf32> to vector<2x32xf32>
    %254 = arith.negf %253 : vector<2x32xf32>
    %255 = math.exp %254 : vector<2x32xf32>
    %cst_102 = arith.constant 1.000000e+00 : f32
    %256 = vector.broadcast %cst_102 : f32 to vector<2x32xf32>
    %257 = arith.addf %256, %255 : vector<2x32xf32>
    %258 = arith.divf %256, %257 : vector<2x32xf32>
    %259 = arith.mulf %250, %231 : vector<2x32xf32>
    %260 = arith.mulf %244, %252 : vector<2x32xf32>
    %261 = arith.addf %259, %260 : vector<2x32xf32>
    %262 = math.tanh %261 : vector<2x32xf32>
    %263 = arith.mulf %258, %262 : vector<2x32xf32>
    %c12_103 = arith.constant 12 : index
    %c0_104 = arith.constant 0 : index
    %264 = vector.load %arg18[%c12_103, %c0_104] : memref<32x32xf32, #tpu.memory_space<vmem>>, vector<2x32xf32>
    tpu.vector_store %arg18[%c12_103, %c0_104], %263 {strides = array<i32>} : memref<32x32xf32, #tpu.memory_space<vmem>>, vector<2x32xf32>,
    %c14 = arith.constant 14 : index
    %c0_105 = arith.constant 0 : index
    %265 = vector.load %arg17[%c14, %c0_105] : memref<32x128xf32, #tpu.memory_space<vmem>>, vector<2x128xf32>
    %c0_106 = arith.constant 0 : index
    %c0_107 = arith.constant 0 : index
    %266 = vector.load %arg9[%c0_106, %c0_107] : memref<32x128xf32, #tpu.memory_space<vmem>>, vector<32x128xf32>
    %cst_108 = arith.constant dense<0.000000e+00> : vector<2x128xf32>
    %267 = tpu.matmul %263, %266, %cst_108 {dimension_numbers = #tpu.dot_dimension_numbers<[1], [0], [0], [1], [0, 0, 1, 1], [], []>, precision = #tpu.contract_precision<fp32>} : vector<2x32xf32>, vector<32x128xf32>, vector<2x128xf32> -> vector<2x128xf32>
    %268 = arith.addf %265, %267 : vector<2x128xf32>
    %269 = vector.extract_strided_slice %268 {offsets = [0, 0], sizes = [2, 32], strides = [1, 1]} : vector<2x128xf32> to vector<2x32xf32>
    %270 = arith.negf %269 : vector<2x32xf32>
    %271 = math.exp %270 : vector<2x32xf32>
    %cst_109 = arith.constant 1.000000e+00 : f32
    %272 = vector.broadcast %cst_109 : f32 to vector<2x32xf32>
    %273 = arith.addf %272, %271 : vector<2x32xf32>
    %274 = arith.divf %272, %273 : vector<2x32xf32>
    %275 = vector.extract_strided_slice %268 {offsets = [0, 32], sizes = [2, 32], strides = [1, 1]} : vector<2x128xf32> to vector<2x32xf32>
    %276 = arith.negf %275 : vector<2x32xf32>
    %277 = math.exp %276 : vector<2x32xf32>
    %cst_110 = arith.constant 1.000000e+00 : f32
    %278 = vector.broadcast %cst_110 : f32 to vector<2x32xf32>
    %279 = arith.addf %278, %277 : vector<2x32xf32>
    %280 = arith.divf %278, %279 : vector<2x32xf32>
    %281 = vector.extract_strided_slice %268 {offsets = [0, 64], sizes = [2, 32], strides = [1, 1]} : vector<2x128xf32> to vector<2x32xf32>
    %282 = math.tanh %281 : vector<2x32xf32>
    %283 = vector.extract_strided_slice %268 {offsets = [0, 96], sizes = [2, 32], strides = [1, 1]} : vector<2x128xf32> to vector<2x32xf32>
    %284 = arith.negf %283 : vector<2x32xf32>
    %285 = math.exp %284 : vector<2x32xf32>
    %cst_111 = arith.constant 1.000000e+00 : f32
    %286 = vector.broadcast %cst_111 : f32 to vector<2x32xf32>
    %287 = arith.addf %286, %285 : vector<2x32xf32>
    %288 = arith.divf %286, %287 : vector<2x32xf32>
    %289 = arith.mulf %280, %261 : vector<2x32xf32>
    %290 = arith.mulf %274, %282 : vector<2x32xf32>
    %291 = arith.addf %289, %290 : vector<2x32xf32>
    %292 = math.tanh %291 : vector<2x32xf32>
    %293 = arith.mulf %288, %292 : vector<2x32xf32>
    %c14_112 = arith.constant 14 : index
    %c0_113 = arith.constant 0 : index
    %294 = vector.load %arg18[%c14_112, %c0_113] : memref<32x32xf32, #tpu.memory_space<vmem>>, vector<2x32xf32>
    tpu.vector_store %arg18[%c14_112, %c0_113], %293 {strides = array<i32>} : memref<32x32xf32, #tpu.memory_space<vmem>>, vector<2x32xf32>,
    %c16 = arith.constant 16 : index
    %c0_114 = arith.constant 0 : index
    %295 = vector.load %arg17[%c16, %c0_114] : memref<32x128xf32, #tpu.memory_space<vmem>>, vector<2x128xf32>
    %c0_115 = arith.constant 0 : index
    %c0_116 = arith.constant 0 : index
    %296 = vector.load %arg9[%c0_115, %c0_116] : memref<32x128xf32, #tpu.memory_space<vmem>>, vector<32x128xf32>
    %cst_117 = arith.constant dense<0.000000e+00> : vector<2x128xf32>
    %297 = tpu.matmul %293, %296, %cst_117 {dimension_numbers = #tpu.dot_dimension_numbers<[1], [0], [0], [1], [0, 0, 1, 1], [], []>, precision = #tpu.contract_precision<fp32>} : vector<2x32xf32>, vector<32x128xf32>, vector<2x128xf32> -> vector<2x128xf32>
    %298 = arith.addf %295, %297 : vector<2x128xf32>
    %299 = vector.extract_strided_slice %298 {offsets = [0, 0], sizes = [2, 32], strides = [1, 1]} : vector<2x128xf32> to vector<2x32xf32>
    %300 = arith.negf %299 : vector<2x32xf32>
    %301 = math.exp %300 : vector<2x32xf32>
    %cst_118 = arith.constant 1.000000e+00 : f32
    %302 = vector.broadcast %cst_118 : f32 to vector<2x32xf32>
    %303 = arith.addf %302, %301 : vector<2x32xf32>
    %304 = arith.divf %302, %303 : vector<2x32xf32>
    %305 = vector.extract_strided_slice %298 {offsets = [0, 32], sizes = [2, 32], strides = [1, 1]} : vector<2x128xf32> to vector<2x32xf32>
    %306 = arith.negf %305 : vector<2x32xf32>
    %307 = math.exp %306 : vector<2x32xf32>
    %cst_119 = arith.constant 1.000000e+00 : f32
    %308 = vector.broadcast %cst_119 : f32 to vector<2x32xf32>
    %309 = arith.addf %308, %307 : vector<2x32xf32>
    %310 = arith.divf %308, %309 : vector<2x32xf32>
    %311 = vector.extract_strided_slice %298 {offsets = [0, 64], sizes = [2, 32], strides = [1, 1]} : vector<2x128xf32> to vector<2x32xf32>
    %312 = math.tanh %311 : vector<2x32xf32>
    %313 = vector.extract_strided_slice %298 {offsets = [0, 96], sizes = [2, 32], strides = [1, 1]} : vector<2x128xf32> to vector<2x32xf32>
    %314 = arith.negf %313 : vector<2x32xf32>
    %315 = math.exp %314 : vector<2x32xf32>
    %cst_120 = arith.constant 1.000000e+00 : f32
    %316 = vector.broadcast %cst_120 : f32 to vector<2x32xf32>
    %317 = arith.addf %316, %315 : vector<2x32xf32>
    %318 = arith.divf %316, %317 : vector<2x32xf32>
    %319 = arith.mulf %310, %291 : vector<2x32xf32>
    %320 = arith.mulf %304, %312 : vector<2x32xf32>
    %321 = arith.addf %319, %320 : vector<2x32xf32>
    %322 = math.tanh %321 : vector<2x32xf32>
    %323 = arith.mulf %318, %322 : vector<2x32xf32>
    %c16_121 = arith.constant 16 : index
    %c0_122 = arith.constant 0 : index
    %324 = vector.load %arg18[%c16_121, %c0_122] : memref<32x32xf32, #tpu.memory_space<vmem>>, vector<2x32xf32>
    tpu.vector_store %arg18[%c16_121, %c0_122], %323 {strides = array<i32>} : memref<32x32xf32, #tpu.memory_space<vmem>>, vector<2x32xf32>,
    %c18 = arith.constant 18 : index
    %c0_123 = arith.constant 0 : index
    %325 = vector.load %arg17[%c18, %c0_123] : memref<32x128xf32, #tpu.memory_space<vmem>>, vector<2x128xf32>
    %c0_124 = arith.constant 0 : index
    %c0_125 = arith.constant 0 : index
    %326 = vector.load %arg9[%c0_124, %c0_125] : memref<32x128xf32, #tpu.memory_space<vmem>>, vector<32x128xf32>
    %cst_126 = arith.constant dense<0.000000e+00> : vector<2x128xf32>
    %327 = tpu.matmul %323, %326, %cst_126 {dimension_numbers = #tpu.dot_dimension_numbers<[1], [0], [0], [1], [0, 0, 1, 1], [], []>, precision = #tpu.contract_precision<fp32>} : vector<2x32xf32>, vector<32x128xf32>, vector<2x128xf32> -> vector<2x128xf32>
    %328 = arith.addf %325, %327 : vector<2x128xf32>
    %329 = vector.extract_strided_slice %328 {offsets = [0, 0], sizes = [2, 32], strides = [1, 1]} : vector<2x128xf32> to vector<2x32xf32>
    %330 = arith.negf %329 : vector<2x32xf32>
    %331 = math.exp %330 : vector<2x32xf32>
    %cst_127 = arith.constant 1.000000e+00 : f32
    %332 = vector.broadcast %cst_127 : f32 to vector<2x32xf32>
    %333 = arith.addf %332, %331 : vector<2x32xf32>
    %334 = arith.divf %332, %333 : vector<2x32xf32>
    %335 = vector.extract_strided_slice %328 {offsets = [0, 32], sizes = [2, 32], strides = [1, 1]} : vector<2x128xf32> to vector<2x32xf32>
    %336 = arith.negf %335 : vector<2x32xf32>
    %337 = math.exp %336 : vector<2x32xf32>
    %cst_128 = arith.constant 1.000000e+00 : f32
    %338 = vector.broadcast %cst_128 : f32 to vector<2x32xf32>
    %339 = arith.addf %338, %337 : vector<2x32xf32>
    %340 = arith.divf %338, %339 : vector<2x32xf32>
    %341 = vector.extract_strided_slice %328 {offsets = [0, 64], sizes = [2, 32], strides = [1, 1]} : vector<2x128xf32> to vector<2x32xf32>
    %342 = math.tanh %341 : vector<2x32xf32>
    %343 = vector.extract_strided_slice %328 {offsets = [0, 96], sizes = [2, 32], strides = [1, 1]} : vector<2x128xf32> to vector<2x32xf32>
    %344 = arith.negf %343 : vector<2x32xf32>
    %345 = math.exp %344 : vector<2x32xf32>
    %cst_129 = arith.constant 1.000000e+00 : f32
    %346 = vector.broadcast %cst_129 : f32 to vector<2x32xf32>
    %347 = arith.addf %346, %345 : vector<2x32xf32>
    %348 = arith.divf %346, %347 : vector<2x32xf32>
    %349 = arith.mulf %340, %321 : vector<2x32xf32>
    %350 = arith.mulf %334, %342 : vector<2x32xf32>
    %351 = arith.addf %349, %350 : vector<2x32xf32>
    %352 = math.tanh %351 : vector<2x32xf32>
    %353 = arith.mulf %348, %352 : vector<2x32xf32>
    %c18_130 = arith.constant 18 : index
    %c0_131 = arith.constant 0 : index
    %354 = vector.load %arg18[%c18_130, %c0_131] : memref<32x32xf32, #tpu.memory_space<vmem>>, vector<2x32xf32>
    tpu.vector_store %arg18[%c18_130, %c0_131], %353 {strides = array<i32>} : memref<32x32xf32, #tpu.memory_space<vmem>>, vector<2x32xf32>,
    %c20 = arith.constant 20 : index
    %c0_132 = arith.constant 0 : index
    %355 = vector.load %arg17[%c20, %c0_132] : memref<32x128xf32, #tpu.memory_space<vmem>>, vector<2x128xf32>
    %c0_133 = arith.constant 0 : index
    %c0_134 = arith.constant 0 : index
    %356 = vector.load %arg9[%c0_133, %c0_134] : memref<32x128xf32, #tpu.memory_space<vmem>>, vector<32x128xf32>
    %cst_135 = arith.constant dense<0.000000e+00> : vector<2x128xf32>
    %357 = tpu.matmul %353, %356, %cst_135 {dimension_numbers = #tpu.dot_dimension_numbers<[1], [0], [0], [1], [0, 0, 1, 1], [], []>, precision = #tpu.contract_precision<fp32>} : vector<2x32xf32>, vector<32x128xf32>, vector<2x128xf32> -> vector<2x128xf32>
    %358 = arith.addf %355, %357 : vector<2x128xf32>
    %359 = vector.extract_strided_slice %358 {offsets = [0, 0], sizes = [2, 32], strides = [1, 1]} : vector<2x128xf32> to vector<2x32xf32>
    %360 = arith.negf %359 : vector<2x32xf32>
    %361 = math.exp %360 : vector<2x32xf32>
    %cst_136 = arith.constant 1.000000e+00 : f32
    %362 = vector.broadcast %cst_136 : f32 to vector<2x32xf32>
    %363 = arith.addf %362, %361 : vector<2x32xf32>
    %364 = arith.divf %362, %363 : vector<2x32xf32>
    %365 = vector.extract_strided_slice %358 {offsets = [0, 32], sizes = [2, 32], strides = [1, 1]} : vector<2x128xf32> to vector<2x32xf32>
    %366 = arith.negf %365 : vector<2x32xf32>
    %367 = math.exp %366 : vector<2x32xf32>
    %cst_137 = arith.constant 1.000000e+00 : f32
    %368 = vector.broadcast %cst_137 : f32 to vector<2x32xf32>
    %369 = arith.addf %368, %367 : vector<2x32xf32>
    %370 = arith.divf %368, %369 : vector<2x32xf32>
    %371 = vector.extract_strided_slice %358 {offsets = [0, 64], sizes = [2, 32], strides = [1, 1]} : vector<2x128xf32> to vector<2x32xf32>
    %372 = math.tanh %371 : vector<2x32xf32>
    %373 = vector.extract_strided_slice %358 {offsets = [0, 96], sizes = [2, 32], strides = [1, 1]} : vector<2x128xf32> to vector<2x32xf32>
    %374 = arith.negf %373 : vector<2x32xf32>
    %375 = math.exp %374 : vector<2x32xf32>
    %cst_138 = arith.constant 1.000000e+00 : f32
    %376 = vector.broadcast %cst_138 : f32 to vector<2x32xf32>
    %377 = arith.addf %376, %375 : vector<2x32xf32>
    %378 = arith.divf %376, %377 : vector<2x32xf32>
    %379 = arith.mulf %370, %351 : vector<2x32xf32>
    %380 = arith.mulf %364, %372 : vector<2x32xf32>
    %381 = arith.addf %379, %380 : vector<2x32xf32>
    %382 = math.tanh %381 : vector<2x32xf32>
    %383 = arith.mulf %378, %382 : vector<2x32xf32>
    %c20_139 = arith.constant 20 : index
    %c0_140 = arith.constant 0 : index
    %384 = vector.load %arg18[%c20_139, %c0_140] : memref<32x32xf32, #tpu.memory_space<vmem>>, vector<2x32xf32>
    tpu.vector_store %arg18[%c20_139, %c0_140], %383 {strides = array<i32>} : memref<32x32xf32, #tpu.memory_space<vmem>>, vector<2x32xf32>,
    %c22 = arith.constant 22 : index
    %c0_141 = arith.constant 0 : index
    %385 = vector.load %arg17[%c22, %c0_141] : memref<32x128xf32, #tpu.memory_space<vmem>>, vector<2x128xf32>
    %c0_142 = arith.constant 0 : index
    %c0_143 = arith.constant 0 : index
    %386 = vector.load %arg9[%c0_142, %c0_143] : memref<32x128xf32, #tpu.memory_space<vmem>>, vector<32x128xf32>
    %cst_144 = arith.constant dense<0.000000e+00> : vector<2x128xf32>
    %387 = tpu.matmul %383, %386, %cst_144 {dimension_numbers = #tpu.dot_dimension_numbers<[1], [0], [0], [1], [0, 0, 1, 1], [], []>, precision = #tpu.contract_precision<fp32>} : vector<2x32xf32>, vector<32x128xf32>, vector<2x128xf32> -> vector<2x128xf32>
    %388 = arith.addf %385, %387 : vector<2x128xf32>
    %389 = vector.extract_strided_slice %388 {offsets = [0, 0], sizes = [2, 32], strides = [1, 1]} : vector<2x128xf32> to vector<2x32xf32>
    %390 = arith.negf %389 : vector<2x32xf32>
    %391 = math.exp %390 : vector<2x32xf32>
    %cst_145 = arith.constant 1.000000e+00 : f32
    %392 = vector.broadcast %cst_145 : f32 to vector<2x32xf32>
    %393 = arith.addf %392, %391 : vector<2x32xf32>
    %394 = arith.divf %392, %393 : vector<2x32xf32>
    %395 = vector.extract_strided_slice %388 {offsets = [0, 32], sizes = [2, 32], strides = [1, 1]} : vector<2x128xf32> to vector<2x32xf32>
    %396 = arith.negf %395 : vector<2x32xf32>
    %397 = math.exp %396 : vector<2x32xf32>
    %cst_146 = arith.constant 1.000000e+00 : f32
    %398 = vector.broadcast %cst_146 : f32 to vector<2x32xf32>
    %399 = arith.addf %398, %397 : vector<2x32xf32>
    %400 = arith.divf %398, %399 : vector<2x32xf32>
    %401 = vector.extract_strided_slice %388 {offsets = [0, 64], sizes = [2, 32], strides = [1, 1]} : vector<2x128xf32> to vector<2x32xf32>
    %402 = math.tanh %401 : vector<2x32xf32>
    %403 = vector.extract_strided_slice %388 {offsets = [0, 96], sizes = [2, 32], strides = [1, 1]} : vector<2x128xf32> to vector<2x32xf32>
    %404 = arith.negf %403 : vector<2x32xf32>
    %405 = math.exp %404 : vector<2x32xf32>
    %cst_147 = arith.constant 1.000000e+00 : f32
    %406 = vector.broadcast %cst_147 : f32 to vector<2x32xf32>
    %407 = arith.addf %406, %405 : vector<2x32xf32>
    %408 = arith.divf %406, %407 : vector<2x32xf32>
    %409 = arith.mulf %400, %381 : vector<2x32xf32>
    %410 = arith.mulf %394, %402 : vector<2x32xf32>
    %411 = arith.addf %409, %410 : vector<2x32xf32>
    %412 = math.tanh %411 : vector<2x32xf32>
    %413 = arith.mulf %408, %412 : vector<2x32xf32>
    %c22_148 = arith.constant 22 : index
    %c0_149 = arith.constant 0 : index
    %414 = vector.load %arg18[%c22_148, %c0_149] : memref<32x32xf32, #tpu.memory_space<vmem>>, vector<2x32xf32>
    tpu.vector_store %arg18[%c22_148, %c0_149], %413 {strides = array<i32>} : memref<32x32xf32, #tpu.memory_space<vmem>>, vector<2x32xf32>,
    %c24 = arith.constant 24 : index
    %c0_150 = arith.constant 0 : index
    %415 = vector.load %arg17[%c24, %c0_150] : memref<32x128xf32, #tpu.memory_space<vmem>>, vector<2x128xf32>
    %c0_151 = arith.constant 0 : index
    %c0_152 = arith.constant 0 : index
    %416 = vector.load %arg9[%c0_151, %c0_152] : memref<32x128xf32, #tpu.memory_space<vmem>>, vector<32x128xf32>
    %cst_153 = arith.constant dense<0.000000e+00> : vector<2x128xf32>
    %417 = tpu.matmul %413, %416, %cst_153 {dimension_numbers = #tpu.dot_dimension_numbers<[1], [0], [0], [1], [0, 0, 1, 1], [], []>, precision = #tpu.contract_precision<fp32>} : vector<2x32xf32>, vector<32x128xf32>, vector<2x128xf32> -> vector<2x128xf32>
    %418 = arith.addf %415, %417 : vector<2x128xf32>
    %419 = vector.extract_strided_slice %418 {offsets = [0, 0], sizes = [2, 32], strides = [1, 1]} : vector<2x128xf32> to vector<2x32xf32>
    %420 = arith.negf %419 : vector<2x32xf32>
    %421 = math.exp %420 : vector<2x32xf32>
    %cst_154 = arith.constant 1.000000e+00 : f32
    %422 = vector.broadcast %cst_154 : f32 to vector<2x32xf32>
    %423 = arith.addf %422, %421 : vector<2x32xf32>
    %424 = arith.divf %422, %423 : vector<2x32xf32>
    %425 = vector.extract_strided_slice %418 {offsets = [0, 32], sizes = [2, 32], strides = [1, 1]} : vector<2x128xf32> to vector<2x32xf32>
    %426 = arith.negf %425 : vector<2x32xf32>
    %427 = math.exp %426 : vector<2x32xf32>
    %cst_155 = arith.constant 1.000000e+00 : f32
    %428 = vector.broadcast %cst_155 : f32 to vector<2x32xf32>
    %429 = arith.addf %428, %427 : vector<2x32xf32>
    %430 = arith.divf %428, %429 : vector<2x32xf32>
    %431 = vector.extract_strided_slice %418 {offsets = [0, 64], sizes = [2, 32], strides = [1, 1]} : vector<2x128xf32> to vector<2x32xf32>
    %432 = math.tanh %431 : vector<2x32xf32>
    %433 = vector.extract_strided_slice %418 {offsets = [0, 96], sizes = [2, 32], strides = [1, 1]} : vector<2x128xf32> to vector<2x32xf32>
    %434 = arith.negf %433 : vector<2x32xf32>
    %435 = math.exp %434 : vector<2x32xf32>
    %cst_156 = arith.constant 1.000000e+00 : f32
    %436 = vector.broadcast %cst_156 : f32 to vector<2x32xf32>
    %437 = arith.addf %436, %435 : vector<2x32xf32>
    %438 = arith.divf %436, %437 : vector<2x32xf32>
    %439 = arith.mulf %430, %411 : vector<2x32xf32>
    %440 = arith.mulf %424, %432 : vector<2x32xf32>
    %441 = arith.addf %439, %440 : vector<2x32xf32>
    %442 = math.tanh %441 : vector<2x32xf32>
    %443 = arith.mulf %438, %442 : vector<2x32xf32>
    %c24_157 = arith.constant 24 : index
    %c0_158 = arith.constant 0 : index
    %444 = vector.load %arg18[%c24_157, %c0_158] : memref<32x32xf32, #tpu.memory_space<vmem>>, vector<2x32xf32>
    tpu.vector_store %arg18[%c24_157, %c0_158], %443 {strides = array<i32>} : memref<32x32xf32, #tpu.memory_space<vmem>>, vector<2x32xf32>,
    %c26 = arith.constant 26 : index
    %c0_159 = arith.constant 0 : index
    %445 = vector.load %arg17[%c26, %c0_159] : memref<32x128xf32, #tpu.memory_space<vmem>>, vector<2x128xf32>
    %c0_160 = arith.constant 0 : index
    %c0_161 = arith.constant 0 : index
    %446 = vector.load %arg9[%c0_160, %c0_161] : memref<32x128xf32, #tpu.memory_space<vmem>>, vector<32x128xf32>
    %cst_162 = arith.constant dense<0.000000e+00> : vector<2x128xf32>
    %447 = tpu.matmul %443, %446, %cst_162 {dimension_numbers = #tpu.dot_dimension_numbers<[1], [0], [0], [1], [0, 0, 1, 1], [], []>, precision = #tpu.contract_precision<fp32>} : vector<2x32xf32>, vector<32x128xf32>, vector<2x128xf32> -> vector<2x128xf32>
    %448 = arith.addf %445, %447 : vector<2x128xf32>
    %449 = vector.extract_strided_slice %448 {offsets = [0, 0], sizes = [2, 32], strides = [1, 1]} : vector<2x128xf32> to vector<2x32xf32>
    %450 = arith.negf %449 : vector<2x32xf32>
    %451 = math.exp %450 : vector<2x32xf32>
    %cst_163 = arith.constant 1.000000e+00 : f32
    %452 = vector.broadcast %cst_163 : f32 to vector<2x32xf32>
    %453 = arith.addf %452, %451 : vector<2x32xf32>
    %454 = arith.divf %452, %453 : vector<2x32xf32>
    %455 = vector.extract_strided_slice %448 {offsets = [0, 32], sizes = [2, 32], strides = [1, 1]} : vector<2x128xf32> to vector<2x32xf32>
    %456 = arith.negf %455 : vector<2x32xf32>
    %457 = math.exp %456 : vector<2x32xf32>
    %cst_164 = arith.constant 1.000000e+00 : f32
    %458 = vector.broadcast %cst_164 : f32 to vector<2x32xf32>
    %459 = arith.addf %458, %457 : vector<2x32xf32>
    %460 = arith.divf %458, %459 : vector<2x32xf32>
    %461 = vector.extract_strided_slice %448 {offsets = [0, 64], sizes = [2, 32], strides = [1, 1]} : vector<2x128xf32> to vector<2x32xf32>
    %462 = math.tanh %461 : vector<2x32xf32>
    %463 = vector.extract_strided_slice %448 {offsets = [0, 96], sizes = [2, 32], strides = [1, 1]} : vector<2x128xf32> to vector<2x32xf32>
    %464 = arith.negf %463 : vector<2x32xf32>
    %465 = math.exp %464 : vector<2x32xf32>
    %cst_165 = arith.constant 1.000000e+00 : f32
    %466 = vector.broadcast %cst_165 : f32 to vector<2x32xf32>
    %467 = arith.addf %466, %465 : vector<2x32xf32>
    %468 = arith.divf %466, %467 : vector<2x32xf32>
    %469 = arith.mulf %460, %441 : vector<2x32xf32>
    %470 = arith.mulf %454, %462 : vector<2x32xf32>
    %471 = arith.addf %469, %470 : vector<2x32xf32>
    %472 = math.tanh %471 : vector<2x32xf32>
    %473 = arith.mulf %468, %472 : vector<2x32xf32>
    %c26_166 = arith.constant 26 : index
    %c0_167 = arith.constant 0 : index
    %474 = vector.load %arg18[%c26_166, %c0_167] : memref<32x32xf32, #tpu.memory_space<vmem>>, vector<2x32xf32>
    tpu.vector_store %arg18[%c26_166, %c0_167], %473 {strides = array<i32>} : memref<32x32xf32, #tpu.memory_space<vmem>>, vector<2x32xf32>,
    %c28 = arith.constant 28 : index
    %c0_168 = arith.constant 0 : index
    %475 = vector.load %arg17[%c28, %c0_168] : memref<32x128xf32, #tpu.memory_space<vmem>>, vector<2x128xf32>
    %c0_169 = arith.constant 0 : index
    %c0_170 = arith.constant 0 : index
    %476 = vector.load %arg9[%c0_169, %c0_170] : memref<32x128xf32, #tpu.memory_space<vmem>>, vector<32x128xf32>
    %cst_171 = arith.constant dense<0.000000e+00> : vector<2x128xf32>
    %477 = tpu.matmul %473, %476, %cst_171 {dimension_numbers = #tpu.dot_dimension_numbers<[1], [0], [0], [1], [0, 0, 1, 1], [], []>, precision = #tpu.contract_precision<fp32>} : vector<2x32xf32>, vector<32x128xf32>, vector<2x128xf32> -> vector<2x128xf32>
    %478 = arith.addf %475, %477 : vector<2x128xf32>
    %479 = vector.extract_strided_slice %478 {offsets = [0, 0], sizes = [2, 32], strides = [1, 1]} : vector<2x128xf32> to vector<2x32xf32>
    %480 = arith.negf %479 : vector<2x32xf32>
    %481 = math.exp %480 : vector<2x32xf32>
    %cst_172 = arith.constant 1.000000e+00 : f32
    %482 = vector.broadcast %cst_172 : f32 to vector<2x32xf32>
    %483 = arith.addf %482, %481 : vector<2x32xf32>
    %484 = arith.divf %482, %483 : vector<2x32xf32>
    %485 = vector.extract_strided_slice %478 {offsets = [0, 32], sizes = [2, 32], strides = [1, 1]} : vector<2x128xf32> to vector<2x32xf32>
    %486 = arith.negf %485 : vector<2x32xf32>
    %487 = math.exp %486 : vector<2x32xf32>
    %cst_173 = arith.constant 1.000000e+00 : f32
    %488 = vector.broadcast %cst_173 : f32 to vector<2x32xf32>
    %489 = arith.addf %488, %487 : vector<2x32xf32>
    %490 = arith.divf %488, %489 : vector<2x32xf32>
    %491 = vector.extract_strided_slice %478 {offsets = [0, 64], sizes = [2, 32], strides = [1, 1]} : vector<2x128xf32> to vector<2x32xf32>
    %492 = math.tanh %491 : vector<2x32xf32>
    %493 = vector.extract_strided_slice %478 {offsets = [0, 96], sizes = [2, 32], strides = [1, 1]} : vector<2x128xf32> to vector<2x32xf32>
    %494 = arith.negf %493 : vector<2x32xf32>
    %495 = math.exp %494 : vector<2x32xf32>
    %cst_174 = arith.constant 1.000000e+00 : f32
    %496 = vector.broadcast %cst_174 : f32 to vector<2x32xf32>
    %497 = arith.addf %496, %495 : vector<2x32xf32>
    %498 = arith.divf %496, %497 : vector<2x32xf32>
    %499 = arith.mulf %490, %471 : vector<2x32xf32>
    %500 = arith.mulf %484, %492 : vector<2x32xf32>
    %501 = arith.addf %499, %500 : vector<2x32xf32>
    %502 = math.tanh %501 : vector<2x32xf32>
    %503 = arith.mulf %498, %502 : vector<2x32xf32>
    %c28_175 = arith.constant 28 : index
    %c0_176 = arith.constant 0 : index
    %504 = vector.load %arg18[%c28_175, %c0_176] : memref<32x32xf32, #tpu.memory_space<vmem>>, vector<2x32xf32>
    tpu.vector_store %arg18[%c28_175, %c0_176], %503 {strides = array<i32>} : memref<32x32xf32, #tpu.memory_space<vmem>>, vector<2x32xf32>,
    %c30 = arith.constant 30 : index
    %c0_177 = arith.constant 0 : index
    %505 = vector.load %arg17[%c30, %c0_177] : memref<32x128xf32, #tpu.memory_space<vmem>>, vector<2x128xf32>
    %c0_178 = arith.constant 0 : index
    %c0_179 = arith.constant 0 : index
    %506 = vector.load %arg9[%c0_178, %c0_179] : memref<32x128xf32, #tpu.memory_space<vmem>>, vector<32x128xf32>
    %cst_180 = arith.constant dense<0.000000e+00> : vector<2x128xf32>
    %507 = tpu.matmul %503, %506, %cst_180 {dimension_numbers = #tpu.dot_dimension_numbers<[1], [0], [0], [1], [0, 0, 1, 1], [], []>, precision = #tpu.contract_precision<fp32>} : vector<2x32xf32>, vector<32x128xf32>, vector<2x128xf32> -> vector<2x128xf32>
    %508 = arith.addf %505, %507 : vector<2x128xf32>
    %509 = vector.extract_strided_slice %508 {offsets = [0, 0], sizes = [2, 32], strides = [1, 1]} : vector<2x128xf32> to vector<2x32xf32>
    %510 = arith.negf %509 : vector<2x32xf32>
    %511 = math.exp %510 : vector<2x32xf32>
    %cst_181 = arith.constant 1.000000e+00 : f32
    %512 = vector.broadcast %cst_181 : f32 to vector<2x32xf32>
    %513 = arith.addf %512, %511 : vector<2x32xf32>
    %514 = arith.divf %512, %513 : vector<2x32xf32>
    %515 = vector.extract_strided_slice %508 {offsets = [0, 32], sizes = [2, 32], strides = [1, 1]} : vector<2x128xf32> to vector<2x32xf32>
    %516 = arith.negf %515 : vector<2x32xf32>
    %517 = math.exp %516 : vector<2x32xf32>
    %cst_182 = arith.constant 1.000000e+00 : f32
    %518 = vector.broadcast %cst_182 : f32 to vector<2x32xf32>
    %519 = arith.addf %518, %517 : vector<2x32xf32>
    %520 = arith.divf %518, %519 : vector<2x32xf32>
    %521 = vector.extract_strided_slice %508 {offsets = [0, 64], sizes = [2, 32], strides = [1, 1]} : vector<2x128xf32> to vector<2x32xf32>
    %522 = math.tanh %521 : vector<2x32xf32>
    %523 = vector.extract_strided_slice %508 {offsets = [0, 96], sizes = [2, 32], strides = [1, 1]} : vector<2x128xf32> to vector<2x32xf32>
    %524 = arith.negf %523 : vector<2x32xf32>
    %525 = math.exp %524 : vector<2x32xf32>
    %cst_183 = arith.constant 1.000000e+00 : f32
    %526 = vector.broadcast %cst_183 : f32 to vector<2x32xf32>
    %527 = arith.addf %526, %525 : vector<2x32xf32>
    %528 = arith.divf %526, %527 : vector<2x32xf32>
    %529 = arith.mulf %520, %501 : vector<2x32xf32>
    %530 = arith.mulf %514, %522 : vector<2x32xf32>
    %531 = arith.addf %529, %530 : vector<2x32xf32>
    %532 = math.tanh %531 : vector<2x32xf32>
    %533 = arith.mulf %528, %532 : vector<2x32xf32>
    %c30_184 = arith.constant 30 : index
    %c0_185 = arith.constant 0 : index
    %534 = vector.load %arg18[%c30_184, %c0_185] : memref<32x32xf32, #tpu.memory_space<vmem>>, vector<2x32xf32>
    tpu.vector_store %arg18[%c30_184, %c0_185], %533 {strides = array<i32>} : memref<32x32xf32, #tpu.memory_space<vmem>>, vector<2x32xf32>,
    %c0_186 = arith.constant 0 : index
    %c0_187 = arith.constant 0 : index
    %535 = vector.load %arg18[%c0_186, %c0_187] : memref<32x32xf32, #tpu.memory_space<vmem>>, vector<32x32xf32>
    %c0_188 = arith.constant 0 : index
    %c0_189 = arith.constant 0 : index
    %536 = vector.load %arg11[%c0_188, %c0_189] : memref<32x128xf32, #tpu.memory_space<vmem>>, vector<32x128xf32>
    %cst_190 = arith.constant dense<0.000000e+00> : vector<32x128xf32>
    %537 = tpu.matmul %535, %536, %cst_190 {dimension_numbers = #tpu.dot_dimension_numbers<[1], [0], [0], [1], [0, 0, 1, 1], [], []>, precision = #tpu.contract_precision<fp32>} : vector<32x32xf32>, vector<32x128xf32>, vector<32x128xf32> -> vector<32x128xf32>
    %c0_191 = arith.constant 0 : index
    %c0_192 = arith.constant 0 : index
    %538 = vector.load %arg13[%c0_191, %c0_192] : memref<1x128xf32, #tpu.memory_space<vmem>>, vector<1x128xf32>
    %539 = vector.broadcast %538 : vector<1x128xf32> to vector<32x128xf32>
    %540 = arith.addf %537, %539 : vector<32x128xf32>
    %c0_193 = arith.constant 0 : index
    %c0_194 = arith.constant 0 : index
    %541 = vector.load %arg17[%c0_193, %c0_194] : memref<32x128xf32, #tpu.memory_space<vmem>>, vector<32x128xf32>
    tpu.vector_store %arg17[%c0_193, %c0_194], %540 {strides = array<i32>} : memref<32x128xf32, #tpu.memory_space<vmem>>, vector<32x128xf32>,
    %cst_195 = arith.constant 0.000000e+00 : f32
    %542 = vector.broadcast %cst_195 : f32 to vector<2x32xf32>
    %cst_196 = arith.constant 0.000000e+00 : f32
    %543 = vector.broadcast %cst_196 : f32 to vector<2x32xf32>
    %c0_197 = arith.constant 0 : index
    %c0_198 = arith.constant 0 : index
    %544 = vector.load %arg17[%c0_197, %c0_198] : memref<32x128xf32, #tpu.memory_space<vmem>>, vector<2x128xf32>
    %c0_199 = arith.constant 0 : index
    %c0_200 = arith.constant 0 : index
    %545 = vector.load %arg12[%c0_199, %c0_200] : memref<32x128xf32, #tpu.memory_space<vmem>>, vector<32x128xf32>
    %cst_201 = arith.constant dense<0.000000e+00> : vector<2x128xf32>
    %546 = tpu.matmul %542, %545, %cst_201 {dimension_numbers = #tpu.dot_dimension_numbers<[1], [0], [0], [1], [0, 0, 1, 1], [], []>, precision = #tpu.contract_precision<fp32>} : vector<2x32xf32>, vector<32x128xf32>, vector<2x128xf32> -> vector<2x128xf32>
    %547 = arith.addf %544, %546 : vector<2x128xf32>
    %548 = vector.extract_strided_slice %547 {offsets = [0, 0], sizes = [2, 32], strides = [1, 1]} : vector<2x128xf32> to vector<2x32xf32>
    %549 = arith.negf %548 : vector<2x32xf32>
    %550 = math.exp %549 : vector<2x32xf32>
    %cst_202 = arith.constant 1.000000e+00 : f32
    %551 = vector.broadcast %cst_202 : f32 to vector<2x32xf32>
    %552 = arith.addf %551, %550 : vector<2x32xf32>
    %553 = arith.divf %551, %552 : vector<2x32xf32>
    %554 = vector.extract_strided_slice %547 {offsets = [0, 32], sizes = [2, 32], strides = [1, 1]} : vector<2x128xf32> to vector<2x32xf32>
    %555 = arith.negf %554 : vector<2x32xf32>
    %556 = math.exp %555 : vector<2x32xf32>
    %cst_203 = arith.constant 1.000000e+00 : f32
    %557 = vector.broadcast %cst_203 : f32 to vector<2x32xf32>
    %558 = arith.addf %557, %556 : vector<2x32xf32>
    %559 = arith.divf %557, %558 : vector<2x32xf32>
    %560 = vector.extract_strided_slice %547 {offsets = [0, 64], sizes = [2, 32], strides = [1, 1]} : vector<2x128xf32> to vector<2x32xf32>
    %561 = math.tanh %560 : vector<2x32xf32>
    %562 = vector.extract_strided_slice %547 {offsets = [0, 96], sizes = [2, 32], strides = [1, 1]} : vector<2x128xf32> to vector<2x32xf32>
    %563 = arith.negf %562 : vector<2x32xf32>
    %564 = math.exp %563 : vector<2x32xf32>
    %cst_204 = arith.constant 1.000000e+00 : f32
    %565 = vector.broadcast %cst_204 : f32 to vector<2x32xf32>
    %566 = arith.addf %565, %564 : vector<2x32xf32>
    %567 = arith.divf %565, %566 : vector<2x32xf32>
    %568 = arith.mulf %559, %543 : vector<2x32xf32>
    %569 = arith.mulf %553, %561 : vector<2x32xf32>
    %570 = arith.addf %568, %569 : vector<2x32xf32>
    %571 = math.tanh %570 : vector<2x32xf32>
    %572 = arith.mulf %567, %571 : vector<2x32xf32>
    %c2_205 = arith.constant 2 : index
    %c0_206 = arith.constant 0 : index
    %573 = vector.load %arg17[%c2_205, %c0_206] : memref<32x128xf32, #tpu.memory_space<vmem>>, vector<2x128xf32>
    %c0_207 = arith.constant 0 : index
    %c0_208 = arith.constant 0 : index
    %574 = vector.load %arg12[%c0_207, %c0_208] : memref<32x128xf32, #tpu.memory_space<vmem>>, vector<32x128xf32>
    %cst_209 = arith.constant dense<0.000000e+00> : vector<2x128xf32>
    %575 = tpu.matmul %572, %574, %cst_209 {dimension_numbers = #tpu.dot_dimension_numbers<[1], [0], [0], [1], [0, 0, 1, 1], [], []>, precision = #tpu.contract_precision<fp32>} : vector<2x32xf32>, vector<32x128xf32>, vector<2x128xf32> -> vector<2x128xf32>
    %576 = arith.addf %573, %575 : vector<2x128xf32>
    %577 = vector.extract_strided_slice %576 {offsets = [0, 0], sizes = [2, 32], strides = [1, 1]} : vector<2x128xf32> to vector<2x32xf32>
    %578 = arith.negf %577 : vector<2x32xf32>
    %579 = math.exp %578 : vector<2x32xf32>
    %cst_210 = arith.constant 1.000000e+00 : f32
    %580 = vector.broadcast %cst_210 : f32 to vector<2x32xf32>
    %581 = arith.addf %580, %579 : vector<2x32xf32>
    %582 = arith.divf %580, %581 : vector<2x32xf32>
    %583 = vector.extract_strided_slice %576 {offsets = [0, 32], sizes = [2, 32], strides = [1, 1]} : vector<2x128xf32> to vector<2x32xf32>
    %584 = arith.negf %583 : vector<2x32xf32>
    %585 = math.exp %584 : vector<2x32xf32>
    %cst_211 = arith.constant 1.000000e+00 : f32
    %586 = vector.broadcast %cst_211 : f32 to vector<2x32xf32>
    %587 = arith.addf %586, %585 : vector<2x32xf32>
    %588 = arith.divf %586, %587 : vector<2x32xf32>
    %589 = vector.extract_strided_slice %576 {offsets = [0, 64], sizes = [2, 32], strides = [1, 1]} : vector<2x128xf32> to vector<2x32xf32>
    %590 = math.tanh %589 : vector<2x32xf32>
    %591 = vector.extract_strided_slice %576 {offsets = [0, 96], sizes = [2, 32], strides = [1, 1]} : vector<2x128xf32> to vector<2x32xf32>
    %592 = arith.negf %591 : vector<2x32xf32>
    %593 = math.exp %592 : vector<2x32xf32>
    %cst_212 = arith.constant 1.000000e+00 : f32
    %594 = vector.broadcast %cst_212 : f32 to vector<2x32xf32>
    %595 = arith.addf %594, %593 : vector<2x32xf32>
    %596 = arith.divf %594, %595 : vector<2x32xf32>
    %597 = arith.mulf %588, %570 : vector<2x32xf32>
    %598 = arith.mulf %582, %590 : vector<2x32xf32>
    %599 = arith.addf %597, %598 : vector<2x32xf32>
    %600 = math.tanh %599 : vector<2x32xf32>
    %601 = arith.mulf %596, %600 : vector<2x32xf32>
    %c4_213 = arith.constant 4 : index
    %c0_214 = arith.constant 0 : index
    %602 = vector.load %arg17[%c4_213, %c0_214] : memref<32x128xf32, #tpu.memory_space<vmem>>, vector<2x128xf32>
    %c0_215 = arith.constant 0 : index
    %c0_216 = arith.constant 0 : index
    %603 = vector.load %arg12[%c0_215, %c0_216] : memref<32x128xf32, #tpu.memory_space<vmem>>, vector<32x128xf32>
    %cst_217 = arith.constant dense<0.000000e+00> : vector<2x128xf32>
    %604 = tpu.matmul %601, %603, %cst_217 {dimension_numbers = #tpu.dot_dimension_numbers<[1], [0], [0], [1], [0, 0, 1, 1], [], []>, precision = #tpu.contract_precision<fp32>} : vector<2x32xf32>, vector<32x128xf32>, vector<2x128xf32> -> vector<2x128xf32>
    %605 = arith.addf %602, %604 : vector<2x128xf32>
    %606 = vector.extract_strided_slice %605 {offsets = [0, 0], sizes = [2, 32], strides = [1, 1]} : vector<2x128xf32> to vector<2x32xf32>
    %607 = arith.negf %606 : vector<2x32xf32>
    %608 = math.exp %607 : vector<2x32xf32>
    %cst_218 = arith.constant 1.000000e+00 : f32
    %609 = vector.broadcast %cst_218 : f32 to vector<2x32xf32>
    %610 = arith.addf %609, %608 : vector<2x32xf32>
    %611 = arith.divf %609, %610 : vector<2x32xf32>
    %612 = vector.extract_strided_slice %605 {offsets = [0, 32], sizes = [2, 32], strides = [1, 1]} : vector<2x128xf32> to vector<2x32xf32>
    %613 = arith.negf %612 : vector<2x32xf32>
    %614 = math.exp %613 : vector<2x32xf32>
    %cst_219 = arith.constant 1.000000e+00 : f32
    %615 = vector.broadcast %cst_219 : f32 to vector<2x32xf32>
    %616 = arith.addf %615, %614 : vector<2x32xf32>
    %617 = arith.divf %615, %616 : vector<2x32xf32>
    %618 = vector.extract_strided_slice %605 {offsets = [0, 64], sizes = [2, 32], strides = [1, 1]} : vector<2x128xf32> to vector<2x32xf32>
    %619 = math.tanh %618 : vector<2x32xf32>
    %620 = vector.extract_strided_slice %605 {offsets = [0, 96], sizes = [2, 32], strides = [1, 1]} : vector<2x128xf32> to vector<2x32xf32>
    %621 = arith.negf %620 : vector<2x32xf32>
    %622 = math.exp %621 : vector<2x32xf32>
    %cst_220 = arith.constant 1.000000e+00 : f32
    %623 = vector.broadcast %cst_220 : f32 to vector<2x32xf32>
    %624 = arith.addf %623, %622 : vector<2x32xf32>
    %625 = arith.divf %623, %624 : vector<2x32xf32>
    %626 = arith.mulf %617, %599 : vector<2x32xf32>
    %627 = arith.mulf %611, %619 : vector<2x32xf32>
    %628 = arith.addf %626, %627 : vector<2x32xf32>
    %629 = math.tanh %628 : vector<2x32xf32>
    %630 = arith.mulf %625, %629 : vector<2x32xf32>
    %c6_221 = arith.constant 6 : index
    %c0_222 = arith.constant 0 : index
    %631 = vector.load %arg17[%c6_221, %c0_222] : memref<32x128xf32, #tpu.memory_space<vmem>>, vector<2x128xf32>
    %c0_223 = arith.constant 0 : index
    %c0_224 = arith.constant 0 : index
    %632 = vector.load %arg12[%c0_223, %c0_224] : memref<32x128xf32, #tpu.memory_space<vmem>>, vector<32x128xf32>
    %cst_225 = arith.constant dense<0.000000e+00> : vector<2x128xf32>
    %633 = tpu.matmul %630, %632, %cst_225 {dimension_numbers = #tpu.dot_dimension_numbers<[1], [0], [0], [1], [0, 0, 1, 1], [], []>, precision = #tpu.contract_precision<fp32>} : vector<2x32xf32>, vector<32x128xf32>, vector<2x128xf32> -> vector<2x128xf32>
    %634 = arith.addf %631, %633 : vector<2x128xf32>
    %635 = vector.extract_strided_slice %634 {offsets = [0, 0], sizes = [2, 32], strides = [1, 1]} : vector<2x128xf32> to vector<2x32xf32>
    %636 = arith.negf %635 : vector<2x32xf32>
    %637 = math.exp %636 : vector<2x32xf32>
    %cst_226 = arith.constant 1.000000e+00 : f32
    %638 = vector.broadcast %cst_226 : f32 to vector<2x32xf32>
    %639 = arith.addf %638, %637 : vector<2x32xf32>
    %640 = arith.divf %638, %639 : vector<2x32xf32>
    %641 = vector.extract_strided_slice %634 {offsets = [0, 32], sizes = [2, 32], strides = [1, 1]} : vector<2x128xf32> to vector<2x32xf32>
    %642 = arith.negf %641 : vector<2x32xf32>
    %643 = math.exp %642 : vector<2x32xf32>
    %cst_227 = arith.constant 1.000000e+00 : f32
    %644 = vector.broadcast %cst_227 : f32 to vector<2x32xf32>
    %645 = arith.addf %644, %643 : vector<2x32xf32>
    %646 = arith.divf %644, %645 : vector<2x32xf32>
    %647 = vector.extract_strided_slice %634 {offsets = [0, 64], sizes = [2, 32], strides = [1, 1]} : vector<2x128xf32> to vector<2x32xf32>
    %648 = math.tanh %647 : vector<2x32xf32>
    %649 = vector.extract_strided_slice %634 {offsets = [0, 96], sizes = [2, 32], strides = [1, 1]} : vector<2x128xf32> to vector<2x32xf32>
    %650 = arith.negf %649 : vector<2x32xf32>
    %651 = math.exp %650 : vector<2x32xf32>
    %cst_228 = arith.constant 1.000000e+00 : f32
    %652 = vector.broadcast %cst_228 : f32 to vector<2x32xf32>
    %653 = arith.addf %652, %651 : vector<2x32xf32>
    %654 = arith.divf %652, %653 : vector<2x32xf32>
    %655 = arith.mulf %646, %628 : vector<2x32xf32>
    %656 = arith.mulf %640, %648 : vector<2x32xf32>
    %657 = arith.addf %655, %656 : vector<2x32xf32>
    %658 = math.tanh %657 : vector<2x32xf32>
    %659 = arith.mulf %654, %658 : vector<2x32xf32>
    %c8_229 = arith.constant 8 : index
    %c0_230 = arith.constant 0 : index
    %660 = vector.load %arg17[%c8_229, %c0_230] : memref<32x128xf32, #tpu.memory_space<vmem>>, vector<2x128xf32>
    %c0_231 = arith.constant 0 : index
    %c0_232 = arith.constant 0 : index
    %661 = vector.load %arg12[%c0_231, %c0_232] : memref<32x128xf32, #tpu.memory_space<vmem>>, vector<32x128xf32>
    %cst_233 = arith.constant dense<0.000000e+00> : vector<2x128xf32>
    %662 = tpu.matmul %659, %661, %cst_233 {dimension_numbers = #tpu.dot_dimension_numbers<[1], [0], [0], [1], [0, 0, 1, 1], [], []>, precision = #tpu.contract_precision<fp32>} : vector<2x32xf32>, vector<32x128xf32>, vector<2x128xf32> -> vector<2x128xf32>
    %663 = arith.addf %660, %662 : vector<2x128xf32>
    %664 = vector.extract_strided_slice %663 {offsets = [0, 0], sizes = [2, 32], strides = [1, 1]} : vector<2x128xf32> to vector<2x32xf32>
    %665 = arith.negf %664 : vector<2x32xf32>
    %666 = math.exp %665 : vector<2x32xf32>
    %cst_234 = arith.constant 1.000000e+00 : f32
    %667 = vector.broadcast %cst_234 : f32 to vector<2x32xf32>
    %668 = arith.addf %667, %666 : vector<2x32xf32>
    %669 = arith.divf %667, %668 : vector<2x32xf32>
    %670 = vector.extract_strided_slice %663 {offsets = [0, 32], sizes = [2, 32], strides = [1, 1]} : vector<2x128xf32> to vector<2x32xf32>
    %671 = arith.negf %670 : vector<2x32xf32>
    %672 = math.exp %671 : vector<2x32xf32>
    %cst_235 = arith.constant 1.000000e+00 : f32
    %673 = vector.broadcast %cst_235 : f32 to vector<2x32xf32>
    %674 = arith.addf %673, %672 : vector<2x32xf32>
    %675 = arith.divf %673, %674 : vector<2x32xf32>
    %676 = vector.extract_strided_slice %663 {offsets = [0, 64], sizes = [2, 32], strides = [1, 1]} : vector<2x128xf32> to vector<2x32xf32>
    %677 = math.tanh %676 : vector<2x32xf32>
    %678 = vector.extract_strided_slice %663 {offsets = [0, 96], sizes = [2, 32], strides = [1, 1]} : vector<2x128xf32> to vector<2x32xf32>
    %679 = arith.negf %678 : vector<2x32xf32>
    %680 = math.exp %679 : vector<2x32xf32>
    %cst_236 = arith.constant 1.000000e+00 : f32
    %681 = vector.broadcast %cst_236 : f32 to vector<2x32xf32>
    %682 = arith.addf %681, %680 : vector<2x32xf32>
    %683 = arith.divf %681, %682 : vector<2x32xf32>
    %684 = arith.mulf %675, %657 : vector<2x32xf32>
    %685 = arith.mulf %669, %677 : vector<2x32xf32>
    %686 = arith.addf %684, %685 : vector<2x32xf32>
    %687 = math.tanh %686 : vector<2x32xf32>
    %688 = arith.mulf %683, %687 : vector<2x32xf32>
    %c10_237 = arith.constant 10 : index
    %c0_238 = arith.constant 0 : index
    %689 = vector.load %arg17[%c10_237, %c0_238] : memref<32x128xf32, #tpu.memory_space<vmem>>, vector<2x128xf32>
    %c0_239 = arith.constant 0 : index
    %c0_240 = arith.constant 0 : index
    %690 = vector.load %arg12[%c0_239, %c0_240] : memref<32x128xf32, #tpu.memory_space<vmem>>, vector<32x128xf32>
    %cst_241 = arith.constant dense<0.000000e+00> : vector<2x128xf32>
    %691 = tpu.matmul %688, %690, %cst_241 {dimension_numbers = #tpu.dot_dimension_numbers<[1], [0], [0], [1], [0, 0, 1, 1], [], []>, precision = #tpu.contract_precision<fp32>} : vector<2x32xf32>, vector<32x128xf32>, vector<2x128xf32> -> vector<2x128xf32>
    %692 = arith.addf %689, %691 : vector<2x128xf32>
    %693 = vector.extract_strided_slice %692 {offsets = [0, 0], sizes = [2, 32], strides = [1, 1]} : vector<2x128xf32> to vector<2x32xf32>
    %694 = arith.negf %693 : vector<2x32xf32>
    %695 = math.exp %694 : vector<2x32xf32>
    %cst_242 = arith.constant 1.000000e+00 : f32
    %696 = vector.broadcast %cst_242 : f32 to vector<2x32xf32>
    %697 = arith.addf %696, %695 : vector<2x32xf32>
    %698 = arith.divf %696, %697 : vector<2x32xf32>
    %699 = vector.extract_strided_slice %692 {offsets = [0, 32], sizes = [2, 32], strides = [1, 1]} : vector<2x128xf32> to vector<2x32xf32>
    %700 = arith.negf %699 : vector<2x32xf32>
    %701 = math.exp %700 : vector<2x32xf32>
    %cst_243 = arith.constant 1.000000e+00 : f32
    %702 = vector.broadcast %cst_243 : f32 to vector<2x32xf32>
    %703 = arith.addf %702, %701 : vector<2x32xf32>
    %704 = arith.divf %702, %703 : vector<2x32xf32>
    %705 = vector.extract_strided_slice %692 {offsets = [0, 64], sizes = [2, 32], strides = [1, 1]} : vector<2x128xf32> to vector<2x32xf32>
    %706 = math.tanh %705 : vector<2x32xf32>
    %707 = vector.extract_strided_slice %692 {offsets = [0, 96], sizes = [2, 32], strides = [1, 1]} : vector<2x128xf32> to vector<2x32xf32>
    %708 = arith.negf %707 : vector<2x32xf32>
    %709 = math.exp %708 : vector<2x32xf32>
    %cst_244 = arith.constant 1.000000e+00 : f32
    %710 = vector.broadcast %cst_244 : f32 to vector<2x32xf32>
    %711 = arith.addf %710, %709 : vector<2x32xf32>
    %712 = arith.divf %710, %711 : vector<2x32xf32>
    %713 = arith.mulf %704, %686 : vector<2x32xf32>
    %714 = arith.mulf %698, %706 : vector<2x32xf32>
    %715 = arith.addf %713, %714 : vector<2x32xf32>
    %716 = math.tanh %715 : vector<2x32xf32>
    %717 = arith.mulf %712, %716 : vector<2x32xf32>
    %c12_245 = arith.constant 12 : index
    %c0_246 = arith.constant 0 : index
    %718 = vector.load %arg17[%c12_245, %c0_246] : memref<32x128xf32, #tpu.memory_space<vmem>>, vector<2x128xf32>
    %c0_247 = arith.constant 0 : index
    %c0_248 = arith.constant 0 : index
    %719 = vector.load %arg12[%c0_247, %c0_248] : memref<32x128xf32, #tpu.memory_space<vmem>>, vector<32x128xf32>
    %cst_249 = arith.constant dense<0.000000e+00> : vector<2x128xf32>
    %720 = tpu.matmul %717, %719, %cst_249 {dimension_numbers = #tpu.dot_dimension_numbers<[1], [0], [0], [1], [0, 0, 1, 1], [], []>, precision = #tpu.contract_precision<fp32>} : vector<2x32xf32>, vector<32x128xf32>, vector<2x128xf32> -> vector<2x128xf32>
    %721 = arith.addf %718, %720 : vector<2x128xf32>
    %722 = vector.extract_strided_slice %721 {offsets = [0, 0], sizes = [2, 32], strides = [1, 1]} : vector<2x128xf32> to vector<2x32xf32>
    %723 = arith.negf %722 : vector<2x32xf32>
    %724 = math.exp %723 : vector<2x32xf32>
    %cst_250 = arith.constant 1.000000e+00 : f32
    %725 = vector.broadcast %cst_250 : f32 to vector<2x32xf32>
    %726 = arith.addf %725, %724 : vector<2x32xf32>
    %727 = arith.divf %725, %726 : vector<2x32xf32>
    %728 = vector.extract_strided_slice %721 {offsets = [0, 32], sizes = [2, 32], strides = [1, 1]} : vector<2x128xf32> to vector<2x32xf32>
    %729 = arith.negf %728 : vector<2x32xf32>
    %730 = math.exp %729 : vector<2x32xf32>
    %cst_251 = arith.constant 1.000000e+00 : f32
    %731 = vector.broadcast %cst_251 : f32 to vector<2x32xf32>
    %732 = arith.addf %731, %730 : vector<2x32xf32>
    %733 = arith.divf %731, %732 : vector<2x32xf32>
    %734 = vector.extract_strided_slice %721 {offsets = [0, 64], sizes = [2, 32], strides = [1, 1]} : vector<2x128xf32> to vector<2x32xf32>
    %735 = math.tanh %734 : vector<2x32xf32>
    %736 = vector.extract_strided_slice %721 {offsets = [0, 96], sizes = [2, 32], strides = [1, 1]} : vector<2x128xf32> to vector<2x32xf32>
    %737 = arith.negf %736 : vector<2x32xf32>
    %738 = math.exp %737 : vector<2x32xf32>
    %cst_252 = arith.constant 1.000000e+00 : f32
    %739 = vector.broadcast %cst_252 : f32 to vector<2x32xf32>
    %740 = arith.addf %739, %738 : vector<2x32xf32>
    %741 = arith.divf %739, %740 : vector<2x32xf32>
    %742 = arith.mulf %733, %715 : vector<2x32xf32>
    %743 = arith.mulf %727, %735 : vector<2x32xf32>
    %744 = arith.addf %742, %743 : vector<2x32xf32>
    %745 = math.tanh %744 : vector<2x32xf32>
    %746 = arith.mulf %741, %745 : vector<2x32xf32>
    %c14_253 = arith.constant 14 : index
    %c0_254 = arith.constant 0 : index
    %747 = vector.load %arg17[%c14_253, %c0_254] : memref<32x128xf32, #tpu.memory_space<vmem>>, vector<2x128xf32>
    %c0_255 = arith.constant 0 : index
    %c0_256 = arith.constant 0 : index
    %748 = vector.load %arg12[%c0_255, %c0_256] : memref<32x128xf32, #tpu.memory_space<vmem>>, vector<32x128xf32>
    %cst_257 = arith.constant dense<0.000000e+00> : vector<2x128xf32>
    %749 = tpu.matmul %746, %748, %cst_257 {dimension_numbers = #tpu.dot_dimension_numbers<[1], [0], [0], [1], [0, 0, 1, 1], [], []>, precision = #tpu.contract_precision<fp32>} : vector<2x32xf32>, vector<32x128xf32>, vector<2x128xf32> -> vector<2x128xf32>
    %750 = arith.addf %747, %749 : vector<2x128xf32>
    %751 = vector.extract_strided_slice %750 {offsets = [0, 0], sizes = [2, 32], strides = [1, 1]} : vector<2x128xf32> to vector<2x32xf32>
    %752 = arith.negf %751 : vector<2x32xf32>
    %753 = math.exp %752 : vector<2x32xf32>
    %cst_258 = arith.constant 1.000000e+00 : f32
    %754 = vector.broadcast %cst_258 : f32 to vector<2x32xf32>
    %755 = arith.addf %754, %753 : vector<2x32xf32>
    %756 = arith.divf %754, %755 : vector<2x32xf32>
    %757 = vector.extract_strided_slice %750 {offsets = [0, 32], sizes = [2, 32], strides = [1, 1]} : vector<2x128xf32> to vector<2x32xf32>
    %758 = arith.negf %757 : vector<2x32xf32>
    %759 = math.exp %758 : vector<2x32xf32>
    %cst_259 = arith.constant 1.000000e+00 : f32
    %760 = vector.broadcast %cst_259 : f32 to vector<2x32xf32>
    %761 = arith.addf %760, %759 : vector<2x32xf32>
    %762 = arith.divf %760, %761 : vector<2x32xf32>
    %763 = vector.extract_strided_slice %750 {offsets = [0, 64], sizes = [2, 32], strides = [1, 1]} : vector<2x128xf32> to vector<2x32xf32>
    %764 = math.tanh %763 : vector<2x32xf32>
    %765 = vector.extract_strided_slice %750 {offsets = [0, 96], sizes = [2, 32], strides = [1, 1]} : vector<2x128xf32> to vector<2x32xf32>
    %766 = arith.negf %765 : vector<2x32xf32>
    %767 = math.exp %766 : vector<2x32xf32>
    %cst_260 = arith.constant 1.000000e+00 : f32
    %768 = vector.broadcast %cst_260 : f32 to vector<2x32xf32>
    %769 = arith.addf %768, %767 : vector<2x32xf32>
    %770 = arith.divf %768, %769 : vector<2x32xf32>
    %771 = arith.mulf %762, %744 : vector<2x32xf32>
    %772 = arith.mulf %756, %764 : vector<2x32xf32>
    %773 = arith.addf %771, %772 : vector<2x32xf32>
    %774 = math.tanh %773 : vector<2x32xf32>
    %775 = arith.mulf %770, %774 : vector<2x32xf32>
    %c16_261 = arith.constant 16 : index
    %c0_262 = arith.constant 0 : index
    %776 = vector.load %arg17[%c16_261, %c0_262] : memref<32x128xf32, #tpu.memory_space<vmem>>, vector<2x128xf32>
    %c0_263 = arith.constant 0 : index
    %c0_264 = arith.constant 0 : index
    %777 = vector.load %arg12[%c0_263, %c0_264] : memref<32x128xf32, #tpu.memory_space<vmem>>, vector<32x128xf32>
    %cst_265 = arith.constant dense<0.000000e+00> : vector<2x128xf32>
    %778 = tpu.matmul %775, %777, %cst_265 {dimension_numbers = #tpu.dot_dimension_numbers<[1], [0], [0], [1], [0, 0, 1, 1], [], []>, precision = #tpu.contract_precision<fp32>} : vector<2x32xf32>, vector<32x128xf32>, vector<2x128xf32> -> vector<2x128xf32>
    %779 = arith.addf %776, %778 : vector<2x128xf32>
    %780 = vector.extract_strided_slice %779 {offsets = [0, 0], sizes = [2, 32], strides = [1, 1]} : vector<2x128xf32> to vector<2x32xf32>
    %781 = arith.negf %780 : vector<2x32xf32>
    %782 = math.exp %781 : vector<2x32xf32>
    %cst_266 = arith.constant 1.000000e+00 : f32
    %783 = vector.broadcast %cst_266 : f32 to vector<2x32xf32>
    %784 = arith.addf %783, %782 : vector<2x32xf32>
    %785 = arith.divf %783, %784 : vector<2x32xf32>
    %786 = vector.extract_strided_slice %779 {offsets = [0, 32], sizes = [2, 32], strides = [1, 1]} : vector<2x128xf32> to vector<2x32xf32>
    %787 = arith.negf %786 : vector<2x32xf32>
    %788 = math.exp %787 : vector<2x32xf32>
    %cst_267 = arith.constant 1.000000e+00 : f32
    %789 = vector.broadcast %cst_267 : f32 to vector<2x32xf32>
    %790 = arith.addf %789, %788 : vector<2x32xf32>
    %791 = arith.divf %789, %790 : vector<2x32xf32>
    %792 = vector.extract_strided_slice %779 {offsets = [0, 64], sizes = [2, 32], strides = [1, 1]} : vector<2x128xf32> to vector<2x32xf32>
    %793 = math.tanh %792 : vector<2x32xf32>
    %794 = vector.extract_strided_slice %779 {offsets = [0, 96], sizes = [2, 32], strides = [1, 1]} : vector<2x128xf32> to vector<2x32xf32>
    %795 = arith.negf %794 : vector<2x32xf32>
    %796 = math.exp %795 : vector<2x32xf32>
    %cst_268 = arith.constant 1.000000e+00 : f32
    %797 = vector.broadcast %cst_268 : f32 to vector<2x32xf32>
    %798 = arith.addf %797, %796 : vector<2x32xf32>
    %799 = arith.divf %797, %798 : vector<2x32xf32>
    %800 = arith.mulf %791, %773 : vector<2x32xf32>
    %801 = arith.mulf %785, %793 : vector<2x32xf32>
    %802 = arith.addf %800, %801 : vector<2x32xf32>
    %803 = math.tanh %802 : vector<2x32xf32>
    %804 = arith.mulf %799, %803 : vector<2x32xf32>
    %c18_269 = arith.constant 18 : index
    %c0_270 = arith.constant 0 : index
    %805 = vector.load %arg17[%c18_269, %c0_270] : memref<32x128xf32, #tpu.memory_space<vmem>>, vector<2x128xf32>
    %c0_271 = arith.constant 0 : index
    %c0_272 = arith.constant 0 : index
    %806 = vector.load %arg12[%c0_271, %c0_272] : memref<32x128xf32, #tpu.memory_space<vmem>>, vector<32x128xf32>
    %cst_273 = arith.constant dense<0.000000e+00> : vector<2x128xf32>
    %807 = tpu.matmul %804, %806, %cst_273 {dimension_numbers = #tpu.dot_dimension_numbers<[1], [0], [0], [1], [0, 0, 1, 1], [], []>, precision = #tpu.contract_precision<fp32>} : vector<2x32xf32>, vector<32x128xf32>, vector<2x128xf32> -> vector<2x128xf32>
    %808 = arith.addf %805, %807 : vector<2x128xf32>
    %809 = vector.extract_strided_slice %808 {offsets = [0, 0], sizes = [2, 32], strides = [1, 1]} : vector<2x128xf32> to vector<2x32xf32>
    %810 = arith.negf %809 : vector<2x32xf32>
    %811 = math.exp %810 : vector<2x32xf32>
    %cst_274 = arith.constant 1.000000e+00 : f32
    %812 = vector.broadcast %cst_274 : f32 to vector<2x32xf32>
    %813 = arith.addf %812, %811 : vector<2x32xf32>
    %814 = arith.divf %812, %813 : vector<2x32xf32>
    %815 = vector.extract_strided_slice %808 {offsets = [0, 32], sizes = [2, 32], strides = [1, 1]} : vector<2x128xf32> to vector<2x32xf32>
    %816 = arith.negf %815 : vector<2x32xf32>
    %817 = math.exp %816 : vector<2x32xf32>
    %cst_275 = arith.constant 1.000000e+00 : f32
    %818 = vector.broadcast %cst_275 : f32 to vector<2x32xf32>
    %819 = arith.addf %818, %817 : vector<2x32xf32>
    %820 = arith.divf %818, %819 : vector<2x32xf32>
    %821 = vector.extract_strided_slice %808 {offsets = [0, 64], sizes = [2, 32], strides = [1, 1]} : vector<2x128xf32> to vector<2x32xf32>
    %822 = math.tanh %821 : vector<2x32xf32>
    %823 = vector.extract_strided_slice %808 {offsets = [0, 96], sizes = [2, 32], strides = [1, 1]} : vector<2x128xf32> to vector<2x32xf32>
    %824 = arith.negf %823 : vector<2x32xf32>
    %825 = math.exp %824 : vector<2x32xf32>
    %cst_276 = arith.constant 1.000000e+00 : f32
    %826 = vector.broadcast %cst_276 : f32 to vector<2x32xf32>
    %827 = arith.addf %826, %825 : vector<2x32xf32>
    %828 = arith.divf %826, %827 : vector<2x32xf32>
    %829 = arith.mulf %820, %802 : vector<2x32xf32>
    %830 = arith.mulf %814, %822 : vector<2x32xf32>
    %831 = arith.addf %829, %830 : vector<2x32xf32>
    %832 = math.tanh %831 : vector<2x32xf32>
    %833 = arith.mulf %828, %832 : vector<2x32xf32>
    %c20_277 = arith.constant 20 : index
    %c0_278 = arith.constant 0 : index
    %834 = vector.load %arg17[%c20_277, %c0_278] : memref<32x128xf32, #tpu.memory_space<vmem>>, vector<2x128xf32>
    %c0_279 = arith.constant 0 : index
    %c0_280 = arith.constant 0 : index
    %835 = vector.load %arg12[%c0_279, %c0_280] : memref<32x128xf32, #tpu.memory_space<vmem>>, vector<32x128xf32>
    %cst_281 = arith.constant dense<0.000000e+00> : vector<2x128xf32>
    %836 = tpu.matmul %833, %835, %cst_281 {dimension_numbers = #tpu.dot_dimension_numbers<[1], [0], [0], [1], [0, 0, 1, 1], [], []>, precision = #tpu.contract_precision<fp32>} : vector<2x32xf32>, vector<32x128xf32>, vector<2x128xf32> -> vector<2x128xf32>
    %837 = arith.addf %834, %836 : vector<2x128xf32>
    %838 = vector.extract_strided_slice %837 {offsets = [0, 0], sizes = [2, 32], strides = [1, 1]} : vector<2x128xf32> to vector<2x32xf32>
    %839 = arith.negf %838 : vector<2x32xf32>
    %840 = math.exp %839 : vector<2x32xf32>
    %cst_282 = arith.constant 1.000000e+00 : f32
    %841 = vector.broadcast %cst_282 : f32 to vector<2x32xf32>
    %842 = arith.addf %841, %840 : vector<2x32xf32>
    %843 = arith.divf %841, %842 : vector<2x32xf32>
    %844 = vector.extract_strided_slice %837 {offsets = [0, 32], sizes = [2, 32], strides = [1, 1]} : vector<2x128xf32> to vector<2x32xf32>
    %845 = arith.negf %844 : vector<2x32xf32>
    %846 = math.exp %845 : vector<2x32xf32>
    %cst_283 = arith.constant 1.000000e+00 : f32
    %847 = vector.broadcast %cst_283 : f32 to vector<2x32xf32>
    %848 = arith.addf %847, %846 : vector<2x32xf32>
    %849 = arith.divf %847, %848 : vector<2x32xf32>
    %850 = vector.extract_strided_slice %837 {offsets = [0, 64], sizes = [2, 32], strides = [1, 1]} : vector<2x128xf32> to vector<2x32xf32>
    %851 = math.tanh %850 : vector<2x32xf32>
    %852 = vector.extract_strided_slice %837 {offsets = [0, 96], sizes = [2, 32], strides = [1, 1]} : vector<2x128xf32> to vector<2x32xf32>
    %853 = arith.negf %852 : vector<2x32xf32>
    %854 = math.exp %853 : vector<2x32xf32>
    %cst_284 = arith.constant 1.000000e+00 : f32
    %855 = vector.broadcast %cst_284 : f32 to vector<2x32xf32>
    %856 = arith.addf %855, %854 : vector<2x32xf32>
    %857 = arith.divf %855, %856 : vector<2x32xf32>
    %858 = arith.mulf %849, %831 : vector<2x32xf32>
    %859 = arith.mulf %843, %851 : vector<2x32xf32>
    %860 = arith.addf %858, %859 : vector<2x32xf32>
    %861 = math.tanh %860 : vector<2x32xf32>
    %862 = arith.mulf %857, %861 : vector<2x32xf32>
    %c22_285 = arith.constant 22 : index
    %c0_286 = arith.constant 0 : index
    %863 = vector.load %arg17[%c22_285, %c0_286] : memref<32x128xf32, #tpu.memory_space<vmem>>, vector<2x128xf32>
    %c0_287 = arith.constant 0 : index
    %c0_288 = arith.constant 0 : index
    %864 = vector.load %arg12[%c0_287, %c0_288] : memref<32x128xf32, #tpu.memory_space<vmem>>, vector<32x128xf32>
    %cst_289 = arith.constant dense<0.000000e+00> : vector<2x128xf32>
    %865 = tpu.matmul %862, %864, %cst_289 {dimension_numbers = #tpu.dot_dimension_numbers<[1], [0], [0], [1], [0, 0, 1, 1], [], []>, precision = #tpu.contract_precision<fp32>} : vector<2x32xf32>, vector<32x128xf32>, vector<2x128xf32> -> vector<2x128xf32>
    %866 = arith.addf %863, %865 : vector<2x128xf32>
    %867 = vector.extract_strided_slice %866 {offsets = [0, 0], sizes = [2, 32], strides = [1, 1]} : vector<2x128xf32> to vector<2x32xf32>
    %868 = arith.negf %867 : vector<2x32xf32>
    %869 = math.exp %868 : vector<2x32xf32>
    %cst_290 = arith.constant 1.000000e+00 : f32
    %870 = vector.broadcast %cst_290 : f32 to vector<2x32xf32>
    %871 = arith.addf %870, %869 : vector<2x32xf32>
    %872 = arith.divf %870, %871 : vector<2x32xf32>
    %873 = vector.extract_strided_slice %866 {offsets = [0, 32], sizes = [2, 32], strides = [1, 1]} : vector<2x128xf32> to vector<2x32xf32>
    %874 = arith.negf %873 : vector<2x32xf32>
    %875 = math.exp %874 : vector<2x32xf32>
    %cst_291 = arith.constant 1.000000e+00 : f32
    %876 = vector.broadcast %cst_291 : f32 to vector<2x32xf32>
    %877 = arith.addf %876, %875 : vector<2x32xf32>
    %878 = arith.divf %876, %877 : vector<2x32xf32>
    %879 = vector.extract_strided_slice %866 {offsets = [0, 64], sizes = [2, 32], strides = [1, 1]} : vector<2x128xf32> to vector<2x32xf32>
    %880 = math.tanh %879 : vector<2x32xf32>
    %881 = vector.extract_strided_slice %866 {offsets = [0, 96], sizes = [2, 32], strides = [1, 1]} : vector<2x128xf32> to vector<2x32xf32>
    %882 = arith.negf %881 : vector<2x32xf32>
    %883 = math.exp %882 : vector<2x32xf32>
    %cst_292 = arith.constant 1.000000e+00 : f32
    %884 = vector.broadcast %cst_292 : f32 to vector<2x32xf32>
    %885 = arith.addf %884, %883 : vector<2x32xf32>
    %886 = arith.divf %884, %885 : vector<2x32xf32>
    %887 = arith.mulf %878, %860 : vector<2x32xf32>
    %888 = arith.mulf %872, %880 : vector<2x32xf32>
    %889 = arith.addf %887, %888 : vector<2x32xf32>
    %890 = math.tanh %889 : vector<2x32xf32>
    %891 = arith.mulf %886, %890 : vector<2x32xf32>
    %c24_293 = arith.constant 24 : index
    %c0_294 = arith.constant 0 : index
    %892 = vector.load %arg17[%c24_293, %c0_294] : memref<32x128xf32, #tpu.memory_space<vmem>>, vector<2x128xf32>
    %c0_295 = arith.constant 0 : index
    %c0_296 = arith.constant 0 : index
    %893 = vector.load %arg12[%c0_295, %c0_296] : memref<32x128xf32, #tpu.memory_space<vmem>>, vector<32x128xf32>
    %cst_297 = arith.constant dense<0.000000e+00> : vector<2x128xf32>
    %894 = tpu.matmul %891, %893, %cst_297 {dimension_numbers = #tpu.dot_dimension_numbers<[1], [0], [0], [1], [0, 0, 1, 1], [], []>, precision = #tpu.contract_precision<fp32>} : vector<2x32xf32>, vector<32x128xf32>, vector<2x128xf32> -> vector<2x128xf32>
    %895 = arith.addf %892, %894 : vector<2x128xf32>
    %896 = vector.extract_strided_slice %895 {offsets = [0, 0], sizes = [2, 32], strides = [1, 1]} : vector<2x128xf32> to vector<2x32xf32>
    %897 = arith.negf %896 : vector<2x32xf32>
    %898 = math.exp %897 : vector<2x32xf32>
    %cst_298 = arith.constant 1.000000e+00 : f32
    %899 = vector.broadcast %cst_298 : f32 to vector<2x32xf32>
    %900 = arith.addf %899, %898 : vector<2x32xf32>
    %901 = arith.divf %899, %900 : vector<2x32xf32>
    %902 = vector.extract_strided_slice %895 {offsets = [0, 32], sizes = [2, 32], strides = [1, 1]} : vector<2x128xf32> to vector<2x32xf32>
    %903 = arith.negf %902 : vector<2x32xf32>
    %904 = math.exp %903 : vector<2x32xf32>
    %cst_299 = arith.constant 1.000000e+00 : f32
    %905 = vector.broadcast %cst_299 : f32 to vector<2x32xf32>
    %906 = arith.addf %905, %904 : vector<2x32xf32>
    %907 = arith.divf %905, %906 : vector<2x32xf32>
    %908 = vector.extract_strided_slice %895 {offsets = [0, 64], sizes = [2, 32], strides = [1, 1]} : vector<2x128xf32> to vector<2x32xf32>
    %909 = math.tanh %908 : vector<2x32xf32>
    %910 = vector.extract_strided_slice %895 {offsets = [0, 96], sizes = [2, 32], strides = [1, 1]} : vector<2x128xf32> to vector<2x32xf32>
    %911 = arith.negf %910 : vector<2x32xf32>
    %912 = math.exp %911 : vector<2x32xf32>
    %cst_300 = arith.constant 1.000000e+00 : f32
    %913 = vector.broadcast %cst_300 : f32 to vector<2x32xf32>
    %914 = arith.addf %913, %912 : vector<2x32xf32>
    %915 = arith.divf %913, %914 : vector<2x32xf32>
    %916 = arith.mulf %907, %889 : vector<2x32xf32>
    %917 = arith.mulf %901, %909 : vector<2x32xf32>
    %918 = arith.addf %916, %917 : vector<2x32xf32>
    %919 = math.tanh %918 : vector<2x32xf32>
    %920 = arith.mulf %915, %919 : vector<2x32xf32>
    %c26_301 = arith.constant 26 : index
    %c0_302 = arith.constant 0 : index
    %921 = vector.load %arg17[%c26_301, %c0_302] : memref<32x128xf32, #tpu.memory_space<vmem>>, vector<2x128xf32>
    %c0_303 = arith.constant 0 : index
    %c0_304 = arith.constant 0 : index
    %922 = vector.load %arg12[%c0_303, %c0_304] : memref<32x128xf32, #tpu.memory_space<vmem>>, vector<32x128xf32>
    %cst_305 = arith.constant dense<0.000000e+00> : vector<2x128xf32>
    %923 = tpu.matmul %920, %922, %cst_305 {dimension_numbers = #tpu.dot_dimension_numbers<[1], [0], [0], [1], [0, 0, 1, 1], [], []>, precision = #tpu.contract_precision<fp32>} : vector<2x32xf32>, vector<32x128xf32>, vector<2x128xf32> -> vector<2x128xf32>
    %924 = arith.addf %921, %923 : vector<2x128xf32>
    %925 = vector.extract_strided_slice %924 {offsets = [0, 0], sizes = [2, 32], strides = [1, 1]} : vector<2x128xf32> to vector<2x32xf32>
    %926 = arith.negf %925 : vector<2x32xf32>
    %927 = math.exp %926 : vector<2x32xf32>
    %cst_306 = arith.constant 1.000000e+00 : f32
    %928 = vector.broadcast %cst_306 : f32 to vector<2x32xf32>
    %929 = arith.addf %928, %927 : vector<2x32xf32>
    %930 = arith.divf %928, %929 : vector<2x32xf32>
    %931 = vector.extract_strided_slice %924 {offsets = [0, 32], sizes = [2, 32], strides = [1, 1]} : vector<2x128xf32> to vector<2x32xf32>
    %932 = arith.negf %931 : vector<2x32xf32>
    %933 = math.exp %932 : vector<2x32xf32>
    %cst_307 = arith.constant 1.000000e+00 : f32
    %934 = vector.broadcast %cst_307 : f32 to vector<2x32xf32>
    %935 = arith.addf %934, %933 : vector<2x32xf32>
    %936 = arith.divf %934, %935 : vector<2x32xf32>
    %937 = vector.extract_strided_slice %924 {offsets = [0, 64], sizes = [2, 32], strides = [1, 1]} : vector<2x128xf32> to vector<2x32xf32>
    %938 = math.tanh %937 : vector<2x32xf32>
    %939 = vector.extract_strided_slice %924 {offsets = [0, 96], sizes = [2, 32], strides = [1, 1]} : vector<2x128xf32> to vector<2x32xf32>
    %940 = arith.negf %939 : vector<2x32xf32>
    %941 = math.exp %940 : vector<2x32xf32>
    %cst_308 = arith.constant 1.000000e+00 : f32
    %942 = vector.broadcast %cst_308 : f32 to vector<2x32xf32>
    %943 = arith.addf %942, %941 : vector<2x32xf32>
    %944 = arith.divf %942, %943 : vector<2x32xf32>
    %945 = arith.mulf %936, %918 : vector<2x32xf32>
    %946 = arith.mulf %930, %938 : vector<2x32xf32>
    %947 = arith.addf %945, %946 : vector<2x32xf32>
    %948 = math.tanh %947 : vector<2x32xf32>
    %949 = arith.mulf %944, %948 : vector<2x32xf32>
    %c28_309 = arith.constant 28 : index
    %c0_310 = arith.constant 0 : index
    %950 = vector.load %arg17[%c28_309, %c0_310] : memref<32x128xf32, #tpu.memory_space<vmem>>, vector<2x128xf32>
    %c0_311 = arith.constant 0 : index
    %c0_312 = arith.constant 0 : index
    %951 = vector.load %arg12[%c0_311, %c0_312] : memref<32x128xf32, #tpu.memory_space<vmem>>, vector<32x128xf32>
    %cst_313 = arith.constant dense<0.000000e+00> : vector<2x128xf32>
    %952 = tpu.matmul %949, %951, %cst_313 {dimension_numbers = #tpu.dot_dimension_numbers<[1], [0], [0], [1], [0, 0, 1, 1], [], []>, precision = #tpu.contract_precision<fp32>} : vector<2x32xf32>, vector<32x128xf32>, vector<2x128xf32> -> vector<2x128xf32>
    %953 = arith.addf %950, %952 : vector<2x128xf32>
    %954 = vector.extract_strided_slice %953 {offsets = [0, 0], sizes = [2, 32], strides = [1, 1]} : vector<2x128xf32> to vector<2x32xf32>
    %955 = arith.negf %954 : vector<2x32xf32>
    %956 = math.exp %955 : vector<2x32xf32>
    %cst_314 = arith.constant 1.000000e+00 : f32
    %957 = vector.broadcast %cst_314 : f32 to vector<2x32xf32>
    %958 = arith.addf %957, %956 : vector<2x32xf32>
    %959 = arith.divf %957, %958 : vector<2x32xf32>
    %960 = vector.extract_strided_slice %953 {offsets = [0, 32], sizes = [2, 32], strides = [1, 1]} : vector<2x128xf32> to vector<2x32xf32>
    %961 = arith.negf %960 : vector<2x32xf32>
    %962 = math.exp %961 : vector<2x32xf32>
    %cst_315 = arith.constant 1.000000e+00 : f32
    %963 = vector.broadcast %cst_315 : f32 to vector<2x32xf32>
    %964 = arith.addf %963, %962 : vector<2x32xf32>
    %965 = arith.divf %963, %964 : vector<2x32xf32>
    %966 = vector.extract_strided_slice %953 {offsets = [0, 64], sizes = [2, 32], strides = [1, 1]} : vector<2x128xf32> to vector<2x32xf32>
    %967 = math.tanh %966 : vector<2x32xf32>
    %968 = vector.extract_strided_slice %953 {offsets = [0, 96], sizes = [2, 32], strides = [1, 1]} : vector<2x128xf32> to vector<2x32xf32>
    %969 = arith.negf %968 : vector<2x32xf32>
    %970 = math.exp %969 : vector<2x32xf32>
    %cst_316 = arith.constant 1.000000e+00 : f32
    %971 = vector.broadcast %cst_316 : f32 to vector<2x32xf32>
    %972 = arith.addf %971, %970 : vector<2x32xf32>
    %973 = arith.divf %971, %972 : vector<2x32xf32>
    %974 = arith.mulf %965, %947 : vector<2x32xf32>
    %975 = arith.mulf %959, %967 : vector<2x32xf32>
    %976 = arith.addf %974, %975 : vector<2x32xf32>
    %977 = math.tanh %976 : vector<2x32xf32>
    %978 = arith.mulf %973, %977 : vector<2x32xf32>
    %c30_317 = arith.constant 30 : index
    %c0_318 = arith.constant 0 : index
    %979 = vector.load %arg17[%c30_317, %c0_318] : memref<32x128xf32, #tpu.memory_space<vmem>>, vector<2x128xf32>
    %c0_319 = arith.constant 0 : index
    %c0_320 = arith.constant 0 : index
    %980 = vector.load %arg12[%c0_319, %c0_320] : memref<32x128xf32, #tpu.memory_space<vmem>>, vector<32x128xf32>
    %cst_321 = arith.constant dense<0.000000e+00> : vector<2x128xf32>
    %981 = tpu.matmul %978, %980, %cst_321 {dimension_numbers = #tpu.dot_dimension_numbers<[1], [0], [0], [1], [0, 0, 1, 1], [], []>, precision = #tpu.contract_precision<fp32>} : vector<2x32xf32>, vector<32x128xf32>, vector<2x128xf32> -> vector<2x128xf32>
    %982 = arith.addf %979, %981 : vector<2x128xf32>
    %983 = vector.extract_strided_slice %982 {offsets = [0, 0], sizes = [2, 32], strides = [1, 1]} : vector<2x128xf32> to vector<2x32xf32>
    %984 = arith.negf %983 : vector<2x32xf32>
    %985 = math.exp %984 : vector<2x32xf32>
    %cst_322 = arith.constant 1.000000e+00 : f32
    %986 = vector.broadcast %cst_322 : f32 to vector<2x32xf32>
    %987 = arith.addf %986, %985 : vector<2x32xf32>
    %988 = arith.divf %986, %987 : vector<2x32xf32>
    %989 = vector.extract_strided_slice %982 {offsets = [0, 32], sizes = [2, 32], strides = [1, 1]} : vector<2x128xf32> to vector<2x32xf32>
    %990 = arith.negf %989 : vector<2x32xf32>
    %991 = math.exp %990 : vector<2x32xf32>
    %cst_323 = arith.constant 1.000000e+00 : f32
    %992 = vector.broadcast %cst_323 : f32 to vector<2x32xf32>
    %993 = arith.addf %992, %991 : vector<2x32xf32>
    %994 = arith.divf %992, %993 : vector<2x32xf32>
    %995 = vector.extract_strided_slice %982 {offsets = [0, 64], sizes = [2, 32], strides = [1, 1]} : vector<2x128xf32> to vector<2x32xf32>
    %996 = math.tanh %995 : vector<2x32xf32>
    %997 = vector.extract_strided_slice %982 {offsets = [0, 96], sizes = [2, 32], strides = [1, 1]} : vector<2x128xf32> to vector<2x32xf32>
    %998 = arith.negf %997 : vector<2x32xf32>
    %999 = math.exp %998 : vector<2x32xf32>
    %cst_324 = arith.constant 1.000000e+00 : f32
    %1000 = vector.broadcast %cst_324 : f32 to vector<2x32xf32>
    %1001 = arith.addf %1000, %999 : vector<2x32xf32>
    %1002 = arith.divf %1000, %1001 : vector<2x32xf32>
    %1003 = arith.mulf %994, %976 : vector<2x32xf32>
    %1004 = arith.mulf %988, %996 : vector<2x32xf32>
    %1005 = arith.addf %1003, %1004 : vector<2x32xf32>
    %1006 = math.tanh %1005 : vector<2x32xf32>
    %1007 = arith.mulf %1002, %1006 : vector<2x32xf32>
    %c0_325 = arith.constant 0 : index
    %c0_326 = arith.constant 0 : index
    %1008 = vector.load %arg14[%c0_325, %c0_326] : memref<32x8xf32, #tpu.memory_space<vmem>>, vector<32x8xf32>
    %cst_327 = arith.constant dense<0.000000e+00> : vector<2x8xf32>
    %1009 = tpu.matmul %1007, %1008, %cst_327 {dimension_numbers = #tpu.dot_dimension_numbers<[1], [0], [0], [1], [0, 0, 1, 1], [], []>, precision = #tpu.contract_precision<fp32>} : vector<2x32xf32>, vector<32x8xf32>, vector<2x8xf32> -> vector<2x8xf32>
    %c0_328 = arith.constant 0 : index
    %c0_329 = arith.constant 0 : index
    %1010 = vector.load %arg15[%c0_328, %c0_329] : memref<1x8xf32, #tpu.memory_space<vmem>>, vector<1x8xf32>
    %1011 = vector.broadcast %1010 : vector<1x8xf32> to vector<2x8xf32>
    %1012 = arith.addf %1009, %1011 : vector<2x8xf32>
    %c0_330 = arith.constant 0 : index
    %c0_331 = arith.constant 0 : index
    %c0_332 = arith.constant 0 : index
    %1013 = vector.load %arg16[%c0_330, %c0_331, %c0_332] : memref<1x2x8xf32, #tpu.memory_space<vmem>>, vector<1x2x8xf32>
    %1014 = vector.shape_cast %1013 : vector<1x2x8xf32> to vector<2x8xf32>
    %1015 = vector.shape_cast %1012 : vector<2x8xf32> to vector<1x2x8xf32>
    tpu.vector_store %arg16[%c0_330, %c0_331, %c0_332], %1015 {strides = array<i32>} : memref<1x2x8xf32, #tpu.memory_space<vmem>>, vector<1x2x8xf32>,
    return
  }
  func.func @transform_0(%arg0: i32) -> (i32, i32, i32) {
    %c0_i32 = arith.constant 0 : i32
    %c0_i32_0 = arith.constant 0 : i32
    %c0_i32_1 = arith.constant 0 : i32
    return %arg0, %c0_i32, %c0_i32_0 : i32, i32, i32
  }
  func.func @transform_1(%arg0: i32) -> (i32, i32) {
    %c0_i32 = arith.constant 0 : i32
    %c0_i32_0 = arith.constant 0 : i32
    %c0_i32_1 = arith.constant 0 : i32
    return %c0_i32, %c0_i32_0 : i32, i32
  }
  func.func @transform_2(%arg0: i32) -> (i32, i32) {
    %c0_i32 = arith.constant 0 : i32
    %c0_i32_0 = arith.constant 0 : i32
    %c0_i32_1 = arith.constant 0 : i32
    return %c0_i32, %c0_i32_0 : i32, i32
  }
  func.func @transform_3(%arg0: i32) -> (i32, i32) {
    %c0_i32 = arith.constant 0 : i32
    %c0_i32_0 = arith.constant 0 : i32
    %c0_i32_1 = arith.constant 0 : i32
    return %c0_i32, %c0_i32_0 : i32, i32
  }
  func.func @transform_4(%arg0: i32) -> (i32, i32, i32) {
    %c0_i32 = arith.constant 0 : i32
    %c0_i32_0 = arith.constant 0 : i32
    %c0_i32_1 = arith.constant 0 : i32
    %c0_i32_2 = arith.constant 0 : i32
    return %c0_i32, %c0_i32_0, %c0_i32_1 : i32, i32, i32
  }
  func.func @transform_5(%arg0: i32) -> (i32, i32) {
    %c0_i32 = arith.constant 0 : i32
    %c0_i32_0 = arith.constant 0 : i32
    %c0_i32_1 = arith.constant 0 : i32
    return %c0_i32, %c0_i32_0 : i32, i32
  }
  func.func @transform_6(%arg0: i32) -> (i32, i32) {
    %c0_i32 = arith.constant 0 : i32
    %c0_i32_0 = arith.constant 0 : i32
    %c0_i32_1 = arith.constant 0 : i32
    return %c0_i32, %c0_i32_0 : i32, i32
  }
  func.func @transform_7(%arg0: i32) -> (i32, i32) {
    %c0_i32 = arith.constant 0 : i32
    %c0_i32_0 = arith.constant 0 : i32
    %c0_i32_1 = arith.constant 0 : i32
    return %c0_i32, %c0_i32_0 : i32, i32
  }
  func.func @transform_8(%arg0: i32) -> (i32, i32) {
    %c0_i32 = arith.constant 0 : i32
    %c0_i32_0 = arith.constant 0 : i32
    %c0_i32_1 = arith.constant 0 : i32
    return %c0_i32, %c0_i32_0 : i32, i32
  }
  func.func @transform_9(%arg0: i32) -> (i32, i32) {
    %c0_i32 = arith.constant 0 : i32
    %c0_i32_0 = arith.constant 0 : i32
    %c0_i32_1 = arith.constant 0 : i32
    return %c0_i32, %c0_i32_0 : i32, i32
  }
  func.func @transform_10(%arg0: i32) -> (i32, i32) {
    %c0_i32 = arith.constant 0 : i32
    %c0_i32_0 = arith.constant 0 : i32
    %c0_i32_1 = arith.constant 0 : i32
    return %c0_i32, %c0_i32_0 : i32, i32
  }
  func.func @transform_11(%arg0: i32) -> (i32, i32) {
    %c0_i32 = arith.constant 0 : i32
    %c0_i32_0 = arith.constant 0 : i32
    %c0_i32_1 = arith.constant 0 : i32
    return %c0_i32, %c0_i32_0 : i32, i32
  }
  func.func @transform_12(%arg0: i32) -> (i32, i32) {
    %c0_i32 = arith.constant 0 : i32
    %c0_i32_0 = arith.constant 0 : i32
    %c0_i32_1 = arith.constant 0 : i32
    return %c0_i32, %c0_i32_0 : i32, i32
  }
  func.func @transform_13(%arg0: i32) -> (i32, i32) {
    %c0_i32 = arith.constant 0 : i32
    %c0_i32_0 = arith.constant 0 : i32
    %c0_i32_1 = arith.constant 0 : i32
    return %c0_i32, %c0_i32_0 : i32, i32
  }
  func.func @transform_14(%arg0: i32) -> (i32, i32) {
    %c0_i32 = arith.constant 0 : i32
    %c0_i32_0 = arith.constant 0 : i32
    %c0_i32_1 = arith.constant 0 : i32
    return %c0_i32, %c0_i32_0 : i32, i32
  }
  func.func @transform_15(%arg0: i32) -> (i32, i32, i32) {
    %c0_i32 = arith.constant 0 : i32
    %c0_i32_0 = arith.constant 0 : i32
    %c0_i32_1 = arith.constant 0 : i32
    return %arg0, %c0_i32, %c0_i32_0 : i32, i32, i32
  }
}

</mosaic_0001>

<bundles_post_ra>
// kernel: tpu_custom_call.1
= control target key start
LH: loop header
LB: loop body
LE: loop exit
PB: predicated region body
PF: predicated region fallthrough
CT: control target
= control target key end

     0   :  { %20 = vsyncpa [#allocation5], 0  ;;  %s32831_s0 = inlined_call_operand.vmem [shape: f32[1,32,12], index: 0, kind: input, shape index: {}]   ;;  %s32832_s1 = inlined_call_operand.hbm [shape: f32[12,64], index: 1, kind: input, shape index: {}]   ;;  %s32833_s2 = inlined_call_operand.vmem [shape: f32[1,64], index: 2, kind: input, shape index: {}]   ;;  %s32834_s3 = inlined_call_operand.vmem [shape: f32[1,64], index: 3, kind: input, shape index: {}]   ;;  %s32835_s4 = inlined_call_operand.hbm [shape: f32[3,64,128], index: 4, kind: input, shape index: {}]   ;;  %s32836_s5 = inlined_call_operand.hbm [shape: f32[1,128], index: 5, kind: input, shape index: {}]   ;;  %s32837_s6 = inlined_call_operand.hbm [shape: f32[1,128], index: 6, kind: input, shape index: {}]   ;;  %s32838_s7 = inlined_call_operand.hbm [shape: f32[128,128], index: 7, kind: input, shape index: {}]   ;;  %s32839_s8 = inlined_call_operand.vmem [shape: f32[32,128], index: 8, kind: input, shape index: {}]   ;;  %s32840_s9 = inlined_call_operand.vmem [shape: f32[1,128], index: 9, kind: input, shape index: {}]   ;;  %s32841_s10 = inlined_call_operand.vmem [shape: f32[32,128], index: 10, kind: input, shape index: {}]   ;;  %s32842_s11 = inlined_call_operand.vmem [shape: f32[32,128], index: 11, kind: input, shape index: {}]   ;;  %s32843_s12 = inlined_call_operand.vmem [shape: f32[1,128], index: 12, kind: input, shape index: {}]   ;;  %s32844_s13 = inlined_call_operand.vmem [shape: f32[32,8], index: 13, kind: input, shape index: {}]   ;;  %s32845_s14 = inlined_call_operand.vmem [shape: f32[1,8], index: 14, kind: input, shape index: {}]   ;;  %s32846_s15 = inlined_call_operand.hbm [shape: f32[1,2,8], index: 15, kind: output, shape index: {}]  }
   0x1   :  { %21 = vsyncpa [#allocation8], 0 }
   0x2   :  { %22 = vsyncpa [#allocation11], 0 }
   0x3   :  { %23 = vsyncpa [#allocation6], 0  ;;  %s29810_s18 = smov [#allocation7]   ;;  %s29811_s20 = smov [#allocation10]  }
   0x4   :  { %s47_s19 = sshll.u32 %s29810_s18, 4  ;;  %s70_s21 = sshll.u32 %s29811_s20, 4  ;;  %s48_s19 = int_to_ptr.vmem [resolvable:$true] %s47_s19  ;;  %s29903_s21 = int_to_ptr.vmem [resolvable:$true] %s70_s21 }
   0x5   :  { %s29670_s24 = scalar_lea.hbm %s32835_s4, 3072 }
   0x6   :  { %p29671_p0 = scmp.ne.s32.totalorder %s32835_s4, %s29670_s24  ;;  %p29674_p1 = scmp.lt.u32.totalorder %s29670_s24, %s32835_s4 }
   0x8   :  { %p29676_p2 = pnand %p29674_p1, %p29671_p0 }
   0xa   :  { %29679 = shalt.err (!%p29676_p2)
}
   0xb   :  { %s29680_s29 = scalar_lea.vmem %s48_s19, 3072  ;;  %p29685_p4 = scmp.lt.s32.totalorder %s48_s19, %s48_s19 }
   0xc   :  { %p29681_p3 = scmp.ne.s32.totalorder %s48_s19, %s29680_s29  ;;  %p29686_p5 = scmp.lt.s32.totalorder %s29680_s29, %s29680_s29 }
   0xe   :  { %p29687_p6 = por %p29686_p5, %p29685_p4 }
  0x10   :  { %p29688_p7 = pnand %p29687_p6, %p29681_p3 }
  0x12   :  { %29691 = shalt.err (!%p29688_p7)
}
  0x13   :  { %s29812_s30 = smov 128   ;;  %s29813_s16 = smov 8  }
  0x14   :  { %53 = dma.hbm_to_vmem [thread:$0]  %s32835_s4, 3072, %s48_s19, [#allocation8], %s29812_s30, %s29812_s30, %s29813_s16  }
  0x15   :  { %s29692_s23 = scalar_lea.hbm %s32837_s6, 16 }
  0x16   :  { %p29693_p8 = scmp.ne.s32.totalorder %s32837_s6, %s29692_s23  ;;  %p29696_p9 = scmp.lt.u32.totalorder %s29692_s23, %s32837_s6 }
  0x18   :  { %p29698_p10 = pnand %p29696_p9, %p29693_p8 }
  0x1a   :  { %29701 = shalt.err (!%p29698_p10)
}
  0x1b   :  { %s29702_s28 = scalar_lea.vmem %s29903_s21, 16  ;;  %s29706_s4 = scalar_lea.vmem %s29903_s21, 32 }
  0x1c   :  { %p29703_p11 = scmp.ne.s32.totalorder %s29903_s21, %s29702_s28  ;;  %p29707_p12 = scmp.lt.s32.totalorder %s29903_s21, %s29903_s21 }
  0x1d   :  { %p29708_p13 = scmp.lt.s32.totalorder %s29706_s4, %s29702_s28 }
  0x1f   :  { %p29709_p0 = por %p29708_p13, %p29707_p12 }
  0x21   :  { %p29710_p1 = pnand %p29709_p0, %p29703_p11 }
  0x23   :  { %29713 = shalt.err (!%p29710_p1)
}
  0x24   :  { %73 = dma.hbm_to_vmem [thread:$0]  %s32837_s6, 16, %s29903_s21, [#allocation11]  }
  0x25   :  { %s29814_s17 = smov [#allocation4]   ;;  %s29815_s20 = smov [#allocation9]  }
  0x26   :  { %s31_s18 = sshll.u32 %s29814_s17, 4  ;;  %s60_s22 = sshll.u32 %s29815_s20, 4  ;;  %s32_s18 = int_to_ptr.vmem [resolvable:$true] %s31_s18  ;;  %s61_s22 = int_to_ptr.vmem [resolvable:$true] %s60_s22 }
  0x27   :  { %s29714_s25 = scalar_lea.hbm %s32832_s1, 256 }
  0x28   :  { %p29715_p2 = scmp.ne.s32.totalorder %s32832_s1, %s29714_s25  ;;  %p29718_p3 = scmp.lt.u32.totalorder %s29714_s25, %s32832_s1 }
  0x2a   :  { %p29720_p4 = pnand %p29718_p3, %p29715_p2 }
  0x2c   :  { %29723 = shalt.err (!%p29720_p4)
}
  0x2d   :  { %s29724_s6 = scalar_lea.vmem %s32_s18, 256  ;;  %p29729_p6 = scmp.lt.s32.totalorder %s32_s18, %s32_s18 }
  0x2e   :  { %p29725_p5 = scmp.ne.s32.totalorder %s32_s18, %s29724_s6  ;;  %p29730_p7 = scmp.lt.s32.totalorder %s29724_s6, %s29724_s6 }
  0x30   :  { %p29731_p8 = por %p29730_p7, %p29729_p6 }
  0x32   :  { %p29732_p9 = pnand %p29731_p8, %p29725_p5 }
  0x34   :  { %29735 = shalt.err (!%p29732_p9)
}
  0x35   :  { %37 = dma.hbm_to_vmem [thread:$0]  %s32832_s1, 256, %s32_s18, [#allocation5], %s29812_s30, %s29812_s30, %s29813_s16  }
  0x36   :  { %s29736_s20 = scalar_lea.hbm %s32836_s5, 16 }
  0x37   :  { %p29737_p10 = scmp.ne.s32.totalorder %s32836_s5, %s29736_s20  ;;  %p29740_p11 = scmp.lt.u32.totalorder %s29736_s20, %s32836_s5 }
  0x39   :  { %p29742_p12 = pnand %p29740_p11, %p29737_p10 }
  0x3b   :  { %29745 = shalt.err (!%p29742_p12)
}
  0x3c   :  { %s29746_s27 = scalar_lea.vmem %s61_s22, 16  ;;  %s29750_s28 = scalar_lea.vmem %s61_s22, 32 }
  0x3d   :  { %p29747_p13 = scmp.ne.s32.totalorder %s61_s22, %s29746_s27  ;;  %p29751_p0 = scmp.lt.s32.totalorder %s61_s22, %s61_s22 }
  0x3e   :  { %p29752_p1 = scmp.lt.s32.totalorder %s29750_s28, %s29746_s27 }
  0x40   :  { %p29753_p2 = por %p29752_p1, %p29751_p0 }
  0x42   :  { %p29754_p3 = pnand %p29753_p2, %p29747_p13 }
  0x44   :  { %29757 = shalt.err (!%p29754_p3)
}
  0x45   :  { %63 = dma.hbm_to_vmem [thread:$0]  %s32836_s5, 16, %s61_s22, [#allocation8]  }
  0x46   :  { %s29816_s4 = smov [#allocation12]   ;;  %s29758_s29 = scalar_lea.hbm %s32838_s7, 2048 }
  0x47   :  { %s79_s6 = sshll.u32 %s29816_s4, 4  ;;  %p29759_p4 = scmp.ne.s32.totalorder %s32838_s7, %s29758_s29  ;;  %s80_s6 = int_to_ptr.vmem [resolvable:$true] %s79_s6 }
  0x48   :  { %p29762_p5 = scmp.lt.u32.totalorder %s29758_s29, %s32838_s7 }
  0x4a   :  { %p29764_p6 = pnand %p29762_p5, %p29759_p4 }
  0x4c   :  { %29767 = shalt.err (!%p29764_p6)
}
  0x4d   :  { %s29768_s25 = scalar_lea.vmem %s80_s6, 2048  ;;  %p29773_p8 = scmp.lt.s32.totalorder %s80_s6, %s80_s6 }
  0x4e   :  { %p29769_p7 = scmp.ne.s32.totalorder %s80_s6, %s29768_s25  ;;  %p29774_p9 = scmp.lt.s32.totalorder %s29768_s25, %s29768_s25 }
  0x50   :  { %p29775_p10 = por %p29774_p9, %p29773_p8 }
  0x52   :  { %p29776_p11 = pnand %p29775_p10, %p29769_p7 }
  0x54   :  { %29779 = shalt.err (!%p29776_p11)
}
  0x55   :  { %85 = dma.hbm_to_vmem [thread:$0]  %s32838_s7, 2048, %s80_s6, [#allocation11], %s29812_s30, %s29812_s30, %s29813_s16  }
  0x56   :  { %29802 = dma.done.wait [#allocation5], 256  }
  0x57   :  { %29803 = vsyncadd [#allocation5], 4294967040 }
  0x58   :  { %29804 = dma.done.wait [#allocation8], 3088  }
  0x59   :  { %29805 = vsyncadd [#allocation8], 4294964208 }
  0x5a   :  { %29806 = dma.done.wait [#allocation11], 2064  }
  0x5b   :  { %29807 = vsyncadd [#allocation11], 4294965232  ;;  %vm134_vm0 = vcmask 1043456   ;;  %vm121_vm1 = vcmask 97280   ;;  %v119_v0 = vld [vmem:[#allocation4] sm:$0xff]  ;;  %v116_v6 = vld [vmem:[%s32831_s0 + $0x8] sm:$0xff]  ;;  %v752_v45 = vlaneseq }
  0x5c   :  { %v120_v1 = vld [vmem:[#allocation4 + $0x8] sm:$0xf]  ;;  %v115_v2 = vld [vmem:[%s32831_s0] sm:$0xff]  ;;  %v139_v4 = vand.u32 4294901760, %v119_v0  ;;  %v117_v7 = vld [vmem:[%s32831_s0 + $0x10] sm:$0xff]  ;;  %v126_v11 = vsel %vm121_vm1, %v116_v6, 0 }
  0x5d   :  { %v136_v3 = vsel %vm134_vm0, %v120_v1, 0  ;;  %v123_v5 = vsel %vm121_vm1, %v115_v2, 0  ;;  %v118_v8 = vld [vmem:[%s32831_s0 + $0x18] sm:$0xff]  ;;  %v129_v12 = vsel %vm121_vm1, %v117_v7, 0  ;;  %v29997_v13 = vand.u32 4294901760, %v126_v11  ;;  %s29821_s22 = smov 32  }
  0x5e   :  { %v142_v9 = vand.u32 4294901760, %v136_v3  ;;  %v29993_v10 = vand.u32 4294901760, %v123_v5  ;;  %v247_v14 = vsub.f32 %v119_v0, %v139_v4  ;;  %v29999_v15 = vand.u32 4294901760, %v129_v12  ;;  %v22696_v6 = vld [vmem:[%s32834_s3] ss:$0 sm:$0xff]  ;;  %s29822_s27 = smov [#allocation13]  }
  0x5f   :  { %v132_v16 = vsel %vm121_vm1, %v118_v8, 0  ;;  %v216_v21 = vsub.f32 %v126_v11, %v29997_v13  ;;  %v30014_v46 = vand.u32 127, %v752_v45  ;;  %v753_v47 = vshrl.u32 %v752_v45, 7 }
  0x60   :  { %v27378_v17 = vpack.c.bf16 %v142_v9, %v139_v4  ;;  %v206_v18 = vsub.f32 %v123_v5, %v29993_v10  ;;  %v254_v19 = vsub.f32 %v136_v3, %v142_v9  ;;  %v235_v20 = vand.u32 4294901760, %v132_v16  ;;  %v22695_v4 = vld [vmem:[%s32833_s2] ss:$0 sm:$0xff] }
  0x61   :  { %v248_v22 = vand.u32 4294901760, %v247_v14  ;;  %v226_v23 = vsub.f32 %v129_v12, %v29999_v15  ;;  %v217_v27 = vand.u32 4294901760, %v216_v21  ;;  %v759_v48 = vadd.s32 2, %v30014_v46 }
  0x62   :  { %27379 = vmatprep.subr.bf16.mxu0 %v27378_v17  ;;  %v207_v24 = vand.u32 4294901760, %v206_v18  ;;  %v255_v25 = vand.u32 4294901760, %v254_v19  ;;  %v236_v26 = vsub.f32 %v132_v16, %v235_v20  ;;  %v27386_v42 = vpack.c.bf16 %v254_v19, %v247_v14 }
  0x63   :  { %27381 = vmatpush3.bf16.msra.mxu0 %v27378_v17  ;;  %v249_v28 = vsub.f32 %v247_v14, %v248_v22  ;;  %v227_v29 = vand.u32 4294901760, %v226_v23  ;;  %v218_v33 = vsub.f32 %v216_v21, %v217_v27  ;;  %vm760_vm2 = vcmp.eq.s32.totalorder %v753_v47, %v759_v48 }
  0x64   :  { %v208_v30 = vsub.f32 %v206_v18, %v207_v24  ;;  %v256_v31 = vsub.f32 %v254_v19, %v255_v25  ;;  %v237_v32 = vand.u32 4294901760, %v236_v26  ;;  %v27394_v44 = vpack.c.bf16 %v255_v25, %v248_v22 }
  0x65   :  { %v250_v34 = vand.u32 4294901760, %v249_v28  ;;  %v228_v35 = vsub.f32 %v226_v23, %v227_v29  ;;  %v219_v39 = vand.u32 4294901760, %v218_v33  ;;  %v754_v49 = vadd.s32 8, %v753_v47 }
  0x66   :  { %v209_v36 = vand.u32 4294901760, %v208_v30  ;;  %v257_v37 = vand.u32 4294901760, %v256_v31  ;;  %v238_v38 = vsub.f32 %v236_v26, %v237_v32  ;;  %v32859_v50 = vmov 0.0  }
  0x67   :  { %v229_v40 = vand.u32 4294901760, %v228_v35  ;;  %v30018_v51 = vsel %vm760_vm2, 1.0, %v32859_v50  ;;  %vm780_vm3 = vcmask 261120   ;;  %vm761_vm4 = vcmp.eq.s32.totalorder %v754_v49, %v759_v48 }
  0x68   :  { %24268 = vmatprep.mubr.f32.mxu0 %v209_v36  ;;  %v27382_v41 = vpack.c.bf16 %v257_v37, %v250_v34  ;;  %v239_v43 = vand.u32 4294901760, %v238_v38  ;;  %v782_v52 = vsel %vm780_vm3, %v30018_v51, 0  ;;  %24346 = vmatprep.mubr.msk.f32.mxu1 %vm780_vm3, %v30018_v51  ;;  %v755_v54 = vadd.s32 16, %v753_v47 }
  0x69   :  { %24269 = vmatmul.mubr.f32.vlgmr.msra.gmra.mrb[0].mxu0 %v219_v39  ;;  %v30024_v53 = vsub.f32 %v782_v52, %v782_v52  ;;  %v756_v55 = vadd.s32 24, %v753_v47  ;;  %v768_v58 = vadd.s32 2, %v753_v47  ;;  %v769_v60 = vadd.s32 2, %v754_v49 }
  0x6a   :  { %27383 = vmatprep.subr.bf16.mxu0 %v27382_v41  ;;  %24271 = vmatprep.mubr.f32.mxu0 %v229_v40  ;;  %vm762_vm5 = vcmp.eq.s32.totalorder %v755_v54, %v759_v48  ;;  %v770_v61 = vadd.s32 2, %v755_v54  ;;  %v30036_v63 = vsel %vm761_vm4, 1.0, %v32859_v50  ;;  %vm2050_vm11 = vcmask 523264  }
  0x6b   :  { %27385 = vmatpush3.bf16.msra.mxu0 %v27382_v41  ;;  %v864_v56 = vand.u32 4294901760, %v30024_v53  ;;  %vm763_vm6 = vcmp.eq.s32.totalorder %v756_v55, %v759_v48  ;;  %vm772_vm7 = vcmp.eq.s32.totalorder %v30014_v46, %v768_v58  ;;  %vm773_vm8 = vcmp.eq.s32.totalorder %v30014_v46, %v769_v60 }
  0x6c   :  { %27387 = vmatprep.subr.bf16.mxu0 %v27386_v42  ;;  %v771_v62 = vadd.s32 2, %v756_v55  ;;  %vm774_vm9 = vcmp.eq.s32.totalorder %v30014_v46, %v770_v61  ;;  %v785_v0 = vsel %vm780_vm3, %v30036_v63, 0  ;;  %v30044_v2 = vsel %vm762_vm5, 1.0, %v32859_v50 }
  0x6d   :  { %24272 = vmatmul.mubr.f32.gmra.mrb[2].mxu0 %v239_v43  ;;  %v865_v57 = vsub.f32 %v30024_v53, %v864_v56  ;;  %v30040_v1 = vsub.f32 %v785_v0, %v785_v0  ;;  %v30048_v3 = vsel %vm763_vm6, 1.0, %v32859_v50  ;;  %v788_v8 = vsel %vm780_vm3, %v30044_v2, 0 }
  0x6e   :  { %24278 = vmatprep.mubr.f32.mxu0 %v29993_v10  ;;  %vm775_vm10 = vcmp.eq.s32.totalorder %v30014_v46, %v771_v62  ;;  %v791_v9 = vsel %vm780_vm3, %v30048_v3, 0  ;;  %v30103_v41 = vsel %vm774_vm9, 1.0, %v32859_v50  ;;  %vm29819_vm12 = vmmov 0  }
  0x6f   :  { %v866_v59 = vand.u32 4294901760, %v865_v57  ;;  %v874_v7 = vand.u32 4294901760, %v30040_v1  ;;  %v30068_v16 = vsub.f32 %v791_v9, %v791_v9  ;;  %v30111_v45 = vsel %vm775_vm10, 1.0, %v32859_v50 }
  0x70   :  { %v1414_v57 = vsel %vm780_vm3, %v30103_v41, 0  ;;  %v1417_v61 = vsel %vm780_vm3, %v30111_v45, 0  ;;  %vm5443_vm13 = vcmask 254976   ;;  %vm22676_vm14 = vcmask 58368  }
  0x71   :  { %24279 = vmatmul.mubr.f32.vlgmr.msra.gmra.mrb[0].mxu0 %v29997_v13  ;;  %v875_v19 = vsub.f32 %v30040_v1, %v874_v7  ;;  %v894_v30 = vand.u32 4294901760, %v30068_v16  ;;  %v30137_v9 = vsub.f32 %v1414_v57, %v1414_v57 }
  0x72   :  { %27389 = vmatpush3.bf16.msra.mxu0 %v27386_v42  ;;  %24281 = vmatprep.mubr.f32.mxu0 %v29999_v15 }
  0x73   :  { %27391 = vmatprep.subr.bf16.mxu0 %v27378_v17  ;;  %v876_v37 = vand.u32 4294901760, %v875_v19  ;;  %v895_v49 = vsub.f32 %v30068_v16, %v894_v30 }
  0x75   :  { %24282 = vmatmul.mubr.f32.gmra.mrb[2].mxu0 %v235_v20 }
  0x76   :  { %24288 = vmatprep.mubr.f32.mxu0 %v206_v18 }
  0x79   :  { %24289 = vmatmul.mubr.f32.vlgmr.msra.gmra.mrb[0].mxu0 %v216_v21 }
  0x7a   :  { %27393 = vmatpush3.bf16.msra.mxu0 %v27378_v17  ;;  %24291 = vmatprep.mubr.f32.mxu0 %v226_v23 }
  0x7b   :  { %27395 = vmatprep.subr.bf16.mxu0 %v27394_v44 }
  0x7d   :  { %24292 = vmatmul.mubr.f32.gmra.mrb[2].mxu0 %v236_v26 }
  0x7e   :  { %24298 = vmatprep.mubr.f32.mxu0 %v207_v24  ;;  %v30080_v24 = vsel %vm773_vm8, 1.0, %v32859_v50 }
  0x7f   :  { %v1411_v34 = vsel %vm780_vm3, %v30080_v24, 0 }
  0x81   :  { %24299 = vmatmul.mubr.f32.vlgmr.msra.gmra.mrb[0].mxu0 %v217_v27 }
  0x82   :  { %27397 = vmatpush3.bf16.msra.mxu0 %v27394_v44  ;;  %24301 = vmatprep.mubr.f32.mxu0 %v227_v29  ;;  %v30106_v44 = vsub.f32 %v1411_v34, %v1411_v34 }
  0x83   :  { %27399 = vmatprep.subr.bf16.mxu0 %v27378_v17 }
  0x85   :  { %24302 = vmatmul.mubr.f32.gmra.mrb[2].mxu0 %v237_v32 }
  0x86   :  { %24308 = vmatprep.mubr.f32.mxu0 %v29993_v10 }
  0x89   :  { %24309 = vmatmul.mubr.f32.vlgmr.msra.gmra.mrb[0].mxu0 %v29997_v13 }
  0x8a   :  { %27401 = vmatpush3.bf16.msra.mxu0 %v27378_v17  ;;  %24311 = vmatprep.mubr.f32.mxu0 %v29999_v15 }
  0x8d   :  { %24312 = vmatmul.mubr.f32.gmra.mrb[2].mxu0 %v235_v20 }
  0x8e   :  { %24318 = vmatprep.mubr.f32.mxu0 %v29993_v10 }
  0x91   :  { %24319 = vmatmul.mubr.f32.vlgmr.msra.gmra.mrb[0].mxu0 %v29997_v13  ;;  %v30064_v13 = vsel %vm772_vm7, 1.0, %v32859_v50 }
  0x92   :  { %24321 = vmatprep.mubr.f32.mxu0 %v29999_v15  ;;  %v30066_v15 = vsub.f32 %v788_v8, %v788_v8  ;;  %v1408_v23 = vsel %vm780_vm3, %v30064_v13, 0 }
  0x93   :  { %v30088_v33 = vsub.f32 %v1408_v23, %v1408_v23 }
  0x94   :  { %v884_v29 = vand.u32 4294901760, %v30066_v15 }
  0x95   :  { %24322 = vmatmul.mubr.f32.gmra.mrb[2].mxu0 %v235_v20  ;;  %v1490_v52 = vand.u32 4294901760, %v30088_v33 }
  0x96   :  { %24332 = vmatprep.mubr.f32.mxu0 %v866_v59  ;;  %v885_v48 = vsub.f32 %v30066_v15, %v884_v29 }
 0x164   :  { %v24320_v5 = vpop.f32.mrb[0].mxu0 }
 0x165   :  { %v734_v10 = vmul.f32 %v24320_v5, %v22695_v4  ;;  %v704_v11 = vpop.f32.mrb[1].mxu0  ;;  %v1500_v5 = vand.u32 4294901760, %v30106_v44 }
 0x166   :  { %v733_v12 = vmul.f32 %v22695_v4, %v704_v11 }
 0x167   :  { %v745_v14 = vadd.f32 %v22696_v6, %v734_v10 }
 0x168   :  { %v744_v17 = vadd.f32 %v22696_v6, %v733_v12  ;;  %v24323_v18 = vpop.f32.mrb[2].mxu0 }
 0x169   :  { %v30073_v20 = vmax.f32 %v745_v14, 0.0  ;;  %v736_v21 = vmul.f32 %v24323_v18, %v22695_v4  ;;  %v716_v22 = vpop.f32.mrb[3].mxu0  ;;  %v1491_v14 = vsub.f32 %v30088_v33, %v1490_v52 }
 0x16a   :  { %v30082_v25 = vmax.f32 %v744_v17, 0.0  ;;  %v735_v26 = vmul.f32 %v22695_v4, %v716_v22  ;;  %v30145_v17 = vsub.f32 %v1417_v61, %v1417_v61  ;;  %v886_v22 = vand.u32 4294901760, %v885_v48 }
 0x16b   :  { %v797_v27 = vand.u32 4294901760, %v30073_v20  ;;  %v747_v28 = vadd.f32 %v22696_v6, %v736_v21 }
 0x16c   :  { %v794_v31 = vand.u32 4294901760, %v30082_v25  ;;  %v746_v32 = vadd.f32 %v22696_v6, %v735_v26  ;;  %v1520_v34 = vand.u32 4294901760, %v30145_v17  ;;  %v2052_v48 = vsel %vm2050_vm11, %v30082_v25, 0 }
 0x16d   :  { %v911_v35 = vsub.f32 %v30073_v20, %v797_v27  ;;  %v30093_v36 = vmax.f32 %v747_v28, 0.0  ;;  %v1501_v28 = vsub.f32 %v30106_v44, %v1500_v5 }
 0x16e   :  { %v30095_v38 = vpack.c.bf16 %v797_v27, %v794_v31  ;;  %v904_v39 = vsub.f32 %v30082_v25, %v794_v31  ;;  %v30098_v40 = vmax.f32 %v746_v32, 0.0  ;;  %v896_v27 = vand.u32 4294901760, %v895_v49  ;;  %v2044_v25 = vld [vmem:[#allocation7 + $0x50] sm:$0xff] }
 0x16f   :  { %v803_v42 = vand.u32 4294901760, %v30093_v36  ;;  %v912_v43 = vand.u32 4294901760, %v911_v35  ;;  %v1510_v31 = vand.u32 4294901760, %v30137_v9  ;;  %v1492_v32 = vand.u32 4294901760, %v1491_v14 }
 0x170   :  { %v800_v47 = vand.u32 4294901760, %v30098_v40  ;;  %27403 = vmatprep.subr.bf16.mxu0 %v30095_v38  ;;  %v905_v46 = vand.u32 4294901760, %v904_v39  ;;  %v30129_v60 = vpack.c.bf16 %v911_v35, %v904_v39  ;;  %v2058_v57 = vsel %vm2050_vm11, %v30098_v40, 0 }
 0x171   :  { %v925_v54 = vsub.f32 %v30093_v36, %v803_v42  ;;  %27405 = vmatpush3.bf16.msra.mxu0 %v30095_v38  ;;  %v913_v55 = vsub.f32 %v911_v35, %v912_v43 }
 0x172   :  { %v30126_v58 = vpack.c.bf16 %v803_v42, %v800_v47  ;;  %v918_v59 = vsub.f32 %v30098_v40, %v800_v47  ;;  %v906_v62 = vsub.f32 %v904_v39, %v905_v46  ;;  %v30139_v10 = vpack.c.bf16 %v912_v43, %v905_v46  ;;  %v2046_v46 = vld [vmem:[#allocation7 + $0x60] sm:$0xff] }
 0x173   :  { %v914_v0 = vand.u32 4294901760, %v913_v55  ;;  %v926_v4 = vand.u32 4294901760, %v925_v54  ;;  %v1511_v39 = vsub.f32 %v30137_v9, %v1510_v31  ;;  %v1521_v42 = vsub.f32 %v30145_v17, %v1520_v34  ;;  %v2047_v55 = vld [vmem:[#allocation7 + $0x68] sm:$0xff] }
 0x174   :  { %27407 = vmatprep.subr.bf16.mxu0 %v30126_v58  ;;  %v919_v6 = vand.u32 4294901760, %v918_v59  ;;  %v30135_v8 = vpack.c.bf16 %v925_v54, %v918_v59  ;;  %v907_v11 = vand.u32 4294901760, %v906_v62  ;;  %v2049_v62 = vld [vmem:[#allocation7 + $0x78] sm:$0xff] }
 0x175   :  { %27409 = vmatpush3.bf16.msra.mxu0 %v30126_v58  ;;  %v927_v12 = vsub.f32 %v925_v54, %v926_v4  ;;  %v1512_v43 = vand.u32 4294901760, %v1511_v39  ;;  %v1522_v47 = vand.u32 4294901760, %v1521_v42 }
 0x176   :  { %27451 = vmatprep.subr.bf16.mxu0 %v30095_v38  ;;  %v920_v18 = vsub.f32 %v918_v59, %v919_v6  ;;  %v30148_v19 = vpack.c.bf16 %v926_v4, %v919_v6  ;;  %v27410_v21 = vpack.c.bf16 %v914_v0, %v907_v11  ;;  %v2048_v59 = vld [vmem:[#allocation7 + $0x70] sm:$0xff]  ;;  %v2079_v6 = vand.u32 4294901760, %v2047_v55 }
 0x177   :  { %v928_v23 = vand.u32 4294901760, %v927_v12  ;;  %v2082_v11 = vand.u32 4294901760, %v2048_v59 }
 0x178   :  { %24333 = vmatmul.mubr.f32.vlgmr.msra.gmra.mrb[4].mxu0 %v876_v37  ;;  %v921_v26 = vand.u32 4294901760, %v920_v18  ;;  %27411 = vmatprep.subr.bf16.mxu1 %v27410_v21  ;;  %v1502_v37 = vand.u32 4294901760, %v1501_v28 }
 0x179   :  { %27453 = vmatpush3.bf16.msra.mxu0 %v30095_v38  ;;  %27413 = vmatpush3.bf16.msra.mxu1 %v27410_v21 }
 0x17a   :  { %27455 = vmatprep.subr.bf16.mxu0 %v30126_v58  ;;  %v27414_v35 = vpack.c.bf16 %v928_v23, %v921_v26  ;;  %24335 = vmatprep.mubr.f32.mxu0 %v886_v22 }
 0x17c   :  { %27415 = vmatprep.subr.bf16.mxu1 %v27414_v35  ;;  %24336 = vmatmul.mubr.f32.gmra.mrb[6].mxu0 %v896_v27 }
 0x17d   :  { %27457 = vmatpush3.bf16.msra.mxu0 %v30126_v58  ;;  %24416 = vmatprep.mubr.f32.mxu0 %v1492_v32 }
 0x17e   :  { %27417 = vmatpush3.bf16.msra.mxu1 %v27414_v35  ;;  %27459 = vmatprep.subr.bf16.mxu0 %v27410_v21 }
 0x17f   :  { %27419 = vmatprep.subr.bf16.mxu1 %v30129_v60 }
 0x180   :  { %24417 = vmatmul.mubr.f32.vlgmr.msra.gmra.mrb[8].mxu0 %v1502_v37 }
 0x181   :  { %24347 = vmatmul.mubr.msk.f32.vlgmr.msra.gmra.mrb[0].mxu1 %vm780_vm3, %v30036_v63  ;;  %27461 = vmatpush3.bf16.msra.mxu0 %v27410_v21 }
 0x182   :  { %27421 = vmatpush3.bf16.msra.mxu1 %v30129_v60  ;;  %27463 = vmatprep.subr.bf16.mxu0 %v27414_v35 }
 0x183   :  { %27423 = vmatprep.subr.bf16.mxu1 %v30135_v8  ;;  %24349 = vmatprep.mubr.msk.f32.mxu1 %vm780_vm3, %v30044_v2 }
 0x184   :  { %24419 = vmatprep.mubr.f32.mxu0 %v1512_v43 }
 0x185   :  { %24350 = vmatmul.mubr.msk.f32.gmra.mrb[2].mxu1 %vm780_vm3, %v30048_v3  ;;  %24420 = vmatmul.mubr.f32.gmra.mrb[10].mxu0 %v1522_v47 }
 0x186   :  { %27425 = vmatpush3.bf16.msra.mxu1 %v30135_v8  ;;  %27465 = vmatpush3.bf16.msra.mxu0 %v27414_v35 }
 0x187   :  { %27427 = vmatprep.subr.bf16.mxu1 %v30095_v38  ;;  %27467 = vmatprep.subr.bf16.mxu0 %v30129_v60 }
 0x188   :  { %24360 = vmatprep.mubr.f32.mxu1 %v30024_v53  ;;  %24430 = vmatprep.mubr.msk.f32.mxu0 %vm780_vm3, %v30064_v13  ;;  %v2042_v53 = vld [vmem:[#allocation7 + $0x40] sm:$0xff] }
 0x189   :  { %24361 = vmatmul.mubr.f32.vlgmr.msra.gmra.mrb[0].mxu1 %v30040_v1  ;;  %24431 = vmatmul.mubr.msk.f32.vlgmr.msra.gmra.mrb[8].mxu0 %vm780_vm3, %v30080_v24  ;;  %v30211_v1 = vand.u32 4294901760, %v2052_v48 }
 0x18a   :  { %27429 = vmatpush3.bf16.msra.mxu1 %v30095_v38  ;;  %27469 = vmatpush3.bf16.msra.mxu0 %v30129_v60 }
 0x18b   :  { %27431 = vmatprep.subr.bf16.mxu1 %v30126_v58  ;;  %27471 = vmatprep.subr.bf16.mxu0 %v30135_v8 }
 0x18c   :  { %24363 = vmatprep.mubr.f32.mxu1 %v30066_v15  ;;  %24433 = vmatprep.mubr.msk.f32.mxu0 %vm780_vm3, %v30103_v41 }
 0x18d   :  { %24364 = vmatmul.mubr.f32.gmra.mrb[2].mxu1 %v30068_v16  ;;  %24434 = vmatmul.mubr.msk.f32.gmra.mrb[10].mxu0 %vm780_vm3, %v30111_v45  ;;  %v30225_v16 = vsub.f32 %v2052_v48, %v30211_v1 }
 0x18e   :  { %27433 = vmatpush3.bf16.msra.mxu1 %v30126_v58  ;;  %27473 = vmatpush3.bf16.msra.mxu0 %v30135_v8  ;;  %v2061_v8 = vsel %vm2050_vm11, %v30093_v36, 0  ;;  %v2085_v36 = vand.u32 4294901760, %v2049_v62 }
 0x18f   :  { %27435 = vmatprep.subr.bf16.mxu1 %v30139_v10  ;;  %27475 = vmatprep.subr.bf16.mxu0 %v30095_v38  ;;  %v30300_v22 = vand.u32 4294901760, %v2061_v8 }
 0x190   :  { %24374 = vmatprep.mubr.f32.mxu1 %v864_v56  ;;  %24444 = vmatprep.mubr.f32.mxu0 %v30088_v33  ;;  %v2043_v56 = vld [vmem:[#allocation7 + $0x48] sm:$0xff]  ;;  %v2055_v33 = vsel %vm2050_vm11, %v30073_v20, 0  ;;  %v2138_v20 = vand.u32 4294901760, %v30225_v16  ;;  %v30315_v27 = vpack.c.bf16 %v2085_v36, %v2082_v11  ;;  %v30336_v39 = vsub.f32 %v2049_v62, %v2085_v36 }
 0x191   :  { %24375 = vmatmul.mubr.f32.vlgmr.msra.gmra.mrb[0].mxu1 %v874_v7  ;;  %24445 = vmatmul.mubr.f32.vlgmr.msra.gmra.mrb[8].mxu0 %v30106_v44  ;;  %v2064_v7 = vand.u32 4294901760, %v2042_v53  ;;  %v2067_v15 = vand.u32 4294901760, %v2043_v56  ;;  %v30262_v4 = vand.u32 4294901760, %v2055_v33  ;;  %v30331_v37 = vsub.f32 %v2061_v8, %v30300_v22 }
 0x192   :  { %27437 = vmatpush3.bf16.msra.mxu1 %v30139_v10  ;;  %27477 = vmatpush3.bf16.msra.mxu0 %v30095_v38 }
 0x193   :  { %27439 = vmatprep.subr.bf16.mxu1 %v30148_v19  ;;  %27479 = vmatprep.subr.bf16.mxu0 %v30126_v58  ;;  %v30233_v49 = vsub.f32 %v2043_v56, %v2067_v15  ;;  %v30245_v44 = vpack.c.bf16 %v2067_v15, %v2064_v7  ;;  %v30298_v21 = vsub.f32 %v2055_v33, %v30262_v4  ;;  %v2228_v15 = vand.u32 4294901760, %v30336_v39 }
 0x194   :  { %24377 = vmatprep.mubr.f32.mxu1 %v884_v29  ;;  %24447 = vmatprep.mubr.f32.mxu0 %v30137_v9  ;;  %v2045_v29 = vld [vmem:[#allocation7 + $0x58] sm:$0xff]  ;;  %v30269_v9 = vand.u32 4294901760, %v2058_v57 }
 0x195   :  { %24378 = vmatmul.mubr.f32.gmra.mrb[2].mxu1 %v894_v30  ;;  %24448 = vmatmul.mubr.f32.gmra.mrb[10].mxu0 %v30145_v17  ;;  %v30231_v30 = vsub.f32 %v2042_v53, %v2064_v7  ;;  %v2073_v54 = vand.u32 4294901760, %v2045_v29  ;;  %v2186_v61 = vand.u32 4294901760, %v30233_v49  ;;  %v2148_v35 = vand.u32 4294901760, %v30298_v21 }
 0x196   :  { %27441 = vmatpush3.bf16.msra.mxu1 %v30148_v19  ;;  %27481 = vmatpush3.bf16.msra.mxu0 %v30126_v58  ;;  %v30308_v23 = vsub.f32 %v2058_v57, %v30269_v9 }
 0x197   :  { %27443 = vmatprep.subr.bf16.mxu1 %v30095_v38  ;;  %27483 = vmatprep.subr.bf16.mxu0 %v30139_v10  ;;  %v2179_v60 = vand.u32 4294901760, %v30231_v30  ;;  %v30260_v40 = vsub.f32 %v2045_v29, %v2073_v54  ;;  %v2187_v14 = vsub.f32 %v30233_v49, %v2186_v61  ;;  %v27530_v8 = vpack.c.bf16 %v30233_v49, %v30231_v30 }
 0x198   :  { %24388 = vmatprep.mubr.msk.f32.mxu1 %vm780_vm3, %v30018_v51  ;;  %24458 = vmatprep.mubr.f32.mxu0 %v1490_v52  ;;  %v2070_v52 = vand.u32 4294901760, %v2044_v25  ;;  %v2158_v42 = vand.u32 4294901760, %v30308_v23 }
 0x199   :  { %24389 = vmatmul.mubr.msk.f32.vlgmr.msra.gmra.mrb[0].mxu1 %vm780_vm3, %v30036_v63  ;;  %24459 = vmatmul.mubr.f32.vlgmr.msra.gmra.mrb[8].mxu0 %v1500_v5  ;;  %v2076_v5 = vand.u32 4294901760, %v2046_v46  ;;  %v2180_v12 = vsub.f32 %v30231_v30, %v2179_v60  ;;  %v2200_v17 = vand.u32 4294901760, %v30260_v40 }
 0x19a   :  { %27445 = vmatpush3.bf16.msra.mxu1 %v30095_v38  ;;  %27485 = vmatpush3.bf16.msra.mxu0 %v30139_v10  ;;  %v30258_v0 = vsub.f32 %v2044_v25, %v2070_v52  ;;  %v30274_v10 = vpack.c.bf16 %v2073_v54, %v2070_v52  ;;  %v2159_v25 = vsub.f32 %v30308_v23, %v2158_v42 }
 0x19b   :  { %27447 = vmatprep.subr.bf16.mxu1 %v30126_v58  ;;  %27487 = vmatprep.subr.bf16.mxu0 %v30148_v19  ;;  %v30293_v18 = vsub.f32 %v2046_v46, %v2076_v5  ;;  %v2181_v28 = vand.u32 4294901760, %v2180_v12  ;;  %v27562_v12 = vpack.c.bf16 %v2186_v61, %v2179_v60  ;;  %v2034_v60 = vld [vmem:[#allocation7 + $0x8] sm:$0xff] }
 0x19c   :  { %24391 = vmatprep.mubr.msk.f32.mxu1 %vm780_vm3, %v30044_v2  ;;  %24461 = vmatprep.mubr.f32.mxu0 %v1510_v31  ;;  %v2188_v31 = vand.u32 4294901760, %v2187_v14  ;;  %v2036_v14 = vld [vmem:[#allocation7 + $0x18] sm:$0xff] }
 0x19d   :  { %24392 = vmatmul.mubr.msk.f32.gmra.mrb[2].mxu1 %vm780_vm3, %v30048_v3  ;;  %24462 = vmatmul.mubr.f32.gmra.mrb[10].mxu0 %v1520_v34  ;;  %v2207_v32 = vand.u32 4294901760, %v30293_v18 }
 0x19e   :  { %27449 = vmatpush3.bf16.msra.mxu1 %v30126_v58  ;;  %27489 = vmatpush3.bf16.msra.mxu0 %v30148_v19  ;;  %v30295_v19 = vsub.f32 %v2047_v55, %v2079_v6  ;;  %v27514_v43 = vpack.c.bf16 %v2188_v31, %v2181_v28  ;;  %v2229_v55 = vsub.f32 %v30336_v39, %v2228_v15 }
 0x19f   :  { %27491 = vmatprep.subr.bf16.mxu0 %v30095_v38  ;;  %24402 = vmatprep.mubr.msk.f32.mxu1 %vm780_vm3, %v30018_v51  ;;  %v2139_v51 = vsub.f32 %v30225_v16, %v2138_v20  ;;  %v2208_v53 = vsub.f32 %v30293_v18, %v2207_v32 }
 0x1a0   :  { %24472 = vmatprep.mubr.msk.f32.mxu0 %vm780_vm3, %v30064_v13  ;;  %27499 = vmatprep.subr.bf16.mxu1 %v30245_v44  ;;  %v2214_v34 = vand.u32 4294901760, %v30295_v19 }
 0x1a1   :  { %24403 = vmatmul.mubr.msk.f32.vlgmr.msra.gmra.mrb[0].mxu1 %vm780_vm3, %v30036_v63  ;;  %24473 = vmatmul.mubr.msk.f32.vlgmr.msra.gmra.mrb[8].mxu0 %vm780_vm3, %v30080_v24  ;;  %v2193_v63 = vand.u32 4294901760, %v30258_v0  ;;  %v2140_v26 = vand.u32 4294901760, %v2139_v51  ;;  %v2209_v29 = vand.u32 4294901760, %v2208_v53  ;;  %v27538_v51 = vpack.c.bf16 %v30295_v19, %v30293_v18 }
 0x1a2   :  { %27493 = vmatpush3.bf16.msra.mxu0 %v30095_v38  ;;  %27501 = vmatpush3.bf16.msra.mxu1 %v30245_v44  ;;  %v30305_v38 = vpack.c.bf16 %v2079_v6, %v2076_v5  ;;  %v2215_v56 = vsub.f32 %v30295_v19, %v2214_v34  ;;  %v2230_v5 = vand.u32 4294901760, %v2229_v55  ;;  %v27570_v30 = vpack.c.bf16 %v2214_v34, %v2207_v32 }
 0x1a3   :  { %27495 = vmatprep.subr.bf16.mxu0 %v30126_v58  ;;  %24405 = vmatprep.mubr.msk.f32.mxu1 %vm780_vm3, %v30044_v2  ;;  %v2194_v2 = vsub.f32 %v30258_v0, %v2193_v63 }
 0x1a4   :  { %27503 = vmatprep.subr.bf16.mxu1 %v30274_v10  ;;  %24475 = vmatprep.mubr.msk.f32.mxu0 %vm780_vm3, %v30103_v41  ;;  %v2216_v33 = vand.u32 4294901760, %v2215_v56 }
 0x1a5   :  { %24406 = vmatmul.mubr.msk.f32.gmra.mrb[2].mxu1 %vm780_vm3, %v30048_v3  ;;  %24476 = vmatmul.mubr.msk.f32.gmra.mrb[10].mxu0 %vm780_vm3, %v30111_v45  ;;  %v2201_v3 = vsub.f32 %v30260_v40, %v2200_v17  ;;  %v2195_v47 = vand.u32 4294901760, %v2194_v2  ;;  %v2040_v2 = vld [vmem:[#allocation7 + $0x38] sm:$0xff] }
 0x1a6   :  { %27497 = vmatpush3.bf16.msra.mxu0 %v30126_v58  ;;  %27505 = vmatpush3.bf16.msra.mxu1 %v30274_v10  ;;  %v30334_v58 = vsub.f32 %v2048_v59, %v2082_v11  ;;  %v27522_v59 = vpack.c.bf16 %v2216_v33, %v2209_v29  ;;  %v27534_v11 = vpack.c.bf16 %v30260_v40, %v30258_v0  ;;  %v2745_v0 = vand.u32 4294901760, %v2034_v60  ;;  %v2035_v40 = vld [vmem:[#allocation7 + $0x10] sm:$0xff] }
 0x1a7   :  { %24508 = vmatprep.mubr.f32.mxu1 %v2140_v26  ;;  %27507 = vmatprep.subr.bf16.mxu1 %v30305_v38  ;;  %v2202_v48 = vand.u32 4294901760, %v2201_v3 }
 0x1a8   :  { %24486 = vmatprep.mubr.msk.f32.mxu0 %vm780_vm3, %v30064_v13  ;;  %v2149_v13 = vsub.f32 %v30298_v21, %v2148_v35  ;;  %v2221_v7 = vand.u32 4294901760, %v30334_v58  ;;  %v27542_v36 = vpack.c.bf16 %v30336_v39, %v30334_v58  ;;  %v30438_v19 = vsub.f32 %v2034_v60, %v2745_v0 }
 0x1a9   :  { %24487 = vmatmul.mubr.msk.f32.vlgmr.msra.gmra.mrb[8].mxu0 %vm780_vm3, %v30080_v24  ;;  %v2168_v24 = vand.u32 4294901760, %v30331_v37 }
 0x1aa   :  { %27509 = vmatpush3.bf16.msra.mxu1 %v30305_v38  ;;  %24489 = vmatprep.mubr.msk.f32.mxu0 %vm780_vm3, %v30103_v41  ;;  %v27518_v41 = vpack.c.bf16 %v2202_v48, %v2195_v47  ;;  %v2150_v52 = vand.u32 4294901760, %v2149_v13  ;;  %v2222_v46 = vsub.f32 %v30334_v58, %v2221_v7  ;;  %v27574_v49 = vpack.c.bf16 %v2228_v15, %v2221_v7 }
 0x1ab   :  { %27511 = vmatprep.subr.bf16.mxu1 %v30315_v27  ;;  %v2169_v54 = vsub.f32 %v30331_v37, %v2168_v24  ;;  %v2864_v26 = vand.u32 4294901760, %v30438_v19 }
 0x1ac   :  { %v2223_v62 = vand.u32 4294901760, %v2222_v46 }
 0x1ad   :  { %24490 = vmatmul.mubr.msk.f32.gmra.mrb[10].mxu0 %vm780_vm3, %v30111_v45  ;;  %v2160_v45 = vand.u32 4294901760, %v2159_v25  ;;  %v2170_v57 = vand.u32 4294901760, %v2169_v54  ;;  %v2865_v58 = vsub.f32 %v30438_v19, %v2864_v26 }
 0x1ae   :  { %27513 = vmatpush3.bf16.msra.mxu1 %v30315_v27  ;;  %v27526_v6 = vpack.c.bf16 %v2230_v5, %v2223_v62 }
 0x1af   :  { %27515 = vmatprep.subr.bf16.mxu1 %v27514_v43  ;;  %v2866_v7 = vand.u32 4294901760, %v2865_v58 }
 0x1b1   :  { %24509 = vmatmul.mubr.f32.vlgmr.msra.gmra.mrb[4].mxu1 %v2150_v52 }
 0x1b2   :  { %24511 = vmatprep.mubr.f32.mxu1 %v2160_v45  ;;  %27517 = vmatpush3.bf16.msra.mxu1 %v27514_v43 }
 0x1b3   :  { %27519 = vmatprep.subr.bf16.mxu1 %v27518_v41 }
 0x1b5   :  { %24512 = vmatmul.mubr.f32.gmra.mrb[6].mxu1 %v2170_v57 }
 0x1b6   :  { %27521 = vmatpush3.bf16.msra.mxu1 %v27518_v41  ;;  %24530 = vmatprep.mubr.f32.mxu1 %v30211_v1 }
 0x1b7   :  { %27523 = vmatprep.subr.bf16.mxu1 %v27522_v59 }
 0x1ba   :  { %27525 = vmatpush3.bf16.msra.mxu1 %v27522_v59 }
 0x1bb   :  { %27527 = vmatprep.subr.bf16.mxu1 %v27526_v6 }
 0x1be   :  { %27529 = vmatpush3.bf16.msra.mxu1 %v27526_v6 }
 0x1bf   :  { %27531 = vmatprep.subr.bf16.mxu1 %v27530_v8 }
 0x1c1   :  { %24531 = vmatmul.mubr.f32.vlgmr.msra.gmra.mrb[4].mxu1 %v30262_v4 }
 0x1c2   :  { %24533 = vmatprep.mubr.f32.mxu1 %v30269_v9  ;;  %27533 = vmatpush3.bf16.msra.mxu1 %v27530_v8 }
 0x1c3   :  { %27535 = vmatprep.subr.bf16.mxu1 %v27534_v11 }
 0x1c5   :  { %24534 = vmatmul.mubr.f32.gmra.mrb[6].mxu1 %v30300_v22 }
 0x1c6   :  { %27537 = vmatpush3.bf16.msra.mxu1 %v27534_v11  ;;  %24552 = vmatprep.mubr.f32.mxu1 %v30225_v16  ;;  %v27566_v16 = vpack.c.bf16 %v2200_v17, %v2193_v63  ;;  %v2751_v17 = vand.u32 4294901760, %v2036_v14 }
 0x1c7   :  { %27539 = vmatprep.subr.bf16.mxu1 %v27538_v51 }
 0x1c8   :  { %v2877_v32 = vsub.f32 %v2036_v14, %v2751_v17 }
 0x1ca   :  { %27541 = vmatpush3.bf16.msra.mxu1 %v27538_v51  ;;  %v2878_v39 = vand.u32 4294901760, %v2877_v32 }
 0x1cb   :  { %27543 = vmatprep.subr.bf16.mxu1 %v27542_v36 }
 0x1ce   :  { %27545 = vmatpush3.bf16.msra.mxu1 %v27542_v36 }
 0x1cf   :  { %27547 = vmatprep.subr.bf16.mxu1 %v30245_v44 }
 0x1d1   :  { %24553 = vmatmul.mubr.f32.vlgmr.msra.gmra.mrb[4].mxu1 %v30298_v21  ;;  %v2039_v21 = vld [vmem:[#allocation7 + $0x30] sm:$0xff] }
 0x1d2   :  { %24555 = vmatprep.mubr.f32.mxu1 %v30308_v23  ;;  %27549 = vmatpush3.bf16.msra.mxu1 %v30245_v44  ;;  %v2760_v34 = vand.u32 4294901760, %v2039_v21 }
 0x1d3   :  { %27551 = vmatprep.subr.bf16.mxu1 %v30274_v10 }
 0x1d4   :  { %v2898_v29 = vsub.f32 %v2039_v21, %v2760_v34 }
 0x1d5   :  { %24556 = vmatmul.mubr.f32.gmra.mrb[6].mxu1 %v30331_v37 }
 0x1d6   :  { %27553 = vmatpush3.bf16.msra.mxu1 %v30274_v10  ;;  %24574 = vmatprep.mubr.f32.mxu1 %v2138_v20  ;;  %v2033_v20 = vld [vmem:[#allocation7] sm:$0xff]  ;;  %v2899_v46 = vand.u32 4294901760, %v2898_v29 }
 0x1d7   :  { %27555 = vmatprep.subr.bf16.mxu1 %v30305_v38  ;;  %v2742_v61 = vand.u32 4294901760, %v2033_v20 }
 0x1d8   :  { %v2900_v59 = vsub.f32 %v2898_v29, %v2899_v46 }
 0x1d9   :  { %v30433_v63 = vpack.c.bf16 %v2745_v0, %v2742_v61  ;;  %v30436_v18 = vsub.f32 %v2033_v20, %v2742_v61 }
 0x1da   :  { %27557 = vmatpush3.bf16.msra.mxu1 %v30305_v38  ;;  %v2901_v5 = vand.u32 4294901760, %v2900_v59 }
 0x1db   :  { %27559 = vmatprep.subr.bf16.mxu1 %v30315_v27  ;;  %v2857_v23 = vand.u32 4294901760, %v30436_v18  ;;  %v27626_v11 = vpack.c.bf16 %v30438_v19, %v30436_v18 }
 0x1dd   :  { %v2858_v37 = vsub.f32 %v30436_v18, %v2857_v23 }
 0x1de   :  { %27561 = vmatpush3.bf16.msra.mxu1 %v30315_v27 }
 0x1df   :  { %27563 = vmatprep.subr.bf16.mxu1 %v27562_v12 }
 0x1e1   :  { %24575 = vmatmul.mubr.f32.vlgmr.msra.gmra.mrb[4].mxu1 %v2148_v35 }
 0x1e2   :  { %24577 = vmatprep.mubr.f32.mxu1 %v2158_v42  ;;  %27565 = vmatpush3.bf16.msra.mxu1 %v27562_v12 }
 0x1e3   :  { %27567 = vmatprep.subr.bf16.mxu1 %v27566_v16 }
 0x1e5   :  { %24578 = vmatmul.mubr.f32.gmra.mrb[6].mxu1 %v2168_v24  ;;  %v2859_v24 = vand.u32 4294901760, %v2858_v37 }
 0x1e6   :  { %27569 = vmatpush3.bf16.msra.mxu1 %v27566_v16  ;;  %24596 = vmatprep.mubr.f32.mxu1 %v30211_v1  ;;  %v30474_v16 = vpack.c.bf16 %v2864_v26, %v2857_v23 }
 0x1e7   :  { %27571 = vmatprep.subr.bf16.mxu1 %v27570_v30  ;;  %v27610_v45 = vpack.c.bf16 %v2866_v7, %v2859_v24 }
 0x1ea   :  { %27573 = vmatpush3.bf16.msra.mxu1 %v27570_v30 }
 0x1eb   :  { %27575 = vmatprep.subr.bf16.mxu1 %v27574_v49 }
 0x1ee   :  { %27577 = vmatpush3.bf16.msra.mxu1 %v27574_v49 }
 0x1ef   :  { %27579 = vmatprep.subr.bf16.mxu1 %v30245_v44 }
 0x1f1   :  { %24597 = vmatmul.mubr.f32.vlgmr.msra.gmra.mrb[4].mxu1 %v30262_v4 }
 0x1f2   :  { %24599 = vmatprep.mubr.f32.mxu1 %v30269_v9  ;;  %27581 = vmatpush3.bf16.msra.mxu1 %v30245_v44  ;;  %v2748_v44 = vand.u32 4294901760, %v2035_v40 }
 0x1f3   :  { %27583 = vmatprep.subr.bf16.mxu1 %v30274_v10 }
 0x1f4   :  { %v2870_v3 = vsub.f32 %v2035_v40, %v2748_v44 }
 0x1f5   :  { %24600 = vmatmul.mubr.f32.gmra.mrb[6].mxu1 %v30300_v22 }
 0x1f6   :  { %27585 = vmatpush3.bf16.msra.mxu1 %v30274_v10  ;;  %24618 = vmatprep.mubr.f32.mxu1 %v30211_v1  ;;  %v2037_v10 = vld [vmem:[#allocation7 + $0x20] sm:$0xff]  ;;  %v2038_v1 = vld [vmem:[#allocation7 + $0x28] sm:$0xff]  ;;  %v2871_v35 = vand.u32 4294901760, %v2870_v3  ;;  %v30468_v51 = vpack.c.bf16 %v2877_v32, %v2870_v3 }
 0x1f7   :  { %27587 = vmatprep.subr.bf16.mxu1 %v30305_v38  ;;  %v2754_v28 = vand.u32 4294901760, %v2037_v10  ;;  %v2757_v31 = vand.u32 4294901760, %v2038_v1 }
 0x1f8   :  { %v2872_v43 = vsub.f32 %v2870_v3, %v2871_v35  ;;  %v30476_v30 = vpack.c.bf16 %v2878_v39, %v2871_v35 }
 0x1f9   :  { %v30452_v42 = vpack.c.bf16 %v2757_v31, %v2754_v28  ;;  %v2884_v47 = vsub.f32 %v2037_v10, %v2754_v28  ;;  %v2891_v48 = vsub.f32 %v2038_v1, %v2757_v31 }
 0x1fa   :  { %27589 = vmatpush3.bf16.msra.mxu1 %v30305_v38  ;;  %v30444_v38 = vpack.c.bf16 %v2751_v17, %v2748_v44  ;;  %v2873_v53 = vand.u32 4294901760, %v2872_v43 }
 0x1fb   :  { %27591 = vmatprep.subr.bf16.mxu1 %v30315_v27  ;;  %v2892_v56 = vand.u32 4294901760, %v2891_v48  ;;  %v30470_v36 = vpack.c.bf16 %v2891_v48, %v2884_v47 }
 0x1fd   :  { %v2893_v41 = vsub.f32 %v2891_v48, %v2892_v56 }
 0x1fe   :  { %27593 = vmatpush3.bf16.msra.mxu1 %v30315_v27  ;;  %v2763_v27 = vand.u32 4294901760, %v2040_v2 }
 0x1ff   :  { %27595 = vmatprep.subr.bf16.mxu1 %v30433_v63 }
 0x200   :  { %v30456_v13 = vpack.c.bf16 %v2763_v27, %v2760_v34  ;;  %v2905_v33 = vsub.f32 %v2040_v2, %v2763_v27 }
 0x201   :  { %24619 = vmatmul.mubr.f32.vlgmr.msra.gmra.mrb[4].mxu1 %v30262_v4  ;;  %v2879_v4 = vsub.f32 %v2877_v32, %v2878_v39 }
 0x202   :  { %24621 = vmatprep.mubr.f32.mxu1 %v30269_v9  ;;  %27597 = vmatpush3.bf16.msra.mxu1 %v30433_v63  ;;  %v2885_v9 = vand.u32 4294901760, %v2884_v47  ;;  %v2906_v55 = vand.u32 4294901760, %v2905_v33  ;;  %v30472_v12 = vpack.c.bf16 %v2905_v33, %v2898_v29 }
 0x203   :  { %27599 = vmatprep.subr.bf16.mxu1 %v30444_v38  ;;  %v2880_v15 = vand.u32 4294901760, %v2879_v4 }
 0x204   :  { %v2886_v25 = vsub.f32 %v2884_v47, %v2885_v9  ;;  %v2907_v62 = vsub.f32 %v2905_v33, %v2906_v55  ;;  %v30478_v49 = vpack.c.bf16 %v2892_v56, %v2885_v9  ;;  %v30480_v20 = vpack.c.bf16 %v2906_v55, %v2899_v46  ;;  %v4126_v46 = vld [vmem:[#allocation12 + $0x10] sm:$0xff] }
 0x205   :  { %24622 = vmatmul.mubr.f32.gmra.mrb[6].mxu1 %v30300_v22  ;;  %v30459_v52 = vpack.c.bf16 %v2880_v15, %v2873_v53  ;;  %v2894_v22 = vand.u32 4294901760, %v2893_v41  ;;  %v4154_v59 = vand.u32 4294901760, %v4126_v46 }
 0x206   :  { %27601 = vmatpush3.bf16.msra.mxu1 %v30444_v38  ;;  %v2887_v54 = vand.u32 4294901760, %v2886_v25  ;;  %v2908_v6 = vand.u32 4294901760, %v2907_v62  ;;  %v4128_v62 = vld [vmem:[#allocation12 + $0x20] sm:$0xff] }
 0x207   :  { %27603 = vmatprep.subr.bf16.mxu1 %v30452_v42 }
 0x208   :  { %v30463_v57 = vpack.c.bf16 %v2894_v22, %v2887_v54  ;;  %v27622_v8 = vpack.c.bf16 %v2908_v6, %v2901_v5  ;;  %v4125_v22 = vld [vmem:[#allocation12 + $0x8] sm:$0xff] }
 0x209   :  { %v4129_v5 = vld [vmem:[#allocation12 + $0x28] sm:$0xff] }
 0x20a   :  { %27605 = vmatpush3.bf16.msra.mxu1 %v30452_v42 }
 0x20b   :  { %27607 = vmatprep.subr.bf16.mxu1 %v30456_v13 }
 0x20e   :  { %27609 = vmatpush3.bf16.msra.mxu1 %v30456_v13 }
 0x20f   :  { %27611 = vmatprep.subr.bf16.mxu1 %v27610_v45 }
 0x24b   :  { %v24334_v60 = vpop.f32.mrb[4].mxu0 }
 0x24c   :  { %v868_v61 = vpop.f32.mrb[5].mxu0 }
 0x24f   :  { %v24337_v0 = vpop.f32.mrb[6].mxu0 }
 0x250   :  { %v888_v40 = vpop.f32.mrb[7].mxu0 }
 0x274   :  { %v24404_v14 = vpop.f32.mrb[0].mxu1 }
 0x275   :  { %v29214_v44 = vadd.f32 %v24404_v14, %v24334_v60  ;;  %v1385_v17 = vpop.f32.mrb[1].mxu1  ;;  %v4130_v60 = vld [vmem:[#allocation12 + $0x30] sm:$0xff] }
 0x276   :  { %v29215_v18 = vadd.f32 %v1385_v17, %v868_v61  ;;  %v4131_v61 = vld [vmem:[#allocation12 + $0x38] sm:$0xff] }
 0x277   :  { %v2733_v19 = vsel %vm2050_vm11, %v29214_v44, 0 }
 0x278   :  { %v30483_v10 = vand.u32 4294901760, %v2733_v19  ;;  %v2730_v1 = vsel %vm2050_vm11, %v29215_v18, 0  ;;  %v24407_v21 = vpop.f32.mrb[2].mxu1 }
 0x279   :  { %v30486_v23 = vand.u32 4294901760, %v2730_v1  ;;  %v29216_v26 = vadd.f32 %v24407_v21, %v24337_v0  ;;  %v1397_v28 = vpop.f32.mrb[3].mxu1 }
 0x27a   :  { %v2825_v31 = vsub.f32 %v2733_v19, %v30483_v10  ;;  %v29217_v2 = vadd.f32 %v1397_v28, %v888_v40  ;;  %v4166_v28 = vand.u32 4294901760, %v4130_v60 }
 0x27b   :  { %v2815_v3 = vsub.f32 %v2730_v1, %v30486_v23  ;;  %v2739_v32 = vsel %vm2050_vm11, %v29216_v26, 0 }
 0x27c   :  { %v2826_v34 = vand.u32 4294901760, %v2825_v31  ;;  %v30491_v35 = vand.u32 4294901760, %v2739_v32  ;;  %v2736_v27 = vsel %vm2050_vm11, %v29217_v2, 0  ;;  %v30494_v37 = vpop.f32.mrb[8].mxu0 }
 0x27d   :  { %v30496_v58 = vand.u32 4294901760, %v2736_v27  ;;  %v2816_v39 = vand.u32 4294901760, %v2815_v3  ;;  %v30498_v43 = vpop.f32.mrb[9].mxu0 }
 0x27e   :  { %v2827_v47 = vsub.f32 %v2825_v31, %v2826_v34  ;;  %v2845_v48 = vsub.f32 %v2739_v32, %v30491_v35  ;;  %v30535_v6 = vsel %vm2050_vm11, %v30498_v43, 0  ;;  %v30581_v43 = vsub.f32 %v4130_v60, %v4166_v28  ;;  %v3409_v60 = vld [vmem:[#allocation7 + $0x88] sm:$0xff] }
 0x27f   :  { %v2835_v4 = vsub.f32 %v2736_v27, %v30496_v58  ;;  %v2817_v53 = vsub.f32 %v2815_v3, %v2816_v39 }
 0x280   :  { %v2846_v9 = vand.u32 4294901760, %v2845_v48  ;;  %v30502_v56 = vpop.f32.mrb[10].mxu0  ;;  %v2828_v25 = vand.u32 4294901760, %v2827_v47  ;;  %v4132_v47 = vld [vmem:[#allocation12 + $0x40] sm:$0xff] }
 0x281   :  { %v2818_v24 = vand.u32 4294901760, %v2817_v53  ;;  %v2836_v7 = vand.u32 4294901760, %v2835_v4  ;;  %v30504_v15 = vpop.f32.mrb[11].mxu0 }
 0x282   :  { %v2847_v41 = vsub.f32 %v2845_v48, %v2846_v9 }
 0x283   :  { %24640 = vmatprep.mubr.f32.mxu1 %v2818_v24  ;;  %v2837_v29 = vsub.f32 %v2835_v4, %v2836_v7 }
 0x284   :  { %24641 = vmatmul.mubr.f32.vlgmr.msra.gmra.mrb[4].mxu1 %v2828_v25  ;;  %v2848_v54 = vand.u32 4294901760, %v2847_v41 }
 0x285   :  { %27613 = vmatpush3.bf16.msra.mxu1 %v27610_v45  ;;  %v2838_v33 = vand.u32 4294901760, %v2837_v29  ;;  %v4151_v45 = vand.u32 4294901760, %v4125_v22  ;;  %v32852_v29 = vand.u32 4294901760, %v30581_v43 }
 0x286   :  { %27615 = vmatprep.subr.bf16.mxu1 %v30459_v52 }
 0x287   :  { %24643 = vmatprep.mubr.f32.mxu1 %v2838_v33 }
 0x288   :  { %24644 = vmatmul.mubr.f32.gmra.mrb[6].mxu1 %v2848_v54  ;;  %v4135_v54 = vld [vmem:[#allocation12 + $0x58] sm:$0xff] }
 0x289   :  { %27617 = vmatpush3.bf16.msra.mxu1 %v30459_v52  ;;  %24662 = vmatprep.mubr.f32.mxu1 %v30486_v23  ;;  %v4124_v52 = vld [vmem:[#allocation12] sm:$0xff] }
 0x28a   :  { %27619 = vmatprep.subr.bf16.mxu1 %v30463_v57  ;;  %v4148_v55 = vand.u32 4294901760, %v4124_v52 }
 0x28d   :  { %27621 = vmatpush3.bf16.msra.mxu1 %v30463_v57  ;;  %v4127_v57 = vld [vmem:[#allocation12 + $0x18] sm:$0xff] }
 0x28e   :  { %27623 = vmatprep.subr.bf16.mxu1 %v27622_v8 }
 0x291   :  { %27625 = vmatpush3.bf16.msra.mxu1 %v27622_v8  ;;  %v4157_v8 = vand.u32 4294901760, %v4127_v57 }
 0x292   :  { %27627 = vmatprep.subr.bf16.mxu1 %v27626_v11 }
 0x293   :  { %v30546_v0 = vpack.c.bf16 %v4157_v8, %v4154_v59  ;;  %v30548_v40 = vsub.f32 %v4127_v57, %v4157_v8  ;;  %v4181_v8 = vand.u32 4294901760, %v4135_v54 }
 0x294   :  { %24663 = vmatmul.mubr.f32.vlgmr.msra.gmra.mrb[4].mxu1 %v30483_v10 }
 0x295   :  { %24665 = vmatprep.mubr.f32.mxu1 %v30496_v58  ;;  %27629 = vmatpush3.bf16.msra.mxu1 %v27626_v11  ;;  %v4160_v11 = vand.u32 4294901760, %v4128_v62  ;;  %v32855_v21 = vand.u32 4294901760, %v30548_v40 }
 0x296   :  { %27631 = vmatprep.subr.bf16.mxu1 %v30468_v51 }
 0x297   :  { %v30552_v44 = vsub.f32 %v4128_v62, %v4160_v11 }
 0x298   :  { %24666 = vmatmul.mubr.f32.gmra.mrb[6].mxu1 %v30491_v35 }
 0x299   :  { %27633 = vmatpush3.bf16.msra.mxu1 %v30468_v51  ;;  %24684 = vmatprep.mubr.f32.mxu1 %v2815_v3  ;;  %v4163_v51 = vand.u32 4294901760, %v4129_v5  ;;  %v32854_v26 = vand.u32 4294901760, %v30552_v44 }
 0x29a   :  { %27635 = vmatprep.subr.bf16.mxu1 %v30470_v36 }
 0x29b   :  { %v30550_v14 = vpack.c.bf16 %v4163_v51, %v4160_v11  ;;  %v30558_v1 = vsub.f32 %v4129_v5, %v4163_v51  ;;  %v4300_v27 = vsub.f32 %v30552_v44, %v32854_v26  ;;  %v30603_v11 = vand.u32 4294901760, %v30535_v6  ;;  %v3408_v51 = vld [vmem:[#allocation7 + $0x80] sm:$0xff] }
 0x29d   :  { %27637 = vmatpush3.bf16.msra.mxu1 %v30470_v36  ;;  %v30538_v36 = vpack.c.bf16 %v4151_v45, %v4148_v55  ;;  %v32853_v32 = vand.u32 4294901760, %v30558_v1  ;;  %v4301_v41 = vand.u32 4294901760, %v4300_v27 }
 0x29e   :  { %27639 = vmatprep.subr.bf16.mxu1 %v30472_v12 }
 0x29f   :  { %v4307_v24 = vsub.f32 %v30558_v1, %v32853_v32 }
 0x2a1   :  { %27641 = vmatpush3.bf16.msra.mxu1 %v30472_v12  ;;  %v30540_v12 = vsub.f32 %v4124_v52, %v4148_v55 }
 0x2a2   :  { %27643 = vmatprep.subr.bf16.mxu1 %v30433_v63 }
 0x2a3   :  { %v32858_v17 = vand.u32 4294901760, %v30540_v12 }
 0x2a4   :  { %24685 = vmatmul.mubr.f32.vlgmr.msra.gmra.mrb[4].mxu1 %v2825_v31  ;;  %v4169_v31 = vand.u32 4294901760, %v4131_v61 }
 0x2a5   :  { %24687 = vmatprep.mubr.f32.mxu1 %v2835_v4  ;;  %27645 = vmatpush3.bf16.msra.mxu1 %v30433_v63 }
 0x2a6   :  { %27647 = vmatprep.subr.bf16.mxu1 %v30444_v38  ;;  %v30589_v33 = vsub.f32 %v4131_v61, %v4169_v31 }
 0x2a8   :  { %24688 = vmatmul.mubr.f32.gmra.mrb[6].mxu1 %v2845_v48  ;;  %v4133_v48 = vld [vmem:[#allocation12 + $0x48] sm:$0xff]  ;;  %v32851_v57 = vand.u32 4294901760, %v30589_v33 }
 0x2a9   :  { %27649 = vmatpush3.bf16.msra.mxu1 %v30444_v38  ;;  %24706 = vmatprep.mubr.f32.mxu1 %v2816_v39  ;;  %v30579_v39 = vpack.c.bf16 %v4169_v31, %v4166_v28 }
 0x2aa   :  { %27651 = vmatprep.subr.bf16.mxu1 %v30452_v42  ;;  %v4321_v61 = vsub.f32 %v30589_v33, %v32851_v57 }
 0x2ac   :  { %v4322_v27 = vand.u32 4294901760, %v4321_v61  ;;  %v3413_v61 = vld [vmem:[#allocation7 + $0xa8] sm:$0xff] }
 0x2ad   :  { %27653 = vmatpush3.bf16.msra.mxu1 %v30452_v42 }
 0x2ae   :  { %27655 = vmatprep.subr.bf16.mxu1 %v30456_v13 }
 0x2b1   :  { %27657 = vmatpush3.bf16.msra.mxu1 %v30456_v13 }
 0x2b2   :  { %27659 = vmatprep.subr.bf16.mxu1 %v30474_v16 }
 0x2b4   :  { %24707 = vmatmul.mubr.f32.vlgmr.msra.gmra.mrb[4].mxu1 %v2826_v34  ;;  %v4293_v34 = vsub.f32 %v30548_v40, %v32855_v21 }
 0x2b5   :  { %24709 = vmatprep.mubr.f32.mxu1 %v2836_v7  ;;  %27661 = vmatpush3.bf16.msra.mxu1 %v30474_v16  ;;  %v30542_v16 = vsub.f32 %v4125_v22, %v4151_v45  ;;  %v4134_v7 = vld [vmem:[#allocation12 + $0x50] sm:$0xff]  ;;  %v4308_v22 = vand.u32 4294901760, %v4307_v24  ;;  %v4314_v45 = vsub.f32 %v30581_v43, %v32852_v29 }
 0x2b6   :  { %27663 = vmatprep.subr.bf16.mxu1 %v30476_v30  ;;  %v4294_v25 = vand.u32 4294901760, %v4293_v34 }
 0x2b7   :  { %v32857_v18 = vand.u32 4294901760, %v30542_v16  ;;  %v4315_v31 = vand.u32 4294901760, %v4314_v45  ;;  %v27826_v34 = vpack.c.bf16 %v4308_v22, %v4301_v41 }
 0x2b8   :  { %24710 = vmatmul.mubr.f32.gmra.mrb[6].mxu1 %v2846_v9 }
 0x2b9   :  { %27665 = vmatpush3.bf16.msra.mxu1 %v30476_v30  ;;  %24728 = vmatprep.mubr.f32.mxu1 %v30486_v23  ;;  %v30544_v30 = vsub.f32 %v4126_v46, %v4154_v59  ;;  %v4279_v2 = vsub.f32 %v30542_v16, %v32857_v18  ;;  %v4175_v46 = vand.u32 4294901760, %v4133_v48  ;;  %v4178_v59 = vand.u32 4294901760, %v4134_v7 }
 0x2ba   :  { %27667 = vmatprep.subr.bf16.mxu1 %v30478_v49 }
 0x2bb   :  { %v32856_v19 = vand.u32 4294901760, %v30544_v30  ;;  %v4280_v53 = vand.u32 4294901760, %v4279_v2  ;;  %v30609_v28 = vsub.f32 %v4133_v48, %v4175_v46  ;;  %v30614_v2 = vpack.c.bf16 %v4181_v8, %v4178_v59 }
 0x2bd   :  { %27669 = vmatpush3.bf16.msra.mxu1 %v30478_v49  ;;  %v4272_v49 = vsub.f32 %v30540_v12, %v32858_v17  ;;  %v4286_v3 = vsub.f32 %v30544_v30, %v32856_v19 }
 0x2be   :  { %27671 = vmatprep.subr.bf16.mxu1 %v30480_v20 }
 0x2bf   :  { %v4273_v4 = vand.u32 4294901760, %v4272_v49  ;;  %v4287_v9 = vand.u32 4294901760, %v4286_v3  ;;  %v30616_v3 = vsub.f32 %v4135_v54, %v4181_v8  ;;  %v3420_v8 = vsel %vm2050_vm11, %v30494_v37, 0  ;;  %v3415_v37 = vld [vmem:[#allocation7 + $0xb8] sm:$0xff] }
 0x2c1   :  { %27673 = vmatpush3.bf16.msra.mxu1 %v30480_v20  ;;  %v27818_v52 = vpack.c.bf16 %v4280_v53, %v4273_v4  ;;  %v4172_v20 = vand.u32 4294901760, %v4132_v47  ;;  %v27822_v55 = vpack.c.bf16 %v4294_v25, %v4287_v9  ;;  %v3429_v4 = vand.u32 4294901760, %v3408_v51 }
 0x2c2   :  { %27675 = vmatprep.subr.bf16.mxu1 %v30433_v63  ;;  %v3432_v53 = vand.u32 4294901760, %v3409_v60  ;;  %v32847_v24 = vand.u32 4294901760, %v30616_v3  ;;  %v30633_v25 = vsub.f32 %v30535_v6, %v30603_v11 }
 0x2c3   :  { %v30598_v62 = vpack.c.bf16 %v4175_v46, %v4172_v20  ;;  %v30600_v5 = vsub.f32 %v4132_v47, %v4172_v20  ;;  %27819 = vmatprep.subr.bf16.mxu0 %v27818_v52  ;;  %v32849_v47 = vand.u32 4294901760, %v30609_v28  ;;  %v30635_v41 = vsub.f32 %v3408_v51, %v3429_v4 }
 0x2c4   :  { %24729 = vmatmul.mubr.f32.vlgmr.msra.gmra.mrb[4].mxu1 %v30483_v10  ;;  %27821 = vmatpush3.bf16.msra.mxu0 %v27818_v52  ;;  %v30637_v54 = vsub.f32 %v3409_v60, %v3432_v53  ;;  %v27830_v52 = vpack.c.bf16 %v4322_v27, %v4315_v31  ;;  %v4349_v6 = vsub.f32 %v30616_v3, %v32847_v24  ;;  %v3503_v51 = vand.u32 4294901760, %v30633_v25  ;;  %v3412_v60 = vld [vmem:[#allocation7 + $0xa0] sm:$0xff] }
 0x2c5   :  { %24731 = vmatprep.mubr.f32.mxu1 %v30496_v58  ;;  %27677 = vmatpush3.bf16.msra.mxu1 %v30433_v63  ;;  %v30611_v63 = vsub.f32 %v4134_v7, %v4178_v59  ;;  %v32850_v49 = vand.u32 4294901760, %v30600_v5  ;;  %v4335_v7 = vsub.f32 %v30609_v28, %v32849_v47  ;;  %v30647_v45 = vpack.c.bf16 %v3432_v53, %v3429_v4 }
 0x2c6   :  { %27679 = vmatprep.subr.bf16.mxu1 %v30444_v38  ;;  %27823 = vmatprep.subr.bf16.mxu0 %v27822_v55  ;;  %v3544_v31 = vand.u32 4294901760, %v30635_v41  ;;  %v3551_v27 = vand.u32 4294901760, %v30637_v54  ;;  %v30661_v47 = vand.u32 4294901760, %v3420_v8 }
 0x2c7   :  { %v32848_v48 = vand.u32 4294901760, %v30611_v63  ;;  %v4328_v9 = vsub.f32 %v30600_v5, %v32850_v49  ;;  %v4336_v20 = vand.u32 4294901760, %v4335_v7  ;;  %v4350_v7 = vand.u32 4294901760, %v4349_v6 }
 0x2c8   :  { %24732 = vmatmul.mubr.f32.gmra.mrb[6].mxu1 %v30491_v35  ;;  %27825 = vmatpush3.bf16.msra.mxu0 %v27822_v55  ;;  %v3441_v49 = vand.u32 4294901760, %v3412_v60  ;;  %v3552_v6 = vsub.f32 %v30637_v54, %v3551_v27  ;;  %v30689_v57 = vsub.f32 %v3420_v8, %v30661_v47 }
 0x2c9   :  { %27681 = vmatpush3.bf16.msra.mxu1 %v30444_v38  ;;  %24750 = vmatprep.mubr.f32.mxu1 %v30486_v23  ;;  %v3410_v38 = vld [vmem:[#allocation7 + $0x90] sm:$0xff]  ;;  %v3411_v23 = vld [vmem:[#allocation7 + $0x98] sm:$0xff]  ;;  %v4329_v22 = vand.u32 4294901760, %v4328_v9  ;;  %v4342_v46 = vsub.f32 %v30611_v63, %v32848_v48 }
 0x2ca   :  { %27683 = vmatprep.subr.bf16.mxu1 %v30452_v42  ;;  %27827 = vmatprep.subr.bf16.mxu0 %v27826_v34  ;;  %v3435_v59 = vand.u32 4294901760, %v3410_v38  ;;  %v3438_v55 = vand.u32 4294901760, %v3411_v23  ;;  %v3414_v9 = vld [vmem:[#allocation7 + $0xb0] sm:$0xff]  ;;  %v3553_v32 = vand.u32 4294901760, %v3552_v6 }
 0x2cb   :  { %v27834_v4 = vpack.c.bf16 %v4336_v20, %v4329_v22  ;;  %v4343_v53 = vand.u32 4294901760, %v4342_v46  ;;  %v3426_v22 = vsel %vm2050_vm11, %v30502_v56, 0  ;;  %v3545_v46 = vsub.f32 %v30635_v41, %v3544_v31 }
 0x2cc   :  { %27829 = vmatpush3.bf16.msra.mxu0 %v27826_v34  ;;  %v30657_v24 = vsub.f32 %v3410_v38, %v3435_v59  ;;  %v30659_v48 = vsub.f32 %v3411_v23, %v3438_v55  ;;  %v30664_v34 = vpack.c.bf16 %v3438_v55, %v3435_v59  ;;  %v3447_v38 = vand.u32 4294901760, %v3414_v9 }
 0x2cd   :  { %27685 = vmatpush3.bf16.msra.mxu1 %v30452_v42  ;;  %v3423_v42 = vsel %vm2050_vm11, %v30504_v15, 0  ;;  %27831 = vmatprep.subr.bf16.mxu0 %v27830_v52  ;;  %v3444_v15 = vand.u32 4294901760, %v3413_v61  ;;  %v3450_v23 = vand.u32 4294901760, %v3415_v37  ;;  %v27838_v56 = vpack.c.bf16 %v4350_v7, %v4343_v53 }
 0x2ce   :  { %27687 = vmatprep.subr.bf16.mxu1 %v30456_v13  ;;  %v30668_v20 = vand.u32 4294901760, %v3423_v42  ;;  %v3558_v59 = vand.u32 4294901760, %v30657_v24  ;;  %v30691_v29 = vand.u32 4294901760, %v3426_v22 }
 0x2cf   :  { %v30686_v55 = vsub.f32 %v3413_v61, %v3444_v15  ;;  %v30694_v53 = vpack.c.bf16 %v3444_v15, %v3441_v49  ;;  %v3546_v61 = vand.u32 4294901760, %v3545_v46  ;;  %v30718_v46 = vsub.f32 %v3415_v37, %v3450_v23 }
 0x2d0   :  { %27833 = vmatpush3.bf16.msra.mxu0 %v27830_v52  ;;  %v3565_v52 = vand.u32 4294901760, %v30659_v48  ;;  %v30713_v15 = vsub.f32 %v3426_v22, %v30691_v29 }
 0x2d1   :  { %27689 = vmatpush3.bf16.msra.mxu1 %v30456_v13  ;;  %v3504_v13 = vsub.f32 %v30633_v25, %v3503_v51  ;;  %27835 = vmatprep.subr.bf16.mxu0 %v27834_v4 }
 0x2d2   :  { %27691 = vmatprep.subr.bf16.mxu1 %v30647_v45  ;;  %v3566_v8 = vsub.f32 %v30659_v48, %v3565_v52  ;;  %v3533_v37 = vand.u32 4294901760, %v30713_v15 }
 0x2d3   :  { %v3505_v7 = vand.u32 4294901760, %v3504_v13  ;;  %v30716_v13 = vsub.f32 %v3414_v9, %v3447_v38 }
 0x2d4   :  { %24751 = vmatmul.mubr.f32.vlgmr.msra.gmra.mrb[4].mxu1 %v30483_v10  ;;  %v30684_v10 = vsub.f32 %v3412_v60, %v3441_v49  ;;  %27837 = vmatpush3.bf16.msra.mxu0 %v27834_v4  ;;  %v30700_v60 = vpack.c.bf16 %v3450_v23, %v3447_v38  ;;  %v3559_v49 = vsub.f32 %v30657_v24, %v3558_v59  ;;  %v3513_v4 = vand.u32 4294901760, %v30689_v57 }
 0x2d5   :  { %24753 = vmatprep.mubr.f32.mxu1 %v30496_v58  ;;  %27693 = vmatpush3.bf16.msra.mxu1 %v30647_v45  ;;  %v30697_v58 = vsub.f32 %v3423_v42, %v30668_v20  ;;  %v3567_v21 = vand.u32 4294901760, %v3566_v8  ;;  %v32862_v38 = vand.u32 4294901760, %v30718_v46  ;;  %v3534_v18 = vsub.f32 %v30713_v15, %v3533_v37 }
 0x2d6   :  { %27695 = vmatprep.subr.bf16.mxu1 %v30664_v34  ;;  %27839 = vmatprep.subr.bf16.mxu0 %v27838_v56  ;;  %v3572_v42 = vand.u32 4294901760, %v30684_v10  ;;  %v3560_v26 = vand.u32 4294901760, %v3559_v49  ;;  %v3514_v9 = vsub.f32 %v30689_v57, %v3513_v4 }
 0x2d7   :  { %v3523_v6 = vand.u32 4294901760, %v30697_v58  ;;  %v3594_v50 = vsub.f32 %v30718_v46, %v32862_v38  ;;  %v27722_v38 = vpack.c.bf16 %v30637_v54, %v30635_v41  ;;  %v32869_v41 = vand.u32 4294901760, %v30686_v55 }
 0x2d8   :  { %24754 = vmatmul.mubr.f32.gmra.mrb[6].mxu1 %v30491_v35  ;;  %v32861_v35 = vand.u32 4294901760, %v30686_v55  ;;  %27841 = vmatpush3.bf16.msra.mxu0 %v27838_v56  ;;  %v3573_v19 = vsub.f32 %v30684_v10, %v3572_v42  ;;  %v27710_v56 = vpack.c.bf16 %v3567_v21, %v3560_v26  ;;  %v3515_v8 = vand.u32 4294901760, %v3514_v9 }
 0x2d9   :  { %27697 = vmatpush3.bf16.msra.mxu1 %v30664_v34  ;;  %24772 = vmatprep.mubr.f32.mxu1 %v3505_v7  ;;  %v27706_v7 = vpack.c.bf16 %v3553_v32, %v3546_v61  ;;  %v3586_v32 = vand.u32 4294901760, %v30716_v13  ;;  %v3524_v23 = vsub.f32 %v30697_v58, %v3523_v6  ;;  %v27762_v54 = vpack.c.bf16 %v32869_v41, %v3572_v42 }
 0x2da   :  { %27699 = vmatprep.subr.bf16.mxu1 %v30694_v53  ;;  %v3580_v22 = vsub.f32 %v30686_v55, %v32861_v35  ;;  %v3574_v61 = vand.u32 4294901760, %v3573_v19  ;;  %v3535_v19 = vand.u32 4294901760, %v3534_v18  ;;  %v27726_v18 = vpack.c.bf16 %v30659_v48, %v30657_v24 }
 0x2db   :  { %v3587_v17 = vsub.f32 %v30716_v13, %v3586_v32  ;;  %v3525_v35 = vand.u32 4294901760, %v3524_v23 }
 0x2dc   :  { %v3581_v49 = vand.u32 4294901760, %v3580_v22  ;;  %v3595_v22 = vand.u32 4294901760, %v3594_v50  ;;  %v27730_v50 = vpack.c.bf16 %v30686_v55, %v30684_v10 }
 0x2dd   :  { %27701 = vmatpush3.bf16.msra.mxu1 %v30694_v53  ;;  %v3588_v26 = vand.u32 4294901760, %v3587_v17  ;;  %v27734_v17 = vpack.c.bf16 %v30718_v46, %v30716_v13 }
 0x2de   :  { %27703 = vmatprep.subr.bf16.mxu1 %v30700_v60  ;;  %v27714_v21 = vpack.c.bf16 %v3581_v49, %v3574_v61 }
 0x2df   :  { %v27718_v9 = vpack.c.bf16 %v3595_v22, %v3588_v26 }
 0x2e1   :  { %27705 = vmatpush3.bf16.msra.mxu1 %v30700_v60 }
 0x2e2   :  { %27707 = vmatprep.subr.bf16.mxu1 %v27706_v7 }
 0x2e4   :  { %24773 = vmatmul.mubr.f32.vlgmr.msra.gmra.mrb[4].mxu1 %v3515_v8  ;;  %v22721_v8 = vld [vmem:[#allocation9] ss:$0 sm:$0xff] }
 0x2e5   :  { %24775 = vmatprep.mubr.f32.mxu1 %v3525_v35  ;;  %27709 = vmatpush3.bf16.msra.mxu1 %v27706_v7  ;;  %v27754_v35 = vpack.c.bf16 %v3551_v27, %v3544_v31  ;;  %v4138_v31 = vld [vmem:[#allocation12 + $0x70] sm:$0xff]  ;;  %v4139_v27 = vld [vmem:[#allocation12 + $0x78] sm:$0xff] }
 0x2e6   :  { %27711 = vmatprep.subr.bf16.mxu1 %v27710_v56 }
 0x2e8   :  { %24776 = vmatmul.mubr.f32.gmra.mrb[6].mxu1 %v3535_v19 }
 0x2e9   :  { %27713 = vmatpush3.bf16.msra.mxu1 %v27710_v56  ;;  %24794 = vmatprep.mubr.f32.mxu1 %v30603_v11 }
 0x2ea   :  { %27715 = vmatprep.subr.bf16.mxu1 %v27714_v21 }
 0x2ed   :  { %27717 = vmatpush3.bf16.msra.mxu1 %v27714_v21  ;;  %v22722_v21 = vld [vmem:[#allocation10] ss:$0 sm:$0xff] }
 0x2ee   :  { %27719 = vmatprep.subr.bf16.mxu1 %v27718_v9 }
 0x2f1   :  { %27721 = vmatpush3.bf16.msra.mxu1 %v27718_v9 }
 0x2f2   :  { %27723 = vmatprep.subr.bf16.mxu1 %v27722_v38 }
 0x2f4   :  { %24795 = vmatmul.mubr.f32.vlgmr.msra.gmra.mrb[4].mxu1 %v30661_v47 }
 0x2f5   :  { %24797 = vmatprep.mubr.f32.mxu1 %v30668_v20  ;;  %27725 = vmatpush3.bf16.msra.mxu1 %v27722_v38  ;;  %v27850_v38 = vpack.c.bf16 %v30542_v16, %v30540_v12 }
 0x2f6   :  { %27727 = vmatprep.subr.bf16.mxu1 %v27726_v18 }
 0x2f8   :  { %24798 = vmatmul.mubr.f32.gmra.mrb[6].mxu1 %v30691_v29 }
 0x2f9   :  { %27729 = vmatpush3.bf16.msra.mxu1 %v27726_v18  ;;  %24816 = vmatprep.mubr.f32.mxu1 %v30633_v25  ;;  %v27758_v25 = vpack.c.bf16 %v3565_v52, %v3558_v59  ;;  %v4190_v59 = vand.u32 4294901760, %v4138_v31  ;;  %v4193_v52 = vand.u32 4294901760, %v4139_v27 }
 0x2fa   :  { %27731 = vmatprep.subr.bf16.mxu1 %v27730_v50 }
 0x2fb   :  { %v30854_v56 = vpack.c.bf16 %v4193_v52, %v4190_v59 }
 0x2fd   :  { %27733 = vmatpush3.bf16.msra.mxu1 %v27730_v50 }
 0x2fe   :  { %27735 = vmatprep.subr.bf16.mxu1 %v27734_v17 }
 0x301   :  { %27737 = vmatpush3.bf16.msra.mxu1 %v27734_v17 }
 0x302   :  { %27739 = vmatprep.subr.bf16.mxu1 %v30647_v45 }
 0x304   :  { %24817 = vmatmul.mubr.f32.vlgmr.msra.gmra.mrb[4].mxu1 %v30689_v57  ;;  %v32870_v57 = vand.u32 4294901760, %v30718_v46 }
 0x305   :  { %24819 = vmatprep.mubr.f32.mxu1 %v30697_v58  ;;  %27741 = vmatpush3.bf16.msra.mxu1 %v30647_v45  ;;  %v30838_v58 = vsub.f32 %v4139_v27, %v4193_v52 }
 0x306   :  { %27743 = vmatprep.subr.bf16.mxu1 %v30664_v34  ;;  %v27766_v48 = vpack.c.bf16 %v32870_v57, %v3586_v32 }
 0x308   :  { %24820 = vmatmul.mubr.f32.gmra.mrb[6].mxu1 %v30713_v15  ;;  %v32863_v15 = vand.u32 4294901760, %v30838_v58 }
 0x309   :  { %27745 = vmatpush3.bf16.msra.mxu1 %v30664_v34  ;;  %24838 = vmatprep.mubr.f32.mxu1 %v3503_v51 }
 0x30a   :  { %27747 = vmatprep.subr.bf16.mxu1 %v30694_v53 }
 0x30d   :  { %27749 = vmatpush3.bf16.msra.mxu1 %v30694_v53 }
 0x30e   :  { %27751 = vmatprep.subr.bf16.mxu1 %v30700_v60 }
 0x311   :  { %27753 = vmatpush3.bf16.msra.mxu1 %v30700_v60 }
 0x312   :  { %27755 = vmatprep.subr.bf16.mxu1 %v27754_v35 }
 0x314   :  { %24839 = vmatmul.mubr.f32.vlgmr.msra.gmra.mrb[4].mxu1 %v3513_v4 }
 0x315   :  { %24841 = vmatprep.mubr.f32.mxu1 %v3523_v6  ;;  %27757 = vmatpush3.bf16.msra.mxu1 %v27754_v35  ;;  %v4377_v6 = vsub.f32 %v30838_v58, %v32863_v15 }
 0x316   :  { %27759 = vmatprep.subr.bf16.mxu1 %v27758_v25 }
 0x318   :  { %24842 = vmatmul.mubr.f32.gmra.mrb[6].mxu1 %v3533_v37  ;;  %v4378_v37 = vand.u32 4294901760, %v4377_v6 }
 0x319   :  { %27761 = vmatpush3.bf16.msra.mxu1 %v27758_v25  ;;  %24860 = vmatprep.mubr.f32.mxu1 %v30603_v11 }
 0x31a   :  { %27763 = vmatprep.subr.bf16.mxu1 %v27762_v54 }
 0x31d   :  { %27765 = vmatpush3.bf16.msra.mxu1 %v27762_v54 }
 0x31e   :  { %27767 = vmatprep.subr.bf16.mxu1 %v27766_v48 }
 0x321   :  { %27769 = vmatpush3.bf16.msra.mxu1 %v27766_v48 }
 0x322   :  { %27771 = vmatprep.subr.bf16.mxu1 %v30647_v45 }
 0x324   :  { %24861 = vmatmul.mubr.f32.vlgmr.msra.gmra.mrb[4].mxu1 %v30661_v47 }
 0x325   :  { %24863 = vmatprep.mubr.f32.mxu1 %v30668_v20  ;;  %27773 = vmatpush3.bf16.msra.mxu1 %v30647_v45 }
 0x326   :  { %27775 = vmatprep.subr.bf16.mxu1 %v30664_v34 }
 0x328   :  { %24864 = vmatmul.mubr.f32.gmra.mrb[6].mxu1 %v30691_v29 }
 0x329   :  { %27777 = vmatpush3.bf16.msra.mxu1 %v30664_v34  ;;  %24882 = vmatprep.mubr.f32.mxu1 %v30603_v11  ;;  %v4136_v11 = vld [vmem:[#allocation12 + $0x60] sm:$0xff] }
 0x32a   :  { %27779 = vmatprep.subr.bf16.mxu1 %v30694_v53 }
 0x32d   :  { %27781 = vmatpush3.bf16.msra.mxu1 %v30694_v53  ;;  %v30836_v53 = vsub.f32 %v4138_v31, %v4190_v59 }
 0x32e   :  { %27783 = vmatprep.subr.bf16.mxu1 %v30700_v60 }
 0x32f   :  { %v32864_v4 = vand.u32 4294901760, %v30836_v53  ;;  %v30864_v49 = vpack.c.bf16 %v30838_v58, %v30836_v53 }
 0x331   :  { %27785 = vmatpush3.bf16.msra.mxu1 %v30700_v60  ;;  %v4370_v46 = vsub.f32 %v30836_v53, %v32864_v4 }
 0x332   :  { %27787 = vmatprep.subr.bf16.mxu1 %v30538_v36 }
 0x333   :  { %v4371_v7 = vand.u32 4294901760, %v4370_v46 }
 0x334   :  { %24883 = vmatmul.mubr.f32.vlgmr.msra.gmra.mrb[4].mxu1 %v30661_v47  ;;  %v4184_v47 = vand.u32 4294901760, %v4136_v11 }
 0x335   :  { %24885 = vmatprep.mubr.f32.mxu1 %v30668_v20  ;;  %27789 = vmatpush3.bf16.msra.mxu1 %v30538_v36  ;;  %v27846_v32 = vpack.c.bf16 %v4378_v37, %v4371_v7 }
 0x336   :  { %27791 = vmatprep.subr.bf16.mxu1 %v30546_v0  ;;  %v30824_v45 = vsub.f32 %v4136_v11, %v4184_v47 }
 0x338   :  { %24886 = vmatmul.mubr.f32.gmra.mrb[6].mxu1 %v30691_v29  ;;  %v4137_v29 = vld [vmem:[#allocation12 + $0x68] sm:$0xff]  ;;  %v32866_v34 = vand.u32 4294901760, %v30824_v45 }
 0x339   :  { %27793 = vmatpush3.bf16.msra.mxu1 %v30546_v0  ;;  %v4187_v24 = vand.u32 4294901760, %v4137_v29 }
 0x33a   :  { %27795 = vmatprep.subr.bf16.mxu1 %v30550_v14  ;;  %v4356_v10 = vsub.f32 %v30824_v45, %v32866_v34 }
 0x33b   :  { %v30826_v51 = vsub.f32 %v4137_v29, %v4187_v24  ;;  %v30850_v23 = vpack.c.bf16 %v4187_v24, %v4184_v47  ;;  %v4922_v29 = vld [vmem:[%s32839_s8] sm:$0xff]  ;;  %v4923_v47 = vld [vmem:[%s32839_s8 + $0x8] sm:$0xff] }
 0x33c   :  { %v4357_v60 = vand.u32 4294901760, %v4356_v10  ;;  %v4930_v27 = vand.u32 4294901760, %v4922_v29  ;;  %v4933_v59 = vand.u32 4294901760, %v4923_v47 }
 0x33d   :  { %27797 = vmatpush3.bf16.msra.mxu1 %v30550_v14  ;;  %v32865_v20 = vand.u32 4294901760, %v30826_v51  ;;  %v30860_v61 = vpack.c.bf16 %v30826_v51, %v30824_v45 }
 0x33e   :  { %27799 = vmatprep.subr.bf16.mxu1 %v30579_v39  ;;  %v30887_v46 = vpack.c.bf16 %v4933_v59, %v4930_v27  ;;  %v30893_v37 = vsub.f32 %v4922_v29, %v4930_v27 }
 0x33f   :  { %v4363_v55 = vsub.f32 %v30826_v51, %v32865_v20 }
 0x341   :  { %27801 = vmatpush3.bf16.msra.mxu1 %v30579_v39  ;;  %v4364_v42 = vand.u32 4294901760, %v4363_v55  ;;  %v27854_v55 = vpack.c.bf16 %v30548_v40, %v30544_v30 }
 0x342   :  { %27803 = vmatprep.subr.bf16.mxu1 %v30598_v62 }
 0x343   :  { %v27842_v13 = vpack.c.bf16 %v4364_v42, %v4357_v60  ;;  %v27858_v60 = vpack.c.bf16 %v30558_v1, %v30552_v44 }
 0x345   :  { %27805 = vmatpush3.bf16.msra.mxu1 %v30598_v62  ;;  %27843 = vmatprep.subr.bf16.mxu0 %v27842_v13 }
 0x346   :  { %27807 = vmatprep.subr.bf16.mxu1 %v30614_v2  ;;  %27845 = vmatpush3.bf16.msra.mxu0 %v27842_v13 }
 0x347   :  { %27847 = vmatprep.subr.bf16.mxu0 %v27846_v32 }
 0x349   :  { %27809 = vmatpush3.bf16.msra.mxu1 %v30614_v2 }
 0x34a   :  { %27849 = vmatpush3.bf16.msra.mxu0 %v27846_v32  ;;  %27811 = vmatprep.subr.bf16.mxu1 %v30850_v23  ;;  %v30895_v32 = vsub.f32 %v4923_v47, %v4933_v59 }
 0x34b   :  { %27851 = vmatprep.subr.bf16.mxu0 %v27850_v38 }
 0x34d   :  { %27813 = vmatpush3.bf16.msra.mxu1 %v30850_v23 }
 0x34e   :  { %27815 = vmatprep.subr.bf16.mxu1 %v30854_v56 }
 0x351   :  { %27817 = vmatpush3.bf16.msra.mxu1 %v30854_v56 }
 0x407   :  { %v24884_v19 = vpop.f32.mrb[4].mxu1 }
 0x408   :  { %v4106_v26 = vmul.f32 %v24884_v19, %v22721_v8  ;;  %v4072_v22 = vpop.f32.mrb[5].mxu1  ;;  %v4925_v19 = vld [vmem:[%s32839_s8 + $0x18] sm:$0xff] }
 0x409   :  { %v4105_v9 = vmul.f32 %v22721_v8, %v4072_v22 }
 0x40a   :  { %v4117_v18 = vadd.f32 %v22722_v21, %v4106_v26 }
 0x40b   :  { %v4116_v50 = vadd.f32 %v22722_v21, %v4105_v9  ;;  %v24887_v17 = vpop.f32.mrb[6].mxu1 }
 0x40c   :  { %v4121_v35 = vmax.f32 %v4117_v18, 0.0  ;;  %v4108_v25 = vmul.f32 %v24887_v17, %v22721_v8  ;;  %v4084_v41 = vpop.f32.mrb[7].mxu1  ;;  %v4939_v18 = vand.u32 4294901760, %v4925_v19 }
 0x40d   :  { %v4120_v54 = vmax.f32 %v4116_v50, 0.0  ;;  %v4107_v57 = vmul.f32 %v22721_v8, %v4084_v41  ;;  %v4924_v8 = vld [vmem:[%s32839_s8 + $0x10] sm:$0xff] }
 0x40e   :  { %v30866_v48 = vand.u32 4294901760, %v4121_v35  ;;  %v4119_v11 = vadd.f32 %v22722_v21, %v4108_v25  ;;  %v4936_v9 = vand.u32 4294901760, %v4924_v8  ;;  %v5018_v25 = vand.u32 4294901760, %v30895_v32 }
 0x40f   :  { %v30874_v24 = vand.u32 4294901760, %v4120_v54  ;;  %v4118_v31 = vadd.f32 %v22722_v21, %v4107_v57  ;;  %v29818_v21 = vmov 0.0|0.0   ;;  %v5031_v47 = vsub.f32 %v4925_v19, %v4939_v18 }
 0x410   :  { %v30877_v52 = vsub.f32 %v4121_v35, %v30866_v48  ;;  %v4123_v10 = vmax.f32 %v4119_v11, 0.0  ;;  %28020 = vmatprep.subr.bf16.mxu1 %v29818_v21  ;;  %v5011_v35 = vand.u32 4294901760, %v30893_v37  ;;  %v5024_v57 = vsub.f32 %v4924_v8, %v4936_v9 }
 0x411   :  { %v4122_v42 = vmax.f32 %v4118_v31, 0.0  ;;  %24958 = vmatprep.mubr.f32.mxu0 %v30874_v24  ;;  %v30885_v13 = vsub.f32 %v4120_v54, %v30874_v24  ;;  %v30922_v54 = vpack.c.bf16 %v4939_v18, %v4936_v9  ;;  %v27862_v11 = vpack.c.bf16 %v30589_v33, %v30581_v43 }
 0x412   :  { %v32868_v6 = vand.u32 4294901760, %v30877_v52  ;;  %v30890_v7 = vand.u32 4294901760, %v4123_v10  ;;  %24959 = vmatmul.mubr.f32.vlgmr.msra.gmra.mrb[12].mxu0 %v30866_v48  ;;  %v5012_v31 = vsub.f32 %v30893_v37, %v5011_v35  ;;  %v5025_v15 = vand.u32 4294901760, %v5024_v57 }
 0x413   :  { %v30904_v26 = vand.u32 4294901760, %v4122_v42  ;;  %27853 = vmatpush3.bf16.msra.mxu0 %v27850_v38  ;;  %v4230_v22 = vand.u32 4294901760, %v30885_v13  ;;  %v5032_v4 = vand.u32 4294901760, %v5031_v47 }
 0x414   :  { %v4241_v50 = vsub.f32 %v30877_v52, %v32868_v6  ;;  %v30911_v17 = vsub.f32 %v4123_v10, %v30890_v7  ;;  %27855 = vmatprep.subr.bf16.mxu0 %v27854_v55  ;;  %v5013_v9 = vand.u32 4294901760, %v5012_v31  ;;  %v5026_v18 = vsub.f32 %v5024_v57, %v5025_v15 }
 0x415   :  { %v30916_v41 = vsub.f32 %v4122_v42, %v30904_v26  ;;  %24961 = vmatprep.mubr.f32.mxu0 %v30904_v26  ;;  %v4231_v38 = vsub.f32 %v30885_v13, %v4230_v22  ;;  %v5019_v42 = vsub.f32 %v30895_v32, %v5018_v25  ;;  %v27866_v31 = vpack.c.bf16 %v30609_v28, %v30600_v5 }
 0x416   :  { %24962 = vmatmul.mubr.f32.gmra.mrb[14].mxu0 %v30890_v7  ;;  %v32867_v29 = vand.u32 4294901760, %v30911_v17  ;;  %v4242_v27 = vand.u32 4294901760, %v4241_v50  ;;  %v5033_v50 = vsub.f32 %v5031_v47, %v5032_v4 }
 0x417   :  { %27857 = vmatpush3.bf16.msra.mxu0 %v27854_v55  ;;  %24996 = vmatprep.mubr.f32.mxu0 %v30885_v13  ;;  %v4232_v59 = vand.u32 4294901760, %v4231_v38  ;;  %v4250_v10 = vand.u32 4294901760, %v30916_v41  ;;  %v5020_v19 = vand.u32 4294901760, %v5019_v42  ;;  %v30952_v42 = vpack.c.bf16 %v30895_v32, %v30893_v37 }
 0x418   :  { %27859 = vmatprep.subr.bf16.mxu0 %v27858_v60  ;;  %v4261_v8 = vsub.f32 %v30911_v17, %v32867_v29  ;;  %v5027_v29 = vand.u32 4294901760, %v5026_v18  ;;  %v5034_v6 = vand.u32 4294901760, %v5033_v50  ;;  %v30969_v37 = vpack.c.bf16 %v5032_v4, %v5025_v15 }
 0x419   :  { %24920 = vmatprep.mubr.f32.mxu1 %v4232_v59  ;;  %v4251_v55 = vsub.f32 %v30916_v41, %v4250_v10  ;;  %v30938_v20 = vpack.c.bf16 %v5020_v19, %v5013_v9  ;;  %v27870_v59 = vpack.c.bf16 %v30616_v3, %v30611_v63  ;;  %v32872_v4 = vand.u32 4294901760, %v30540_v12 }
 0x41a   :  { %24921 = vmatmul.mubr.f32.vlgmr.msra.gmra.mrb[8].mxu1 %v4242_v27  ;;  %v4262_v34 = vand.u32 4294901760, %v4261_v8  ;;  %v30944_v27 = vpack.c.bf16 %v5034_v6, %v5027_v29  ;;  %v30963_v6 = vpack.c.bf16 %v5018_v25, %v5011_v35  ;;  %v32873_v15 = vand.u32 4294901760, %v30542_v16 }
 0x41b   :  { %27861 = vmatpush3.bf16.msra.mxu0 %v27858_v60  ;;  %v4252_v38 = vand.u32 4294901760, %v4251_v55  ;;  %28022 = vmatpush3.bf16.msra.mxu1 %v30938_v20  ;;  %v32871_v60 = vmov 0.0   ;;  %v32875_v13 = vand.u32 4294901760, %v30548_v40  ;;  %v32877_v12 = vand.u32 4294901760, %v30552_v44 }
 0x41c   :  { %27863 = vmatprep.subr.bf16.mxu0 %v27862_v11  ;;  %28023 = vmatprep.subr.bf16.mxu1 %v29818_v21  ;;  %v32878_v16 = vand.u32 4294901760, %v30558_v1  ;;  %v32879_v25 = vand.u32 4294901760, %v30911_v17  ;;  %v32881_v40 = vand.u32 4294901760, %v30589_v33  ;;  %v32883_v44 = vand.u32 4294901760, %v30609_v28 }
 0x41d   :  { %24923 = vmatprep.mubr.f32.mxu1 %v4252_v38  ;;  %v32887_v33 = vand.u32 4294901760, %v30826_v51  ;;  %v32889_v28 = vand.u32 4294901760, %v30838_v58 }
 0x41e   :  { %24924 = vmatmul.mubr.f32.gmra.mrb[10].mxu1 %v4262_v34  ;;  %v30956_v34 = vpack.c.bf16 %v5031_v47, %v5024_v57  ;;  %v27922_v35 = vpack.c.bf16 %v32878_v16, %v32877_v12  ;;  %v32885_v57 = vand.u32 4294901760, %v30616_v3 }
 0x41f   :  { %27865 = vmatpush3.bf16.msra.mxu0 %v27862_v11  ;;  %25201 = vmatprep.mubr.msk.f32.mxu1 %vm29819_vm12, %v32871_v60 }
 0x420   :  { %27867 = vmatprep.subr.bf16.mxu0 %v27866_v31  ;;  %28025 = vmatpush3.bf16.msra.mxu1 %v30944_v27 }
 0x421   :  { %28032 = vmatprep.subr.bf16.mxu1 %v29818_v21 }
 0x423   :  { %27869 = vmatpush3.bf16.msra.mxu0 %v27866_v31 }
 0x424   :  { %27871 = vmatprep.subr.bf16.mxu0 %v27870_v59 }
 0x427   :  { %27873 = vmatpush3.bf16.msra.mxu0 %v27870_v59 }
 0x428   :  { %27875 = vmatprep.subr.bf16.mxu0 %v30860_v61 }
 0x42b   :  { %27877 = vmatpush3.bf16.msra.mxu0 %v30860_v61  ;;  %v27914_v61 = vpack.c.bf16 %v32873_v15, %v32872_v4 }
 0x42c   :  { %27879 = vmatprep.subr.bf16.mxu0 %v30864_v49 }
 0x42f   :  { %27881 = vmatpush3.bf16.msra.mxu0 %v30864_v49  ;;  %v32874_v49 = vand.u32 4294901760, %v30544_v30  ;;  %v32880_v30 = vand.u32 4294901760, %v30581_v43  ;;  %v32886_v43 = vand.u32 4294901760, %v30824_v45 }
 0x430   :  { %27883 = vmatprep.subr.bf16.mxu0 %v30538_v36 }
 0x431   :  { %v27918_v32 = vpack.c.bf16 %v32875_v13, %v32874_v49  ;;  %v27938_v29 = vpack.c.bf16 %v32887_v33, %v32886_v43 }
 0x432   :  { %24997 = vmatmul.mubr.f32.vlgmr.msra.gmra.mrb[12].mxu0 %v30877_v52 }
 0x433   :  { %24999 = vmatprep.mubr.f32.mxu0 %v30916_v41  ;;  %27885 = vmatpush3.bf16.msra.mxu0 %v30538_v36  ;;  %v32882_v41 = vand.u32 4294901760, %v30600_v5  ;;  %v32888_v5 = vand.u32 4294901760, %v30836_v53 }
 0x434   :  { %27887 = vmatprep.subr.bf16.mxu0 %v30546_v0 }
 0x435   :  { %v27930_v1 = vpack.c.bf16 %v32883_v44, %v32882_v41  ;;  %v27942_v47 = vpack.c.bf16 %v32889_v28, %v32888_v5 }
 0x436   :  { %25000 = vmatmul.mubr.f32.gmra.mrb[14].mxu0 %v30911_v17  ;;  %v32884_v17 = vand.u32 4294901760, %v30611_v63 }
 0x437   :  { %27889 = vmatpush3.bf16.msra.mxu0 %v30546_v0  ;;  %25034 = vmatprep.mubr.f32.mxu0 %v4230_v22  ;;  %v32876_v22 = vand.u32 4294901760, %v30877_v52  ;;  %v27926_v52 = vpack.c.bf16 %v32881_v40, %v32880_v30 }
 0x438   :  { %27891 = vmatprep.subr.bf16.mxu0 %v30550_v14  ;;  %v27934_v11 = vpack.c.bf16 %v32885_v57, %v32884_v17 }
 0x43b   :  { %27893 = vmatpush3.bf16.msra.mxu0 %v30550_v14 }
 0x43c   :  { %27895 = vmatprep.subr.bf16.mxu0 %v30579_v39 }
 0x43f   :  { %27897 = vmatpush3.bf16.msra.mxu0 %v30579_v39 }
 0x440   :  { %27899 = vmatprep.subr.bf16.mxu0 %v30598_v62 }
 0x443   :  { %27901 = vmatpush3.bf16.msra.mxu0 %v30598_v62 }
 0x444   :  { %27903 = vmatprep.subr.bf16.mxu0 %v30614_v2 }
 0x447   :  { %27905 = vmatpush3.bf16.msra.mxu0 %v30614_v2 }
 0x448   :  { %27907 = vmatprep.subr.bf16.mxu0 %v30850_v23 }
 0x44b   :  { %27909 = vmatpush3.bf16.msra.mxu0 %v30850_v23 }
 0x44c   :  { %27911 = vmatprep.subr.bf16.mxu0 %v30854_v56 }
 0x44f   :  { %27913 = vmatpush3.bf16.msra.mxu0 %v30854_v56 }
 0x450   :  { %27915 = vmatprep.subr.bf16.mxu0 %v27914_v61 }
 0x452   :  { %25035 = vmatmul.mubr.f32.vlgmr.msra.gmra.mrb[12].mxu0 %v32876_v22 }
 0x453   :  { %25037 = vmatprep.mubr.f32.mxu0 %v4250_v10  ;;  %27917 = vmatpush3.bf16.msra.mxu0 %v27914_v61 }
 0x454   :  { %27919 = vmatprep.subr.bf16.mxu0 %v27918_v32 }
 0x456   :  { %25038 = vmatmul.mubr.f32.gmra.mrb[14].mxu0 %v32879_v25 }
 0x457   :  { %27921 = vmatpush3.bf16.msra.mxu0 %v27918_v32  ;;  %25072 = vmatprep.mubr.f32.mxu0 %v30874_v24 }
 0x458   :  { %27923 = vmatprep.subr.bf16.mxu0 %v27922_v35 }
 0x45b   :  { %27925 = vmatpush3.bf16.msra.mxu0 %v27922_v35 }
 0x45c   :  { %27927 = vmatprep.subr.bf16.mxu0 %v27926_v52 }
 0x45f   :  { %27929 = vmatpush3.bf16.msra.mxu0 %v27926_v52 }
 0x460   :  { %27931 = vmatprep.subr.bf16.mxu0 %v27930_v1 }
 0x463   :  { %27933 = vmatpush3.bf16.msra.mxu0 %v27930_v1 }
 0x464   :  { %27935 = vmatprep.subr.bf16.mxu0 %v27934_v11 }
 0x467   :  { %27937 = vmatpush3.bf16.msra.mxu0 %v27934_v11 }
 0x468   :  { %27939 = vmatprep.subr.bf16.mxu0 %v27938_v29 }
 0x46b   :  { %27941 = vmatpush3.bf16.msra.mxu0 %v27938_v29 }
 0x46c   :  { %27943 = vmatprep.subr.bf16.mxu0 %v27942_v47 }
 0x46f   :  { %27945 = vmatpush3.bf16.msra.mxu0 %v27942_v47 }
 0x470   :  { %27947 = vmatprep.subr.bf16.mxu0 %v30538_v36 }
 0x472   :  { %25073 = vmatmul.mubr.f32.vlgmr.msra.gmra.mrb[12].mxu0 %v30866_v48 }
 0x473   :  { %25075 = vmatprep.mubr.f32.mxu0 %v30904_v26  ;;  %27949 = vmatpush3.bf16.msra.mxu0 %v30538_v36 }
 0x474   :  { %27951 = vmatprep.subr.bf16.mxu0 %v30546_v0 }
 0x476   :  { %25076 = vmatmul.mubr.f32.gmra.mrb[14].mxu0 %v30890_v7 }
 0x477   :  { %27953 = vmatpush3.bf16.msra.mxu0 %v30546_v0  ;;  %25110 = vmatprep.mubr.f32.mxu0 %v30874_v24 }
 0x478   :  { %27955 = vmatprep.subr.bf16.mxu0 %v30550_v14 }
 0x47b   :  { %27957 = vmatpush3.bf16.msra.mxu0 %v30550_v14 }
 0x47c   :  { %27959 = vmatprep.subr.bf16.mxu0 %v30579_v39 }
 0x47f   :  { %27961 = vmatpush3.bf16.msra.mxu0 %v30579_v39 }
 0x480   :  { %27963 = vmatprep.subr.bf16.mxu0 %v30598_v62 }
 0x483   :  { %27965 = vmatpush3.bf16.msra.mxu0 %v30598_v62  ;;  %v22723_v62 = vld [vmem:[%s32840_s9] ss:$0 sm:$0xff]  ;;  %s29820_s9 = smov 64  }
 0x484   :  { %27967 = vmatprep.subr.bf16.mxu0 %v30614_v2 }
 0x487   :  { %27969 = vmatpush3.bf16.msra.mxu0 %v30614_v2 }
 0x488   :  { %27971 = vmatprep.subr.bf16.mxu0 %v30850_v23 }
 0x48b   :  { %27973 = vmatpush3.bf16.msra.mxu0 %v30850_v23 }
 0x48c   :  { %27975 = vmatprep.subr.bf16.mxu0 %v30854_v56 }
 0x48f   :  { %27977 = vmatpush3.bf16.msra.mxu0 %v30854_v56 }
 0x490   :  { %27978 = vmatprep.subr.bf16.mxu0 %v29818_v21 }
 0x492   :  { %25111 = vmatmul.mubr.f32.vlgmr.msra.gmra.mrb[12].mxu0 %v30866_v48 }
 0x493   :  { %25113 = vmatprep.mubr.f32.mxu0 %v30904_v26  ;;  %27980 = vmatpush3.bf16.msra.mxu0 %v30887_v46 }
 0x494   :  { %27981 = vmatprep.subr.bf16.mxu0 %v29818_v21 }
 0x496   :  { %25114 = vmatmul.mubr.f32.gmra.mrb[14].mxu0 %v30890_v7 }
 0x497   :  { %27983 = vmatpush3.bf16.msra.mxu0 %v30922_v54  ;;  %25124 = vmatprep.mubr.msk.f32.mxu0 %vm29819_vm12, %v32871_v60 }
 0x498   :  { %27984 = vmatprep.subr.bf16.mxu0 %v29818_v21 }
 0x49a   :  { %25125 = vmatmul.mubr.f32.vlgmr.msra.gmra.mrb[16].mxu0 %v32871_v60 }
 0x49b   :  { %27986 = vmatpush3.bf16.msra.mxu0 %v30938_v20  ;;  %25135 = vmatprep.mubr.msk.f32.mxu0 %vm29819_vm12, %v32871_v60 }
 0x49c   :  { %27987 = vmatprep.subr.bf16.mxu0 %v29818_v21 }
 0x49f   :  { %27989 = vmatpush3.bf16.msra.mxu0 %v30944_v27 }
 0x4a0   :  { %27990 = vmatprep.subr.bf16.mxu0 %v29818_v21 }
 0x4a2   :  { %25136 = vmatmul.mubr.f32.vlgmr.msra.gmra.mrb[18].mxu0 %v32871_v60 }
 0x4a3   :  { %27992 = vmatpush3.bf16.msra.mxu0 %v30952_v42  ;;  %25146 = vmatprep.mubr.msk.f32.mxu0 %vm29819_vm12, %v32871_v60 }
 0x4a4   :  { %27993 = vmatprep.subr.bf16.mxu0 %v29818_v21 }
 0x4a7   :  { %27995 = vmatpush3.bf16.msra.mxu0 %v30956_v34 }
 0x4a8   :  { %27996 = vmatprep.subr.bf16.mxu0 %v29818_v21 }
 0x4aa   :  { %25147 = vmatmul.mubr.f32.vlgmr.msra.gmra.mrb[20].mxu0 %v32871_v60 }
 0x4ab   :  { %27998 = vmatpush3.bf16.msra.mxu0 %v30887_v46  ;;  %25157 = vmatprep.mubr.msk.f32.mxu0 %vm29819_vm12, %v32871_v60 }
 0x4ac   :  { %27999 = vmatprep.subr.bf16.mxu0 %v29818_v21 }
 0x4af   :  { %28001 = vmatpush3.bf16.msra.mxu0 %v30922_v54 }
 0x4b0   :  { %28002 = vmatprep.subr.bf16.mxu0 %v29818_v21 }
 0x4b2   :  { %25158 = vmatmul.mubr.f32.vlgmr.msra.gmra.mrb[22].mxu0 %v32871_v60 }
 0x4b3   :  { %28004 = vmatpush3.bf16.msra.mxu0 %v30963_v6  ;;  %25168 = vmatprep.mubr.msk.f32.mxu0 %vm29819_vm12, %v32871_v60 }
 0x4b4   :  { %28005 = vmatprep.subr.bf16.mxu0 %v29818_v21 }
 0x4b7   :  { %28007 = vmatpush3.bf16.msra.mxu0 %v30969_v37 }
 0x4b8   :  { %28008 = vmatprep.subr.bf16.mxu0 %v29818_v21 }
 0x4ba   :  { %25169 = vmatmul.mubr.f32.vlgmr.msra.gmra.mrb[24].mxu0 %v32871_v60 }
 0x4bb   :  { %28010 = vmatpush3.bf16.msra.mxu0 %v30887_v46  ;;  %25179 = vmatprep.mubr.msk.f32.mxu0 %vm29819_vm12, %v32871_v60 }
 0x4bc   :  { %28011 = vmatprep.subr.bf16.mxu0 %v29818_v21 }
 0x4bf   :  { %28013 = vmatpush3.bf16.msra.mxu0 %v30922_v54 }
 0x4c0   :  { %28014 = vmatprep.subr.bf16.mxu0 %v29818_v21 }
 0x4c2   :  { %25180 = vmatmul.mubr.f32.vlgmr.msra.gmra.mrb[26].mxu0 %v32871_v60 }
 0x4c3   :  { %28016 = vmatpush3.bf16.msra.mxu0 %v30887_v46  ;;  %25190 = vmatprep.mubr.msk.f32.mxu0 %vm29819_vm12, %v32871_v60 }
 0x4c4   :  { %28017 = vmatprep.subr.bf16.mxu0 %v29818_v21 }
 0x4c7   :  { %28019 = vmatpush3.bf16.msra.mxu0 %v30922_v54 }
 0x4c8   :  { %28026 = vmatprep.subr.bf16.mxu0 %v29818_v21 }
 0x4ed   :  { %v24922_v36 = vpop.f32.mrb[8].mxu1 }
 0x4ee   :  { %v4234_v0 = vpop.f32.mrb[9].mxu1  ;;  %v4245_v63 = vadd.f32 %v24922_v36, %v22723_v62 }
 0x4ef   :  { %v4235_v2 = vadd.f32 %v22723_v62, %v4234_v0 }
 0x4f1   :  { %v24925_v14 = vpop.f32.mrb[10].mxu1 }
 0x4f2   :  { %v4254_v39 = vpop.f32.mrb[11].mxu1  ;;  %v4265_v58 = vadd.f32 %v24925_v14, %v22723_v62 }
 0x4f3   :  { %v4255_v23 = vadd.f32 %v22723_v62, %v4254_v39 }
 0x565   :  { %v25112_v3 = vpop.f32.mrb[12].mxu0 }
 0x566   :  { %v29219_v45 = vadd.f32 %v25112_v3, %v4245_v63  ;;  %v4895_v51 = vpop.f32.mrb[13].mxu0 }
 0x567   :  { %v29221_v53 = vadd.f32 %v4895_v51, %v4235_v2 }
 0x568   :  { %4918 = vst [vmem:[#allocation2 + $0x8] sm:$0xff] %v29219_v45 }
 0x569   :  { %4917 = vst [vmem:[#allocation2] sm:$0xff] %v29221_v53  ;;  %v25115_v56 = vpop.f32.mrb[14].mxu0 }
 0x56a   :  { %v29223_v48 = vadd.f32 %v25115_v56, %v4265_v58  ;;  %v4907_v24 = vpop.f32.mrb[15].mxu0 }
 0x56b   :  { %v29225_v7 = vadd.f32 %v4907_v24, %v4255_v23 }
 0x56c   :  { %4920 = vst [vmem:[#allocation2 + $0x18] sm:$0xff] %v29223_v48 }
 0x56d   :  { %4919 = vst [vmem:[#allocation2 + $0x10] sm:$0xff] %v29225_v7  ;;  %v5004_v26 = vpop.f32.mrb[16].mxu0 }
 0x56e   :  { %v25126_v10 = vpop.f32.mrb[17].mxu0 }
 0x570   :  { %v4921_v22 = vld [vmem:[#allocation2] sm:$0x3] }
 0x575   :  { %v5095_v8 = vpop.f32.mrb[18].mxu0 }
 0x576   :  { %v5096_v9 = vadd.f32 %v5095_v8, %v5004_v26  ;;  %v25137_v55 = vpop.f32.mrb[19].mxu0  ;;  %v5445_v8 = vld [vmem:[#allocation2 + $0x2] sm:$0x3] }
 0x57d   :  { %v5175_v19 = vpop.f32.mrb[20].mxu0 }
 0x57e   :  { %v5176_v18 = vadd.f32 %v5175_v19, %v5096_v9  ;;  %v25148_v50 = vpop.f32.mrb[21].mxu0 }
 0x585   :  { %v5252_v38 = vpop.f32.mrb[22].mxu0 }
 0x586   :  { %v5253_v31 = vadd.f32 %v5252_v38, %v5176_v18  ;;  %v25159_v59 = vpop.f32.mrb[23].mxu0 }
 0x58d   :  { %v5335_v4 = vpop.f32.mrb[24].mxu0 }
 0x58e   :  { %v5336_v15 = vadd.f32 %v5335_v4, %v5253_v31  ;;  %v25170_v61 = vpop.f32.mrb[25].mxu0 }
 0x595   :  { %v5410_v49 = vpop.f32.mrb[26].mxu0 }
 0x596   :  { %v5411_v13 = vadd.f32 %v5410_v49, %v5336_v15  ;;  %v25181_v32 = vpop.f32.mrb[27].mxu0 }
 0x598   :  { %v5414_v12 = vadd.f32 %v5411_v13, %v4921_v22 }
 0x59a   :  { %29414 = vtanh.f32 %v5414_v12  ;;  %v22724_v35 = vmul.f32 -1.442695, %v5414_v12 }
 0x59c   :  { %29416 = vpow2.f32 %v22724_v35 }
 0x5a4   :  { %v29415_v16 = vpop.eup %29414 }
 0x5a5   :  { %5424 = vrot.lane.b32.xlu0 %v29415_v16, %s29820_s9 }
 0x5a6   :  { %v29417_v25 = vpop.eup %29416 }
 0x5a7   :  { %v5418_v30 = vadd.f32 1.0, %v29417_v25 }
 0x5a9   :  { %29418 = vrcp.f32 %v5418_v30 }
 0x5b3   :  { %v29419_v40 = vpop.eup %29418 }
 0x5b4   :  { %v5422_v44 = vmul.f32 0.0, %v29419_v40 }
 0x617   :  { %v5425_v52 = vpop.permute.xlu0 %5424 }
 0x618   :  { %v5427_v41 = vmul.f32 %v29419_v40, %v5425_v52 }
 0x61a   :  { %5429 = vrot.lane.b32.xlu0 %v5427_v41, %s29821_s22 }
 0x68c   :  { %v5430_v1 = vpop.permute.xlu0 %5429 }
 0x68d   :  { %v31103_v17 = vadd.f32 %v5430_v1, %v5422_v44 }
 0x68f   :  { %29420 = vtanh.f32 %v31103_v17 }
 0x699   :  { %v29421_v57 = vpop.eup %29420 }
 0x69a   :  { %5435 = vrot.lane.b32.xlu1 %v29421_v57, %s29820_s9 }
 0x70c   :  { %v5436_v11 = vpop.permute.xlu1 %5435 }
 0x70d   :  { %v5438_v43 = vmul.f32 %v29419_v40, %v5436_v11 }
 0x70f   :  { %5440 = vrot.lane.b32.xlu1 %v5438_v43, %s29821_s22 }
 0x781   :  { %v5441_v33 = vpop.permute.xlu1 %5440 }
 0x782   :  { %5444 = vst.msk [vmem:[#allocation3] sm:$0x3] %vm5443_vm13, %v5441_v33  ;;  %v5450_v29 = vsel %vm780_vm3, %v5441_v33, 0 }
 0x783   :  { %v5521_v5 = vand.u32 4294901760, %v5450_v29 }
 0x785   :  { %v5522_v28 = vsub.f32 %v5450_v29, %v5521_v5  ;;  %25202 = vmatmul.mubr.f32.vlgmr.msra.gmra.mrb[12].mxu1 %v5521_v5 }
 0x786   :  { %28034 = vmatpush3.bf16.msra.mxu1 %v30887_v46  ;;  %25223 = vmatprep.mubr.msk.f32.mxu1 %vm29819_vm12, %v32871_v60 }
 0x787   :  { %28035 = vmatprep.subr.bf16.mxu1 %v29818_v21  ;;  %v5523_v47 = vand.u32 4294901760, %v5522_v28 }
 0x789   :  { %v5524_v36 = vsub.f32 %v5522_v28, %v5523_v47 }
 0x78a   :  { %28037 = vmatpush3.bf16.msra.mxu1 %v30922_v54 }
 0x78b   :  { %28044 = vmatprep.subr.bf16.mxu1 %v29818_v21  ;;  %v5525_v0 = vand.u32 4294901760, %v5524_v36 }
 0x78d   :  { %25224 = vmatmul.mubr.f32.vlgmr.msra.gmra.mrb[14].mxu1 %v5523_v47  ;;  %25191 = vmatmul.mubr.f32.vlgmr.msra.gmra.mrb[28].mxu0 %v5525_v0 }
 0x78e   :  { %28028 = vmatpush3.bf16.msra.mxu0 %v30952_v42  ;;  %28046 = vmatpush3.bf16.msra.mxu1 %v30887_v46 }
 0x78f   :  { %28029 = vmatprep.subr.bf16.mxu0 %v29818_v21  ;;  %28047 = vmatprep.subr.bf16.mxu1 %v29818_v21 }
 0x790   :  { %25212 = vmatprep.mubr.msk.f32.mxu0 %vm29819_vm12, %v32871_v60  ;;  %25245 = vmatprep.mubr.msk.f32.mxu1 %vm29819_vm12, %v32871_v60 }
 0x792   :  { %28031 = vmatpush3.bf16.msra.mxu0 %v30956_v34  ;;  %28049 = vmatpush3.bf16.msra.mxu1 %v30922_v54 }
 0x793   :  { %28038 = vmatprep.subr.bf16.mxu0 %v29818_v21  ;;  %28056 = vmatprep.subr.bf16.mxu1 %v29818_v21 }
 0x795   :  { %25213 = vmatmul.mubr.f32.vlgmr.msra.gmra.mrb[30].mxu0 %v5522_v28  ;;  %25246 = vmatmul.mubr.f32.vlgmr.msra.gmra.mrb[16].mxu1 %v5521_v5 }
 0x796   :  { %28040 = vmatpush3.bf16.msra.mxu0 %v30963_v6  ;;  %25234 = vmatprep.mubr.msk.f32.mxu0 %vm29819_vm12, %v32871_v60 }
 0x797   :  { %28041 = vmatprep.subr.bf16.mxu0 %v29818_v21  ;;  %28058 = vmatpush3.bf16.msra.mxu1 %v30938_v20 }
 0x798   :  { %28059 = vmatprep.subr.bf16.mxu1 %v29818_v21  ;;  %25267 = vmatprep.mubr.msk.f32.mxu1 %vm29819_vm12, %v32871_v60 }
 0x79a   :  { %28043 = vmatpush3.bf16.msra.mxu0 %v30969_v37 }
 0x79b   :  { %28061 = vmatpush3.bf16.msra.mxu1 %v30944_v27  ;;  %28050 = vmatprep.subr.bf16.mxu0 %v29818_v21 }
 0x79c   :  { %28068 = vmatprep.subr.bf16.mxu1 %v29818_v21 }
 0x79d   :  { %25235 = vmatmul.mubr.f32.vlgmr.msra.gmra.mrb[32].mxu0 %v5521_v5 }
 0x79e   :  { %28052 = vmatpush3.bf16.msra.mxu0 %v30887_v46  ;;  %25256 = vmatprep.mubr.msk.f32.mxu0 %vm29819_vm12, %v32871_v60 }
 0x79f   :  { %28053 = vmatprep.subr.bf16.mxu0 %v29818_v21 }
 0x7a2   :  { %28055 = vmatpush3.bf16.msra.mxu0 %v30922_v54 }
 0x7a3   :  { %28062 = vmatprep.subr.bf16.mxu0 %v29818_v21 }
 0x858   :  { %v5618_v14 = vpop.f32.mrb[12].mxu1 }
 0x859   :  { %v25203_v39 = vpop.f32.mrb[13].mxu1 }
 0x860   :  { %v5775_v62 = vpop.f32.mrb[14].mxu1  ;;  %v5527_v63 = vpop.f32.mrb[28].mxu0 }
 0x861   :  { %v5619_v2 = vadd.f32 %v5618_v14, %v5527_v63  ;;  %v25225_v3 = vpop.f32.mrb[15].mxu1  ;;  %v25192_v45 = vpop.f32.mrb[29].mxu0 }
 0x868   :  { %v5698_v51 = vpop.f32.mrb[30].mxu0  ;;  %v5933_v53 = vpop.f32.mrb[16].mxu1 }
 0x869   :  { %v5699_v58 = vadd.f32 %v5698_v51, %v5619_v2  ;;  %v25214_v23 = vpop.f32.mrb[31].mxu0  ;;  %v25247_v56 = vpop.f32.mrb[17].mxu1 }
 0x86b   :  { %v5776_v48 = vadd.f32 %v5775_v62, %v5699_v58  ;;  %v5967_v62 = vld [vmem:[#allocation2 + $0x4] sm:$0x3] }
 0x870   :  { %v5858_v24 = vpop.f32.mrb[32].mxu0 }
 0x871   :  { %v5859_v7 = vadd.f32 %v5858_v24, %v5776_v48  ;;  %v25236_v26 = vpop.f32.mrb[33].mxu0 }
 0x873   :  { %v5934_v10 = vadd.f32 %v5933_v53, %v5859_v7 }
 0x875   :  { %v5937_v9 = vadd.f32 %v5934_v10, %v5445_v8 }
 0x877   :  { %29422 = vtanh.f32 %v5937_v9  ;;  %v22725_v19 = vmul.f32 -1.442695, %v5937_v9 }
 0x879   :  { %29424 = vpow2.f32 %v22725_v19 }
 0x881   :  { %v29423_v55 = vpop.eup %29422 }
 0x882   :  { %5947 = vrot.lane.b32.xlu0 %v29423_v55, %s29820_s9 }
 0x883   :  { %v29425_v18 = vpop.eup %29424 }
 0x884   :  { %v5941_v50 = vadd.f32 1.0, %v29425_v18 }
 0x886   :  { %29426 = vrcp.f32 %v5941_v50 }
 0x890   :  { %v29427_v38 = vpop.eup %29426 }
 0x891   :  { %v5945_v4 = vmul.f32 %v29427_v38, %v31103_v17 }
 0x8f4   :  { %v5948_v31 = vpop.permute.xlu0 %5947 }
 0x8f5   :  { %v5950_v59 = vmul.f32 %v29427_v38, %v5948_v31 }
 0x8f7   :  { %5952 = vrot.lane.b32.xlu1 %v5950_v59, %s29821_s22 }
 0x969   :  { %v5953_v15 = vpop.permute.xlu1 %5952 }
 0x96a   :  { %v31149_v61 = vadd.f32 %v5953_v15, %v5945_v4 }
 0x96c   :  { %29428 = vtanh.f32 %v31149_v61 }
 0x976   :  { %v29429_v49 = vpop.eup %29428 }
 0x977   :  { %5958 = vrot.lane.b32.xlu0 %v29429_v49, %s29820_s9 }
 0x9e9   :  { %v5959_v13 = vpop.permute.xlu0 %5958 }
 0x9ea   :  { %v5961_v32 = vmul.f32 %v29427_v38, %v5959_v13 }
 0x9ec   :  { %5963 = vrot.lane.b32.xlu1 %v5961_v32, %s29821_s22 }
 0xa5e   :  { %v5964_v22 = vpop.permute.xlu1 %5963 }
 0xa5f   :  { %5966 = vst.msk [vmem:[#allocation3 + $0x2] sm:$0x3] %vm5443_vm13, %v5964_v22  ;;  %v5972_v12 = vsel %vm780_vm3, %v5964_v22, 0 }
 0xa60   :  { %v6043_v16 = vand.u32 4294901760, %v5972_v12 }
 0xa62   :  { %v6044_v35 = vsub.f32 %v5972_v12, %v6043_v16  ;;  %25268 = vmatmul.mubr.f32.vlgmr.msra.gmra.mrb[18].mxu1 %v6043_v16 }
 0xa63   :  { %28070 = vmatpush3.bf16.msra.mxu1 %v30887_v46  ;;  %25289 = vmatprep.mubr.msk.f32.mxu1 %vm29819_vm12, %v32871_v60 }
 0xa64   :  { %28071 = vmatprep.subr.bf16.mxu1 %v29818_v21  ;;  %v6045_v25 = vand.u32 4294901760, %v6044_v35 }
 0xa66   :  { %v6046_v30 = vsub.f32 %v6044_v35, %v6045_v25 }
 0xa67   :  { %28073 = vmatpush3.bf16.msra.mxu1 %v30922_v54 }
 0xa68   :  { %28080 = vmatprep.subr.bf16.mxu1 %v29818_v21  ;;  %v6047_v40 = vand.u32 4294901760, %v6046_v30 }
 0xa6a   :  { %25290 = vmatmul.mubr.f32.vlgmr.msra.gmra.mrb[20].mxu1 %v6045_v25  ;;  %25257 = vmatmul.mubr.f32.vlgmr.msra.gmra.mrb[34].mxu0 %v6047_v40 }
 0xa6b   :  { %28064 = vmatpush3.bf16.msra.mxu0 %v30952_v42  ;;  %28082 = vmatpush3.bf16.msra.mxu1 %v30887_v46 }
 0xa6c   :  { %28065 = vmatprep.subr.bf16.mxu0 %v29818_v21  ;;  %28083 = vmatprep.subr.bf16.mxu1 %v29818_v21 }
 0xa6d   :  { %25278 = vmatprep.mubr.msk.f32.mxu0 %vm29819_vm12, %v32871_v60  ;;  %25311 = vmatprep.mubr.msk.f32.mxu1 %vm29819_vm12, %v32871_v60 }
 0xa6f   :  { %28067 = vmatpush3.bf16.msra.mxu0 %v30956_v34  ;;  %28085 = vmatpush3.bf16.msra.mxu1 %v30922_v54 }
 0xa70   :  { %28074 = vmatprep.subr.bf16.mxu0 %v29818_v21  ;;  %28092 = vmatprep.subr.bf16.mxu1 %v29818_v21 }
 0xa72   :  { %25279 = vmatmul.mubr.f32.vlgmr.msra.gmra.mrb[36].mxu0 %v6044_v35  ;;  %25312 = vmatmul.mubr.f32.vlgmr.msra.gmra.mrb[22].mxu1 %v6043_v16 }
 0xa73   :  { %28076 = vmatpush3.bf16.msra.mxu0 %v30963_v6  ;;  %25300 = vmatprep.mubr.msk.f32.mxu0 %vm29819_vm12, %v32871_v60 }
 0xa74   :  { %28077 = vmatprep.subr.bf16.mxu0 %v29818_v21  ;;  %28094 = vmatpush3.bf16.msra.mxu1 %v30938_v20 }
 0xa75   :  { %28095 = vmatprep.subr.bf16.mxu1 %v29818_v21  ;;  %25333 = vmatprep.mubr.msk.f32.mxu1 %vm29819_vm12, %v32871_v60 }
 0xa77   :  { %28079 = vmatpush3.bf16.msra.mxu0 %v30969_v37 }
 0xa78   :  { %28097 = vmatpush3.bf16.msra.mxu1 %v30944_v27  ;;  %28086 = vmatprep.subr.bf16.mxu0 %v29818_v21 }
 0xa79   :  { %28104 = vmatprep.subr.bf16.mxu1 %v29818_v21 }
 0xa7a   :  { %25301 = vmatmul.mubr.f32.vlgmr.msra.gmra.mrb[38].mxu0 %v6043_v16 }
 0xa7b   :  { %28088 = vmatpush3.bf16.msra.mxu0 %v30887_v46  ;;  %25322 = vmatprep.mubr.msk.f32.mxu0 %vm29819_vm12, %v32871_v60 }
 0xa7c   :  { %28089 = vmatprep.subr.bf16.mxu0 %v29818_v21 }
 0xa7f   :  { %28091 = vmatpush3.bf16.msra.mxu0 %v30922_v54 }
 0xa80   :  { %28098 = vmatprep.subr.bf16.mxu0 %v29818_v21 }
 0xb35   :  { %v6140_v52 = vpop.f32.mrb[18].mxu1 }
 0xb36   :  { %v25269_v41 = vpop.f32.mrb[19].mxu1 }
 0xb3d   :  { %v6297_v44 = vpop.f32.mrb[20].mxu1  ;;  %v6049_v1 = vpop.f32.mrb[34].mxu0 }
 0xb3e   :  { %v6141_v17 = vadd.f32 %v6140_v52, %v6049_v1  ;;  %v25291_v57 = vpop.f32.mrb[21].mxu1  ;;  %v25258_v11 = vpop.f32.mrb[35].mxu0  ;;  %v6489_v52 = vld [vmem:[#allocation2 + $0x6] sm:$0x3] }
 0xb45   :  { %v6220_v43 = vpop.f32.mrb[36].mxu0  ;;  %v6455_v33 = vpop.f32.mrb[22].mxu1 }
 0xb46   :  { %v6221_v29 = vadd.f32 %v6220_v43, %v6141_v17  ;;  %v25280_v5 = vpop.f32.mrb[37].mxu0  ;;  %v25313_v28 = vpop.f32.mrb[23].mxu1 }
 0xb48   :  { %v6298_v47 = vadd.f32 %v6297_v44, %v6221_v29 }
 0xb4d   :  { %v6380_v36 = vpop.f32.mrb[38].mxu0 }
 0xb4e   :  { %v6381_v0 = vadd.f32 %v6380_v36, %v6298_v47  ;;  %v25302_v14 = vpop.f32.mrb[39].mxu0 }
 0xb50   :  { %v6456_v39 = vadd.f32 %v6455_v33, %v6381_v0 }
 0xb52   :  { %v6459_v63 = vadd.f32 %v6456_v39, %v5967_v62 }
 0xb54   :  { %29430 = vtanh.f32 %v6459_v63  ;;  %v22726_v3 = vmul.f32 -1.442695, %v6459_v63 }
 0xb56   :  { %29432 = vpow2.f32 %v22726_v3 }
 0xb5e   :  { %v29431_v2 = vpop.eup %29430 }
 0xb5f   :  { %6469 = vrot.lane.b32.xlu0 %v29431_v2, %s29820_s9 }
 0xb60   :  { %v29433_v45 = vpop.eup %29432 }
 0xb61   :  { %v6463_v51 = vadd.f32 1.0, %v29433_v45 }
 0xb63   :  { %29434 = vrcp.f32 %v6463_v51 }
 0xb6d   :  { %v29435_v53 = vpop.eup %29434 }
 0xb6e   :  { %v6467_v56 = vmul.f32 %v29435_v53, %v31149_v61 }
 0xbd1   :  { %v6470_v58 = vpop.permute.xlu0 %6469 }
 0xbd2   :  { %v6472_v23 = vmul.f32 %v29435_v53, %v6470_v58 }
 0xbd4   :  { %6474 = vrot.lane.b32.xlu1 %v6472_v23, %s29821_s22 }
 0xc46   :  { %v6475_v48 = vpop.permute.xlu1 %6474 }
 0xc47   :  { %v31195_v24 = vadd.f32 %v6475_v48, %v6467_v56 }
 0xc49   :  { %29436 = vtanh.f32 %v31195_v24 }
 0xc53   :  { %v29437_v7 = vpop.eup %29436 }
 0xc54   :  { %6480 = vrot.lane.b32.xlu0 %v29437_v7, %s29820_s9 }
 0xcc6   :  { %v6481_v26 = vpop.permute.xlu0 %6480 }
 0xcc7   :  { %v6483_v10 = vmul.f32 %v29435_v53, %v6481_v26 }
 0xcc9   :  { %6485 = vrot.lane.b32.xlu1 %v6483_v10, %s29821_s22 }
 0xd3b   :  { %v6486_v8 = vpop.permute.xlu1 %6485 }
 0xd3c   :  { %6488 = vst.msk [vmem:[#allocation3 + $0x4] sm:$0x3] %vm5443_vm13, %v6486_v8  ;;  %v6494_v9 = vsel %vm780_vm3, %v6486_v8, 0 }
 0xd3d   :  { %v6565_v55 = vand.u32 4294901760, %v6494_v9 }
 0xd3f   :  { %v6566_v19 = vsub.f32 %v6494_v9, %v6565_v55  ;;  %25334 = vmatmul.mubr.f32.vlgmr.msra.gmra.mrb[24].mxu1 %v6565_v55  ;;  %v7011_v9 = vld [vmem:[#allocation2 + $0x8] sm:$0x3] }
 0xd40   :  { %28106 = vmatpush3.bf16.msra.mxu1 %v30887_v46  ;;  %25355 = vmatprep.mubr.msk.f32.mxu1 %vm29819_vm12, %v32871_v60 }
 0xd41   :  { %28107 = vmatprep.subr.bf16.mxu1 %v29818_v21  ;;  %v6567_v18 = vand.u32 4294901760, %v6566_v19 }
 0xd43   :  { %v6568_v50 = vsub.f32 %v6566_v19, %v6567_v18 }
 0xd44   :  { %28109 = vmatpush3.bf16.msra.mxu1 %v30922_v54 }
 0xd45   :  { %28116 = vmatprep.subr.bf16.mxu1 %v29818_v21  ;;  %v6569_v38 = vand.u32 4294901760, %v6568_v50 }
 0xd47   :  { %25356 = vmatmul.mubr.f32.vlgmr.msra.gmra.mrb[26].mxu1 %v6567_v18  ;;  %25323 = vmatmul.mubr.f32.vlgmr.msra.gmra.mrb[40].mxu0 %v6569_v38 }
 0xd48   :  { %28100 = vmatpush3.bf16.msra.mxu0 %v30952_v42  ;;  %28118 = vmatpush3.bf16.msra.mxu1 %v30887_v46 }
 0xd49   :  { %28101 = vmatprep.subr.bf16.mxu0 %v29818_v21  ;;  %28119 = vmatprep.subr.bf16.mxu1 %v29818_v21 }
 0xd4a   :  { %25344 = vmatprep.mubr.msk.f32.mxu0 %vm29819_vm12, %v32871_v60  ;;  %25377 = vmatprep.mubr.msk.f32.mxu1 %vm29819_vm12, %v32871_v60 }
 0xd4c   :  { %28103 = vmatpush3.bf16.msra.mxu0 %v30956_v34  ;;  %28121 = vmatpush3.bf16.msra.mxu1 %v30922_v54 }
 0xd4d   :  { %28110 = vmatprep.subr.bf16.mxu0 %v29818_v21  ;;  %28128 = vmatprep.subr.bf16.mxu1 %v29818_v21 }
 0xd4f   :  { %25345 = vmatmul.mubr.f32.vlgmr.msra.gmra.mrb[42].mxu0 %v6566_v19  ;;  %25378 = vmatmul.mubr.f32.vlgmr.msra.gmra.mrb[28].mxu1 %v6565_v55 }
 0xd50   :  { %28112 = vmatpush3.bf16.msra.mxu0 %v30963_v6  ;;  %25366 = vmatprep.mubr.msk.f32.mxu0 %vm29819_vm12, %v32871_v60 }
 0xd51   :  { %28113 = vmatprep.subr.bf16.mxu0 %v29818_v21  ;;  %28130 = vmatpush3.bf16.msra.mxu1 %v30938_v20 }
 0xd52   :  { %28131 = vmatprep.subr.bf16.mxu1 %v29818_v21  ;;  %25399 = vmatprep.mubr.msk.f32.mxu1 %vm29819_vm12, %v32871_v60 }
 0xd54   :  { %28115 = vmatpush3.bf16.msra.mxu0 %v30969_v37 }
 0xd55   :  { %28133 = vmatpush3.bf16.msra.mxu1 %v30944_v27  ;;  %28122 = vmatprep.subr.bf16.mxu0 %v29818_v21 }
 0xd56   :  { %28140 = vmatprep.subr.bf16.mxu1 %v29818_v21 }
 0xd57   :  { %25367 = vmatmul.mubr.f32.vlgmr.msra.gmra.mrb[44].mxu0 %v6565_v55 }
 0xd58   :  { %28124 = vmatpush3.bf16.msra.mxu0 %v30887_v46  ;;  %25388 = vmatprep.mubr.msk.f32.mxu0 %vm29819_vm12, %v32871_v60 }
 0xd59   :  { %28125 = vmatprep.subr.bf16.mxu0 %v29818_v21 }
 0xd5c   :  { %28127 = vmatpush3.bf16.msra.mxu0 %v30922_v54 }
 0xd5d   :  { %28134 = vmatprep.subr.bf16.mxu0 %v29818_v21 }
 0xe12   :  { %v6662_v20 = vpop.f32.mrb[24].mxu1 }
 0xe13   :  { %v25335_v31 = vpop.f32.mrb[25].mxu1 }
 0xe1a   :  { %v6819_v59 = vpop.f32.mrb[26].mxu1  ;;  %v6571_v27 = vpop.f32.mrb[40].mxu0 }
 0xe1b   :  { %v6663_v4 = vadd.f32 %v6662_v20, %v6571_v27  ;;  %v25357_v15 = vpop.f32.mrb[27].mxu1  ;;  %v25324_v61 = vpop.f32.mrb[41].mxu0 }
 0xe1c   :  { %v7534_v61 = vld [vmem:[%s32839_s8] sm:$0xff] }
 0xe22   :  { %v6742_v49 = vpop.f32.mrb[42].mxu0  ;;  %v6977_v13 = vpop.f32.mrb[28].mxu1 }
 0xe23   :  { %v6743_v32 = vadd.f32 %v6742_v49, %v6663_v4  ;;  %v25346_v22 = vpop.f32.mrb[43].mxu0  ;;  %v25379_v12 = vpop.f32.mrb[29].mxu1  ;;  %v7535_v49 = vld [vmem:[%s32839_s8 + $0x8] sm:$0xff] }
 0xe24   :  { %v7544_v22 = vand.u32 4294901760, %v7535_v49  ;;  %v7537_v12 = vld [vmem:[%s32839_s8 + $0x18] sm:$0xff] }
 0xe25   :  { %v6820_v16 = vadd.f32 %v6819_v59, %v6743_v32  ;;  %v7541_v32 = vand.u32 4294901760, %v7534_v61 }
 0xe2a   :  { %v6902_v35 = vpop.f32.mrb[44].mxu0 }
 0xe2b   :  { %v6903_v25 = vadd.f32 %v6902_v35, %v6820_v16  ;;  %v25368_v30 = vpop.f32.mrb[45].mxu0  ;;  %v7550_v35 = vand.u32 4294901760, %v7537_v12 }
 0xe2c   :  { %v7628_v30 = vsub.f32 %v7535_v49, %v7544_v22 }
 0xe2d   :  { %v6978_v40 = vadd.f32 %v6977_v13, %v6903_v25  ;;  %v7536_v13 = vld [vmem:[%s32839_s8 + $0x10] sm:$0xff]  ;;  %v7621_v25 = vsub.f32 %v7534_v61, %v7541_v32 }
 0xe2e   :  { %v7547_v16 = vand.u32 4294901760, %v7536_v13 }
 0xe2f   :  { %v6981_v41 = vadd.f32 %v6978_v40, %v6489_v52  ;;  %v31296_v52 = vsub.f32 %v7537_v12, %v7550_v35 }
 0xe30   :  { %v31294_v40 = vsub.f32 %v7536_v13, %v7547_v16 }
 0xe31   :  { %29438 = vtanh.f32 %v6981_v41  ;;  %v22727_v1 = vmul.f32 -1.442695, %v6981_v41  ;;  %v7622_v41 = vand.u32 4294901760, %v7621_v25 }
 0xe33   :  { %29440 = vpow2.f32 %v22727_v1  ;;  %v7636_v1 = vand.u32 4294901760, %v31294_v40 }
 0xe3b   :  { %v29439_v44 = vpop.eup %29438 }
 0xe3c   :  { %6991 = vrot.lane.b32.xlu0 %v29439_v44, %s29820_s9  ;;  %v7629_v44 = vand.u32 4294901760, %v7628_v30 }
 0xe3d   :  { %v29441_v17 = vpop.eup %29440 }
 0xe3e   :  { %v6985_v57 = vadd.f32 1.0, %v29441_v17  ;;  %v7643_v17 = vand.u32 4294901760, %v31296_v52 }
 0xe40   :  { %29442 = vrcp.f32 %v6985_v57  ;;  %v7623_v57 = vsub.f32 %v7621_v25, %v7622_v41 }
 0xe4a   :  { %v29443_v11 = vpop.eup %29442 }
 0xe4b   :  { %v6989_v29 = vmul.f32 %v29443_v11, %v31195_v24 }
 0xeae   :  { %v6992_v43 = vpop.permute.xlu0 %6991 }
 0xeaf   :  { %v6994_v33 = vmul.f32 %v29443_v11, %v6992_v43  ;;  %v7637_v43 = vsub.f32 %v31294_v40, %v7636_v1 }
 0xeb1   :  { %6996 = vrot.lane.b32.xlu1 %v6994_v33, %s29821_s22  ;;  %v7644_v33 = vsub.f32 %v31296_v52, %v7643_v17 }
 0xf23   :  { %v6997_v5 = vpop.permute.xlu1 %6996 }
 0xf24   :  { %v31241_v28 = vadd.f32 %v6997_v5, %v6989_v29  ;;  %v7624_v29 = vand.u32 4294901760, %v7623_v57 }
 0xf26   :  { %29444 = vtanh.f32 %v31241_v28 }
 0xf30   :  { %v29445_v47 = vpop.eup %29444 }
 0xf31   :  { %7002 = vrot.lane.b32.xlu0 %v29445_v47, %s29820_s9 }
 0xfa3   :  { %v7003_v36 = vpop.permute.xlu0 %7002 }
 0xfa4   :  { %v7005_v0 = vmul.f32 %v29443_v11, %v7003_v36  ;;  %v7630_v11 = vsub.f32 %v7628_v30, %v7629_v44  ;;  %v7645_v36 = vand.u32 4294901760, %v7644_v33 }
 0xfa6   :  { %7007 = vrot.lane.b32.xlu1 %v7005_v0, %s29821_s22  ;;  %v7631_v5 = vand.u32 4294901760, %v7630_v11 }
 0xfa8   :  { %v31303_v0 = vpack.c.bf16 %v7631_v5, %v7624_v29 }
0x1018   :  { %v7008_v14 = vpop.permute.xlu1 %7007 }
0x1019   :  { %7010 = vst.msk [vmem:[#allocation3 + $0x6] sm:$0x3] %vm5443_vm13, %v7008_v14  ;;  %v7016_v39 = vsel %vm780_vm3, %v7008_v14, 0 }
0x101a   :  { %v7087_v62 = vand.u32 4294901760, %v7016_v39 }
0x101c   :  { %v7088_v63 = vsub.f32 %v7016_v39, %v7087_v62  ;;  %25400 = vmatmul.mubr.f32.vlgmr.msra.gmra.mrb[30].mxu1 %v7087_v62  ;;  %v31311_v39 = vpack.c.bf16 %v7544_v22, %v7541_v32 }
0x101d   :  { %28142 = vmatpush3.bf16.msra.mxu1 %v30887_v46  ;;  %25421 = vmatprep.mubr.msk.f32.mxu1 %vm29819_vm12, %v32871_v60 }
0x101e   :  { %28143 = vmatprep.subr.bf16.mxu1 %v29818_v21  ;;  %v7089_v2 = vand.u32 4294901760, %v7088_v63 }
0x1020   :  { %v7090_v3 = vsub.f32 %v7088_v63, %v7089_v2 }
0x1021   :  { %28145 = vmatpush3.bf16.msra.mxu1 %v30922_v54 }
0x1022   :  { %28152 = vmatprep.subr.bf16.mxu1 %v29818_v21  ;;  %v7091_v45 = vand.u32 4294901760, %v7090_v3 }
0x1024   :  { %25422 = vmatmul.mubr.f32.vlgmr.msra.gmra.mrb[32].mxu1 %v7089_v2  ;;  %25389 = vmatmul.mubr.f32.vlgmr.msra.gmra.mrb[46].mxu0 %v7091_v45 }
0x1025   :  { %28136 = vmatpush3.bf16.msra.mxu0 %v30952_v42  ;;  %28154 = vmatpush3.bf16.msra.mxu1 %v30887_v46 }
0x1026   :  { %28137 = vmatprep.subr.bf16.mxu0 %v29818_v21  ;;  %28155 = vmatprep.subr.bf16.mxu1 %v29818_v21 }
0x1027   :  { %25410 = vmatprep.mubr.msk.f32.mxu0 %vm29819_vm12, %v32871_v60  ;;  %25443 = vmatprep.mubr.msk.f32.mxu1 %vm29819_vm12, %v32871_v60 }
0x1029   :  { %28139 = vmatpush3.bf16.msra.mxu0 %v30956_v34  ;;  %28157 = vmatpush3.bf16.msra.mxu1 %v30922_v54 }
0x102a   :  { %28146 = vmatprep.subr.bf16.mxu0 %v29818_v21  ;;  %28164 = vmatprep.subr.bf16.mxu1 %v29818_v21 }
0x102c   :  { %25411 = vmatmul.mubr.f32.vlgmr.msra.gmra.mrb[48].mxu0 %v7088_v63  ;;  %25444 = vmatmul.mubr.f32.vlgmr.msra.gmra.mrb[34].mxu1 %v7087_v62 }
0x102d   :  { %28148 = vmatpush3.bf16.msra.mxu0 %v30963_v6  ;;  %25432 = vmatprep.mubr.msk.f32.mxu0 %vm29819_vm12, %v32871_v60 }
0x102e   :  { %28149 = vmatprep.subr.bf16.mxu0 %v29818_v21  ;;  %25465 = vmatprep.mubr.msk.f32.mxu1 %vm29819_vm12, %v32871_v60 }
0x102f   :  { %28166 = vmatpush3.bf16.msra.mxu1 %v31303_v0 }
0x1030   :  { %28167 = vmatprep.subr.bf16.mxu1 %v29818_v21 }
0x1031   :  { %28151 = vmatpush3.bf16.msra.mxu0 %v30969_v37 }
0x1032   :  { %28158 = vmatprep.subr.bf16.mxu0 %v29818_v21 }
0x1034   :  { %25433 = vmatmul.mubr.f32.vlgmr.msra.gmra.mrb[50].mxu0 %v7087_v62  ;;  %v31315_v62 = vpack.c.bf16 %v7550_v35, %v7547_v16 }
0x1035   :  { %25454 = vmatprep.mubr.msk.f32.mxu0 %vm29819_vm12, %v32871_v60  ;;  %28160 = vmatpush3.bf16.msra.mxu0 %v31311_v39 }
0x1036   :  { %28161 = vmatprep.subr.bf16.mxu0 %v29818_v21 }
0x1039   :  { %28163 = vmatpush3.bf16.msra.mxu0 %v31315_v62 }
0x103a   :  { %28170 = vmatprep.subr.bf16.mxu0 %v29818_v21 }
0x10ef   :  { %v7184_v46 = vpop.f32.mrb[30].mxu1 }
0x10f0   :  { %v25401_v54 = vpop.f32.mrb[31].mxu1 }
0x10f7   :  { %v7341_v42 = vpop.f32.mrb[32].mxu1  ;;  %v7093_v34 = vpop.f32.mrb[46].mxu0 }
0x10f8   :  { %v7185_v6 = vadd.f32 %v7184_v46, %v7093_v34  ;;  %v25423_v51 = vpop.f32.mrb[33].mxu1  ;;  %v25390_v53 = vpop.f32.mrb[47].mxu0 }
0x10f9   :  { %v31334_v53 = vpack.c.bf16 %v31296_v52, %v31294_v40 }
0x10ff   :  { %v7264_v58 = vpop.f32.mrb[48].mxu0  ;;  %v7499_v23 = vpop.f32.mrb[34].mxu1 }
0x1100   :  { %v7265_v56 = vadd.f32 %v7264_v58, %v7185_v6  ;;  %v25412_v48 = vpop.f32.mrb[49].mxu0  ;;  %v25445_v24 = vpop.f32.mrb[35].mxu1  ;;  %v31327_v6 = vpack.c.bf16 %v7628_v30, %v7621_v25  ;;  %v31344_v58 = vpack.c.bf16 %v7629_v44, %v7622_v41 }
0x1102   :  { %v7342_v7 = vadd.f32 %v7341_v42, %v7265_v56 }
0x1107   :  { %v7424_v37 = vpop.f32.mrb[50].mxu0 }
0x1108   :  { %v7425_v26 = vadd.f32 %v7424_v37, %v7342_v7  ;;  %v25434_v10 = vpop.f32.mrb[51].mxu0 }
0x110a   :  { %v7500_v8 = vadd.f32 %v7499_v23, %v7425_v26  ;;  %v31349_v23 = vpack.c.bf16 %v7643_v17, %v7636_v1 }
0x110c   :  { %v7503_v55 = vadd.f32 %v7500_v8, %v7011_v9 }
0x110e   :  { %29446 = vtanh.f32 %v7503_v55  ;;  %v22728_v18 = vmul.f32 -1.442695, %v7503_v55 }
0x1110   :  { %29448 = vpow2.f32 %v22728_v18 }
0x1118   :  { %v29447_v19 = vpop.eup %29446 }
0x1119   :  { %7513 = vrot.lane.b32.xlu0 %v29447_v19, %s29820_s9 }
0x111a   :  { %v29449_v50 = vpop.eup %29448 }
0x111b   :  { %v7507_v38 = vadd.f32 1.0, %v29449_v50 }
0x111d   :  { %29450 = vrcp.f32 %v7507_v38 }
0x1127   :  { %v29451_v20 = vpop.eup %29450 }
0x1128   :  { %v7511_v27 = vmul.f32 %v29451_v20, %v31241_v28  ;;  %v7638_v28 = vand.u32 4294901760, %v7637_v43 }
0x112a   :  { %v31306_v14 = vpack.c.bf16 %v7645_v36, %v7638_v28 }
0x112c   :  { %28169 = vmatpush3.bf16.msra.mxu1 %v31306_v14 }
0x112d   :  { %28176 = vmatprep.subr.bf16.mxu1 %v29818_v21 }
0x118b   :  { %v7514_v31 = vpop.permute.xlu0 %7513 }
0x118c   :  { %v7516_v59 = vmul.f32 %v29451_v20, %v7514_v31 }
0x118e   :  { %7518 = vrot.lane.b32.xlu1 %v7516_v59, %s29821_s22 }
0x1200   :  { %v7519_v4 = vpop.permute.xlu1 %7518 }
0x1201   :  { %v31279_v15 = vadd.f32 %v7519_v4, %v7511_v27  ;;  %v7533_v27 = vld [vmem:[#allocation2 + $0xa] sm:$0x3] }
0x1203   :  { %29452 = vtanh.f32 %v31279_v15 }
0x120d   :  { %v29453_v47 = vpop.eup %29452 }
0x120e   :  { %7524 = vrot.lane.b32.xlu0 %v29453_v47, %s29820_s9 }
0x1280   :  { %v7525_v63 = vpop.permute.xlu0 %7524 }
0x1281   :  { %v7527_v2 = vmul.f32 %v29451_v20, %v7525_v63 }
0x1283   :  { %7529 = vrot.lane.b32.xlu1 %v7527_v2, %s29821_s22 }
0x12f5   :  { %v7530_v3 = vpop.permute.xlu1 %7529 }
0x12f6   :  { %7532 = vst.msk [vmem:[#allocation3 + $0x8] sm:$0x3] %vm5443_vm13, %v7530_v3  ;;  %v7538_v45 = vsel %vm780_vm3, %v7530_v3, 0 }
0x12f7   :  { %v7609_v46 = vand.u32 4294901760, %v7538_v45 }
0x12f9   :  { %v7610_v54 = vsub.f32 %v7538_v45, %v7609_v46  ;;  %25466 = vmatmul.mubr.f32.vlgmr.msra.gmra.mrb[36].mxu1 %v7609_v46 }
0x12fa   :  { %28178 = vmatpush3.bf16.msra.mxu1 %v31311_v39  ;;  %25487 = vmatprep.mubr.msk.f32.mxu1 %vm29819_vm12, %v32871_v60 }
0x12fb   :  { %28179 = vmatprep.subr.bf16.mxu1 %v29818_v21  ;;  %v7611_v42 = vand.u32 4294901760, %v7610_v54 }
0x12fd   :  { %v7612_v34 = vsub.f32 %v7610_v54, %v7611_v42 }
0x12fe   :  { %28181 = vmatpush3.bf16.msra.mxu1 %v31315_v62 }
0x12ff   :  { %28188 = vmatprep.subr.bf16.mxu1 %v29818_v21  ;;  %v7613_v51 = vand.u32 4294901760, %v7612_v34 }
0x1301   :  { %25488 = vmatmul.mubr.f32.vlgmr.msra.gmra.mrb[38].mxu1 %v7611_v42  ;;  %25455 = vmatmul.mubr.f32.vlgmr.msra.gmra.mrb[52].mxu0 %v7613_v51 }
0x1302   :  { %28172 = vmatpush3.bf16.msra.mxu0 %v31327_v6  ;;  %28190 = vmatpush3.bf16.msra.mxu1 %v31311_v39 }
0x1303   :  { %28173 = vmatprep.subr.bf16.mxu0 %v29818_v21  ;;  %28191 = vmatprep.subr.bf16.mxu1 %v29818_v21 }
0x1304   :  { %25476 = vmatprep.mubr.msk.f32.mxu0 %vm29819_vm12, %v32871_v60  ;;  %25509 = vmatprep.mubr.msk.f32.mxu1 %vm29819_vm12, %v32871_v60 }
0x1306   :  { %28175 = vmatpush3.bf16.msra.mxu0 %v31334_v53  ;;  %28193 = vmatpush3.bf16.msra.mxu1 %v31315_v62 }
0x1307   :  { %28182 = vmatprep.subr.bf16.mxu0 %v29818_v21  ;;  %28200 = vmatprep.subr.bf16.mxu1 %v29818_v21 }
0x1309   :  { %25477 = vmatmul.mubr.f32.vlgmr.msra.gmra.mrb[54].mxu0 %v7610_v54  ;;  %25510 = vmatmul.mubr.f32.vlgmr.msra.gmra.mrb[40].mxu1 %v7609_v46 }
0x130a   :  { %28184 = vmatpush3.bf16.msra.mxu0 %v31344_v58  ;;  %25498 = vmatprep.mubr.msk.f32.mxu0 %vm29819_vm12, %v32871_v60 }
0x130b   :  { %28185 = vmatprep.subr.bf16.mxu0 %v29818_v21  ;;  %28202 = vmatpush3.bf16.msra.mxu1 %v31303_v0 }
0x130c   :  { %28203 = vmatprep.subr.bf16.mxu1 %v29818_v21  ;;  %25531 = vmatprep.mubr.msk.f32.mxu1 %vm29819_vm12, %v32871_v60 }
0x130e   :  { %28187 = vmatpush3.bf16.msra.mxu0 %v31349_v23 }
0x130f   :  { %28205 = vmatpush3.bf16.msra.mxu1 %v31306_v14  ;;  %28194 = vmatprep.subr.bf16.mxu0 %v29818_v21 }
0x1310   :  { %28212 = vmatprep.subr.bf16.mxu1 %v29818_v21 }
0x1311   :  { %25499 = vmatmul.mubr.f32.vlgmr.msra.gmra.mrb[56].mxu0 %v7609_v46 }
0x1312   :  { %28196 = vmatpush3.bf16.msra.mxu0 %v31311_v39  ;;  %25520 = vmatprep.mubr.msk.f32.mxu0 %vm29819_vm12, %v32871_v60 }
0x1313   :  { %28197 = vmatprep.subr.bf16.mxu0 %v29818_v21 }
0x1316   :  { %28199 = vmatpush3.bf16.msra.mxu0 %v31315_v62 }
0x1317   :  { %28206 = vmatprep.subr.bf16.mxu0 %v29818_v21 }
0x13cc   :  { %v7706_v56 = vpop.f32.mrb[36].mxu1 }
0x13cd   :  { %v25467_v48 = vpop.f32.mrb[37].mxu1 }
0x13d4   :  { %v7863_v24 = vpop.f32.mrb[38].mxu1  ;;  %v7615_v7 = vpop.f32.mrb[52].mxu0 }
0x13d5   :  { %v7707_v37 = vadd.f32 %v7706_v56, %v7615_v7  ;;  %v25489_v26 = vpop.f32.mrb[39].mxu1  ;;  %v25456_v10 = vpop.f32.mrb[53].mxu0 }
0x13dc   :  { %v7786_v8 = vpop.f32.mrb[54].mxu0  ;;  %v8021_v9 = vpop.f32.mrb[40].mxu1 }
0x13dd   :  { %v7787_v55 = vadd.f32 %v7786_v8, %v7707_v37  ;;  %v25478_v19 = vpop.f32.mrb[55].mxu0  ;;  %v25511_v18 = vpop.f32.mrb[41].mxu1 }
0x13df   :  { %v7864_v50 = vadd.f32 %v7863_v24, %v7787_v55  ;;  %v8055_v24 = vld [vmem:[#allocation2 + $0xc] sm:$0x3] }
0x13e4   :  { %v7946_v38 = vpop.f32.mrb[56].mxu0 }
0x13e5   :  { %v7947_v20 = vadd.f32 %v7946_v38, %v7864_v50  ;;  %v25500_v31 = vpop.f32.mrb[57].mxu0 }
0x13e7   :  { %v8022_v59 = vadd.f32 %v8021_v9, %v7947_v20 }
0x13e9   :  { %v8025_v4 = vadd.f32 %v8022_v59, %v7533_v27 }
0x13eb   :  { %29454 = vtanh.f32 %v8025_v4  ;;  %v22729_v49 = vmul.f32 -1.442695, %v8025_v4 }
0x13ed   :  { %29456 = vpow2.f32 %v22729_v49 }
0x13f5   :  { %v29455_v61 = vpop.eup %29454 }
0x13f6   :  { %8035 = vrot.lane.b32.xlu0 %v29455_v61, %s29820_s9 }
0x13f7   :  { %v29457_v13 = vpop.eup %29456 }
0x13f8   :  { %v8029_v32 = vadd.f32 1.0, %v29457_v13 }
0x13fa   :  { %29458 = vrcp.f32 %v8029_v32 }
0x1404   :  { %v29459_v22 = vpop.eup %29458 }
0x1405   :  { %v8033_v35 = vmul.f32 %v29459_v22, %v31279_v15 }
0x1468   :  { %v8036_v12 = vpop.permute.xlu0 %8035 }
0x1469   :  { %v8038_v16 = vmul.f32 %v29459_v22, %v8036_v12 }
0x146b   :  { %8040 = vrot.lane.b32.xlu1 %v8038_v16, %s29821_s22 }
0x14dd   :  { %v8041_v25 = vpop.permute.xlu1 %8040 }
0x14de   :  { %v31371_v30 = vadd.f32 %v8041_v25, %v8033_v35 }
0x14e0   :  { %29460 = vtanh.f32 %v31371_v30 }
0x14ea   :  { %v29461_v40 = vpop.eup %29460 }
0x14eb   :  { %8046 = vrot.lane.b32.xlu0 %v29461_v40, %s29820_s9 }
0x155d   :  { %v8047_v52 = vpop.permute.xlu0 %8046 }
0x155e   :  { %v8049_v41 = vmul.f32 %v29459_v22, %v8047_v52 }
0x1560   :  { %8051 = vrot.lane.b32.xlu1 %v8049_v41, %s29821_s22 }
0x15d2   :  { %v8052_v44 = vpop.permute.xlu1 %8051 }
0x15d3   :  { %8054 = vst.msk [vmem:[#allocation3 + $0xa] sm:$0x3] %vm5443_vm13, %v8052_v44  ;;  %v8060_v1 = vsel %vm780_vm3, %v8052_v44, 0 }
0x15d4   :  { %v8131_v17 = vand.u32 4294901760, %v8060_v1 }
0x15d6   :  { %v8132_v57 = vsub.f32 %v8060_v1, %v8131_v17  ;;  %25532 = vmatmul.mubr.f32.vlgmr.msra.gmra.mrb[42].mxu1 %v8131_v17 }
0x15d7   :  { %28214 = vmatpush3.bf16.msra.mxu1 %v31311_v39  ;;  %25553 = vmatprep.mubr.msk.f32.mxu1 %vm29819_vm12, %v32871_v60 }
0x15d8   :  { %28215 = vmatprep.subr.bf16.mxu1 %v29818_v21  ;;  %v8133_v15 = vand.u32 4294901760, %v8132_v57 }
0x15da   :  { %v8134_v11 = vsub.f32 %v8132_v57, %v8133_v15 }
0x15db   :  { %28217 = vmatpush3.bf16.msra.mxu1 %v31315_v62 }
0x15dc   :  { %28224 = vmatprep.subr.bf16.mxu1 %v29818_v21  ;;  %v8135_v43 = vand.u32 4294901760, %v8134_v11 }
0x15de   :  { %25554 = vmatmul.mubr.f32.vlgmr.msra.gmra.mrb[44].mxu1 %v8133_v15  ;;  %25521 = vmatmul.mubr.f32.vlgmr.msra.gmra.mrb[58].mxu0 %v8135_v43 }
0x15df   :  { %28208 = vmatpush3.bf16.msra.mxu0 %v31327_v6  ;;  %28226 = vmatpush3.bf16.msra.mxu1 %v31311_v39 }
0x15e0   :  { %28209 = vmatprep.subr.bf16.mxu0 %v29818_v21  ;;  %28227 = vmatprep.subr.bf16.mxu1 %v29818_v21 }
0x15e1   :  { %25542 = vmatprep.mubr.msk.f32.mxu0 %vm29819_vm12, %v32871_v60  ;;  %25575 = vmatprep.mubr.msk.f32.mxu1 %vm29819_vm12, %v32871_v60 }
0x15e3   :  { %28211 = vmatpush3.bf16.msra.mxu0 %v31334_v53  ;;  %28229 = vmatpush3.bf16.msra.mxu1 %v31315_v62 }
0x15e4   :  { %28218 = vmatprep.subr.bf16.mxu0 %v29818_v21  ;;  %28236 = vmatprep.subr.bf16.mxu1 %v29818_v21 }
0x15e6   :  { %25543 = vmatmul.mubr.f32.vlgmr.msra.gmra.mrb[60].mxu0 %v8132_v57  ;;  %25576 = vmatmul.mubr.f32.vlgmr.msra.gmra.mrb[46].mxu1 %v8131_v17 }
0x15e7   :  { %28220 = vmatpush3.bf16.msra.mxu0 %v31344_v58  ;;  %25564 = vmatprep.mubr.msk.f32.mxu0 %vm29819_vm12, %v32871_v60 }
0x15e8   :  { %28221 = vmatprep.subr.bf16.mxu0 %v29818_v21  ;;  %28238 = vmatpush3.bf16.msra.mxu1 %v31303_v0 }
0x15e9   :  { %28239 = vmatprep.subr.bf16.mxu1 %v29818_v21  ;;  %25597 = vmatprep.mubr.msk.f32.mxu1 %vm29819_vm12, %v32871_v60 }
0x15eb   :  { %28223 = vmatpush3.bf16.msra.mxu0 %v31349_v23 }
0x15ec   :  { %28241 = vmatpush3.bf16.msra.mxu1 %v31306_v14  ;;  %28230 = vmatprep.subr.bf16.mxu0 %v29818_v21 }
0x15ed   :  { %28248 = vmatprep.subr.bf16.mxu1 %v29818_v21 }
0x15ee   :  { %25565 = vmatmul.mubr.f32.vlgmr.msra.gmra.mrb[62].mxu0 %v8131_v17 }
0x15ef   :  { %28232 = vmatpush3.bf16.msra.mxu0 %v31311_v39  ;;  %25586 = vmatprep.mubr.msk.f32.mxu0 %vm29819_vm12, %v32871_v60 }
0x15f0   :  { %28233 = vmatprep.subr.bf16.mxu0 %v29818_v21 }
0x15f3   :  { %28235 = vmatpush3.bf16.msra.mxu0 %v31315_v62 }
0x15f4   :  { %28242 = vmatprep.subr.bf16.mxu0 %v29818_v21 }
0x16a9   :  { %v8228_v33 = vpop.f32.mrb[42].mxu1 }
0x16aa   :  { %v25533_v29 = vpop.f32.mrb[43].mxu1 }
0x16b1   :  { %v8385_v5 = vpop.f32.mrb[44].mxu1  ;;  %v8137_v28 = vpop.f32.mrb[58].mxu0 }
0x16b2   :  { %v8229_v47 = vadd.f32 %v8228_v33, %v8137_v28  ;;  %v25555_v36 = vpop.f32.mrb[45].mxu1  ;;  %v25522_v63 = vpop.f32.mrb[59].mxu0 }
0x16b9   :  { %v8308_v2 = vpop.f32.mrb[60].mxu0  ;;  %v8543_v3 = vpop.f32.mrb[46].mxu1 }
0x16ba   :  { %v8309_v45 = vadd.f32 %v8308_v2, %v8229_v47  ;;  %v25544_v46 = vpop.f32.mrb[61].mxu0  ;;  %v25577_v54 = vpop.f32.mrb[47].mxu1 }
0x16bc   :  { %v8386_v42 = vadd.f32 %v8385_v5, %v8309_v45  ;;  %v8577_v5 = vld [vmem:[#allocation2 + $0xe] sm:$0x3] }
0x16c1   :  { %v8468_v34 = vpop.f32.mrb[62].mxu0 }
0x16c2   :  { %v8469_v51 = vadd.f32 %v8468_v34, %v8386_v42  ;;  %v25566_v56 = vpop.f32.mrb[63].mxu0 }
0x16c4   :  { %v8544_v48 = vadd.f32 %v8543_v3, %v8469_v51 }
0x16c6   :  { %v8547_v7 = vadd.f32 %v8544_v48, %v8055_v24 }
0x16c8   :  { %29462 = vtanh.f32 %v8547_v7  ;;  %v22730_v26 = vmul.f32 -1.442695, %v8547_v7 }
0x16ca   :  { %29464 = vpow2.f32 %v22730_v26 }
0x16d2   :  { %v29463_v37 = vpop.eup %29462 }
0x16d3   :  { %8557 = vrot.lane.b32.xlu0 %v29463_v37, %s29820_s9 }
0x16d4   :  { %v29465_v10 = vpop.eup %29464 }
0x16d5   :  { %v8551_v8 = vadd.f32 1.0, %v29465_v10 }
0x16d7   :  { %29466 = vrcp.f32 %v8551_v8 }
0x16e1   :  { %v29467_v9 = vpop.eup %29466 }
0x16e2   :  { %v8555_v18 = vmul.f32 %v29467_v9, %v31371_v30 }
0x1745   :  { %v8558_v55 = vpop.permute.xlu0 %8557 }
0x1746   :  { %v8560_v19 = vmul.f32 %v29467_v9, %v8558_v55 }
0x1748   :  { %8562 = vrot.lane.b32.xlu1 %v8560_v19, %s29821_s22 }
0x17ba   :  { %v8563_v50 = vpop.permute.xlu1 %8562 }
0x17bb   :  { %v31417_v38 = vadd.f32 %v8563_v50, %v8555_v18 }
0x17bd   :  { %29468 = vtanh.f32 %v31417_v38 }
0x17c7   :  { %v29469_v20 = vpop.eup %29468 }
0x17c8   :  { %8568 = vrot.lane.b32.xlu0 %v29469_v20, %s29820_s9 }
0x183a   :  { %v8569_v31 = vpop.permute.xlu0 %8568 }
0x183b   :  { %v8571_v59 = vmul.f32 %v29467_v9, %v8569_v31 }
0x183d   :  { %8573 = vrot.lane.b32.xlu1 %v8571_v59, %s29821_s22 }
0x18af   :  { %v8574_v27 = vpop.permute.xlu1 %8573 }
0x18b0   :  { %8576 = vst.msk [vmem:[#allocation3 + $0xc] sm:$0x3] %vm5443_vm13, %v8574_v27  ;;  %v8582_v4 = vsel %vm780_vm3, %v8574_v27, 0 }
0x18b1   :  { %v8653_v61 = vand.u32 4294901760, %v8582_v4 }
0x18b3   :  { %v8654_v49 = vsub.f32 %v8582_v4, %v8653_v61  ;;  %25598 = vmatmul.mubr.f32.vlgmr.msra.gmra.mrb[48].mxu1 %v8653_v61 }
0x18b4   :  { %28250 = vmatpush3.bf16.msra.mxu1 %v31311_v39  ;;  %25619 = vmatprep.mubr.msk.f32.mxu1 %vm29819_vm12, %v32871_v60 }
0x18b5   :  { %28251 = vmatprep.subr.bf16.mxu1 %v29818_v21  ;;  %v8655_v13 = vand.u32 4294901760, %v8654_v49 }
0x18b7   :  { %v8656_v32 = vsub.f32 %v8654_v49, %v8655_v13 }
0x18b8   :  { %28253 = vmatpush3.bf16.msra.mxu1 %v31315_v62 }
0x18b9   :  { %28260 = vmatprep.subr.bf16.mxu1 %v29818_v21  ;;  %v8657_v22 = vand.u32 4294901760, %v8656_v32 }
0x18bb   :  { %25620 = vmatmul.mubr.f32.vlgmr.msra.gmra.mrb[50].mxu1 %v8655_v13  ;;  %25587 = vmatmul.mubr.f32.vlgmr.msra.gmra.mrb[64].mxu0 %v8657_v22 }
0x18bc   :  { %28244 = vmatpush3.bf16.msra.mxu0 %v31327_v6  ;;  %28262 = vmatpush3.bf16.msra.mxu1 %v31311_v39 }
0x18bd   :  { %28245 = vmatprep.subr.bf16.mxu0 %v29818_v21  ;;  %28263 = vmatprep.subr.bf16.mxu1 %v29818_v21 }
0x18be   :  { %25608 = vmatprep.mubr.msk.f32.mxu0 %vm29819_vm12, %v32871_v60  ;;  %25641 = vmatprep.mubr.msk.f32.mxu1 %vm29819_vm12, %v32871_v60 }
0x18c0   :  { %28247 = vmatpush3.bf16.msra.mxu0 %v31334_v53  ;;  %28265 = vmatpush3.bf16.msra.mxu1 %v31315_v62 }
0x18c1   :  { %28254 = vmatprep.subr.bf16.mxu0 %v29818_v21  ;;  %28272 = vmatprep.subr.bf16.mxu1 %v29818_v21 }
0x18c3   :  { %25609 = vmatmul.mubr.f32.vlgmr.msra.gmra.mrb[66].mxu0 %v8654_v49  ;;  %25642 = vmatmul.mubr.f32.vlgmr.msra.gmra.mrb[52].mxu1 %v8653_v61 }
0x18c4   :  { %28256 = vmatpush3.bf16.msra.mxu0 %v31344_v58  ;;  %25630 = vmatprep.mubr.msk.f32.mxu0 %vm29819_vm12, %v32871_v60 }
0x18c5   :  { %28257 = vmatprep.subr.bf16.mxu0 %v29818_v21  ;;  %28274 = vmatpush3.bf16.msra.mxu1 %v31303_v0 }
0x18c6   :  { %28275 = vmatprep.subr.bf16.mxu1 %v29818_v21  ;;  %25663 = vmatprep.mubr.msk.f32.mxu1 %vm29819_vm12, %v32871_v60 }
0x18c8   :  { %28259 = vmatpush3.bf16.msra.mxu0 %v31349_v23 }
0x18c9   :  { %28277 = vmatpush3.bf16.msra.mxu1 %v31306_v14  ;;  %28266 = vmatprep.subr.bf16.mxu0 %v29818_v21 }
0x18ca   :  { %28284 = vmatprep.subr.bf16.mxu1 %v29818_v21 }
0x18cb   :  { %25631 = vmatmul.mubr.f32.vlgmr.msra.gmra.mrb[68].mxu0 %v8653_v61 }
0x18cc   :  { %28268 = vmatpush3.bf16.msra.mxu0 %v31311_v39  ;;  %25652 = vmatprep.mubr.msk.f32.mxu0 %vm29819_vm12, %v32871_v60 }
0x18cd   :  { %28269 = vmatprep.subr.bf16.mxu0 %v29818_v21 }
0x18d0   :  { %28271 = vmatpush3.bf16.msra.mxu0 %v31315_v62 }
0x18d1   :  { %28278 = vmatprep.subr.bf16.mxu0 %v29818_v21 }
0x1986   :  { %v8750_v12 = vpop.f32.mrb[48].mxu1 }
0x1987   :  { %v25599_v16 = vpop.f32.mrb[49].mxu1 }
0x198e   :  { %v8907_v35 = vpop.f32.mrb[50].mxu1  ;;  %v8659_v25 = vpop.f32.mrb[64].mxu0 }
0x198f   :  { %v8751_v30 = vadd.f32 %v8750_v12, %v8659_v25  ;;  %v25621_v40 = vpop.f32.mrb[51].mxu1  ;;  %v25588_v52 = vpop.f32.mrb[65].mxu0  ;;  %v9099_v12 = vld [vmem:[#allocation2 + $0x10] sm:$0x3] }
0x1996   :  { %v8830_v41 = vpop.f32.mrb[66].mxu0  ;;  %v9065_v44 = vpop.f32.mrb[52].mxu1 }
0x1997   :  { %v8831_v1 = vadd.f32 %v8830_v41, %v8751_v30  ;;  %v25610_v17 = vpop.f32.mrb[67].mxu0  ;;  %v25643_v57 = vpop.f32.mrb[53].mxu1 }
0x1999   :  { %v8908_v15 = vadd.f32 %v8907_v35, %v8831_v1 }
0x199e   :  { %v8990_v11 = vpop.f32.mrb[68].mxu0 }
0x199f   :  { %v8991_v43 = vadd.f32 %v8990_v11, %v8908_v15  ;;  %v25632_v33 = vpop.f32.mrb[69].mxu0 }
0x19a1   :  { %v9066_v29 = vadd.f32 %v9065_v44, %v8991_v43 }
0x19a3   :  { %v9069_v28 = vadd.f32 %v9066_v29, %v8577_v5 }
0x19a5   :  { %29470 = vtanh.f32 %v9069_v28  ;;  %v22731_v36 = vmul.f32 -1.442695, %v9069_v28 }
0x19a7   :  { %29472 = vpow2.f32 %v22731_v36 }
0x19af   :  { %v29471_v47 = vpop.eup %29470 }
0x19b0   :  { %9079 = vrot.lane.b32.xlu0 %v29471_v47, %s29820_s9 }
0x19b1   :  { %v29473_v63 = vpop.eup %29472 }
0x19b2   :  { %v9073_v2 = vadd.f32 1.0, %v29473_v63 }
0x19b4   :  { %29474 = vrcp.f32 %v9073_v2 }
0x19be   :  { %v29475_v3 = vpop.eup %29474 }
0x19bf   :  { %v9077_v54 = vmul.f32 %v29475_v3, %v31417_v38 }
0x1a22   :  { %v9080_v45 = vpop.permute.xlu0 %9079 }
0x1a23   :  { %v9082_v46 = vmul.f32 %v29475_v3, %v9080_v45 }
0x1a25   :  { %9084 = vrot.lane.b32.xlu1 %v9082_v46, %s29821_s22 }
0x1a97   :  { %v9085_v42 = vpop.permute.xlu1 %9084 }
0x1a98   :  { %v31463_v34 = vadd.f32 %v9085_v42, %v9077_v54 }
0x1a9a   :  { %29476 = vtanh.f32 %v31463_v34 }
0x1aa4   :  { %v29477_v51 = vpop.eup %29476 }
0x1aa5   :  { %9090 = vrot.lane.b32.xlu0 %v29477_v51, %s29820_s9 }
0x1b17   :  { %v9091_v56 = vpop.permute.xlu0 %9090 }
0x1b18   :  { %v9093_v48 = vmul.f32 %v29475_v3, %v9091_v56 }
0x1b1a   :  { %9095 = vrot.lane.b32.xlu1 %v9093_v48, %s29821_s22 }
0x1b8c   :  { %v9096_v24 = vpop.permute.xlu1 %9095 }
0x1b8d   :  { %9098 = vst.msk [vmem:[#allocation3 + $0xe] sm:$0x3] %vm5443_vm13, %v9096_v24  ;;  %v9104_v7 = vsel %vm780_vm3, %v9096_v24, 0 }
0x1b8e   :  { %v9175_v37 = vand.u32 4294901760, %v9104_v7 }
0x1b90   :  { %v9176_v26 = vsub.f32 %v9104_v7, %v9175_v37  ;;  %25664 = vmatmul.mubr.f32.vlgmr.msra.gmra.mrb[54].mxu1 %v9175_v37  ;;  %v9621_v7 = vld [vmem:[#allocation2 + $0x12] sm:$0x3] }
0x1b91   :  { %28286 = vmatpush3.bf16.msra.mxu1 %v31311_v39  ;;  %25685 = vmatprep.mubr.msk.f32.mxu1 %vm29819_vm12, %v32871_v60 }
0x1b92   :  { %v9177_v10 = vand.u32 4294901760, %v9176_v26  ;;  %28287 = vmatprep.subr.bf16.mxu1 %v29818_v21 }
0x1b94   :  { %v9178_v8 = vsub.f32 %v9176_v26, %v9177_v10 }
0x1b95   :  { %28289 = vmatpush3.bf16.msra.mxu1 %v31315_v62 }
0x1b96   :  { %28296 = vmatprep.subr.bf16.mxu1 %v29818_v21  ;;  %v9179_v9 = vand.u32 4294901760, %v9178_v8 }
0x1b98   :  { %25686 = vmatmul.mubr.f32.vlgmr.msra.gmra.mrb[56].mxu1 %v9177_v10  ;;  %25653 = vmatmul.mubr.f32.vlgmr.msra.gmra.mrb[70].mxu0 %v9179_v9 }
0x1b99   :  { %28280 = vmatpush3.bf16.msra.mxu0 %v31327_v6  ;;  %28298 = vmatpush3.bf16.msra.mxu1 %v31311_v39 }
0x1b9a   :  { %28281 = vmatprep.subr.bf16.mxu0 %v29818_v21  ;;  %28299 = vmatprep.subr.bf16.mxu1 %v29818_v21 }
0x1b9b   :  { %25674 = vmatprep.mubr.msk.f32.mxu0 %vm29819_vm12, %v32871_v60  ;;  %25707 = vmatprep.mubr.msk.f32.mxu1 %vm29819_vm12, %v32871_v60 }
0x1b9d   :  { %28283 = vmatpush3.bf16.msra.mxu0 %v31334_v53  ;;  %28301 = vmatpush3.bf16.msra.mxu1 %v31315_v62 }
0x1b9e   :  { %28290 = vmatprep.subr.bf16.mxu0 %v29818_v21  ;;  %28308 = vmatprep.subr.bf16.mxu1 %v29818_v21 }
0x1ba0   :  { %25675 = vmatmul.mubr.f32.vlgmr.msra.gmra.mrb[72].mxu0 %v9176_v26  ;;  %25708 = vmatmul.mubr.f32.vlgmr.msra.gmra.mrb[58].mxu1 %v9175_v37 }
0x1ba1   :  { %28292 = vmatpush3.bf16.msra.mxu0 %v31344_v58  ;;  %25696 = vmatprep.mubr.msk.f32.mxu0 %vm29819_vm12, %v32871_v60 }
0x1ba2   :  { %28293 = vmatprep.subr.bf16.mxu0 %v29818_v21  ;;  %28310 = vmatpush3.bf16.msra.mxu1 %v31303_v0 }
0x1ba3   :  { %28311 = vmatprep.subr.bf16.mxu1 %v29818_v21  ;;  %25729 = vmatprep.mubr.msk.f32.mxu1 %vm29819_vm12, %v32871_v60 }
0x1ba5   :  { %28295 = vmatpush3.bf16.msra.mxu0 %v31349_v23 }
0x1ba6   :  { %28313 = vmatpush3.bf16.msra.mxu1 %v31306_v14  ;;  %28302 = vmatprep.subr.bf16.mxu0 %v29818_v21 }
0x1ba7   :  { %28320 = vmatprep.subr.bf16.mxu1 %v29818_v21 }
0x1ba8   :  { %25697 = vmatmul.mubr.f32.vlgmr.msra.gmra.mrb[74].mxu0 %v9175_v37 }
0x1ba9   :  { %28304 = vmatpush3.bf16.msra.mxu0 %v31311_v39  ;;  %25718 = vmatprep.mubr.msk.f32.mxu0 %vm29819_vm12, %v32871_v60 }
0x1baa   :  { %28305 = vmatprep.subr.bf16.mxu0 %v29818_v21 }
0x1bad   :  { %28307 = vmatpush3.bf16.msra.mxu0 %v31315_v62 }
0x1bae   :  { %28314 = vmatprep.subr.bf16.mxu0 %v29818_v21 }
0x1c63   :  { %v9272_v0 = vpop.f32.mrb[54].mxu1 }
0x1c64   :  { %v25665_v55 = vpop.f32.mrb[55].mxu1 }
0x1c6b   :  { %v9429_v19 = vpop.f32.mrb[56].mxu1  ;;  %v9181_v14 = vpop.f32.mrb[70].mxu0 }
0x1c6c   :  { %v9273_v18 = vadd.f32 %v9272_v0, %v9181_v14  ;;  %v25687_v50 = vpop.f32.mrb[57].mxu1  ;;  %v25654_v38 = vpop.f32.mrb[71].mxu0 }
0x1c6d   :  { %v10144_v38 = vld [vmem:[%s32839_s8] sm:$0xff] }
0x1c73   :  { %v9352_v20 = vpop.f32.mrb[72].mxu0  ;;  %v9587_v31 = vpop.f32.mrb[58].mxu1 }
0x1c74   :  { %v9353_v59 = vadd.f32 %v9352_v20, %v9273_v18  ;;  %v25676_v27 = vpop.f32.mrb[73].mxu0  ;;  %v25709_v4 = vpop.f32.mrb[59].mxu1  ;;  %v10145_v20 = vld [vmem:[%s32839_s8 + $0x8] sm:$0xff] }
0x1c75   :  { %v10154_v27 = vand.u32 4294901760, %v10145_v20  ;;  %v10147_v4 = vld [vmem:[%s32839_s8 + $0x18] sm:$0xff] }
0x1c76   :  { %v9430_v61 = vadd.f32 %v9429_v19, %v9353_v59  ;;  %v10151_v59 = vand.u32 4294901760, %v10144_v38 }
0x1c7b   :  { %v9512_v49 = vpop.f32.mrb[74].mxu0 }
0x1c7c   :  { %v9513_v13 = vadd.f32 %v9512_v49, %v9430_v61  ;;  %v25698_v32 = vpop.f32.mrb[75].mxu0  ;;  %v10160_v49 = vand.u32 4294901760, %v10147_v4 }
0x1c7d   :  { %v10238_v32 = vsub.f32 %v10145_v20, %v10154_v27 }
0x1c7e   :  { %v9588_v22 = vadd.f32 %v9587_v31, %v9513_v13  ;;  %v10146_v31 = vld [vmem:[%s32839_s8 + $0x10] sm:$0xff]  ;;  %v10231_v13 = vsub.f32 %v10144_v38, %v10151_v59 }
0x1c7f   :  { %v10157_v61 = vand.u32 4294901760, %v10146_v31 }
0x1c80   :  { %v9591_v16 = vadd.f32 %v9588_v22, %v9099_v12  ;;  %v31564_v12 = vsub.f32 %v10147_v4, %v10160_v49 }
0x1c81   :  { %v31562_v22 = vsub.f32 %v10146_v31, %v10157_v61 }
0x1c82   :  { %29478 = vtanh.f32 %v9591_v16  ;;  %v22732_v25 = vmul.f32 -1.442695, %v9591_v16  ;;  %v10232_v16 = vand.u32 4294901760, %v10231_v13 }
0x1c84   :  { %29480 = vpow2.f32 %v22732_v25  ;;  %v10246_v25 = vand.u32 4294901760, %v31562_v22 }
0x1c8c   :  { %v29479_v35 = vpop.eup %29478 }
0x1c8d   :  { %9601 = vrot.lane.b32.xlu0 %v29479_v35, %s29820_s9  ;;  %v10239_v35 = vand.u32 4294901760, %v10238_v32 }
0x1c8e   :  { %v29481_v30 = vpop.eup %29480 }
0x1c8f   :  { %v9595_v40 = vadd.f32 1.0, %v29481_v30  ;;  %v10253_v30 = vand.u32 4294901760, %v31564_v12 }
0x1c91   :  { %29482 = vrcp.f32 %v9595_v40  ;;  %v10233_v40 = vsub.f32 %v10231_v13, %v10232_v16 }
0x1c9b   :  { %v29483_v52 = vpop.eup %29482 }
0x1c9c   :  { %v9599_v1 = vmul.f32 %v29483_v52, %v31463_v34 }
0x1cff   :  { %v9602_v41 = vpop.permute.xlu0 %9601 }
0x1d00   :  { %v9604_v44 = vmul.f32 %v29483_v52, %v9602_v41  ;;  %v10247_v41 = vsub.f32 %v31562_v22, %v10246_v25 }
0x1d02   :  { %9606 = vrot.lane.b32.xlu1 %v9604_v44, %s29821_s22  ;;  %v10254_v44 = vsub.f32 %v31564_v12, %v10253_v30 }
0x1d74   :  { %v9607_v17 = vpop.permute.xlu1 %9606 }
0x1d75   :  { %v31509_v57 = vadd.f32 %v9607_v17, %v9599_v1  ;;  %v10234_v1 = vand.u32 4294901760, %v10233_v40 }
0x1d77   :  { %29484 = vtanh.f32 %v31509_v57 }
0x1d81   :  { %v29485_v15 = vpop.eup %29484 }
0x1d82   :  { %9612 = vrot.lane.b32.xlu0 %v29485_v15, %s29820_s9 }
0x1df4   :  { %v9613_v11 = vpop.permute.xlu0 %9612 }
0x1df5   :  { %v9615_v43 = vmul.f32 %v29483_v52, %v9613_v11  ;;  %v10240_v52 = vsub.f32 %v10238_v32, %v10239_v35  ;;  %v10255_v11 = vand.u32 4294901760, %v10254_v44 }
0x1df7   :  { %9617 = vrot.lane.b32.xlu1 %v9615_v43, %s29821_s22  ;;  %v10241_v17 = vand.u32 4294901760, %v10240_v52 }
0x1df9   :  { %v31571_v43 = vpack.c.bf16 %v10241_v17, %v10234_v1 }
0x1e69   :  { %v9618_v33 = vpop.permute.xlu1 %9617 }
0x1e6a   :  { %9620 = vst.msk [vmem:[#allocation3 + $0x10] sm:$0x3] %vm5443_vm13, %v9618_v33  ;;  %v9626_v29 = vsel %vm780_vm3, %v9618_v33, 0 }
0x1e6b   :  { %v9697_v5 = vand.u32 4294901760, %v9626_v29 }
0x1e6d   :  { %v9698_v28 = vsub.f32 %v9626_v29, %v9697_v5  ;;  %25730 = vmatmul.mubr.f32.vlgmr.msra.gmra.mrb[60].mxu1 %v9697_v5  ;;  %v31579_v29 = vpack.c.bf16 %v10154_v27, %v10151_v59 }
0x1e6e   :  { %28322 = vmatpush3.bf16.msra.mxu1 %v31311_v39  ;;  %25751 = vmatprep.mubr.msk.f32.mxu1 %vm29819_vm12, %v32871_v60 }
0x1e6f   :  { %v9699_v47 = vand.u32 4294901760, %v9698_v28  ;;  %28323 = vmatprep.subr.bf16.mxu1 %v29818_v21 }
0x1e71   :  { %v9700_v36 = vsub.f32 %v9698_v28, %v9699_v47 }
0x1e72   :  { %28325 = vmatpush3.bf16.msra.mxu1 %v31315_v62 }
0x1e73   :  { %28332 = vmatprep.subr.bf16.mxu1 %v29818_v21  ;;  %v9701_v63 = vand.u32 4294901760, %v9700_v36 }
0x1e75   :  { %25752 = vmatmul.mubr.f32.vlgmr.msra.gmra.mrb[62].mxu1 %v9699_v47  ;;  %25719 = vmatmul.mubr.f32.vlgmr.msra.gmra.mrb[76].mxu0 %v9701_v63 }
0x1e76   :  { %28316 = vmatpush3.bf16.msra.mxu0 %v31327_v6  ;;  %28334 = vmatpush3.bf16.msra.mxu1 %v31311_v39 }
0x1e77   :  { %28317 = vmatprep.subr.bf16.mxu0 %v29818_v21  ;;  %28335 = vmatprep.subr.bf16.mxu1 %v29818_v21 }
0x1e78   :  { %25740 = vmatprep.mubr.msk.f32.mxu0 %vm29819_vm12, %v32871_v60  ;;  %25773 = vmatprep.mubr.msk.f32.mxu1 %vm29819_vm12, %v32871_v60 }
0x1e7a   :  { %28319 = vmatpush3.bf16.msra.mxu0 %v31334_v53  ;;  %28337 = vmatpush3.bf16.msra.mxu1 %v31315_v62 }
0x1e7b   :  { %28326 = vmatprep.subr.bf16.mxu0 %v29818_v21  ;;  %28344 = vmatprep.subr.bf16.mxu1 %v29818_v21 }
0x1e7d   :  { %25741 = vmatmul.mubr.f32.vlgmr.msra.gmra.mrb[78].mxu0 %v9698_v28  ;;  %25774 = vmatmul.mubr.f32.vlgmr.msra.gmra.mrb[64].mxu1 %v9697_v5 }
0x1e7e   :  { %28328 = vmatpush3.bf16.msra.mxu0 %v31344_v58  ;;  %25762 = vmatprep.mubr.msk.f32.mxu0 %vm29819_vm12, %v32871_v60 }
0x1e7f   :  { %28329 = vmatprep.subr.bf16.mxu0 %v29818_v21  ;;  %25795 = vmatprep.mubr.msk.f32.mxu1 %vm29819_vm12, %v32871_v60 }
0x1e80   :  { %28346 = vmatpush3.bf16.msra.mxu1 %v31571_v43 }
0x1e81   :  { %28347 = vmatprep.subr.bf16.mxu1 %v29818_v21 }
0x1e82   :  { %28331 = vmatpush3.bf16.msra.mxu0 %v31349_v23 }
0x1e83   :  { %28338 = vmatprep.subr.bf16.mxu0 %v29818_v21 }
0x1e85   :  { %25763 = vmatmul.mubr.f32.vlgmr.msra.gmra.mrb[80].mxu0 %v9697_v5  ;;  %v31583_v5 = vpack.c.bf16 %v10160_v49, %v10157_v61 }
0x1e86   :  { %25784 = vmatprep.mubr.msk.f32.mxu0 %vm29819_vm12, %v32871_v60  ;;  %28340 = vmatpush3.bf16.msra.mxu0 %v31579_v29 }
0x1e87   :  { %28341 = vmatprep.subr.bf16.mxu0 %v29818_v21 }
0x1e8a   :  { %28343 = vmatpush3.bf16.msra.mxu0 %v31583_v5 }
0x1e8b   :  { %28350 = vmatprep.subr.bf16.mxu0 %v29818_v21 }
0x1f40   :  { %v9794_v39 = vpop.f32.mrb[60].mxu1 }
0x1f41   :  { %v25731_v62 = vpop.f32.mrb[61].mxu1 }
0x1f48   :  { %v9951_v6 = vpop.f32.mrb[62].mxu1  ;;  %v9703_v53 = vpop.f32.mrb[76].mxu0 }
0x1f49   :  { %v9795_v58 = vadd.f32 %v9794_v39, %v9703_v53  ;;  %v25753_v2 = vpop.f32.mrb[63].mxu1  ;;  %v25720_v3 = vpop.f32.mrb[77].mxu0 }
0x1f4a   :  { %v31602_v3 = vpack.c.bf16 %v31564_v12, %v31562_v22 }
0x1f50   :  { %v9874_v45 = vpop.f32.mrb[78].mxu0  ;;  %v10109_v46 = vpop.f32.mrb[64].mxu1 }
0x1f51   :  { %v9875_v54 = vadd.f32 %v9874_v45, %v9795_v58  ;;  %v25742_v42 = vpop.f32.mrb[79].mxu0  ;;  %v25775_v34 = vpop.f32.mrb[65].mxu1  ;;  %v31595_v58 = vpack.c.bf16 %v10238_v32, %v10231_v13  ;;  %v31612_v45 = vpack.c.bf16 %v10239_v35, %v10232_v16 }
0x1f53   :  { %v9952_v51 = vadd.f32 %v9951_v6, %v9875_v54 }
0x1f58   :  { %v10034_v23 = vpop.f32.mrb[80].mxu0 }
0x1f59   :  { %v10035_v56 = vadd.f32 %v10034_v23, %v9952_v51  ;;  %v25764_v48 = vpop.f32.mrb[81].mxu0 }
0x1f5b   :  { %v10110_v24 = vadd.f32 %v10109_v46, %v10035_v56  ;;  %v31617_v46 = vpack.c.bf16 %v10253_v30, %v10246_v25 }
0x1f5d   :  { %v10113_v37 = vadd.f32 %v10110_v24, %v9621_v7 }
0x1f5f   :  { %29486 = vtanh.f32 %v10113_v37  ;;  %v22733_v10 = vmul.f32 -1.442695, %v10113_v37 }
0x1f61   :  { %29488 = vpow2.f32 %v22733_v10 }
0x1f69   :  { %v29487_v26 = vpop.eup %29486 }
0x1f6a   :  { %10123 = vrot.lane.b32.xlu0 %v29487_v26, %s29820_s9 }
0x1f6b   :  { %v29489_v8 = vpop.eup %29488 }
0x1f6c   :  { %v10117_v9 = vadd.f32 1.0, %v29489_v8 }
0x1f6e   :  { %29490 = vrcp.f32 %v10117_v9 }
0x1f78   :  { %v29491_v0 = vpop.eup %29490 }
0x1f79   :  { %v10121_v14 = vmul.f32 %v29491_v0, %v31509_v57  ;;  %v10248_v57 = vand.u32 4294901760, %v10247_v41 }
0x1f7b   :  { %v31574_v33 = vpack.c.bf16 %v10255_v11, %v10248_v57 }
0x1f7d   :  { %28349 = vmatpush3.bf16.msra.mxu1 %v31574_v33 }
0x1f7e   :  { %28356 = vmatprep.subr.bf16.mxu1 %v29818_v21 }
0x1fdc   :  { %v10124_v55 = vpop.permute.xlu0 %10123 }
0x1fdd   :  { %v10126_v19 = vmul.f32 %v29491_v0, %v10124_v55 }
0x1fdf   :  { %10128 = vrot.lane.b32.xlu1 %v10126_v19, %s29821_s22 }
0x2051   :  { %v10129_v18 = vpop.permute.xlu1 %10128 }
0x2052   :  { %v31547_v50 = vadd.f32 %v10129_v18, %v10121_v14  ;;  %v10143_v14 = vld [vmem:[#allocation2 + $0x14] sm:$0x3] }
0x2054   :  { %29492 = vtanh.f32 %v31547_v50 }
0x205e   :  { %v29493_v15 = vpop.eup %29492 }
0x205f   :  { %10134 = vrot.lane.b32.xlu0 %v29493_v15, %s29820_s9 }
0x20d1   :  { %v10135_v28 = vpop.permute.xlu0 %10134 }
0x20d2   :  { %v10137_v47 = vmul.f32 %v29491_v0, %v10135_v28 }
0x20d4   :  { %10139 = vrot.lane.b32.xlu1 %v10137_v47, %s29821_s22 }
0x2146   :  { %v10140_v36 = vpop.permute.xlu1 %10139 }
0x2147   :  { %10142 = vst.msk [vmem:[#allocation3 + $0x12] sm:$0x3] %vm5443_vm13, %v10140_v36  ;;  %v10148_v63 = vsel %vm780_vm3, %v10140_v36, 0 }
0x2148   :  { %v10219_v39 = vand.u32 4294901760, %v10148_v63 }
0x214a   :  { %v10220_v62 = vsub.f32 %v10148_v63, %v10219_v39  ;;  %25796 = vmatmul.mubr.f32.vlgmr.msra.gmra.mrb[66].mxu1 %v10219_v39 }
0x214b   :  { %28358 = vmatpush3.bf16.msra.mxu1 %v31579_v29  ;;  %25817 = vmatprep.mubr.msk.f32.mxu1 %vm29819_vm12, %v32871_v60 }
0x214c   :  { %v10221_v6 = vand.u32 4294901760, %v10220_v62  ;;  %28359 = vmatprep.subr.bf16.mxu1 %v29818_v21 }
0x214e   :  { %v10222_v53 = vsub.f32 %v10220_v62, %v10221_v6 }
0x214f   :  { %28361 = vmatpush3.bf16.msra.mxu1 %v31583_v5 }
0x2150   :  { %28368 = vmatprep.subr.bf16.mxu1 %v29818_v21  ;;  %v10223_v2 = vand.u32 4294901760, %v10222_v53 }
0x2152   :  { %25818 = vmatmul.mubr.f32.vlgmr.msra.gmra.mrb[68].mxu1 %v10221_v6  ;;  %25785 = vmatmul.mubr.f32.vlgmr.msra.gmra.mrb[82].mxu0 %v10223_v2 }
0x2153   :  { %28352 = vmatpush3.bf16.msra.mxu0 %v31595_v58  ;;  %28370 = vmatpush3.bf16.msra.mxu1 %v31579_v29 }
0x2154   :  { %28353 = vmatprep.subr.bf16.mxu0 %v29818_v21  ;;  %28371 = vmatprep.subr.bf16.mxu1 %v29818_v21 }
0x2155   :  { %25806 = vmatprep.mubr.msk.f32.mxu0 %vm29819_vm12, %v32871_v60  ;;  %25839 = vmatprep.mubr.msk.f32.mxu1 %vm29819_vm12, %v32871_v60 }
0x2157   :  { %28355 = vmatpush3.bf16.msra.mxu0 %v31602_v3  ;;  %28373 = vmatpush3.bf16.msra.mxu1 %v31583_v5 }
0x2158   :  { %28362 = vmatprep.subr.bf16.mxu0 %v29818_v21  ;;  %28380 = vmatprep.subr.bf16.mxu1 %v29818_v21 }
0x215a   :  { %25807 = vmatmul.mubr.f32.vlgmr.msra.gmra.mrb[84].mxu0 %v10220_v62  ;;  %25840 = vmatmul.mubr.f32.vlgmr.msra.gmra.mrb[70].mxu1 %v10219_v39 }
0x215b   :  { %28364 = vmatpush3.bf16.msra.mxu0 %v31612_v45  ;;  %25828 = vmatprep.mubr.msk.f32.mxu0 %vm29819_vm12, %v32871_v60 }
0x215c   :  { %28365 = vmatprep.subr.bf16.mxu0 %v29818_v21  ;;  %28382 = vmatpush3.bf16.msra.mxu1 %v31571_v43 }
0x215d   :  { %28383 = vmatprep.subr.bf16.mxu1 %v29818_v21  ;;  %25861 = vmatprep.mubr.msk.f32.mxu1 %vm29819_vm12, %v32871_v60 }
0x215f   :  { %28367 = vmatpush3.bf16.msra.mxu0 %v31617_v46 }
0x2160   :  { %28385 = vmatpush3.bf16.msra.mxu1 %v31574_v33  ;;  %28374 = vmatprep.subr.bf16.mxu0 %v29818_v21 }
0x2161   :  { %28392 = vmatprep.subr.bf16.mxu1 %v29818_v21 }
0x2162   :  { %25829 = vmatmul.mubr.f32.vlgmr.msra.gmra.mrb[86].mxu0 %v10219_v39 }
0x2163   :  { %28376 = vmatpush3.bf16.msra.mxu0 %v31579_v29  ;;  %25850 = vmatprep.mubr.msk.f32.mxu0 %vm29819_vm12, %v32871_v60 }
0x2164   :  { %28377 = vmatprep.subr.bf16.mxu0 %v29818_v21 }
0x2167   :  { %28379 = vmatpush3.bf16.msra.mxu0 %v31583_v5 }
0x2168   :  { %28386 = vmatprep.subr.bf16.mxu0 %v29818_v21 }
0x221d   :  { %v10316_v54 = vpop.f32.mrb[66].mxu1 }
0x221e   :  { %v25797_v42 = vpop.f32.mrb[67].mxu1 }
0x2225   :  { %v10473_v34 = vpop.f32.mrb[68].mxu1  ;;  %v10225_v51 = vpop.f32.mrb[82].mxu0 }
0x2226   :  { %v10317_v23 = vadd.f32 %v10316_v54, %v10225_v51  ;;  %v25819_v56 = vpop.f32.mrb[69].mxu1  ;;  %v25786_v48 = vpop.f32.mrb[83].mxu0 }
0x222d   :  { %v10396_v24 = vpop.f32.mrb[84].mxu0  ;;  %v10631_v7 = vpop.f32.mrb[70].mxu1 }
0x222e   :  { %v10397_v37 = vadd.f32 %v10396_v24, %v10317_v23  ;;  %v25808_v26 = vpop.f32.mrb[85].mxu0  ;;  %v25841_v10 = vpop.f32.mrb[71].mxu1 }
0x2230   :  { %v10474_v8 = vadd.f32 %v10473_v34, %v10397_v37  ;;  %v10665_v34 = vld [vmem:[#allocation2 + $0x16] sm:$0x3] }
0x2235   :  { %v10556_v9 = vpop.f32.mrb[86].mxu0 }
0x2236   :  { %v10557_v0 = vadd.f32 %v10556_v9, %v10474_v8  ;;  %v25830_v55 = vpop.f32.mrb[87].mxu0 }
0x2238   :  { %v10632_v19 = vadd.f32 %v10631_v7, %v10557_v0 }
0x223a   :  { %v10635_v18 = vadd.f32 %v10632_v19, %v10143_v14 }
0x223c   :  { %29494 = vtanh.f32 %v10635_v18  ;;  %v22734_v20 = vmul.f32 -1.442695, %v10635_v18 }
0x223e   :  { %29496 = vpow2.f32 %v22734_v20 }
0x2246   :  { %v29495_v38 = vpop.eup %29494 }
0x2247   :  { %10645 = vrot.lane.b32.xlu0 %v29495_v38, %s29820_s9 }
0x2248   :  { %v29497_v31 = vpop.eup %29496 }
0x2249   :  { %v10639_v59 = vadd.f32 1.0, %v29497_v31 }
0x224b   :  { %29498 = vrcp.f32 %v10639_v59 }
0x2255   :  { %v29499_v27 = vpop.eup %29498 }
0x2256   :  { %v10643_v49 = vmul.f32 %v29499_v27, %v31547_v50 }
0x22b9   :  { %v10646_v4 = vpop.permute.xlu0 %10645 }
0x22ba   :  { %v10648_v61 = vmul.f32 %v29499_v27, %v10646_v4 }
0x22bc   :  { %10650 = vrot.lane.b32.xlu1 %v10648_v61, %s29821_s22 }
0x232e   :  { %v10651_v13 = vpop.permute.xlu1 %10650 }
0x232f   :  { %v31639_v32 = vadd.f32 %v10651_v13, %v10643_v49 }
0x2331   :  { %29500 = vtanh.f32 %v31639_v32 }
0x233b   :  { %v29501_v22 = vpop.eup %29500 }
0x233c   :  { %10656 = vrot.lane.b32.xlu0 %v29501_v22, %s29820_s9 }
0x23ae   :  { %v10657_v12 = vpop.permute.xlu0 %10656 }
0x23af   :  { %v10659_v16 = vmul.f32 %v29499_v27, %v10657_v12 }
0x23b1   :  { %10661 = vrot.lane.b32.xlu1 %v10659_v16, %s29821_s22 }
0x2423   :  { %v10662_v35 = vpop.permute.xlu1 %10661 }
0x2424   :  { %10664 = vst.msk [vmem:[#allocation3 + $0x14] sm:$0x3] %vm5443_vm13, %v10662_v35  ;;  %v10670_v25 = vsel %vm780_vm3, %v10662_v35, 0 }
0x2425   :  { %v10741_v30 = vand.u32 4294901760, %v10670_v25 }
0x2427   :  { %v10742_v40 = vsub.f32 %v10670_v25, %v10741_v30  ;;  %25862 = vmatmul.mubr.f32.vlgmr.msra.gmra.mrb[72].mxu1 %v10741_v30 }
0x2428   :  { %28394 = vmatpush3.bf16.msra.mxu1 %v31579_v29  ;;  %25883 = vmatprep.mubr.msk.f32.mxu1 %vm29819_vm12, %v32871_v60 }
0x2429   :  { %v10743_v50 = vand.u32 4294901760, %v10742_v40  ;;  %28395 = vmatprep.subr.bf16.mxu1 %v29818_v21 }
0x242b   :  { %v10744_v52 = vsub.f32 %v10742_v40, %v10743_v50 }
0x242c   :  { %28397 = vmatpush3.bf16.msra.mxu1 %v31583_v5 }
0x242d   :  { %28404 = vmatprep.subr.bf16.mxu1 %v29818_v21  ;;  %v10745_v41 = vand.u32 4294901760, %v10744_v52 }
0x242f   :  { %25884 = vmatmul.mubr.f32.vlgmr.msra.gmra.mrb[74].mxu1 %v10743_v50  ;;  %25851 = vmatmul.mubr.f32.vlgmr.msra.gmra.mrb[88].mxu0 %v10745_v41 }
0x2430   :  { %28388 = vmatpush3.bf16.msra.mxu0 %v31595_v58  ;;  %28406 = vmatpush3.bf16.msra.mxu1 %v31579_v29 }
0x2431   :  { %28389 = vmatprep.subr.bf16.mxu0 %v29818_v21  ;;  %28407 = vmatprep.subr.bf16.mxu1 %v29818_v21 }
0x2432   :  { %25872 = vmatprep.mubr.msk.f32.mxu0 %vm29819_vm12, %v32871_v60  ;;  %25905 = vmatprep.mubr.msk.f32.mxu1 %vm29819_vm12, %v32871_v60 }
0x2434   :  { %28391 = vmatpush3.bf16.msra.mxu0 %v31602_v3  ;;  %28409 = vmatpush3.bf16.msra.mxu1 %v31583_v5 }
0x2435   :  { %28398 = vmatprep.subr.bf16.mxu0 %v29818_v21  ;;  %28416 = vmatprep.subr.bf16.mxu1 %v29818_v21 }
0x2437   :  { %25873 = vmatmul.mubr.f32.vlgmr.msra.gmra.mrb[90].mxu0 %v10742_v40  ;;  %25906 = vmatmul.mubr.f32.vlgmr.msra.gmra.mrb[76].mxu1 %v10741_v30 }
0x2438   :  { %28400 = vmatpush3.bf16.msra.mxu0 %v31612_v45  ;;  %25894 = vmatprep.mubr.msk.f32.mxu0 %vm29819_vm12, %v32871_v60 }
0x2439   :  { %28401 = vmatprep.subr.bf16.mxu0 %v29818_v21  ;;  %28418 = vmatpush3.bf16.msra.mxu1 %v31571_v43 }
0x243a   :  { %28419 = vmatprep.subr.bf16.mxu1 %v29818_v21  ;;  %25927 = vmatprep.mubr.msk.f32.mxu1 %vm29819_vm12, %v32871_v60 }
0x243c   :  { %28403 = vmatpush3.bf16.msra.mxu0 %v31617_v46 }
0x243d   :  { %28421 = vmatpush3.bf16.msra.mxu1 %v31574_v33  ;;  %28410 = vmatprep.subr.bf16.mxu0 %v29818_v21 }
0x243e   :  { %28428 = vmatprep.subr.bf16.mxu1 %v29818_v21 }
0x243f   :  { %25895 = vmatmul.mubr.f32.vlgmr.msra.gmra.mrb[92].mxu0 %v10741_v30 }
0x2440   :  { %28412 = vmatpush3.bf16.msra.mxu0 %v31579_v29  ;;  %25916 = vmatprep.mubr.msk.f32.mxu0 %vm29819_vm12, %v32871_v60 }
0x2441   :  { %28413 = vmatprep.subr.bf16.mxu0 %v29818_v21 }
0x2444   :  { %28415 = vmatpush3.bf16.msra.mxu0 %v31583_v5 }
0x2445   :  { %28422 = vmatprep.subr.bf16.mxu0 %v29818_v21 }
0x24fa   :  { %v10838_v44 = vpop.f32.mrb[72].mxu1 }
0x24fb   :  { %v25863_v1 = vpop.f32.mrb[73].mxu1 }
0x2502   :  { %v10995_v17 = vpop.f32.mrb[74].mxu1  ;;  %v10747_v57 = vpop.f32.mrb[88].mxu0 }
0x2503   :  { %v10839_v15 = vadd.f32 %v10838_v44, %v10747_v57  ;;  %v25885_v11 = vpop.f32.mrb[75].mxu1  ;;  %v25852_v28 = vpop.f32.mrb[89].mxu0 }
0x250a   :  { %v10918_v47 = vpop.f32.mrb[90].mxu0  ;;  %v11153_v36 = vpop.f32.mrb[76].mxu1 }
0x250b   :  { %v10919_v63 = vadd.f32 %v10918_v47, %v10839_v15  ;;  %v25874_v39 = vpop.f32.mrb[91].mxu0  ;;  %v25907_v62 = vpop.f32.mrb[77].mxu1 }
0x250d   :  { %v10996_v6 = vadd.f32 %v10995_v17, %v10919_v63  ;;  %v11187_v17 = vld [vmem:[#allocation2 + $0x18] sm:$0x3] }
0x2512   :  { %v11078_v53 = vpop.f32.mrb[92].mxu0 }
0x2513   :  { %v11079_v2 = vadd.f32 %v11078_v53, %v10996_v6  ;;  %v25896_v54 = vpop.f32.mrb[93].mxu0 }
0x2515   :  { %v11154_v42 = vadd.f32 %v11153_v36, %v11079_v2 }
0x2517   :  { %v11157_v51 = vadd.f32 %v11154_v42, %v10665_v34 }
0x2519   :  { %29502 = vtanh.f32 %v11157_v51  ;;  %v22735_v56 = vmul.f32 -1.442695, %v11157_v51 }
0x251b   :  { %29504 = vpow2.f32 %v22735_v56 }
0x2523   :  { %v29503_v23 = vpop.eup %29502 }
0x2524   :  { %11167 = vrot.lane.b32.xlu0 %v29503_v23, %s29820_s9 }
0x2525   :  { %v29505_v48 = vpop.eup %29504 }
0x2526   :  { %v11161_v24 = vadd.f32 1.0, %v29505_v48 }
0x2528   :  { %29506 = vrcp.f32 %v11161_v24 }
0x2532   :  { %v29507_v7 = vpop.eup %29506 }
0x2533   :  { %v11165_v10 = vmul.f32 %v29507_v7, %v31639_v32 }
0x2596   :  { %v11168_v37 = vpop.permute.xlu0 %11167 }
0x2597   :  { %v11170_v26 = vmul.f32 %v29507_v7, %v11168_v37 }
0x2599   :  { %11172 = vrot.lane.b32.xlu1 %v11170_v26, %s29821_s22 }
0x260b   :  { %v11173_v8 = vpop.permute.xlu1 %11172 }
0x260c   :  { %v31685_v9 = vadd.f32 %v11173_v8, %v11165_v10 }
0x260e   :  { %29508 = vtanh.f32 %v31685_v9 }
0x2618   :  { %v29509_v0 = vpop.eup %29508 }
0x2619   :  { %11178 = vrot.lane.b32.xlu0 %v29509_v0, %s29820_s9 }
0x268b   :  { %v11179_v55 = vpop.permute.xlu0 %11178 }
0x268c   :  { %v11181_v19 = vmul.f32 %v29507_v7, %v11179_v55 }
0x268e   :  { %11183 = vrot.lane.b32.xlu1 %v11181_v19, %s29821_s22 }
0x2700   :  { %v11184_v14 = vpop.permute.xlu1 %11183 }
0x2701   :  { %11186 = vst.msk [vmem:[#allocation3 + $0x16] sm:$0x3] %vm5443_vm13, %v11184_v14  ;;  %v11192_v18 = vsel %vm780_vm3, %v11184_v14, 0 }
0x2702   :  { %v11263_v38 = vand.u32 4294901760, %v11192_v18 }
0x2704   :  { %v11264_v20 = vsub.f32 %v11192_v18, %v11263_v38  ;;  %25928 = vmatmul.mubr.f32.vlgmr.msra.gmra.mrb[78].mxu1 %v11263_v38 }
0x2705   :  { %28430 = vmatpush3.bf16.msra.mxu1 %v31579_v29  ;;  %25949 = vmatprep.mubr.msk.f32.mxu1 %vm29819_vm12, %v32871_v60 }
0x2706   :  { %v11265_v31 = vand.u32 4294901760, %v11264_v20  ;;  %28431 = vmatprep.subr.bf16.mxu1 %v29818_v21 }
0x2708   :  { %v11266_v59 = vsub.f32 %v11264_v20, %v11265_v31 }
0x2709   :  { %28433 = vmatpush3.bf16.msra.mxu1 %v31583_v5 }
0x270a   :  { %28440 = vmatprep.subr.bf16.mxu1 %v29818_v21  ;;  %v11267_v27 = vand.u32 4294901760, %v11266_v59 }
0x270c   :  { %25950 = vmatmul.mubr.f32.vlgmr.msra.gmra.mrb[80].mxu1 %v11265_v31  ;;  %25917 = vmatmul.mubr.f32.vlgmr.msra.gmra.mrb[94].mxu0 %v11267_v27 }
0x270d   :  { %28424 = vmatpush3.bf16.msra.mxu0 %v31595_v58  ;;  %28442 = vmatpush3.bf16.msra.mxu1 %v31579_v29 }
0x270e   :  { %28425 = vmatprep.subr.bf16.mxu0 %v29818_v21  ;;  %28443 = vmatprep.subr.bf16.mxu1 %v29818_v21 }
0x270f   :  { %25938 = vmatprep.mubr.msk.f32.mxu0 %vm29819_vm12, %v32871_v60  ;;  %25971 = vmatprep.mubr.msk.f32.mxu1 %vm29819_vm12, %v32871_v60 }
0x2711   :  { %28427 = vmatpush3.bf16.msra.mxu0 %v31602_v3  ;;  %28445 = vmatpush3.bf16.msra.mxu1 %v31583_v5 }
0x2712   :  { %28434 = vmatprep.subr.bf16.mxu0 %v29818_v21  ;;  %28452 = vmatprep.subr.bf16.mxu1 %v29818_v21 }
0x2714   :  { %25939 = vmatmul.mubr.f32.vlgmr.msra.gmra.mrb[96].mxu0 %v11264_v20  ;;  %25972 = vmatmul.mubr.f32.vlgmr.msra.gmra.mrb[82].mxu1 %v11263_v38 }
0x2715   :  { %28436 = vmatpush3.bf16.msra.mxu0 %v31612_v45  ;;  %25960 = vmatprep.mubr.msk.f32.mxu0 %vm29819_vm12, %v32871_v60 }
0x2716   :  { %28437 = vmatprep.subr.bf16.mxu0 %v29818_v21  ;;  %28454 = vmatpush3.bf16.msra.mxu1 %v31571_v43 }
0x2717   :  { %28455 = vmatprep.subr.bf16.mxu1 %v29818_v21  ;;  %25993 = vmatprep.mubr.msk.f32.mxu1 %vm29819_vm12, %v32871_v60 }
0x2719   :  { %28439 = vmatpush3.bf16.msra.mxu0 %v31617_v46 }
0x271a   :  { %28457 = vmatpush3.bf16.msra.mxu1 %v31574_v33  ;;  %28446 = vmatprep.subr.bf16.mxu0 %v29818_v21 }
0x271b   :  { %28464 = vmatprep.subr.bf16.mxu1 %v29818_v21 }
0x271c   :  { %25961 = vmatmul.mubr.f32.vlgmr.msra.gmra.mrb[98].mxu0 %v11263_v38 }
0x271d   :  { %28448 = vmatpush3.bf16.msra.mxu0 %v31579_v29  ;;  %25982 = vmatprep.mubr.msk.f32.mxu0 %vm29819_vm12, %v32871_v60 }
0x271e   :  { %28449 = vmatprep.subr.bf16.mxu0 %v29818_v21 }
0x2721   :  { %28451 = vmatpush3.bf16.msra.mxu0 %v31583_v5 }
0x2722   :  { %28458 = vmatprep.subr.bf16.mxu0 %v29818_v21 }
0x27d7   :  { %v11360_v4 = vpop.f32.mrb[78].mxu1 }
0x27d8   :  { %v25929_v61 = vpop.f32.mrb[79].mxu1 }
0x27df   :  { %v11517_v49 = vpop.f32.mrb[80].mxu1  ;;  %v11269_v13 = vpop.f32.mrb[94].mxu0 }
0x27e0   :  { %v11361_v32 = vadd.f32 %v11360_v4, %v11269_v13  ;;  %v25951_v22 = vpop.f32.mrb[81].mxu1  ;;  %v25918_v12 = vpop.f32.mrb[95].mxu0  ;;  %v11709_v4 = vld [vmem:[#allocation2 + $0x1a] sm:$0x3] }
0x27e7   :  { %v11440_v16 = vpop.f32.mrb[96].mxu0  ;;  %v11675_v35 = vpop.f32.mrb[82].mxu1 }
0x27e8   :  { %v11441_v25 = vadd.f32 %v11440_v16, %v11361_v32  ;;  %v25940_v30 = vpop.f32.mrb[97].mxu0  ;;  %v25973_v40 = vpop.f32.mrb[83].mxu1 }
0x27ea   :  { %v11518_v50 = vadd.f32 %v11517_v49, %v11441_v25 }
0x27ef   :  { %v11600_v52 = vpop.f32.mrb[98].mxu0 }
0x27f0   :  { %v11601_v41 = vadd.f32 %v11600_v52, %v11518_v50  ;;  %v25962_v44 = vpop.f32.mrb[99].mxu0 }
0x27f2   :  { %v11676_v1 = vadd.f32 %v11675_v35, %v11601_v41 }
0x27f4   :  { %v11679_v57 = vadd.f32 %v11676_v1, %v11187_v17 }
0x27f6   :  { %29510 = vtanh.f32 %v11679_v57  ;;  %v22736_v11 = vmul.f32 -1.442695, %v11679_v57 }
0x27f8   :  { %29512 = vpow2.f32 %v22736_v11 }
0x2800   :  { %v29511_v15 = vpop.eup %29510 }
0x2801   :  { %11689 = vrot.lane.b32.xlu0 %v29511_v15, %s29820_s9 }
0x2802   :  { %v29513_v28 = vpop.eup %29512 }
0x2803   :  { %v11683_v47 = vadd.f32 1.0, %v29513_v28 }
0x2805   :  { %29514 = vrcp.f32 %v11683_v47 }
0x280f   :  { %v29515_v36 = vpop.eup %29514 }
0x2810   :  { %v11687_v62 = vmul.f32 %v29515_v36, %v31685_v9 }
0x2873   :  { %v11690_v63 = vpop.permute.xlu0 %11689 }
0x2874   :  { %v11692_v39 = vmul.f32 %v29515_v36, %v11690_v63 }
0x2876   :  { %11694 = vrot.lane.b32.xlu1 %v11692_v39, %s29821_s22 }
0x28e8   :  { %v11695_v6 = vpop.permute.xlu1 %11694 }
0x28e9   :  { %v31731_v53 = vadd.f32 %v11695_v6, %v11687_v62 }
0x28eb   :  { %29516 = vtanh.f32 %v31731_v53 }
0x28f5   :  { %v29517_v2 = vpop.eup %29516 }
0x28f6   :  { %11700 = vrot.lane.b32.xlu0 %v29517_v2, %s29820_s9 }
0x2968   :  { %v11701_v54 = vpop.permute.xlu0 %11700 }
0x2969   :  { %v11703_v42 = vmul.f32 %v29515_v36, %v11701_v54 }
0x296b   :  { %11705 = vrot.lane.b32.xlu1 %v11703_v42, %s29821_s22 }
0x29dd   :  { %v11706_v34 = vpop.permute.xlu1 %11705 }
0x29de   :  { %11708 = vst.msk [vmem:[#allocation3 + $0x18] sm:$0x3] %vm5443_vm13, %v11706_v34  ;;  %v11714_v51 = vsel %vm780_vm3, %v11706_v34, 0 }
0x29df   :  { %v11785_v23 = vand.u32 4294901760, %v11714_v51 }
0x29e1   :  { %v11786_v56 = vsub.f32 %v11714_v51, %v11785_v23  ;;  %25994 = vmatmul.mubr.f32.vlgmr.msra.gmra.mrb[84].mxu1 %v11785_v23  ;;  %v12231_v51 = vld [vmem:[#allocation2 + $0x1c] sm:$0x3] }
0x29e2   :  { %28466 = vmatpush3.bf16.msra.mxu1 %v31579_v29  ;;  %26015 = vmatprep.mubr.msk.f32.mxu1 %vm29819_vm12, %v32871_v60 }
0x29e3   :  { %v11787_v48 = vand.u32 4294901760, %v11786_v56  ;;  %28467 = vmatprep.subr.bf16.mxu1 %v29818_v21 }
0x29e5   :  { %v11788_v24 = vsub.f32 %v11786_v56, %v11787_v48 }
0x29e6   :  { %28469 = vmatpush3.bf16.msra.mxu1 %v31583_v5 }
0x29e7   :  { %28476 = vmatprep.subr.bf16.mxu1 %v29818_v21  ;;  %v11789_v7 = vand.u32 4294901760, %v11788_v24 }
0x29e9   :  { %26016 = vmatmul.mubr.f32.vlgmr.msra.gmra.mrb[86].mxu1 %v11787_v48  ;;  %25983 = vmatmul.mubr.f32.vlgmr.msra.gmra.mrb[100].mxu0 %v11789_v7 }
0x29ea   :  { %28460 = vmatpush3.bf16.msra.mxu0 %v31595_v58  ;;  %28478 = vmatpush3.bf16.msra.mxu1 %v31579_v29 }
0x29eb   :  { %28461 = vmatprep.subr.bf16.mxu0 %v29818_v21  ;;  %28479 = vmatprep.subr.bf16.mxu1 %v29818_v21 }
0x29ec   :  { %26004 = vmatprep.mubr.msk.f32.mxu0 %vm29819_vm12, %v32871_v60  ;;  %26037 = vmatprep.mubr.msk.f32.mxu1 %vm29819_vm12, %v32871_v60 }
0x29ee   :  { %28463 = vmatpush3.bf16.msra.mxu0 %v31602_v3  ;;  %28481 = vmatpush3.bf16.msra.mxu1 %v31583_v5 }
0x29ef   :  { %28470 = vmatprep.subr.bf16.mxu0 %v29818_v21  ;;  %28488 = vmatprep.subr.bf16.mxu1 %v29818_v21 }
0x29f1   :  { %26005 = vmatmul.mubr.f32.vlgmr.msra.gmra.mrb[102].mxu0 %v11786_v56  ;;  %26038 = vmatmul.mubr.f32.vlgmr.msra.gmra.mrb[88].mxu1 %v11785_v23 }
0x29f2   :  { %28472 = vmatpush3.bf16.msra.mxu0 %v31612_v45  ;;  %26026 = vmatprep.mubr.msk.f32.mxu0 %vm29819_vm12, %v32871_v60 }
0x29f3   :  { %28473 = vmatprep.subr.bf16.mxu0 %v29818_v21  ;;  %28490 = vmatpush3.bf16.msra.mxu1 %v31571_v43 }
0x29f4   :  { %28491 = vmatprep.subr.bf16.mxu1 %v29818_v21  ;;  %26059 = vmatprep.mubr.msk.f32.mxu1 %vm29819_vm12, %v32871_v60 }
0x29f6   :  { %28475 = vmatpush3.bf16.msra.mxu0 %v31617_v46 }
0x29f7   :  { %28493 = vmatpush3.bf16.msra.mxu1 %v31574_v33  ;;  %28482 = vmatprep.subr.bf16.mxu0 %v29818_v21 }
0x29f8   :  { %28500 = vmatprep.subr.bf16.mxu1 %v29818_v21 }
0x29f9   :  { %26027 = vmatmul.mubr.f32.vlgmr.msra.gmra.mrb[104].mxu0 %v11785_v23 }
0x29fa   :  { %28484 = vmatpush3.bf16.msra.mxu0 %v31579_v29  ;;  %26048 = vmatprep.mubr.msk.f32.mxu0 %vm29819_vm12, %v32871_v60 }
0x29fb   :  { %28485 = vmatprep.subr.bf16.mxu0 %v29818_v21 }
0x29fe   :  { %28487 = vmatpush3.bf16.msra.mxu0 %v31583_v5 }
0x29ff   :  { %28494 = vmatprep.subr.bf16.mxu0 %v29818_v21 }
0x2ab4   :  { %v11882_v43 = vpop.f32.mrb[84].mxu1 }
0x2ab5   :  { %v25995_v37 = vpop.f32.mrb[85].mxu1 }
0x2abc   :  { %v12039_v26 = vpop.f32.mrb[86].mxu1  ;;  %v11791_v33 = vpop.f32.mrb[100].mxu0 }
0x2abd   :  { %v11883_v10 = vadd.f32 %v11882_v43, %v11791_v33  ;;  %v26017_v8 = vpop.f32.mrb[87].mxu1  ;;  %v25984_v9 = vpop.f32.mrb[101].mxu0 }
0x2abe   :  { %v12754_v9 = vld [vmem:[%s32839_s8] sm:$0xff] }
0x2ac4   :  { %v11962_v0 = vpop.f32.mrb[102].mxu0  ;;  %v12197_v55 = vpop.f32.mrb[88].mxu1 }
0x2ac5   :  { %v11963_v19 = vadd.f32 %v11962_v0, %v11883_v10  ;;  %v26006_v14 = vpop.f32.mrb[103].mxu0  ;;  %v26039_v18 = vpop.f32.mrb[89].mxu1  ;;  %v12755_v0 = vld [vmem:[%s32839_s8 + $0x8] sm:$0xff] }
0x2ac6   :  { %v12764_v14 = vand.u32 4294901760, %v12755_v0  ;;  %v12757_v18 = vld [vmem:[%s32839_s8 + $0x18] sm:$0xff] }
0x2ac7   :  { %v12040_v38 = vadd.f32 %v12039_v26, %v11963_v19  ;;  %v12761_v19 = vand.u32 4294901760, %v12754_v9 }
0x2acc   :  { %v12122_v20 = vpop.f32.mrb[104].mxu0 }
0x2acd   :  { %v12123_v31 = vadd.f32 %v12122_v20, %v12040_v38  ;;  %v26028_v59 = vpop.f32.mrb[105].mxu0  ;;  %v12770_v20 = vand.u32 4294901760, %v12757_v18 }
0x2ace   :  { %v31832_v59 = vsub.f32 %v12755_v0, %v12764_v14 }
0x2acf   :  { %v12198_v27 = vadd.f32 %v12197_v55, %v12123_v31  ;;  %v12756_v55 = vld [vmem:[%s32839_s8 + $0x10] sm:$0xff]  ;;  %v31830_v31 = vsub.f32 %v12754_v9, %v12761_v19  ;;  %s22684_s8 = sshll.u32 %s29822_s27, 4  ;;  %s22685_s8 = int_to_ptr.vmem [resolvable:$true] %s22684_s8 }
0x2ad0   :  { %v12767_v38 = vand.u32 4294901760, %v12756_v55  ;;  %s29780_s28 = scalar_lea.vmem %s22685_s8, 32  ;;  %p29785_p13 = scmp.lt.s32.totalorder %s22685_s8, %s22685_s8 }
0x2ad1   :  { %v12201_v61 = vadd.f32 %v12198_v27, %v11709_v4  ;;  %v31836_v4 = vsub.f32 %v12757_v18, %v12770_v20  ;;  %p29781_p12 = scmp.ne.s32.totalorder %s22685_s8, %s29780_s28  ;;  %p29786_p0 = scmp.lt.s32.totalorder %s29780_s28, %s29780_s28 }
0x2ad2   :  { %v31834_v27 = vsub.f32 %v12756_v55, %v12767_v38 }
0x2ad3   :  { %29518 = vtanh.f32 %v12201_v61  ;;  %v22737_v13 = vmul.f32 -1.442695, %v12201_v61  ;;  %v12842_v61 = vand.u32 4294901760, %v31830_v31  ;;  %p29787_p1 = por %p29786_p0, %p29785_p13 }
0x2ad5   :  { %29520 = vpow2.f32 %v22737_v13  ;;  %v12856_v13 = vand.u32 4294901760, %v31834_v27  ;;  %p29788_p2 = pnand %p29787_p1, %p29781_p12 }
0x2add   :  { %v29519_v49 = vpop.eup %29518 }
0x2ade   :  { %12211 = vrot.lane.b32.xlu0 %v29519_v49, %s29820_s9  ;;  %v12849_v49 = vand.u32 4294901760, %v31832_v59 }
0x2adf   :  { %v29521_v32 = vpop.eup %29520 }
0x2ae0   :  { %v12205_v22 = vadd.f32 1.0, %v29521_v32  ;;  %v12863_v32 = vand.u32 4294901760, %v31836_v4 }
0x2ae2   :  { %29522 = vrcp.f32 %v12205_v22  ;;  %v12843_v22 = vsub.f32 %v31830_v31, %v12842_v61 }
0x2aec   :  { %v29523_v12 = vpop.eup %29522 }
0x2aed   :  { %v12209_v25 = vmul.f32 %v29523_v12, %v31731_v53 }
0x2b50   :  { %v12212_v16 = vpop.permute.xlu0 %12211 }
0x2b51   :  { %v12214_v35 = vmul.f32 %v29523_v12, %v12212_v16  ;;  %v12857_v16 = vsub.f32 %v31834_v27, %v12856_v13 }
0x2b53   :  { %12216 = vrot.lane.b32.xlu1 %v12214_v35, %s29821_s22  ;;  %v12864_v35 = vsub.f32 %v31836_v4, %v12863_v32 }
0x2bc5   :  { %v12217_v30 = vpop.permute.xlu1 %12216 }
0x2bc6   :  { %v31777_v40 = vadd.f32 %v12217_v30, %v12209_v25  ;;  %v12844_v25 = vand.u32 4294901760, %v12843_v22 }
0x2bc8   :  { %29524 = vtanh.f32 %v31777_v40 }
0x2bd2   :  { %v29525_v50 = vpop.eup %29524 }
0x2bd3   :  { %12222 = vrot.lane.b32.xlu0 %v29525_v50, %s29820_s9 }
0x2c45   :  { %v12223_v52 = vpop.permute.xlu0 %12222 }
0x2c46   :  { %v12225_v41 = vmul.f32 %v29523_v12, %v12223_v52  ;;  %v12850_v12 = vsub.f32 %v31832_v59, %v12849_v49  ;;  %v12865_v52 = vand.u32 4294901760, %v12864_v35 }
0x2c48   :  { %12227 = vrot.lane.b32.xlu1 %v12225_v41, %s29821_s22  ;;  %v12851_v30 = vand.u32 4294901760, %v12850_v12 }
0x2c4a   :  { %v28525_v41 = vpack.c.bf16 %v12851_v30, %v12844_v25 }
0x2cba   :  { %v12228_v44 = vpop.permute.xlu1 %12227 }
0x2cbb   :  { %12230 = vst.msk [vmem:[#allocation3 + $0x1a] sm:$0x3] %vm5443_vm13, %v12228_v44  ;;  %v12236_v1 = vsel %vm780_vm3, %v12228_v44, 0 }
0x2cbc   :  { %v12307_v17 = vand.u32 4294901760, %v12236_v1 }
0x2cbe   :  { %v12308_v57 = vsub.f32 %v12236_v1, %v12307_v17  ;;  %26060 = vmatmul.mubr.f32.vlgmr.msra.gmra.mrb[90].mxu1 %v12307_v17  ;;  %v28519_v1 = vpack.c.bf16 %v12764_v14, %v12761_v19 }
0x2cbf   :  { %28502 = vmatpush3.bf16.msra.mxu1 %v31579_v29  ;;  %26081 = vmatprep.mubr.msk.f32.mxu1 %vm29819_vm12, %v32871_v60 }
0x2cc0   :  { %v12309_v15 = vand.u32 4294901760, %v12308_v57  ;;  %28503 = vmatprep.subr.bf16.mxu1 %v29818_v21 }
0x2cc2   :  { %v12310_v11 = vsub.f32 %v12308_v57, %v12309_v15 }
0x2cc3   :  { %28505 = vmatpush3.bf16.msra.mxu1 %v31583_v5 }
0x2cc4   :  { %28512 = vmatprep.subr.bf16.mxu1 %v29818_v21  ;;  %v12311_v28 = vand.u32 4294901760, %v12310_v11 }
0x2cc6   :  { %26082 = vmatmul.mubr.f32.vlgmr.msra.gmra.mrb[92].mxu1 %v12309_v15  ;;  %26049 = vmatmul.mubr.f32.vlgmr.msra.gmra.mrb[106].mxu0 %v12311_v28 }
0x2cc7   :  { %28496 = vmatpush3.bf16.msra.mxu0 %v31595_v58  ;;  %28514 = vmatpush3.bf16.msra.mxu1 %v31579_v29 }
0x2cc8   :  { %28497 = vmatprep.subr.bf16.mxu0 %v29818_v21  ;;  %28515 = vmatprep.subr.bf16.mxu1 %v29818_v21 }
0x2cc9   :  { %26070 = vmatprep.mubr.msk.f32.mxu0 %vm29819_vm12, %v32871_v60  ;;  %26103 = vmatprep.mubr.msk.f32.mxu1 %vm29819_vm12, %v32871_v60 }
0x2ccb   :  { %28499 = vmatpush3.bf16.msra.mxu0 %v31602_v3  ;;  %28517 = vmatpush3.bf16.msra.mxu1 %v31583_v5 }
0x2ccc   :  { %28506 = vmatprep.subr.bf16.mxu0 %v29818_v21  ;;  %28524 = vmatprep.subr.bf16.mxu1 %v29818_v21 }
0x2cce   :  { %26071 = vmatmul.mubr.f32.vlgmr.msra.gmra.mrb[108].mxu0 %v12308_v57  ;;  %26104 = vmatmul.mubr.f32.vlgmr.msra.gmra.mrb[94].mxu1 %v12307_v17 }
0x2ccf   :  { %28508 = vmatpush3.bf16.msra.mxu0 %v31612_v45  ;;  %26092 = vmatprep.mubr.msk.f32.mxu0 %vm29819_vm12, %v32871_v60 }
0x2cd0   :  { %28509 = vmatprep.subr.bf16.mxu0 %v29818_v21  ;;  %26125 = vmatprep.mubr.msk.f32.mxu1 %vm29819_vm12, %v32871_v60 }
0x2cd1   :  { %28526 = vmatpush3.bf16.msra.mxu1 %v28525_v41 }
0x2cd2   :  { %28527 = vmatprep.subr.bf16.mxu1 %v29818_v21 }
0x2cd3   :  { %28511 = vmatpush3.bf16.msra.mxu0 %v31617_v46 }
0x2cd4   :  { %28518 = vmatprep.subr.bf16.mxu0 %v29818_v21 }
0x2cd6   :  { %26093 = vmatmul.mubr.f32.vlgmr.msra.gmra.mrb[110].mxu0 %v12307_v17  ;;  %v28522_v17 = vpack.c.bf16 %v12770_v20, %v12767_v38 }
0x2cd7   :  { %26114 = vmatprep.mubr.msk.f32.mxu0 %vm29819_vm12, %v32871_v60  ;;  %28520 = vmatpush3.bf16.msra.mxu0 %v28519_v1 }
0x2cd8   :  { %28521 = vmatprep.subr.bf16.mxu0 %v29818_v21 }
0x2cdb   :  { %28523 = vmatpush3.bf16.msra.mxu0 %v28522_v17 }
0x2cdc   :  { %28530 = vmatprep.subr.bf16.mxu0 %v29818_v21 }
0x2d91   :  { %v12404_v29 = vpop.f32.mrb[90].mxu1 }
0x2d92   :  { %v26061_v5 = vpop.f32.mrb[91].mxu1 }
0x2d99   :  { %v12561_v58 = vpop.f32.mrb[92].mxu1  ;;  %v12313_v3 = vpop.f32.mrb[106].mxu0 }
0x2d9a   :  { %v12405_v45 = vadd.f32 %v12404_v29, %v12313_v3  ;;  %v26083_v47 = vpop.f32.mrb[93].mxu1  ;;  %v26050_v36 = vpop.f32.mrb[107].mxu0 }
0x2d9b   :  { %v28531_v36 = vpack.c.bf16 %v31832_v59, %v31830_v31 }
0x2da1   :  { %v12484_v63 = vpop.f32.mrb[108].mxu0  ;;  %v12719_v39 = vpop.f32.mrb[94].mxu1 }
0x2da2   :  { %v12485_v62 = vadd.f32 %v12484_v63, %v12405_v45  ;;  %v26072_v6 = vpop.f32.mrb[109].mxu0  ;;  %v26105_v53 = vpop.f32.mrb[95].mxu1 }
0x2da3   :  { %v28534_v6 = vpack.c.bf16 %v31836_v4, %v31834_v27  ;;  %v13277_v53 = vld [vmem:[#allocation3 + $0x10] sm:$0xff] }
0x2da4   :  { %v12562_v2 = vadd.f32 %v12561_v58, %v12485_v62  ;;  %v13275_v58 = vld [vmem:[#allocation3] sm:$0xff]  ;;  %v13276_v62 = vld [vmem:[#allocation3 + $0x8] sm:$0xff] }
0x2da5   :  { %v13291_v47 = vsel %vm780_vm3, %v13275_v58, 0 }
0x2da9   :  { %v12644_v46 = vpop.f32.mrb[110].mxu0 }
0x2daa   :  { %v12645_v54 = vadd.f32 %v12644_v46, %v12562_v2  ;;  %v26094_v42 = vpop.f32.mrb[111].mxu0  ;;  %v31882_v2 = vld [vmem:[%s32841_s10] sm:$0xff]  ;;  %v31887_v46 = vld [vmem:[%s32841_s10 + $0x8] sm:$0xff] }
0x2dab   :  { %v13294_v42 = vsel %vm780_vm3, %v13276_v62, 0  ;;  %v13921_v62 = vld [vmem:[%s32842_s11] sm:$0xff] }
0x2dac   :  { %v12720_v34 = vadd.f32 %v12719_v39, %v12645_v54  ;;  %v31869_v39 = vand.u32 4294901760, %v13291_v47 }
0x2dae   :  { %v12723_v23 = vadd.f32 %v12720_v34, %v12231_v51  ;;  %v31890_v54 = vsub.f32 %v13291_v47, %v31869_v39  ;;  %v13297_v34 = vsel %vm780_vm3, %v13277_v53, 0  ;;  %v28543_v51 = vpack.c.bf16 %v12849_v49, %v12842_v61  ;;  %v13923_v53 = vld [vmem:[%s32842_s11 + $0x10] sm:$0xff] }
0x2db0   :  { %29526 = vtanh.f32 %v12723_v23  ;;  %v22738_v48 = vmul.f32 -1.442695, %v12723_v23  ;;  %v13303_v23 = vand.u32 4294901760, %v31882_v2 }
0x2db2   :  { %29528 = vpow2.f32 %v22738_v48  ;;  %v31901_v48 = vand.u32 4294901760, %v13294_v42 }
0x2db4   :  { %v31933_v0 = vsub.f32 %v13294_v42, %v31901_v48  ;;  %v13926_v42 = vand.u32 4294901760, %v13921_v62 }
0x2db6   :  { %v13383_v18 = vand.u32 4294901760, %v31933_v0 }
0x2db8   :  { %v13384_v31 = vsub.f32 %v31933_v0, %v13383_v18 }
0x2dba   :  { %v29527_v56 = vpop.eup %29526  ;;  %v13385_v27 = vand.u32 4294901760, %v13384_v31 }
0x2dbb   :  { %12733 = vrot.lane.b32.xlu0 %v29527_v56, %s29820_s9  ;;  %v13306_v56 = vand.u32 4294901760, %v31887_v46 }
0x2dbc   :  { %v29529_v24 = vpop.eup %29528 }
0x2dbd   :  { %v12727_v7 = vadd.f32 1.0, %v29529_v24  ;;  %v13373_v24 = vand.u32 4294901760, %v31890_v54 }
0x2dbf   :  { %29530 = vrcp.f32 %v12727_v7  ;;  %v31908_v7 = vld [vmem:[%s32841_s10 + $0x10] sm:$0xff]  ;;  %v13374_v55 = vsub.f32 %v31890_v54, %v13373_v24 }
0x2dc1   :  { %v13375_v38 = vand.u32 4294901760, %v13374_v55 }
0x2dc9   :  { %v29531_v43 = vpop.eup %29530 }
0x2dca   :  { %v12731_v33 = vmul.f32 %v29531_v43, %v31777_v40  ;;  %v12858_v40 = vand.u32 4294901760, %v12857_v16 }
0x2dcc   :  { %v28528_v44 = vpack.c.bf16 %v12865_v52, %v12858_v40 }
0x2dce   :  { %28529 = vmatpush3.bf16.msra.mxu1 %v28528_v44 }
0x2dcf   :  { %28536 = vmatprep.subr.bf16.mxu1 %v29818_v21 }
0x2e2d   :  { %v12734_v37 = vpop.permute.xlu0 %12733 }
0x2e2e   :  { %v12736_v26 = vmul.f32 %v29531_v43, %v12734_v37  ;;  %v31915_v37 = vand.u32 4294901760, %v13297_v34 }
0x2e30   :  { %12738 = vrot.lane.b32.xlu1 %v12736_v26, %s29821_s22  ;;  %v28546_v26 = vpack.c.bf16 %v12863_v32, %v12856_v13  ;;  %v31941_v19 = vsub.f32 %v13297_v34, %v31915_v37 }
0x2e32   :  { %v13393_v20 = vand.u32 4294901760, %v31941_v19 }
0x2e34   :  { %v13394_v59 = vsub.f32 %v31941_v19, %v13393_v20 }
0x2e36   :  { %v13395_v4 = vand.u32 4294901760, %v13394_v59 }
0x2ea2   :  { %v12739_v10 = vpop.permute.xlu1 %12738 }
0x2ea3   :  { %v31815_v8 = vadd.f32 %v12739_v10, %v12731_v33  ;;  %v31928_v33 = vpack.c.bf16 %v13306_v56, %v13303_v23  ;;  %v13309_v10 = vand.u32 4294901760, %v31908_v7 }
0x2ea5   :  { %29532 = vtanh.f32 %v31815_v8 }
0x2eaf   :  { %v29533_v50 = vpop.eup %29532 }
0x2eb0   :  { %12744 = vrot.lane.b32.xlu0 %v29533_v50, %s29820_s9 }
0x2f22   :  { %v12745_v57 = vpop.permute.xlu0 %12744 }
0x2f23   :  { %v12747_v15 = vmul.f32 %v29531_v43, %v12745_v57  ;;  %v31913_v43 = vld [vmem:[%s32841_s10 + $0x18] sm:$0xff] }
0x2f24   :  { %v13312_v9 = vand.u32 4294901760, %v31913_v43  ;;  %v12753_v57 = vld [vmem:[#allocation2 + $0x1e] sm:$0x3] }
0x2f25   :  { %12749 = vrot.lane.b32.xlu1 %v12747_v15, %s29821_s22 }
0x2f26   :  { %v31948_v14 = vpack.c.bf16 %v13312_v9, %v13309_v10 }
0x2f97   :  { %v12750_v11 = vpop.permute.xlu1 %12749 }
0x2f98   :  { %12752 = vst.msk [vmem:[#allocation3 + $0x1c] sm:$0x3] %vm5443_vm13, %v12750_v11  ;;  %v12758_v28 = vsel %vm780_vm3, %v12750_v11, 0 }
0x2f99   :  { %v12829_v29 = vand.u32 4294901760, %v12758_v28 }
0x2f9b   :  { %v12830_v5 = vsub.f32 %v12758_v28, %v12829_v29  ;;  %26126 = vmatmul.mubr.f32.vlgmr.msra.gmra.mrb[96].mxu1 %v12829_v29 }
0x2f9c   :  { %28538 = vmatpush3.bf16.msra.mxu1 %v28519_v1  ;;  %26147 = vmatprep.mubr.msk.f32.mxu1 %vm29819_vm12, %v32871_v60 }
0x2f9d   :  { %v12831_v3 = vand.u32 4294901760, %v12830_v5  ;;  %28539 = vmatprep.subr.bf16.mxu1 %v29818_v21 }
0x2f9f   :  { %v12832_v45 = vsub.f32 %v12830_v5, %v12831_v3 }
0x2fa0   :  { %28541 = vmatpush3.bf16.msra.mxu1 %v28522_v17 }
0x2fa1   :  { %28548 = vmatprep.subr.bf16.mxu1 %v29818_v21  ;;  %v12833_v63 = vand.u32 4294901760, %v12832_v45 }
0x2fa3   :  { %26148 = vmatmul.mubr.f32.vlgmr.msra.gmra.mrb[98].mxu1 %v12831_v3  ;;  %26115 = vmatmul.mubr.f32.vlgmr.msra.gmra.mrb[112].mxu0 %v12833_v63 }
0x2fa4   :  { %28532 = vmatpush3.bf16.msra.mxu0 %v28531_v36  ;;  %28550 = vmatpush3.bf16.msra.mxu1 %v28519_v1 }
0x2fa5   :  { %28533 = vmatprep.subr.bf16.mxu0 %v29818_v21  ;;  %28551 = vmatprep.subr.bf16.mxu1 %v29818_v21 }
0x2fa6   :  { %26136 = vmatprep.mubr.msk.f32.mxu0 %vm29819_vm12, %v32871_v60  ;;  %26169 = vmatprep.mubr.msk.f32.mxu1 %vm29819_vm12, %v32871_v60 }
0x2fa8   :  { %28535 = vmatpush3.bf16.msra.mxu0 %v28534_v6  ;;  %28553 = vmatpush3.bf16.msra.mxu1 %v28522_v17  ;;  %v13922_v6 = vld [vmem:[%s32842_s11 + $0x8] sm:$0xff] }
0x2fa9   :  { %28542 = vmatprep.subr.bf16.mxu0 %v29818_v21  ;;  %28602 = vmatprep.subr.bf16.mxu1 %v29818_v21  ;;  %v13929_v34 = vand.u32 4294901760, %v13922_v6 }
0x2fab   :  { %26137 = vmatmul.mubr.f32.vlgmr.msra.gmra.mrb[114].mxu0 %v12830_v5  ;;  %26170 = vmatmul.mubr.f32.vlgmr.msra.gmra.mrb[100].mxu1 %v12829_v29  ;;  %v31980_v55 = vpack.c.bf16 %v13929_v34, %v13926_v42  ;;  %v31984_v31 = vsub.f32 %v13922_v6, %v13929_v34 }
0x2fac   :  { %28544 = vmatpush3.bf16.msra.mxu0 %v28543_v51  ;;  %26158 = vmatprep.mubr.msk.f32.mxu0 %vm29819_vm12, %v32871_v60  ;;  %v13932_v51 = vand.u32 4294901760, %v13923_v53 }
0x2fad   :  { %28545 = vmatprep.subr.bf16.mxu0 %v29818_v21  ;;  %26264 = vmatprep.mubr.msk.f32.mxu1 %vm29819_vm12, %v32871_v60 }
0x2fae   :  { %28604 = vmatpush3.bf16.msra.mxu1 %v31980_v55 }
0x2faf   :  { %28605 = vmatprep.subr.bf16.mxu1 %v29818_v21 }
0x2fb0   :  { %28547 = vmatpush3.bf16.msra.mxu0 %v28546_v26 }
0x2fb1   :  { %28555 = vmatprep.subr.bf16.mxu0 %v31928_v33 }
0x2fb3   :  { %26159 = vmatmul.mubr.f32.vlgmr.msra.gmra.mrb[116].mxu0 %v12829_v29 }
0x2fb4   :  { %28557 = vmatpush3.bf16.msra.mxu0 %v31928_v33  ;;  %26180 = vmatprep.mubr.f32.mxu0 %v13375_v38  ;;  %v31982_v38 = vsub.f32 %v13921_v62, %v13926_v42 }
0x2fb5   :  { %28559 = vmatprep.subr.bf16.mxu0 %v31948_v14 }
0x2fb8   :  { %28561 = vmatpush3.bf16.msra.mxu0 %v31948_v14 }
0x2fbb   :  { %26181 = vmatmul.mubr.f32.vlgmr.msra.gmra.mrb[118].mxu0 %v13385_v27  ;;  %v14007_v27 = vand.u32 4294901760, %v31982_v38 }
0x2fbc   :  { %26183 = vmatprep.mubr.f32.mxu0 %v13395_v4  ;;  %v14014_v4 = vand.u32 4294901760, %v31984_v31 }
0x306e   :  { %v12926_v61 = vpop.f32.mrb[96].mxu1 }
0x306f   :  { %v26127_v49 = vpop.f32.mrb[97].mxu1 }
0x3070   :  { %v14015_v49 = vsub.f32 %v31984_v31, %v14014_v4 }
0x3076   :  { %v13083_v13 = vpop.f32.mrb[98].mxu1  ;;  %v12835_v32 = vpop.f32.mrb[112].mxu0 }
0x3077   :  { %v12927_v22 = vadd.f32 %v12926_v61, %v12835_v32  ;;  %v26149_v12 = vpop.f32.mrb[99].mxu1  ;;  %v26116_v16 = vpop.f32.mrb[113].mxu0  ;;  %v14008_v61 = vsub.f32 %v31982_v38, %v14007_v27  ;;  %v14016_v32 = vand.u32 4294901760, %v14015_v49 }
0x3078   :  { %v14020_v16 = vsub.f32 %v13923_v53, %v13932_v51 }
0x307e   :  { %v13006_v35 = vpop.f32.mrb[114].mxu0  ;;  %v13241_v25 = vpop.f32.mrb[100].mxu1 }
0x307f   :  { %v13007_v30 = vadd.f32 %v13006_v35, %v12927_v22  ;;  %v26138_v40 = vpop.f32.mrb[115].mxu0  ;;  %v26171_v50 = vpop.f32.mrb[101].mxu1 }
0x3081   :  { %v13084_v52 = vadd.f32 %v13083_v13, %v13007_v30  ;;  %v14009_v13 = vand.u32 4294901760, %v14008_v61 }
0x3083   :  { %v31999_v12 = vpack.c.bf16 %v14016_v32, %v14009_v13 }
0x3086   :  { %v13166_v41 = vpop.f32.mrb[116].mxu0 }
0x3087   :  { %v13167_v44 = vadd.f32 %v13166_v41, %v13084_v52  ;;  %v26160_v1 = vpop.f32.mrb[117].mxu0 }
0x3088   :  { %v32012_v1 = vpack.c.bf16 %v31984_v31, %v31982_v38 }
0x3089   :  { %v13242_v17 = vadd.f32 %v13241_v25, %v13167_v44  ;;  %v14021_v25 = vand.u32 4294901760, %v14020_v16 }
0x308b   :  { %v13245_v15 = vadd.f32 %v13242_v17, %v12753_v57  ;;  %v14022_v40 = vsub.f32 %v14020_v16, %v14021_v25  ;;  %v13413_v17 = vsub.f32 %v31882_v2, %v13303_v23  ;;  %v13420_v57 = vsub.f32 %v31887_v46, %v13306_v56 }
0x308c   :  { %v13427_v56 = vsub.f32 %v31908_v7, %v13309_v10 }
0x308d   :  { %29534 = vtanh.f32 %v13245_v15  ;;  %v22739_v28 = vmul.f32 -1.442695, %v13245_v15  ;;  %v14023_v52 = vand.u32 4294901760, %v14022_v40  ;;  %v28570_v53 = vpack.c.bf16 %v13420_v57, %v13413_v17 }
0x308f   :  { %29536 = vpow2.f32 %v22739_v28  ;;  %v13421_v28 = vand.u32 4294901760, %v13420_v57 }
0x3097   :  { %v29535_v11 = vpop.eup %29534 }
0x3098   :  { %13255 = vrot.lane.b32.xlu0 %v29535_v11, %s29820_s9  ;;  %v13414_v11 = vand.u32 4294901760, %v13413_v17 }
0x3099   :  { %v29537_v29 = vpop.eup %29536 }
0x309a   :  { %v13249_v5 = vadd.f32 1.0, %v29537_v29  ;;  %v13415_v29 = vsub.f32 %v13413_v17, %v13414_v11  ;;  %v28586_v34 = vpack.c.bf16 %v13421_v28, %v13414_v11 }
0x309c   :  { %29538 = vrcp.f32 %v13249_v5  ;;  %v13422_v5 = vsub.f32 %v13420_v57, %v13421_v28  ;;  %v13416_v2 = vand.u32 4294901760, %v13415_v29 }
0x309e   :  { %v13423_v23 = vand.u32 4294901760, %v13422_v5 }
0x30a0   :  { %v28562_v46 = vpack.c.bf16 %v13423_v23, %v13416_v2 }
0x30a2   :  { %28563 = vmatprep.subr.bf16.mxu0 %v28562_v46 }
0x30a3   :  { %28565 = vmatpush3.bf16.msra.mxu0 %v28562_v46 }
0x30a6   :  { %v31962_v58 = vpop.eup %29538 }
0x30a7   :  { %v13253_v47 = vmul.f32 %v31962_v58, %v31815_v8  ;;  %v13924_v8 = vld [vmem:[%s32842_s11 + $0x18] sm:$0xff] }
0x30a8   :  { %v13935_v26 = vand.u32 4294901760, %v13924_v8 }
0x30aa   :  { %v31987_v59 = vpack.c.bf16 %v13935_v26, %v13932_v51  ;;  %v14027_v35 = vsub.f32 %v13924_v8, %v13935_v26 }
0x30ac   :  { %28607 = vmatpush3.bf16.msra.mxu1 %v31987_v59  ;;  %v14028_v30 = vand.u32 4294901760, %v14027_v35  ;;  %v32022_v15 = vpack.c.bf16 %v14027_v35, %v14020_v16 }
0x30ad   :  { %28608 = vmatprep.subr.bf16.mxu1 %v29818_v21 }
0x30ae   :  { %v14029_v50 = vsub.f32 %v14027_v35, %v14028_v30  ;;  %v32053_v6 = vpack.c.bf16 %v14028_v30, %v14021_v25  ;;  %v22740_v30 = vld [vmem:[%s32843_s12] ss:$0 sm:$0xff] }
0x30af   :  { %26265 = vmatmul.mubr.f32.vlgmr.msra.gmra.mrb[102].mxu1 %v32871_v60 }
0x30b0   :  { %28610 = vmatpush3.bf16.msra.mxu1 %v31999_v12  ;;  %26275 = vmatprep.mubr.msk.f32.mxu1 %vm29819_vm12, %v32871_v60  ;;  %v14030_v41 = vand.u32 4294901760, %v14029_v50 }
0x30b1   :  { %28611 = vmatprep.subr.bf16.mxu1 %v29818_v21 }
0x30b2   :  { %v32006_v44 = vpack.c.bf16 %v14030_v41, %v14023_v52 }
0x30b4   :  { %28613 = vmatpush3.bf16.msra.mxu1 %v32006_v44 }
0x30b5   :  { %28614 = vmatprep.subr.bf16.mxu1 %v29818_v21 }
0x30b7   :  { %26276 = vmatmul.mubr.f32.vlgmr.msra.gmra.mrb[104].mxu1 %v32871_v60 }
0x30b8   :  { %28616 = vmatpush3.bf16.msra.mxu1 %v32012_v1  ;;  %26286 = vmatprep.mubr.msk.f32.mxu1 %vm29819_vm12, %v32871_v60 }
0x30b9   :  { %28617 = vmatprep.subr.bf16.mxu1 %v29818_v21 }
0x30bc   :  { %28619 = vmatpush3.bf16.msra.mxu1 %v32022_v15 }
0x30bd   :  { %28620 = vmatprep.subr.bf16.mxu1 %v29818_v21 }
0x30bf   :  { %26287 = vmatmul.mubr.f32.vlgmr.msra.gmra.mrb[106].mxu1 %v32871_v60 }
0x30c0   :  { %28622 = vmatpush3.bf16.msra.mxu1 %v31980_v55  ;;  %26297 = vmatprep.mubr.msk.f32.mxu1 %vm29819_vm12, %v32871_v60 }
0x30c1   :  { %28623 = vmatprep.subr.bf16.mxu1 %v29818_v21 }
0x30c4   :  { %28625 = vmatpush3.bf16.msra.mxu1 %v31987_v59 }
0x30c5   :  { %28626 = vmatprep.subr.bf16.mxu1 %v29818_v21 }
0x30c7   :  { %26298 = vmatmul.mubr.f32.vlgmr.msra.gmra.mrb[108].mxu1 %v32871_v60 }
0x30c8   :  { %26308 = vmatprep.mubr.msk.f32.mxu1 %vm29819_vm12, %v32871_v60 }
0x310a   :  { %v13256_v3 = vpop.permute.xlu0 %13255 }
0x310b   :  { %v13258_v45 = vmul.f32 %v31962_v58, %v13256_v3  ;;  %v13434_v3 = vsub.f32 %v31913_v43, %v13312_v9 }
0x310d   :  { %13260 = vrot.lane.b32.xlu1 %v13258_v45, %s29821_s22  ;;  %v28574_v42 = vpack.c.bf16 %v13434_v3, %v13427_v56 }
0x317f   :  { %v13261_v36 = vpop.permute.xlu1 %13260 }
0x3180   :  { %v13263_v63 = vadd.f32 %v13261_v36, %v13253_v47  ;;  %v13428_v36 = vand.u32 4294901760, %v13427_v56 }
0x3182   :  { %29540 = vtanh.f32 %v13263_v63  ;;  %v13435_v63 = vand.u32 4294901760, %v13434_v3  ;;  %v13429_v7 = vsub.f32 %v13427_v56, %v13428_v36  ;;  %v14000_v51 = vpop.f32.mrb[102].mxu1 }
0x3183   :  { %v26266_v26 = vpop.f32.mrb[103].mxu1 }
0x3184   :  { %v13436_v10 = vsub.f32 %v13434_v3, %v13435_v63  ;;  %v13430_v43 = vand.u32 4294901760, %v13429_v7  ;;  %v28590_v8 = vpack.c.bf16 %v13435_v63, %v13428_v36 }
0x3186   :  { %v13437_v9 = vand.u32 4294901760, %v13436_v10 }
0x3188   :  { %v28566_v62 = vpack.c.bf16 %v13437_v9, %v13430_v43 }
0x318a   :  { %28567 = vmatprep.subr.bf16.mxu0 %v28566_v62 }
0x318b   :  { %28569 = vmatpush3.bf16.msra.mxu0 %v28566_v62 }
0x318c   :  { %v29541_v22 = vpop.eup %29540  ;;  %28571 = vmatprep.subr.bf16.mxu0 %v28570_v53 }
0x318d   :  { %13266 = vrot.lane.b32.xlu0 %v29541_v22, %s29820_s9 }
0x31ff   :  { %v13267_v45 = vpop.permute.xlu0 %13266 }
0x3200   :  { %v13269_v47 = vmul.f32 %v31962_v58, %v13267_v45  ;;  %v32046_v58 = vpack.c.bf16 %v14014_v4, %v14007_v27 }
0x3202   :  { %13271 = vrot.lane.b32.xlu1 %v13269_v47, %s29821_s22  ;;  %28628 = vmatpush3.bf16.msra.mxu1 %v32046_v58 }
0x3203   :  { %28629 = vmatprep.subr.bf16.mxu1 %v29818_v21 }
0x3206   :  { %28631 = vmatpush3.bf16.msra.mxu1 %v32053_v6 }
0x3207   :  { %28632 = vmatprep.subr.bf16.mxu1 %v29818_v21 }
0x3209   :  { %26309 = vmatmul.mubr.f32.vlgmr.msra.gmra.mrb[110].mxu1 %v32871_v60 }
0x320a   :  { %28634 = vmatpush3.bf16.msra.mxu1 %v31980_v55  ;;  %26319 = vmatprep.mubr.msk.f32.mxu1 %vm29819_vm12, %v32871_v60 }
0x320b   :  { %28635 = vmatprep.subr.bf16.mxu1 %v29818_v21 }
0x320e   :  { %28637 = vmatpush3.bf16.msra.mxu1 %v31987_v59 }
0x320f   :  { %28644 = vmatprep.subr.bf16.mxu1 %v29818_v21 }
0x3211   :  { %26320 = vmatmul.mubr.f32.vlgmr.msra.gmra.mrb[112].mxu1 %v32871_v60 }
0x3212   :  { %28646 = vmatpush3.bf16.msra.mxu1 %v31999_v12  ;;  %26341 = vmatprep.mubr.msk.f32.mxu1 %vm29819_vm12, %v32871_v60 }
0x3213   :  { %28647 = vmatprep.subr.bf16.mxu1 %v29818_v21 }
0x3216   :  { %28649 = vmatpush3.bf16.msra.mxu1 %v32006_v44 }
0x3217   :  { %28656 = vmatprep.subr.bf16.mxu1 %v29818_v21 }
0x3274   :  { %v13272_v38 = vpop.permute.xlu1 %13271 }
0x3275   :  { %13274 = vst.msk [vmem:[#allocation3 + $0x1e] sm:$0x3] %vm5443_vm13, %v13272_v38 }
0x327c   :  { %v13278_v31 = vld [vmem:[#allocation3 + $0x18] sm:$0xff] }
0x327d   :  { %v13300_v27 = vsel %vm780_vm3, %v13278_v31, 0 }
0x327e   :  { %v13401_v4 = vand.u32 4294901760, %v13300_v27 }
0x3280   :  { %v13402_v61 = vsub.f32 %v13300_v27, %v13401_v4 }
0x3282   :  { %v13403_v49 = vand.u32 4294901760, %v13402_v61 }
0x3284   :  { %v13404_v13 = vsub.f32 %v13402_v61, %v13403_v49 }
0x3286   :  { %v13405_v32 = vand.u32 4294901760, %v13404_v13 }
0x3288   :  { %26184 = vmatmul.mubr.f32.gmra.mrb[120].mxu0 %v13405_v32 }
0x3289   :  { %26194 = vmatprep.mubr.f32.mxu0 %v31869_v39 }
0x328c   :  { %26195 = vmatmul.mubr.f32.vlgmr.msra.gmra.mrb[118].mxu0 %v31901_v48 }
0x328d   :  { %26197 = vmatprep.mubr.f32.mxu0 %v31915_v37  ;;  %28573 = vmatpush3.bf16.msra.mxu0 %v28570_v53 }
0x328e   :  { %28575 = vmatprep.subr.bf16.mxu0 %v28574_v42 }
0x3290   :  { %26198 = vmatmul.mubr.f32.gmra.mrb[120].mxu0 %v13401_v4 }
0x3291   :  { %28577 = vmatpush3.bf16.msra.mxu0 %v28574_v42  ;;  %26208 = vmatprep.mubr.f32.mxu0 %v31890_v54  ;;  %v14091_v54 = vpop.f32.mrb[104].mxu1 }
0x3292   :  { %28579 = vmatprep.subr.bf16.mxu0 %v31928_v33 }
0x3294   :  { %26209 = vmatmul.mubr.f32.vlgmr.msra.gmra.mrb[118].mxu0 %v31933_v0 }
0x3295   :  { %26211 = vmatprep.mubr.f32.mxu0 %v31941_v19  ;;  %28581 = vmatpush3.bf16.msra.mxu0 %v31928_v33 }
0x3296   :  { %28583 = vmatprep.subr.bf16.mxu0 %v31948_v14 }
0x3298   :  { %26212 = vmatmul.mubr.f32.gmra.mrb[120].mxu0 %v13402_v61 }
0x3299   :  { %28585 = vmatpush3.bf16.msra.mxu0 %v31948_v14  ;;  %26222 = vmatprep.mubr.f32.mxu0 %v13373_v24  ;;  %v26277_v24 = vpop.f32.mrb[105].mxu1 }
0x329a   :  { %28587 = vmatprep.subr.bf16.mxu0 %v28586_v34 }
0x329c   :  { %26223 = vmatmul.mubr.f32.vlgmr.msra.gmra.mrb[118].mxu0 %v13383_v18 }
0x329d   :  { %26225 = vmatprep.mubr.f32.mxu0 %v13393_v20  ;;  %28589 = vmatpush3.bf16.msra.mxu0 %v28586_v34 }
0x329e   :  { %28591 = vmatprep.subr.bf16.mxu0 %v28590_v8 }
0x32a0   :  { %26226 = vmatmul.mubr.f32.gmra.mrb[120].mxu0 %v13403_v49 }
0x32a1   :  { %28593 = vmatpush3.bf16.msra.mxu0 %v28590_v8  ;;  %26236 = vmatprep.mubr.f32.mxu0 %v31869_v39 }
0x32a2   :  { %28595 = vmatprep.subr.bf16.mxu0 %v31928_v33 }
0x32a4   :  { %26237 = vmatmul.mubr.f32.vlgmr.msra.gmra.mrb[118].mxu0 %v31901_v48 }
0x32a5   :  { %26239 = vmatprep.mubr.f32.mxu0 %v31915_v37  ;;  %28597 = vmatpush3.bf16.msra.mxu0 %v31928_v33  ;;  %v14171_v33 = vpop.f32.mrb[106].mxu1 }
0x32a6   :  { %28599 = vmatprep.subr.bf16.mxu0 %v31948_v14 }
0x32a8   :  { %26240 = vmatmul.mubr.f32.gmra.mrb[120].mxu0 %v13401_v4 }
0x32a9   :  { %28601 = vmatpush3.bf16.msra.mxu0 %v31948_v14  ;;  %26250 = vmatprep.mubr.f32.mxu0 %v31869_v39  ;;  %v14092_v39 = vadd.f32 %v14091_v54, %v14000_v51 }
0x32aa   :  { %28638 = vmatprep.subr.bf16.mxu0 %v29818_v21 }
0x32ab   :  { %v14172_v0 = vadd.f32 %v14171_v33, %v14092_v39 }
0x32ac   :  { %26251 = vmatmul.mubr.f32.vlgmr.msra.gmra.mrb[118].mxu0 %v31901_v48  ;;  %v26288_v48 = vpop.f32.mrb[107].mxu1 }
0x32ad   :  { %26253 = vmatprep.mubr.f32.mxu0 %v31915_v37  ;;  %28640 = vmatpush3.bf16.msra.mxu0 %v31980_v55  ;;  %v14248_v19 = vpop.f32.mrb[108].mxu1 }
0x32ae   :  { %28641 = vmatprep.subr.bf16.mxu0 %v29818_v21  ;;  %v14249_v37 = vadd.f32 %v14248_v19, %v14172_v0  ;;  %v26299_v14 = vpop.f32.mrb[109].mxu1 }
0x32b0   :  { %26254 = vmatmul.mubr.f32.gmra.mrb[120].mxu0 %v13401_v4 }
0x32b1   :  { %28643 = vmatpush3.bf16.msra.mxu0 %v31987_v59  ;;  %26330 = vmatprep.mubr.msk.f32.mxu0 %vm29819_vm12, %v32871_v60 }
0x32b2   :  { %28650 = vmatprep.subr.bf16.mxu0 %v29818_v21 }
0x32dc   :  { %v14331_v18 = vpop.f32.mrb[110].mxu1 }
0x32dd   :  { %v14332_v20 = vadd.f32 %v14331_v18, %v14249_v37  ;;  %v26310_v22 = vpop.f32.mrb[111].mxu1 }
0x32e4   :  { %v14406_v16 = vpop.f32.mrb[112].mxu1 }
0x32e5   :  { %v14407_v35 = vadd.f32 %v14406_v16, %v14332_v20  ;;  %v26321_v25 = vpop.f32.mrb[113].mxu1 }
0x337f   :  { %v26252_v40 = vpop.f32.mrb[118].mxu0 }
0x3380   :  { %v29226_v50 = vadd.f32 %v26252_v40, %v22740_v30  ;;  %v13894_v52 = vpop.f32.mrb[119].mxu0 }
0x3381   :  { %v29227_v41 = vadd.f32 %v22740_v30, %v13894_v52 }
0x3382   :  { %13917 = vst [vmem:[#allocation2 + $0x8] sm:$0xff] %v29226_v50 }
0x3383   :  { %13916 = vst [vmem:[#allocation2] sm:$0xff] %v29227_v41  ;;  %v26255_v17 = vpop.f32.mrb[120].mxu0 }
0x3384   :  { %v29228_v57 = vadd.f32 %v26255_v17, %v22740_v30  ;;  %v13906_v11 = vpop.f32.mrb[121].mxu0 }
0x3385   :  { %v29229_v28 = vadd.f32 %v22740_v30, %v13906_v11 }
0x3386   :  { %13919 = vst [vmem:[#allocation2 + $0x18] sm:$0xff] %v29228_v57 }
0x3387   :  { %13918 = vst [vmem:[#allocation2 + $0x10] sm:$0xff] %v29229_v28 }
0x338a   :  { %v13920_v29 = vld [vmem:[#allocation2] sm:$0x3]  ;;  %v14435_v18 = vld [vmem:[#allocation2 + $0x2] sm:$0x3] }
0x338b   :  { %v14410_v5 = vadd.f32 %v14407_v35, %v13920_v29 }
0x338d   :  { %29542 = vtanh.f32 %v14410_v5  ;;  %v22741_v23 = vmul.f32 -1.442695, %v14410_v5 }
0x338f   :  { %29544 = vpow2.f32 %v22741_v23 }
0x3397   :  { %v29543_v2 = vpop.eup %29542 }
0x3398   :  { %14420 = vrot.lane.b32.xlu0 %v29543_v2, %s29820_s9 }
0x3399   :  { %v29545_v46 = vpop.eup %29544 }
0x339a   :  { %v14414_v56 = vadd.f32 1.0, %v29545_v46 }
0x339c   :  { %29546 = vrcp.f32 %v14414_v56 }
0x33a6   :  { %v29547_v3 = vpop.eup %29546 }
0x33a7   :  { %v14418_v36 = vmul.f32 0.0, %v29547_v3 }
0x340a   :  { %v14421_v45 = vpop.permute.xlu0 %14420 }
0x340b   :  { %v14423_v47 = vmul.f32 %v29547_v3, %v14421_v45 }
0x340d   :  { %14425 = vrot.lane.b32.xlu1 %v14423_v47, %s29821_s22 }
0x347f   :  { %v14426_v63 = vpop.permute.xlu1 %14425 }
0x3480   :  { %v32111_v7 = vadd.f32 %v14426_v63, %v14418_v36 }
0x3482   :  { %29548 = vtanh.f32 %v32111_v7 }
0x348c   :  { %v29549_v10 = vpop.eup %29548 }
0x348d   :  { %14431 = vrot.lane.b32.xlu0 %v29549_v10, %s29820_s9 }
0x34ff   :  { %v14432_v43 = vpop.permute.xlu0 %14431 }
0x3500   :  { %v14434_v9 = vmul.f32 %v29547_v3, %v14432_v43 }
0x3502   :  { %14437 = vrot.lane.b32.xlu1 %v14434_v9, %s29821_s22 }
0x3574   :  { %v14438_v62 = vpop.permute.xlu1 %14437 }
0x3575   :  { %v14439_v53 = vsel %vm780_vm3, %v14438_v62, 0 }
0x3576   :  { %v14510_v42 = vand.u32 4294901760, %v14439_v53 }
0x3578   :  { %v14511_v34 = vsub.f32 %v14439_v53, %v14510_v42  ;;  %26342 = vmatmul.mubr.f32.vlgmr.msra.gmra.mrb[114].mxu1 %v14510_v42 }
0x3579   :  { %28658 = vmatpush3.bf16.msra.mxu1 %v31980_v55  ;;  %26363 = vmatprep.mubr.msk.f32.mxu1 %vm29819_vm12, %v32871_v60 }
0x357a   :  { %v14512_v8 = vand.u32 4294901760, %v14511_v34  ;;  %28659 = vmatprep.subr.bf16.mxu1 %v29818_v21 }
0x357c   :  { %v14513_v51 = vsub.f32 %v14511_v34, %v14512_v8 }
0x357d   :  { %28661 = vmatpush3.bf16.msra.mxu1 %v31987_v59 }
0x357e   :  { %v14514_v26 = vand.u32 4294901760, %v14513_v51  ;;  %28668 = vmatprep.subr.bf16.mxu1 %v29818_v21 }
0x3580   :  { %26364 = vmatmul.mubr.f32.vlgmr.msra.gmra.mrb[116].mxu1 %v14512_v8  ;;  %26331 = vmatmul.mubr.f32.vlgmr.msra.gmra.mrb[122].mxu0 %v14514_v26 }
0x3581   :  { %28652 = vmatpush3.bf16.msra.mxu0 %v32012_v1  ;;  %28670 = vmatpush3.bf16.msra.mxu1 %v31980_v55 }
0x3582   :  { %28653 = vmatprep.subr.bf16.mxu0 %v29818_v21  ;;  %28671 = vmatprep.subr.bf16.mxu1 %v29818_v21 }
0x3583   :  { %26352 = vmatprep.mubr.msk.f32.mxu0 %vm29819_vm12, %v32871_v60  ;;  %26385 = vmatprep.mubr.msk.f32.mxu1 %vm29819_vm12, %v32871_v60 }
0x3585   :  { %28655 = vmatpush3.bf16.msra.mxu0 %v32022_v15  ;;  %28673 = vmatpush3.bf16.msra.mxu1 %v31987_v59 }
0x3586   :  { %28662 = vmatprep.subr.bf16.mxu0 %v29818_v21  ;;  %28680 = vmatprep.subr.bf16.mxu1 %v29818_v21 }
0x3588   :  { %26353 = vmatmul.mubr.f32.vlgmr.msra.gmra.mrb[124].mxu0 %v14511_v34  ;;  %26386 = vmatmul.mubr.f32.vlgmr.msra.gmra.mrb[118].mxu1 %v14510_v42 }
0x3589   :  { %28664 = vmatpush3.bf16.msra.mxu0 %v32046_v58  ;;  %26374 = vmatprep.mubr.msk.f32.mxu0 %vm29819_vm12, %v32871_v60 }
0x358a   :  { %28665 = vmatprep.subr.bf16.mxu0 %v29818_v21  ;;  %28682 = vmatpush3.bf16.msra.mxu1 %v31999_v12 }
0x358b   :  { %28683 = vmatprep.subr.bf16.mxu1 %v29818_v21  ;;  %26407 = vmatprep.mubr.msk.f32.mxu1 %vm29819_vm12, %v32871_v60 }
0x358d   :  { %28667 = vmatpush3.bf16.msra.mxu0 %v32053_v6 }
0x358e   :  { %28685 = vmatpush3.bf16.msra.mxu1 %v32006_v44  ;;  %28674 = vmatprep.subr.bf16.mxu0 %v29818_v21 }
0x358f   :  { %28692 = vmatprep.subr.bf16.mxu1 %v29818_v21 }
0x3590   :  { %26375 = vmatmul.mubr.f32.vlgmr.msra.gmra.mrb[126].mxu0 %v14510_v42 }
0x3591   :  { %28676 = vmatpush3.bf16.msra.mxu0 %v31980_v55  ;;  %26396 = vmatprep.mubr.msk.f32.mxu0 %vm29819_vm12, %v32871_v60 }
0x3592   :  { %28677 = vmatprep.subr.bf16.mxu0 %v29818_v21 }
0x3595   :  { %28679 = vmatpush3.bf16.msra.mxu0 %v31987_v59 }
0x3596   :  { %28686 = vmatprep.subr.bf16.mxu0 %v29818_v21 }
0x364b   :  { %v14607_v38 = vpop.f32.mrb[114].mxu1 }
0x364c   :  { %v26343_v31 = vpop.f32.mrb[115].mxu1 }
0x3653   :  { %v14764_v27 = vpop.f32.mrb[116].mxu1  ;;  %v14516_v4 = vpop.f32.mrb[122].mxu0 }
0x3654   :  { %v14608_v61 = vadd.f32 %v14607_v38, %v14516_v4  ;;  %v26365_v49 = vpop.f32.mrb[117].mxu1  ;;  %v26332_v13 = vpop.f32.mrb[123].mxu0 }
0x365b   :  { %v14687_v32 = vpop.f32.mrb[124].mxu0  ;;  %v14922_v54 = vpop.f32.mrb[118].mxu1 }
0x365c   :  { %v14688_v39 = vadd.f32 %v14687_v32, %v14608_v61  ;;  %v26354_v24 = vpop.f32.mrb[125].mxu0  ;;  %v26387_v33 = vpop.f32.mrb[119].mxu1 }
0x365e   :  { %v14765_v0 = vadd.f32 %v14764_v27, %v14688_v39  ;;  %v14951_v27 = vld [vmem:[#allocation2 + $0x4] sm:$0x3] }
0x3663   :  { %v14847_v48 = vpop.f32.mrb[126].mxu0 }
0x3664   :  { %v14848_v19 = vadd.f32 %v14847_v48, %v14765_v0  ;;  %v26376_v37 = vpop.f32.mrb[127].mxu0 }
0x3666   :  { %v14923_v14 = vadd.f32 %v14922_v54, %v14848_v19 }
0x3668   :  { %v14926_v20 = vadd.f32 %v14923_v14, %v14435_v18 }
0x366a   :  { %29550 = vtanh.f32 %v14926_v20  ;;  %v22742_v16 = vmul.f32 -1.442695, %v14926_v20 }
0x366c   :  { %29552 = vpow2.f32 %v22742_v16 }
0x3674   :  { %v29551_v22 = vpop.eup %29550 }
0x3675   :  { %14936 = vrot.lane.b32.xlu0 %v29551_v22, %s29820_s9 }
0x3676   :  { %v29553_v35 = vpop.eup %29552 }
0x3677   :  { %v14930_v25 = vadd.f32 1.0, %v29553_v35 }
0x3679   :  { %29554 = vrcp.f32 %v14930_v25 }
0x3683   :  { %v29555_v30 = vpop.eup %29554 }
0x3684   :  { %v14934_v52 = vmul.f32 %v29555_v30, %v32111_v7 }
0x36e7   :  { %v14937_v40 = vpop.permute.xlu0 %14936 }
0x36e8   :  { %v14939_v50 = vmul.f32 %v29555_v30, %v14937_v40 }
0x36ea   :  { %14941 = vrot.lane.b32.xlu1 %v14939_v50, %s29821_s22 }
0x375c   :  { %v14942_v41 = vpop.permute.xlu1 %14941 }
0x375d   :  { %v32156_v17 = vadd.f32 %v14942_v41, %v14934_v52 }
0x375f   :  { %29556 = vtanh.f32 %v32156_v17 }
0x3769   :  { %v29557_v57 = vpop.eup %29556 }
0x376a   :  { %14947 = vrot.lane.b32.xlu0 %v29557_v57, %s29820_s9 }
0x37dc   :  { %v14948_v11 = vpop.permute.xlu0 %14947 }
0x37dd   :  { %v14950_v28 = vmul.f32 %v29555_v30, %v14948_v11 }
0x37df   :  { %14953 = vrot.lane.b32.xlu1 %v14950_v28, %s29821_s22 }
0x3851   :  { %v14954_v29 = vpop.permute.xlu1 %14953 }
0x3852   :  { %v14955_v5 = vsel %vm780_vm3, %v14954_v29, 0 }
0x3853   :  { %v15026_v2 = vand.u32 4294901760, %v14955_v5 }
0x3855   :  { %v15027_v23 = vsub.f32 %v14955_v5, %v15026_v2  ;;  %26408 = vmatmul.mubr.f32.vlgmr.msra.gmra.mrb[120].mxu1 %v15026_v2 }
0x3856   :  { %28694 = vmatpush3.bf16.msra.mxu1 %v31980_v55  ;;  %26429 = vmatprep.mubr.msk.f32.mxu1 %vm29819_vm12, %v32871_v60 }
0x3857   :  { %v15028_v46 = vand.u32 4294901760, %v15027_v23  ;;  %28695 = vmatprep.subr.bf16.mxu1 %v29818_v21 }
0x3859   :  { %v15029_v56 = vsub.f32 %v15027_v23, %v15028_v46 }
0x385a   :  { %28697 = vmatpush3.bf16.msra.mxu1 %v31987_v59 }
0x385b   :  { %v15030_v3 = vand.u32 4294901760, %v15029_v56  ;;  %28704 = vmatprep.subr.bf16.mxu1 %v29818_v21 }
0x385d   :  { %26430 = vmatmul.mubr.f32.vlgmr.msra.gmra.mrb[122].mxu1 %v15028_v46  ;;  %26397 = vmatmul.mubr.f32.vlgmr.msra.gmra.mrb[128].mxu0 %v15030_v3 }
0x385e   :  { %28688 = vmatpush3.bf16.msra.mxu0 %v32012_v1  ;;  %28706 = vmatpush3.bf16.msra.mxu1 %v31980_v55 }
0x385f   :  { %28689 = vmatprep.subr.bf16.mxu0 %v29818_v21  ;;  %28707 = vmatprep.subr.bf16.mxu1 %v29818_v21 }
0x3860   :  { %26418 = vmatprep.mubr.msk.f32.mxu0 %vm29819_vm12, %v32871_v60  ;;  %26451 = vmatprep.mubr.msk.f32.mxu1 %vm29819_vm12, %v32871_v60 }
0x3862   :  { %28691 = vmatpush3.bf16.msra.mxu0 %v32022_v15  ;;  %28709 = vmatpush3.bf16.msra.mxu1 %v31987_v59 }
0x3863   :  { %28698 = vmatprep.subr.bf16.mxu0 %v29818_v21  ;;  %28716 = vmatprep.subr.bf16.mxu1 %v29818_v21 }
0x3865   :  { %26419 = vmatmul.mubr.f32.vlgmr.msra.gmra.mrb[130].mxu0 %v15027_v23  ;;  %26452 = vmatmul.mubr.f32.vlgmr.msra.gmra.mrb[124].mxu1 %v15026_v2 }
0x3866   :  { %28700 = vmatpush3.bf16.msra.mxu0 %v32046_v58  ;;  %26440 = vmatprep.mubr.msk.f32.mxu0 %vm29819_vm12, %v32871_v60 }
0x3867   :  { %28701 = vmatprep.subr.bf16.mxu0 %v29818_v21  ;;  %28718 = vmatpush3.bf16.msra.mxu1 %v31999_v12 }
0x3868   :  { %28719 = vmatprep.subr.bf16.mxu1 %v29818_v21  ;;  %26473 = vmatprep.mubr.msk.f32.mxu1 %vm29819_vm12, %v32871_v60 }
0x386a   :  { %28703 = vmatpush3.bf16.msra.mxu0 %v32053_v6 }
0x386b   :  { %28721 = vmatpush3.bf16.msra.mxu1 %v32006_v44  ;;  %28710 = vmatprep.subr.bf16.mxu0 %v29818_v21 }
0x386c   :  { %28728 = vmatprep.subr.bf16.mxu1 %v29818_v21 }
0x386d   :  { %26441 = vmatmul.mubr.f32.vlgmr.msra.gmra.mrb[132].mxu0 %v15026_v2 }
0x386e   :  { %28712 = vmatpush3.bf16.msra.mxu0 %v31980_v55  ;;  %26462 = vmatprep.mubr.msk.f32.mxu0 %vm29819_vm12, %v32871_v60 }
0x386f   :  { %28713 = vmatprep.subr.bf16.mxu0 %v29818_v21 }
0x3872   :  { %28715 = vmatpush3.bf16.msra.mxu0 %v31987_v59 }
0x3873   :  { %28722 = vmatprep.subr.bf16.mxu0 %v29818_v21 }
0x3928   :  { %v15123_v45 = vpop.f32.mrb[120].mxu1 }
0x3929   :  { %v26409_v47 = vpop.f32.mrb[121].mxu1 }
0x3930   :  { %v15280_v36 = vpop.f32.mrb[122].mxu1  ;;  %v15032_v63 = vpop.f32.mrb[128].mxu0 }
0x3931   :  { %v15124_v7 = vadd.f32 %v15123_v45, %v15032_v63  ;;  %v26431_v10 = vpop.f32.mrb[123].mxu1  ;;  %v26398_v43 = vpop.f32.mrb[129].mxu0 }
0x3938   :  { %v15203_v9 = vpop.f32.mrb[130].mxu0  ;;  %v15438_v62 = vpop.f32.mrb[124].mxu1 }
0x3939   :  { %v15204_v53 = vadd.f32 %v15203_v9, %v15124_v7  ;;  %v26420_v42 = vpop.f32.mrb[131].mxu0  ;;  %v26453_v34 = vpop.f32.mrb[125].mxu1 }
0x393b   :  { %v15281_v8 = vadd.f32 %v15280_v36, %v15204_v53  ;;  %v15467_v36 = vld [vmem:[#allocation2 + $0x6] sm:$0x3] }
0x3940   :  { %v15363_v51 = vpop.f32.mrb[132].mxu0 }
0x3941   :  { %v15364_v26 = vadd.f32 %v15363_v51, %v15281_v8  ;;  %v26442_v38 = vpop.f32.mrb[133].mxu0 }
0x3943   :  { %v15439_v31 = vadd.f32 %v15438_v62, %v15364_v26 }
0x3945   :  { %v15442_v4 = vadd.f32 %v15439_v31, %v14951_v27 }
0x3947   :  { %29558 = vtanh.f32 %v15442_v4  ;;  %v22743_v49 = vmul.f32 -1.442695, %v15442_v4 }
0x3949   :  { %29560 = vpow2.f32 %v22743_v49 }
0x3951   :  { %v29559_v61 = vpop.eup %29558 }
0x3952   :  { %15452 = vrot.lane.b32.xlu0 %v29559_v61, %s29820_s9 }
0x3953   :  { %v29561_v13 = vpop.eup %29560 }
0x3954   :  { %v15446_v32 = vadd.f32 1.0, %v29561_v13 }
0x3956   :  { %29562 = vrcp.f32 %v15446_v32 }
0x3960   :  { %v29563_v54 = vpop.eup %29562 }
0x3961   :  { %v15450_v33 = vmul.f32 %v29563_v54, %v32156_v17 }
0x39c4   :  { %v15453_v39 = vpop.permute.xlu0 %15452 }
0x39c5   :  { %v15455_v24 = vmul.f32 %v29563_v54, %v15453_v39 }
0x39c7   :  { %15457 = vrot.lane.b32.xlu1 %v15455_v24, %s29821_s22 }
0x3a39   :  { %v15458_v0 = vpop.permute.xlu1 %15457 }
0x3a3a   :  { %v32201_v48 = vadd.f32 %v15458_v0, %v15450_v33 }
0x3a3c   :  { %29564 = vtanh.f32 %v32201_v48 }
0x3a46   :  { %v29565_v19 = vpop.eup %29564 }
0x3a47   :  { %15463 = vrot.lane.b32.xlu0 %v29565_v19, %s29820_s9 }
0x3ab9   :  { %v15464_v37 = vpop.permute.xlu0 %15463 }
0x3aba   :  { %v15466_v14 = vmul.f32 %v29563_v54, %v15464_v37 }
0x3abc   :  { %15469 = vrot.lane.b32.xlu1 %v15466_v14, %s29821_s22 }
0x3b2e   :  { %v15470_v18 = vpop.permute.xlu1 %15469 }
0x3b2f   :  { %v15471_v20 = vsel %vm780_vm3, %v15470_v18, 0 }
0x3b30   :  { %v15542_v22 = vand.u32 4294901760, %v15471_v20 }
0x3b32   :  { %v15543_v16 = vsub.f32 %v15471_v20, %v15542_v22  ;;  %26474 = vmatmul.mubr.f32.vlgmr.msra.gmra.mrb[126].mxu1 %v15542_v22 }
0x3b33   :  { %28730 = vmatpush3.bf16.msra.mxu1 %v31980_v55  ;;  %26495 = vmatprep.mubr.msk.f32.mxu1 %vm29819_vm12, %v32871_v60 }
0x3b34   :  { %v15544_v35 = vand.u32 4294901760, %v15543_v16  ;;  %28731 = vmatprep.subr.bf16.mxu1 %v29818_v21 }
0x3b36   :  { %v15545_v25 = vsub.f32 %v15543_v16, %v15544_v35 }
0x3b37   :  { %28733 = vmatpush3.bf16.msra.mxu1 %v31987_v59 }
0x3b38   :  { %v15546_v30 = vand.u32 4294901760, %v15545_v25  ;;  %28740 = vmatprep.subr.bf16.mxu1 %v29818_v21 }
0x3b3a   :  { %26496 = vmatmul.mubr.f32.vlgmr.msra.gmra.mrb[128].mxu1 %v15544_v35  ;;  %26463 = vmatmul.mubr.f32.vlgmr.msra.gmra.mrb[134].mxu0 %v15546_v30 }
0x3b3b   :  { %28724 = vmatpush3.bf16.msra.mxu0 %v32012_v1  ;;  %28742 = vmatpush3.bf16.msra.mxu1 %v31980_v55 }
0x3b3c   :  { %28725 = vmatprep.subr.bf16.mxu0 %v29818_v21  ;;  %28743 = vmatprep.subr.bf16.mxu1 %v29818_v21 }
0x3b3d   :  { %26484 = vmatprep.mubr.msk.f32.mxu0 %vm29819_vm12, %v32871_v60  ;;  %26517 = vmatprep.mubr.msk.f32.mxu1 %vm29819_vm12, %v32871_v60 }
0x3b3f   :  { %28727 = vmatpush3.bf16.msra.mxu0 %v32022_v15  ;;  %28745 = vmatpush3.bf16.msra.mxu1 %v31987_v59 }
0x3b40   :  { %28734 = vmatprep.subr.bf16.mxu0 %v29818_v21  ;;  %28752 = vmatprep.subr.bf16.mxu1 %v29818_v21 }
0x3b42   :  { %26485 = vmatmul.mubr.f32.vlgmr.msra.gmra.mrb[136].mxu0 %v15543_v16  ;;  %26518 = vmatmul.mubr.f32.vlgmr.msra.gmra.mrb[130].mxu1 %v15542_v22 }
0x3b43   :  { %28736 = vmatpush3.bf16.msra.mxu0 %v32046_v58  ;;  %26506 = vmatprep.mubr.msk.f32.mxu0 %vm29819_vm12, %v32871_v60 }
0x3b44   :  { %28737 = vmatprep.subr.bf16.mxu0 %v29818_v21  ;;  %28754 = vmatpush3.bf16.msra.mxu1 %v31999_v12 }
0x3b45   :  { %28755 = vmatprep.subr.bf16.mxu1 %v29818_v21  ;;  %26539 = vmatprep.mubr.msk.f32.mxu1 %vm29819_vm12, %v32871_v60 }
0x3b47   :  { %28739 = vmatpush3.bf16.msra.mxu0 %v32053_v6 }
0x3b48   :  { %28757 = vmatpush3.bf16.msra.mxu1 %v32006_v44  ;;  %28746 = vmatprep.subr.bf16.mxu0 %v29818_v21 }
0x3b49   :  { %28764 = vmatprep.subr.bf16.mxu1 %v29818_v21 }
0x3b4a   :  { %26507 = vmatmul.mubr.f32.vlgmr.msra.gmra.mrb[138].mxu0 %v15542_v22 }
0x3b4b   :  { %28748 = vmatpush3.bf16.msra.mxu0 %v31980_v55  ;;  %26528 = vmatprep.mubr.msk.f32.mxu0 %vm29819_vm12, %v32871_v60 }
0x3b4c   :  { %28749 = vmatprep.subr.bf16.mxu0 %v29818_v21 }
0x3b4f   :  { %28751 = vmatpush3.bf16.msra.mxu0 %v31987_v59 }
0x3b50   :  { %28758 = vmatprep.subr.bf16.mxu0 %v29818_v21 }
0x3c05   :  { %v15639_v40 = vpop.f32.mrb[126].mxu1 }
0x3c06   :  { %v26475_v50 = vpop.f32.mrb[127].mxu1 }
0x3c0d   :  { %v15796_v52 = vpop.f32.mrb[128].mxu1  ;;  %v15548_v41 = vpop.f32.mrb[134].mxu0 }
0x3c0e   :  { %v15640_v17 = vadd.f32 %v15639_v40, %v15548_v41  ;;  %v26497_v57 = vpop.f32.mrb[129].mxu1  ;;  %v26464_v11 = vpop.f32.mrb[135].mxu0 }
0x3c15   :  { %v15719_v28 = vpop.f32.mrb[136].mxu0  ;;  %v15954_v29 = vpop.f32.mrb[130].mxu1 }
0x3c16   :  { %v15720_v5 = vadd.f32 %v15719_v28, %v15640_v17  ;;  %v26486_v2 = vpop.f32.mrb[137].mxu0  ;;  %v26519_v23 = vpop.f32.mrb[131].mxu1 }
0x3c18   :  { %v15797_v46 = vadd.f32 %v15796_v52, %v15720_v5  ;;  %v15983_v52 = vld [vmem:[#allocation2 + $0x8] sm:$0x3] }
0x3c1d   :  { %v15879_v56 = vpop.f32.mrb[138].mxu0 }
0x3c1e   :  { %v15880_v3 = vadd.f32 %v15879_v56, %v15797_v46  ;;  %v26508_v45 = vpop.f32.mrb[139].mxu0 }
0x3c20   :  { %v15955_v47 = vadd.f32 %v15954_v29, %v15880_v3 }
0x3c22   :  { %v15958_v63 = vadd.f32 %v15955_v47, %v15467_v36 }
0x3c24   :  { %29566 = vtanh.f32 %v15958_v63  ;;  %v22744_v10 = vmul.f32 -1.442695, %v15958_v63 }
0x3c26   :  { %29568 = vpow2.f32 %v22744_v10 }
0x3c2e   :  { %v29567_v7 = vpop.eup %29566 }
0x3c2f   :  { %15968 = vrot.lane.b32.xlu0 %v29567_v7, %s29820_s9 }
0x3c30   :  { %v29569_v43 = vpop.eup %29568 }
0x3c31   :  { %v15962_v9 = vadd.f32 1.0, %v29569_v43 }
0x3c33   :  { %29570 = vrcp.f32 %v15962_v9 }
0x3c3d   :  { %v29571_v62 = vpop.eup %29570 }
0x3c3e   :  { %v15966_v34 = vmul.f32 %v29571_v62, %v32201_v48 }
0x3ca1   :  { %v15969_v53 = vpop.permute.xlu0 %15968 }
0x3ca2   :  { %v15971_v42 = vmul.f32 %v29571_v62, %v15969_v53 }
0x3ca4   :  { %15973 = vrot.lane.b32.xlu1 %v15971_v42, %s29821_s22 }
0x3d16   :  { %v15974_v8 = vpop.permute.xlu1 %15973 }
0x3d17   :  { %v32246_v51 = vadd.f32 %v15974_v8, %v15966_v34 }
0x3d19   :  { %29572 = vtanh.f32 %v32246_v51 }
0x3d23   :  { %v29573_v26 = vpop.eup %29572 }
0x3d24   :  { %15979 = vrot.lane.b32.xlu0 %v29573_v26, %s29820_s9 }
0x3d96   :  { %v15980_v38 = vpop.permute.xlu0 %15979 }
0x3d97   :  { %v15982_v31 = vmul.f32 %v29571_v62, %v15980_v38 }
0x3d99   :  { %15985 = vrot.lane.b32.xlu1 %v15982_v31, %s29821_s22 }
0x3e0b   :  { %v15986_v27 = vpop.permute.xlu1 %15985 }
0x3e0c   :  { %v15987_v4 = vsel %vm780_vm3, %v15986_v27, 0 }
0x3e0d   :  { %v16058_v61 = vand.u32 4294901760, %v15987_v4 }
0x3e0f   :  { %v16059_v49 = vsub.f32 %v15987_v4, %v16058_v61  ;;  %26540 = vmatmul.mubr.f32.vlgmr.msra.gmra.mrb[132].mxu1 %v16058_v61 }
0x3e10   :  { %28766 = vmatpush3.bf16.msra.mxu1 %v31980_v55  ;;  %26561 = vmatprep.mubr.msk.f32.mxu1 %vm29819_vm12, %v32871_v60 }
0x3e11   :  { %v16060_v13 = vand.u32 4294901760, %v16059_v49  ;;  %28767 = vmatprep.subr.bf16.mxu1 %v29818_v21 }
0x3e13   :  { %v16061_v32 = vsub.f32 %v16059_v49, %v16060_v13 }
0x3e14   :  { %28769 = vmatpush3.bf16.msra.mxu1 %v31987_v59 }
0x3e15   :  { %v16062_v54 = vand.u32 4294901760, %v16061_v32  ;;  %28776 = vmatprep.subr.bf16.mxu1 %v29818_v21 }
0x3e17   :  { %26562 = vmatmul.mubr.f32.vlgmr.msra.gmra.mrb[134].mxu1 %v16060_v13  ;;  %26529 = vmatmul.mubr.f32.vlgmr.msra.gmra.mrb[140].mxu0 %v16062_v54 }
0x3e18   :  { %28760 = vmatpush3.bf16.msra.mxu0 %v32012_v1  ;;  %28778 = vmatpush3.bf16.msra.mxu1 %v31980_v55 }
0x3e19   :  { %28761 = vmatprep.subr.bf16.mxu0 %v29818_v21  ;;  %28779 = vmatprep.subr.bf16.mxu1 %v29818_v21 }
0x3e1a   :  { %26550 = vmatprep.mubr.msk.f32.mxu0 %vm29819_vm12, %v32871_v60  ;;  %26583 = vmatprep.mubr.msk.f32.mxu1 %vm29819_vm12, %v32871_v60 }
0x3e1c   :  { %28763 = vmatpush3.bf16.msra.mxu0 %v32022_v15  ;;  %28781 = vmatpush3.bf16.msra.mxu1 %v31987_v59 }
0x3e1d   :  { %28770 = vmatprep.subr.bf16.mxu0 %v29818_v21  ;;  %28788 = vmatprep.subr.bf16.mxu1 %v29818_v21 }
0x3e1f   :  { %26551 = vmatmul.mubr.f32.vlgmr.msra.gmra.mrb[142].mxu0 %v16059_v49  ;;  %26584 = vmatmul.mubr.f32.vlgmr.msra.gmra.mrb[136].mxu1 %v16058_v61 }
0x3e20   :  { %28772 = vmatpush3.bf16.msra.mxu0 %v32046_v58  ;;  %26572 = vmatprep.mubr.msk.f32.mxu0 %vm29819_vm12, %v32871_v60 }
0x3e21   :  { %28773 = vmatprep.subr.bf16.mxu0 %v29818_v21  ;;  %28790 = vmatpush3.bf16.msra.mxu1 %v31999_v12 }
0x3e22   :  { %28791 = vmatprep.subr.bf16.mxu1 %v29818_v21  ;;  %26605 = vmatprep.mubr.msk.f32.mxu1 %vm29819_vm12, %v32871_v60 }
0x3e24   :  { %28775 = vmatpush3.bf16.msra.mxu0 %v32053_v6 }
0x3e25   :  { %28793 = vmatpush3.bf16.msra.mxu1 %v32006_v44  ;;  %28782 = vmatprep.subr.bf16.mxu0 %v29818_v21 }
0x3e26   :  { %28800 = vmatprep.subr.bf16.mxu1 %v29818_v21 }
0x3e27   :  { %26573 = vmatmul.mubr.f32.vlgmr.msra.gmra.mrb[144].mxu0 %v16058_v61 }
0x3e28   :  { %28784 = vmatpush3.bf16.msra.mxu0 %v31980_v55  ;;  %26594 = vmatprep.mubr.msk.f32.mxu0 %vm29819_vm12, %v32871_v60 }
0x3e29   :  { %28785 = vmatprep.subr.bf16.mxu0 %v29818_v21 }
0x3e2c   :  { %28787 = vmatpush3.bf16.msra.mxu0 %v31987_v59 }
0x3e2d   :  { %28794 = vmatprep.subr.bf16.mxu0 %v29818_v21 }
0x3ee2   :  { %v16155_v39 = vpop.f32.mrb[132].mxu1 }
0x3ee3   :  { %v26541_v24 = vpop.f32.mrb[133].mxu1 }
0x3eea   :  { %v16312_v33 = vpop.f32.mrb[134].mxu1  ;;  %v16064_v0 = vpop.f32.mrb[140].mxu0 }
0x3eeb   :  { %v16156_v48 = vadd.f32 %v16155_v39, %v16064_v0  ;;  %v26563_v19 = vpop.f32.mrb[135].mxu1  ;;  %v26530_v37 = vpop.f32.mrb[141].mxu0 }
0x3ef2   :  { %v16235_v14 = vpop.f32.mrb[142].mxu0  ;;  %v16470_v18 = vpop.f32.mrb[136].mxu1 }
0x3ef3   :  { %v16236_v20 = vadd.f32 %v16235_v14, %v16156_v48  ;;  %v26552_v22 = vpop.f32.mrb[143].mxu0  ;;  %v26585_v16 = vpop.f32.mrb[137].mxu1 }
0x3ef5   :  { %v16313_v35 = vadd.f32 %v16312_v33, %v16236_v20  ;;  %v16499_v33 = vld [vmem:[#allocation2 + $0xa] sm:$0x3] }
0x3efa   :  { %v16395_v25 = vpop.f32.mrb[144].mxu0 }
0x3efb   :  { %v16396_v30 = vadd.f32 %v16395_v25, %v16313_v35  ;;  %v26574_v40 = vpop.f32.mrb[145].mxu0 }
0x3efd   :  { %v16471_v50 = vadd.f32 %v16470_v18, %v16396_v30 }
0x3eff   :  { %v16474_v41 = vadd.f32 %v16471_v50, %v15983_v52 }
0x3f01   :  { %29574 = vtanh.f32 %v16474_v41  ;;  %v22745_v57 = vmul.f32 -1.442695, %v16474_v41 }
0x3f03   :  { %29576 = vpow2.f32 %v22745_v57 }
0x3f0b   :  { %v29575_v17 = vpop.eup %29574 }
0x3f0c   :  { %16484 = vrot.lane.b32.xlu0 %v29575_v17, %s29820_s9 }
0x3f0d   :  { %v29577_v11 = vpop.eup %29576 }
0x3f0e   :  { %v16478_v28 = vadd.f32 1.0, %v29577_v11 }
0x3f10   :  { %29578 = vrcp.f32 %v16478_v28 }
0x3f1a   :  { %v29579_v29 = vpop.eup %29578 }
0x3f1b   :  { %v16482_v23 = vmul.f32 %v29579_v29, %v32246_v51 }
0x3f7e   :  { %v16485_v5 = vpop.permute.xlu0 %16484 }
0x3f7f   :  { %v16487_v2 = vmul.f32 %v29579_v29, %v16485_v5 }
0x3f81   :  { %16489 = vrot.lane.b32.xlu1 %v16487_v2, %s29821_s22 }
0x3ff3   :  { %v16490_v46 = vpop.permute.xlu1 %16489 }
0x3ff4   :  { %v32291_v56 = vadd.f32 %v16490_v46, %v16482_v23 }
0x3ff6   :  { %29580 = vtanh.f32 %v32291_v56 }
0x4000   :  { %v29581_v3 = vpop.eup %29580 }
0x4001   :  { %16495 = vrot.lane.b32.xlu0 %v29581_v3, %s29820_s9 }
0x4073   :  { %v16496_v45 = vpop.permute.xlu0 %16495 }
0x4074   :  { %v16498_v47 = vmul.f32 %v29579_v29, %v16496_v45 }
0x4076   :  { %16501 = vrot.lane.b32.xlu1 %v16498_v47, %s29821_s22 }
0x40e8   :  { %v16502_v36 = vpop.permute.xlu1 %16501 }
0x40e9   :  { %v16503_v63 = vsel %vm780_vm3, %v16502_v36, 0 }
0x40ea   :  { %v16574_v7 = vand.u32 4294901760, %v16503_v63 }
0x40ec   :  { %v16575_v10 = vsub.f32 %v16503_v63, %v16574_v7  ;;  %26606 = vmatmul.mubr.f32.vlgmr.msra.gmra.mrb[138].mxu1 %v16574_v7 }
0x40ed   :  { %28802 = vmatpush3.bf16.msra.mxu1 %v31980_v55  ;;  %26627 = vmatprep.mubr.msk.f32.mxu1 %vm29819_vm12, %v32871_v60 }
0x40ee   :  { %v16576_v43 = vand.u32 4294901760, %v16575_v10  ;;  %28803 = vmatprep.subr.bf16.mxu1 %v29818_v21 }
0x40f0   :  { %v16577_v9 = vsub.f32 %v16575_v10, %v16576_v43 }
0x40f1   :  { %28805 = vmatpush3.bf16.msra.mxu1 %v31987_v59 }
0x40f2   :  { %v16578_v62 = vand.u32 4294901760, %v16577_v9  ;;  %28812 = vmatprep.subr.bf16.mxu1 %v29818_v21 }
0x40f4   :  { %26628 = vmatmul.mubr.f32.vlgmr.msra.gmra.mrb[140].mxu1 %v16576_v43  ;;  %26595 = vmatmul.mubr.f32.vlgmr.msra.gmra.mrb[146].mxu0 %v16578_v62 }
0x40f5   :  { %28796 = vmatpush3.bf16.msra.mxu0 %v32012_v1  ;;  %28814 = vmatpush3.bf16.msra.mxu1 %v31980_v55 }
0x40f6   :  { %28797 = vmatprep.subr.bf16.mxu0 %v29818_v21  ;;  %28815 = vmatprep.subr.bf16.mxu1 %v29818_v21 }
0x40f7   :  { %26616 = vmatprep.mubr.msk.f32.mxu0 %vm29819_vm12, %v32871_v60  ;;  %26649 = vmatprep.mubr.msk.f32.mxu1 %vm29819_vm12, %v32871_v60 }
0x40f9   :  { %28799 = vmatpush3.bf16.msra.mxu0 %v32022_v15  ;;  %28817 = vmatpush3.bf16.msra.mxu1 %v31987_v59 }
0x40fa   :  { %28806 = vmatprep.subr.bf16.mxu0 %v29818_v21  ;;  %28824 = vmatprep.subr.bf16.mxu1 %v29818_v21 }
0x40fc   :  { %26617 = vmatmul.mubr.f32.vlgmr.msra.gmra.mrb[148].mxu0 %v16575_v10  ;;  %26650 = vmatmul.mubr.f32.vlgmr.msra.gmra.mrb[142].mxu1 %v16574_v7 }
0x40fd   :  { %28808 = vmatpush3.bf16.msra.mxu0 %v32046_v58  ;;  %26638 = vmatprep.mubr.msk.f32.mxu0 %vm29819_vm12, %v32871_v60 }
0x40fe   :  { %28809 = vmatprep.subr.bf16.mxu0 %v29818_v21  ;;  %28826 = vmatpush3.bf16.msra.mxu1 %v31999_v12 }
0x40ff   :  { %28827 = vmatprep.subr.bf16.mxu1 %v29818_v21  ;;  %26671 = vmatprep.mubr.msk.f32.mxu1 %vm29819_vm12, %v32871_v60 }
0x4101   :  { %28811 = vmatpush3.bf16.msra.mxu0 %v32053_v6 }
0x4102   :  { %28829 = vmatpush3.bf16.msra.mxu1 %v32006_v44  ;;  %28818 = vmatprep.subr.bf16.mxu0 %v29818_v21 }
0x4103   :  { %28836 = vmatprep.subr.bf16.mxu1 %v29818_v21 }
0x4104   :  { %26639 = vmatmul.mubr.f32.vlgmr.msra.gmra.mrb[150].mxu0 %v16574_v7 }
0x4105   :  { %28820 = vmatpush3.bf16.msra.mxu0 %v31980_v55  ;;  %26660 = vmatprep.mubr.msk.f32.mxu0 %vm29819_vm12, %v32871_v60 }
0x4106   :  { %28821 = vmatprep.subr.bf16.mxu0 %v29818_v21 }
0x4109   :  { %28823 = vmatpush3.bf16.msra.mxu0 %v31987_v59 }
0x410a   :  { %28830 = vmatprep.subr.bf16.mxu0 %v29818_v21 }
0x41bf   :  { %v16671_v53 = vpop.f32.mrb[138].mxu1 }
0x41c0   :  { %v26607_v42 = vpop.f32.mrb[139].mxu1 }
0x41c7   :  { %v16828_v34 = vpop.f32.mrb[140].mxu1  ;;  %v16580_v8 = vpop.f32.mrb[146].mxu0 }
0x41c8   :  { %v16672_v51 = vadd.f32 %v16671_v53, %v16580_v8  ;;  %v26629_v26 = vpop.f32.mrb[141].mxu1  ;;  %v26596_v38 = vpop.f32.mrb[147].mxu0 }
0x41cf   :  { %v16751_v31 = vpop.f32.mrb[148].mxu0  ;;  %v16986_v27 = vpop.f32.mrb[142].mxu1 }
0x41d0   :  { %v16752_v4 = vadd.f32 %v16751_v31, %v16672_v51  ;;  %v26618_v61 = vpop.f32.mrb[149].mxu0  ;;  %v26651_v49 = vpop.f32.mrb[143].mxu1 }
0x41d2   :  { %v16829_v13 = vadd.f32 %v16828_v34, %v16752_v4  ;;  %v17015_v34 = vld [vmem:[#allocation2 + $0xc] sm:$0x3] }
0x41d7   :  { %v16911_v32 = vpop.f32.mrb[150].mxu0 }
0x41d8   :  { %v16912_v54 = vadd.f32 %v16911_v32, %v16829_v13  ;;  %v26640_v39 = vpop.f32.mrb[151].mxu0 }
0x41da   :  { %v16987_v24 = vadd.f32 %v16986_v27, %v16912_v54 }
0x41dc   :  { %v16990_v0 = vadd.f32 %v16987_v24, %v16499_v33 }
0x41de   :  { %29582 = vtanh.f32 %v16990_v0  ;;  %v22746_v19 = vmul.f32 -1.442695, %v16990_v0 }
0x41e0   :  { %29584 = vpow2.f32 %v22746_v19 }
0x41e8   :  { %v29583_v48 = vpop.eup %29582 }
0x41e9   :  { %17000 = vrot.lane.b32.xlu0 %v29583_v48, %s29820_s9 }
0x41ea   :  { %v29585_v37 = vpop.eup %29584 }
0x41eb   :  { %v16994_v14 = vadd.f32 1.0, %v29585_v37 }
0x41ed   :  { %29586 = vrcp.f32 %v16994_v14 }
0x41f7   :  { %v29587_v18 = vpop.eup %29586 }
0x41f8   :  { %v16998_v16 = vmul.f32 %v29587_v18, %v32291_v56 }
0x425b   :  { %v17001_v20 = vpop.permute.xlu0 %17000 }
0x425c   :  { %v17003_v22 = vmul.f32 %v29587_v18, %v17001_v20 }
0x425e   :  { %17005 = vrot.lane.b32.xlu1 %v17003_v22, %s29821_s22 }
0x42d0   :  { %v17006_v35 = vpop.permute.xlu1 %17005 }
0x42d1   :  { %v32336_v25 = vadd.f32 %v17006_v35, %v16998_v16 }
0x42d3   :  { %29588 = vtanh.f32 %v32336_v25 }
0x42dd   :  { %v29589_v30 = vpop.eup %29588 }
0x42de   :  { %17011 = vrot.lane.b32.xlu0 %v29589_v30, %s29820_s9 }
0x4350   :  { %v17012_v40 = vpop.permute.xlu0 %17011 }
0x4351   :  { %v17014_v50 = vmul.f32 %v29587_v18, %v17012_v40 }
0x4353   :  { %17017 = vrot.lane.b32.xlu1 %v17014_v50, %s29821_s22 }
0x43c5   :  { %v17018_v52 = vpop.permute.xlu1 %17017 }
0x43c6   :  { %v17019_v41 = vsel %vm780_vm3, %v17018_v52, 0 }
0x43c7   :  { %v17090_v17 = vand.u32 4294901760, %v17019_v41 }
0x43c9   :  { %v17091_v57 = vsub.f32 %v17019_v41, %v17090_v17  ;;  %26672 = vmatmul.mubr.f32.vlgmr.msra.gmra.mrb[144].mxu1 %v17090_v17 }
0x43ca   :  { %28838 = vmatpush3.bf16.msra.mxu1 %v31980_v55  ;;  %26693 = vmatprep.mubr.msk.f32.mxu1 %vm29819_vm12, %v32871_v60 }
0x43cb   :  { %v17092_v11 = vand.u32 4294901760, %v17091_v57  ;;  %28839 = vmatprep.subr.bf16.mxu1 %v29818_v21 }
0x43cd   :  { %v17093_v28 = vsub.f32 %v17091_v57, %v17092_v11 }
0x43ce   :  { %28841 = vmatpush3.bf16.msra.mxu1 %v31987_v59 }
0x43cf   :  { %v17094_v29 = vand.u32 4294901760, %v17093_v28  ;;  %28848 = vmatprep.subr.bf16.mxu1 %v29818_v21 }
0x43d1   :  { %26694 = vmatmul.mubr.f32.vlgmr.msra.gmra.mrb[146].mxu1 %v17092_v11  ;;  %26661 = vmatmul.mubr.f32.vlgmr.msra.gmra.mrb[152].mxu0 %v17094_v29 }
0x43d2   :  { %28832 = vmatpush3.bf16.msra.mxu0 %v32012_v1  ;;  %28850 = vmatpush3.bf16.msra.mxu1 %v31980_v55 }
0x43d3   :  { %28833 = vmatprep.subr.bf16.mxu0 %v29818_v21  ;;  %28851 = vmatprep.subr.bf16.mxu1 %v29818_v21 }
0x43d4   :  { %26682 = vmatprep.mubr.msk.f32.mxu0 %vm29819_vm12, %v32871_v60  ;;  %26715 = vmatprep.mubr.msk.f32.mxu1 %vm29819_vm12, %v32871_v60 }
0x43d6   :  { %28835 = vmatpush3.bf16.msra.mxu0 %v32022_v15  ;;  %28853 = vmatpush3.bf16.msra.mxu1 %v31987_v59 }
0x43d7   :  { %28842 = vmatprep.subr.bf16.mxu0 %v29818_v21  ;;  %28860 = vmatprep.subr.bf16.mxu1 %v29818_v21 }
0x43d9   :  { %26683 = vmatmul.mubr.f32.vlgmr.msra.gmra.mrb[154].mxu0 %v17091_v57  ;;  %26716 = vmatmul.mubr.f32.vlgmr.msra.gmra.mrb[148].mxu1 %v17090_v17 }
0x43da   :  { %28844 = vmatpush3.bf16.msra.mxu0 %v32046_v58  ;;  %26704 = vmatprep.mubr.msk.f32.mxu0 %vm29819_vm12, %v32871_v60 }
0x43db   :  { %28845 = vmatprep.subr.bf16.mxu0 %v29818_v21  ;;  %28862 = vmatpush3.bf16.msra.mxu1 %v31999_v12 }
0x43dc   :  { %28863 = vmatprep.subr.bf16.mxu1 %v29818_v21  ;;  %26737 = vmatprep.mubr.msk.f32.mxu1 %vm29819_vm12, %v32871_v60 }
0x43de   :  { %28847 = vmatpush3.bf16.msra.mxu0 %v32053_v6 }
0x43df   :  { %28865 = vmatpush3.bf16.msra.mxu1 %v32006_v44  ;;  %28854 = vmatprep.subr.bf16.mxu0 %v29818_v21 }
0x43e0   :  { %28872 = vmatprep.subr.bf16.mxu1 %v29818_v21 }
0x43e1   :  { %26705 = vmatmul.mubr.f32.vlgmr.msra.gmra.mrb[156].mxu0 %v17090_v17 }
0x43e2   :  { %28856 = vmatpush3.bf16.msra.mxu0 %v31980_v55  ;;  %26726 = vmatprep.mubr.msk.f32.mxu0 %vm29819_vm12, %v32871_v60 }
0x43e3   :  { %28857 = vmatprep.subr.bf16.mxu0 %v29818_v21 }
0x43e6   :  { %28859 = vmatpush3.bf16.msra.mxu0 %v31987_v59 }
0x43e7   :  { %28866 = vmatprep.subr.bf16.mxu0 %v29818_v21 }
0x449c   :  { %v17187_v5 = vpop.f32.mrb[144].mxu1 }
0x449d   :  { %v26673_v2 = vpop.f32.mrb[145].mxu1 }
0x44a4   :  { %v17344_v23 = vpop.f32.mrb[146].mxu1  ;;  %v17096_v46 = vpop.f32.mrb[152].mxu0 }
0x44a5   :  { %v17188_v56 = vadd.f32 %v17187_v5, %v17096_v46  ;;  %v26695_v3 = vpop.f32.mrb[147].mxu1  ;;  %v26662_v45 = vpop.f32.mrb[153].mxu0 }
0x44ac   :  { %v17267_v47 = vpop.f32.mrb[154].mxu0  ;;  %v17502_v36 = vpop.f32.mrb[148].mxu1 }
0x44ad   :  { %v17268_v63 = vadd.f32 %v17267_v47, %v17188_v56  ;;  %v26684_v7 = vpop.f32.mrb[155].mxu0  ;;  %v26717_v10 = vpop.f32.mrb[149].mxu1 }
0x44af   :  { %v17345_v43 = vadd.f32 %v17344_v23, %v17268_v63  ;;  %v17531_v23 = vld [vmem:[#allocation2 + $0xe] sm:$0x3] }
0x44b4   :  { %v17427_v9 = vpop.f32.mrb[156].mxu0 }
0x44b5   :  { %v17428_v62 = vadd.f32 %v17427_v9, %v17345_v43  ;;  %v26706_v53 = vpop.f32.mrb[157].mxu0 }
0x44b7   :  { %v17503_v42 = vadd.f32 %v17502_v36, %v17428_v62 }
0x44b9   :  { %v17506_v8 = vadd.f32 %v17503_v42, %v17015_v34 }
0x44bb   :  { %29590 = vtanh.f32 %v17506_v8  ;;  %v22747_v26 = vmul.f32 -1.442695, %v17506_v8 }
0x44bd   :  { %29592 = vpow2.f32 %v22747_v26 }
0x44c5   :  { %v29591_v51 = vpop.eup %29590 }
0x44c6   :  { %17516 = vrot.lane.b32.xlu0 %v29591_v51, %s29820_s9 }
0x44c7   :  { %v29593_v38 = vpop.eup %29592 }
0x44c8   :  { %v17510_v31 = vadd.f32 1.0, %v29593_v38 }
0x44ca   :  { %29594 = vrcp.f32 %v17510_v31 }
0x44d4   :  { %v29595_v27 = vpop.eup %29594 }
0x44d5   :  { %v17514_v49 = vmul.f32 %v29595_v27, %v32336_v25 }
0x4538   :  { %v17517_v4 = vpop.permute.xlu0 %17516 }
0x4539   :  { %v17519_v61 = vmul.f32 %v29595_v27, %v17517_v4 }
0x453b   :  { %17521 = vrot.lane.b32.xlu1 %v17519_v61, %s29821_s22 }
0x45ad   :  { %v17522_v13 = vpop.permute.xlu1 %17521 }
0x45ae   :  { %v32381_v32 = vadd.f32 %v17522_v13, %v17514_v49 }
0x45b0   :  { %29596 = vtanh.f32 %v32381_v32 }
0x45ba   :  { %v29597_v54 = vpop.eup %29596 }
0x45bb   :  { %17527 = vrot.lane.b32.xlu0 %v29597_v54, %s29820_s9 }
0x462d   :  { %v17528_v39 = vpop.permute.xlu0 %17527 }
0x462e   :  { %v17530_v24 = vmul.f32 %v29595_v27, %v17528_v39 }
0x4630   :  { %17533 = vrot.lane.b32.xlu1 %v17530_v24, %s29821_s22 }
0x46a2   :  { %v17534_v33 = vpop.permute.xlu1 %17533 }
0x46a3   :  { %v17535_v0 = vsel %vm780_vm3, %v17534_v33, 0 }
0x46a4   :  { %v17606_v48 = vand.u32 4294901760, %v17535_v0 }
0x46a6   :  { %v17607_v19 = vsub.f32 %v17535_v0, %v17606_v48  ;;  %26738 = vmatmul.mubr.f32.vlgmr.msra.gmra.mrb[150].mxu1 %v17606_v48 }
0x46a7   :  { %28874 = vmatpush3.bf16.msra.mxu1 %v31980_v55  ;;  %26759 = vmatprep.mubr.msk.f32.mxu1 %vm29819_vm12, %v32871_v60 }
0x46a8   :  { %v17608_v37 = vand.u32 4294901760, %v17607_v19  ;;  %28875 = vmatprep.subr.bf16.mxu1 %v29818_v21 }
0x46aa   :  { %v17609_v14 = vsub.f32 %v17607_v19, %v17608_v37 }
0x46ab   :  { %28877 = vmatpush3.bf16.msra.mxu1 %v31987_v59 }
0x46ac   :  { %v17610_v18 = vand.u32 4294901760, %v17609_v14  ;;  %28884 = vmatprep.subr.bf16.mxu1 %v29818_v21 }
0x46ae   :  { %26760 = vmatmul.mubr.f32.vlgmr.msra.gmra.mrb[152].mxu1 %v17608_v37  ;;  %26727 = vmatmul.mubr.f32.vlgmr.msra.gmra.mrb[158].mxu0 %v17610_v18 }
0x46af   :  { %28868 = vmatpush3.bf16.msra.mxu0 %v32012_v1  ;;  %28886 = vmatpush3.bf16.msra.mxu1 %v31980_v55 }
0x46b0   :  { %28869 = vmatprep.subr.bf16.mxu0 %v29818_v21  ;;  %28887 = vmatprep.subr.bf16.mxu1 %v29818_v21 }
0x46b1   :  { %26748 = vmatprep.mubr.msk.f32.mxu0 %vm29819_vm12, %v32871_v60  ;;  %26781 = vmatprep.mubr.msk.f32.mxu1 %vm29819_vm12, %v32871_v60 }
0x46b3   :  { %28871 = vmatpush3.bf16.msra.mxu0 %v32022_v15  ;;  %28889 = vmatpush3.bf16.msra.mxu1 %v31987_v59 }
0x46b4   :  { %28878 = vmatprep.subr.bf16.mxu0 %v29818_v21  ;;  %28896 = vmatprep.subr.bf16.mxu1 %v29818_v21 }
0x46b6   :  { %26749 = vmatmul.mubr.f32.vlgmr.msra.gmra.mrb[160].mxu0 %v17607_v19  ;;  %26782 = vmatmul.mubr.f32.vlgmr.msra.gmra.mrb[154].mxu1 %v17606_v48 }
0x46b7   :  { %28880 = vmatpush3.bf16.msra.mxu0 %v32046_v58  ;;  %26770 = vmatprep.mubr.msk.f32.mxu0 %vm29819_vm12, %v32871_v60 }
0x46b8   :  { %28881 = vmatprep.subr.bf16.mxu0 %v29818_v21  ;;  %28898 = vmatpush3.bf16.msra.mxu1 %v31999_v12 }
0x46b9   :  { %28899 = vmatprep.subr.bf16.mxu1 %v29818_v21  ;;  %26803 = vmatprep.mubr.msk.f32.mxu1 %vm29819_vm12, %v32871_v60 }
0x46bb   :  { %28883 = vmatpush3.bf16.msra.mxu0 %v32053_v6 }
0x46bc   :  { %28901 = vmatpush3.bf16.msra.mxu1 %v32006_v44  ;;  %28890 = vmatprep.subr.bf16.mxu0 %v29818_v21 }
0x46bd   :  { %28908 = vmatprep.subr.bf16.mxu1 %v29818_v21 }
0x46be   :  { %26771 = vmatmul.mubr.f32.vlgmr.msra.gmra.mrb[162].mxu0 %v17606_v48 }
0x46bf   :  { %28892 = vmatpush3.bf16.msra.mxu0 %v31980_v55  ;;  %26792 = vmatprep.mubr.msk.f32.mxu0 %vm29819_vm12, %v32871_v60 }
0x46c0   :  { %28893 = vmatprep.subr.bf16.mxu0 %v29818_v21 }
0x46c3   :  { %28895 = vmatpush3.bf16.msra.mxu0 %v31987_v59 }
0x46c4   :  { %28902 = vmatprep.subr.bf16.mxu0 %v29818_v21 }
0x4779   :  { %v17703_v20 = vpop.f32.mrb[150].mxu1 }
0x477a   :  { %v26739_v22 = vpop.f32.mrb[151].mxu1 }
0x4781   :  { %v17860_v16 = vpop.f32.mrb[152].mxu1  ;;  %v17612_v35 = vpop.f32.mrb[158].mxu0 }
0x4782   :  { %v17704_v25 = vadd.f32 %v17703_v20, %v17612_v35  ;;  %v26761_v30 = vpop.f32.mrb[153].mxu1  ;;  %v26728_v40 = vpop.f32.mrb[159].mxu0 }
0x4789   :  { %v17783_v50 = vpop.f32.mrb[160].mxu0  ;;  %v18018_v52 = vpop.f32.mrb[154].mxu1 }
0x478a   :  { %v17784_v41 = vadd.f32 %v17783_v50, %v17704_v25  ;;  %v26750_v17 = vpop.f32.mrb[161].mxu0  ;;  %v26783_v57 = vpop.f32.mrb[155].mxu1 }
0x478c   :  { %v17861_v11 = vadd.f32 %v17860_v16, %v17784_v41  ;;  %v18047_v16 = vld [vmem:[#allocation2 + $0x10] sm:$0x3] }
0x4791   :  { %v17943_v28 = vpop.f32.mrb[162].mxu0 }
0x4792   :  { %v17944_v29 = vadd.f32 %v17943_v28, %v17861_v11  ;;  %v26772_v5 = vpop.f32.mrb[163].mxu0 }
0x4794   :  { %v18019_v2 = vadd.f32 %v18018_v52, %v17944_v29 }
0x4796   :  { %v18022_v46 = vadd.f32 %v18019_v2, %v17531_v23 }
0x4798   :  { %29598 = vtanh.f32 %v18022_v46  ;;  %v22748_v3 = vmul.f32 -1.442695, %v18022_v46 }
0x479a   :  { %29600 = vpow2.f32 %v22748_v3 }
0x47a2   :  { %v29599_v56 = vpop.eup %29598 }
0x47a3   :  { %18032 = vrot.lane.b32.xlu0 %v29599_v56, %s29820_s9 }
0x47a4   :  { %v29601_v45 = vpop.eup %29600 }
0x47a5   :  { %v18026_v47 = vadd.f32 1.0, %v29601_v45 }
0x47a7   :  { %29602 = vrcp.f32 %v18026_v47 }
0x47b1   :  { %v29603_v36 = vpop.eup %29602 }
0x47b2   :  { %v18030_v10 = vmul.f32 %v29603_v36, %v32381_v32 }
0x4815   :  { %v18033_v63 = vpop.permute.xlu0 %18032 }
0x4816   :  { %v18035_v7 = vmul.f32 %v29603_v36, %v18033_v63 }
0x4818   :  { %18037 = vrot.lane.b32.xlu1 %v18035_v7, %s29821_s22 }
0x488a   :  { %v18038_v43 = vpop.permute.xlu1 %18037 }
0x488b   :  { %v32426_v9 = vadd.f32 %v18038_v43, %v18030_v10 }
0x488d   :  { %29604 = vtanh.f32 %v32426_v9 }
0x4897   :  { %v29605_v62 = vpop.eup %29604 }
0x4898   :  { %18043 = vrot.lane.b32.xlu0 %v29605_v62, %s29820_s9 }
0x490a   :  { %v18044_v53 = vpop.permute.xlu0 %18043 }
0x490b   :  { %v18046_v42 = vmul.f32 %v29603_v36, %v18044_v53 }
0x490d   :  { %18049 = vrot.lane.b32.xlu1 %v18046_v42, %s29821_s22 }
0x497f   :  { %v18050_v34 = vpop.permute.xlu1 %18049 }
0x4980   :  { %v18051_v8 = vsel %vm780_vm3, %v18050_v34, 0 }
0x4981   :  { %v18122_v51 = vand.u32 4294901760, %v18051_v8 }
0x4983   :  { %v18123_v26 = vsub.f32 %v18051_v8, %v18122_v51  ;;  %26804 = vmatmul.mubr.f32.vlgmr.msra.gmra.mrb[156].mxu1 %v18122_v51 }
0x4984   :  { %28910 = vmatpush3.bf16.msra.mxu1 %v31980_v55  ;;  %26825 = vmatprep.mubr.msk.f32.mxu1 %vm29819_vm12, %v32871_v60 }
0x4985   :  { %v18124_v38 = vand.u32 4294901760, %v18123_v26  ;;  %28911 = vmatprep.subr.bf16.mxu1 %v29818_v21 }
0x4987   :  { %v18125_v31 = vsub.f32 %v18123_v26, %v18124_v38 }
0x4988   :  { %28913 = vmatpush3.bf16.msra.mxu1 %v31987_v59 }
0x4989   :  { %v18126_v27 = vand.u32 4294901760, %v18125_v31  ;;  %28920 = vmatprep.subr.bf16.mxu1 %v29818_v21 }
0x498b   :  { %26826 = vmatmul.mubr.f32.vlgmr.msra.gmra.mrb[158].mxu1 %v18124_v38  ;;  %26793 = vmatmul.mubr.f32.vlgmr.msra.gmra.mrb[164].mxu0 %v18126_v27 }
0x498c   :  { %28904 = vmatpush3.bf16.msra.mxu0 %v32012_v1  ;;  %28922 = vmatpush3.bf16.msra.mxu1 %v31980_v55 }
0x498d   :  { %28905 = vmatprep.subr.bf16.mxu0 %v29818_v21  ;;  %28923 = vmatprep.subr.bf16.mxu1 %v29818_v21 }
0x498e   :  { %26814 = vmatprep.mubr.msk.f32.mxu0 %vm29819_vm12, %v32871_v60  ;;  %26847 = vmatprep.mubr.msk.f32.mxu1 %vm29819_vm12, %v32871_v60 }
0x4990   :  { %28907 = vmatpush3.bf16.msra.mxu0 %v32022_v15  ;;  %28925 = vmatpush3.bf16.msra.mxu1 %v31987_v59 }
0x4991   :  { %28914 = vmatprep.subr.bf16.mxu0 %v29818_v21  ;;  %28932 = vmatprep.subr.bf16.mxu1 %v29818_v21 }
0x4993   :  { %26815 = vmatmul.mubr.f32.vlgmr.msra.gmra.mrb[166].mxu0 %v18123_v26  ;;  %26848 = vmatmul.mubr.f32.vlgmr.msra.gmra.mrb[160].mxu1 %v18122_v51 }
0x4994   :  { %28916 = vmatpush3.bf16.msra.mxu0 %v32046_v58  ;;  %26836 = vmatprep.mubr.msk.f32.mxu0 %vm29819_vm12, %v32871_v60 }
0x4995   :  { %28917 = vmatprep.subr.bf16.mxu0 %v29818_v21  ;;  %28934 = vmatpush3.bf16.msra.mxu1 %v31999_v12 }
0x4996   :  { %28935 = vmatprep.subr.bf16.mxu1 %v29818_v21  ;;  %26869 = vmatprep.mubr.msk.f32.mxu1 %vm29819_vm12, %v32871_v60 }
0x4998   :  { %28919 = vmatpush3.bf16.msra.mxu0 %v32053_v6 }
0x4999   :  { %28937 = vmatpush3.bf16.msra.mxu1 %v32006_v44  ;;  %28926 = vmatprep.subr.bf16.mxu0 %v29818_v21 }
0x499a   :  { %28944 = vmatprep.subr.bf16.mxu1 %v29818_v21 }
0x499b   :  { %26837 = vmatmul.mubr.f32.vlgmr.msra.gmra.mrb[168].mxu0 %v18122_v51 }
0x499c   :  { %28928 = vmatpush3.bf16.msra.mxu0 %v31980_v55  ;;  %26858 = vmatprep.mubr.msk.f32.mxu0 %vm29819_vm12, %v32871_v60 }
0x499d   :  { %28929 = vmatprep.subr.bf16.mxu0 %v29818_v21 }
0x49a0   :  { %28931 = vmatpush3.bf16.msra.mxu0 %v31987_v59 }
0x49a1   :  { %28938 = vmatprep.subr.bf16.mxu0 %v29818_v21 }
0x4a56   :  { %v18219_v4 = vpop.f32.mrb[156].mxu1 }
0x4a57   :  { %v26805_v61 = vpop.f32.mrb[157].mxu1 }
0x4a5e   :  { %v18376_v49 = vpop.f32.mrb[158].mxu1  ;;  %v18128_v13 = vpop.f32.mrb[164].mxu0 }
0x4a5f   :  { %v18220_v32 = vadd.f32 %v18219_v4, %v18128_v13  ;;  %v26827_v54 = vpop.f32.mrb[159].mxu1  ;;  %v26794_v39 = vpop.f32.mrb[165].mxu0 }
0x4a66   :  { %v18299_v24 = vpop.f32.mrb[166].mxu0  ;;  %v18534_v33 = vpop.f32.mrb[160].mxu1 }
0x4a67   :  { %v18300_v0 = vadd.f32 %v18299_v24, %v18220_v32  ;;  %v26816_v48 = vpop.f32.mrb[167].mxu0  ;;  %v26849_v19 = vpop.f32.mrb[161].mxu1 }
0x4a69   :  { %v18377_v37 = vadd.f32 %v18376_v49, %v18300_v0  ;;  %v18563_v49 = vld [vmem:[#allocation2 + $0x12] sm:$0x3] }
0x4a6e   :  { %v18459_v14 = vpop.f32.mrb[168].mxu0 }
0x4a6f   :  { %v18460_v18 = vadd.f32 %v18459_v14, %v18377_v37  ;;  %v26838_v20 = vpop.f32.mrb[169].mxu0 }
0x4a71   :  { %v18535_v22 = vadd.f32 %v18534_v33, %v18460_v18 }
0x4a73   :  { %v18538_v35 = vadd.f32 %v18535_v22, %v18047_v16 }
0x4a75   :  { %29606 = vtanh.f32 %v18538_v35  ;;  %v22749_v30 = vmul.f32 -1.442695, %v18538_v35 }
0x4a77   :  { %29608 = vpow2.f32 %v22749_v30 }
0x4a7f   :  { %v29607_v25 = vpop.eup %29606 }
0x4a80   :  { %18548 = vrot.lane.b32.xlu0 %v29607_v25, %s29820_s9 }
0x4a81   :  { %v29609_v40 = vpop.eup %29608 }
0x4a82   :  { %v18542_v50 = vadd.f32 1.0, %v29609_v40 }
0x4a84   :  { %29610 = vrcp.f32 %v18542_v50 }
0x4a8e   :  { %v29611_v52 = vpop.eup %29610 }
0x4a8f   :  { %v18546_v57 = vmul.f32 %v29611_v52, %v32426_v9 }
0x4af2   :  { %v18549_v41 = vpop.permute.xlu0 %18548 }
0x4af3   :  { %v18551_v17 = vmul.f32 %v29611_v52, %v18549_v41 }
0x4af5   :  { %18553 = vrot.lane.b32.xlu1 %v18551_v17, %s29821_s22 }
0x4b67   :  { %v18554_v11 = vpop.permute.xlu1 %18553 }
0x4b68   :  { %v32471_v28 = vadd.f32 %v18554_v11, %v18546_v57 }
0x4b6a   :  { %29612 = vtanh.f32 %v32471_v28 }
0x4b74   :  { %v29613_v29 = vpop.eup %29612 }
0x4b75   :  { %18559 = vrot.lane.b32.xlu0 %v29613_v29, %s29820_s9 }
0x4be7   :  { %v18560_v5 = vpop.permute.xlu0 %18559 }
0x4be8   :  { %v18562_v2 = vmul.f32 %v29611_v52, %v18560_v5 }
0x4bea   :  { %18565 = vrot.lane.b32.xlu1 %v18562_v2, %s29821_s22 }
0x4c5c   :  { %v18566_v23 = vpop.permute.xlu1 %18565 }
0x4c5d   :  { %v18567_v46 = vsel %vm780_vm3, %v18566_v23, 0 }
0x4c5e   :  { %v18638_v56 = vand.u32 4294901760, %v18567_v46 }
0x4c60   :  { %v18639_v3 = vsub.f32 %v18567_v46, %v18638_v56  ;;  %26870 = vmatmul.mubr.f32.vlgmr.msra.gmra.mrb[162].mxu1 %v18638_v56 }
0x4c61   :  { %28946 = vmatpush3.bf16.msra.mxu1 %v31980_v55  ;;  %26891 = vmatprep.mubr.msk.f32.mxu1 %vm29819_vm12, %v32871_v60 }
0x4c62   :  { %v18640_v45 = vand.u32 4294901760, %v18639_v3  ;;  %28947 = vmatprep.subr.bf16.mxu1 %v29818_v21 }
0x4c64   :  { %v18641_v47 = vsub.f32 %v18639_v3, %v18640_v45 }
0x4c65   :  { %28949 = vmatpush3.bf16.msra.mxu1 %v31987_v59 }
0x4c66   :  { %v18642_v36 = vand.u32 4294901760, %v18641_v47  ;;  %28956 = vmatprep.subr.bf16.mxu1 %v29818_v21 }
0x4c68   :  { %26892 = vmatmul.mubr.f32.vlgmr.msra.gmra.mrb[164].mxu1 %v18640_v45  ;;  %26859 = vmatmul.mubr.f32.vlgmr.msra.gmra.mrb[170].mxu0 %v18642_v36 }
0x4c69   :  { %28940 = vmatpush3.bf16.msra.mxu0 %v32012_v1  ;;  %28958 = vmatpush3.bf16.msra.mxu1 %v31980_v55 }
0x4c6a   :  { %28941 = vmatprep.subr.bf16.mxu0 %v29818_v21  ;;  %28959 = vmatprep.subr.bf16.mxu1 %v29818_v21 }
0x4c6b   :  { %26880 = vmatprep.mubr.msk.f32.mxu0 %vm29819_vm12, %v32871_v60  ;;  %26913 = vmatprep.mubr.msk.f32.mxu1 %vm29819_vm12, %v32871_v60 }
0x4c6d   :  { %28943 = vmatpush3.bf16.msra.mxu0 %v32022_v15  ;;  %28961 = vmatpush3.bf16.msra.mxu1 %v31987_v59 }
0x4c6e   :  { %28950 = vmatprep.subr.bf16.mxu0 %v29818_v21  ;;  %28968 = vmatprep.subr.bf16.mxu1 %v29818_v21 }
0x4c70   :  { %26881 = vmatmul.mubr.f32.vlgmr.msra.gmra.mrb[172].mxu0 %v18639_v3  ;;  %26914 = vmatmul.mubr.f32.vlgmr.msra.gmra.mrb[166].mxu1 %v18638_v56 }
0x4c71   :  { %28952 = vmatpush3.bf16.msra.mxu0 %v32046_v58  ;;  %26902 = vmatprep.mubr.msk.f32.mxu0 %vm29819_vm12, %v32871_v60 }
0x4c72   :  { %28953 = vmatprep.subr.bf16.mxu0 %v29818_v21  ;;  %28970 = vmatpush3.bf16.msra.mxu1 %v31999_v12 }
0x4c73   :  { %28971 = vmatprep.subr.bf16.mxu1 %v29818_v21  ;;  %26935 = vmatprep.mubr.msk.f32.mxu1 %vm29819_vm12, %v32871_v60 }
0x4c75   :  { %28955 = vmatpush3.bf16.msra.mxu0 %v32053_v6 }
0x4c76   :  { %28973 = vmatpush3.bf16.msra.mxu1 %v32006_v44  ;;  %28962 = vmatprep.subr.bf16.mxu0 %v29818_v21 }
0x4c77   :  { %28980 = vmatprep.subr.bf16.mxu1 %v29818_v21 }
0x4c78   :  { %26903 = vmatmul.mubr.f32.vlgmr.msra.gmra.mrb[174].mxu0 %v18638_v56 }
0x4c79   :  { %28964 = vmatpush3.bf16.msra.mxu0 %v31980_v55  ;;  %26924 = vmatprep.mubr.msk.f32.mxu0 %vm29819_vm12, %v32871_v60 }
0x4c7a   :  { %28965 = vmatprep.subr.bf16.mxu0 %v29818_v21 }
0x4c7d   :  { %28967 = vmatpush3.bf16.msra.mxu0 %v31987_v59 }
0x4c7e   :  { %28974 = vmatprep.subr.bf16.mxu0 %v29818_v21 }
0x4d33   :  { %v18735_v63 = vpop.f32.mrb[162].mxu1 }
0x4d34   :  { %v26871_v7 = vpop.f32.mrb[163].mxu1 }
0x4d3b   :  { %v18892_v10 = vpop.f32.mrb[164].mxu1  ;;  %v18644_v43 = vpop.f32.mrb[170].mxu0 }
0x4d3c   :  { %v18736_v9 = vadd.f32 %v18735_v63, %v18644_v43  ;;  %v26893_v62 = vpop.f32.mrb[165].mxu1  ;;  %v26860_v53 = vpop.f32.mrb[171].mxu0 }
0x4d43   :  { %v18815_v42 = vpop.f32.mrb[172].mxu0  ;;  %v19050_v34 = vpop.f32.mrb[166].mxu1 }
0x4d44   :  { %v18816_v8 = vadd.f32 %v18815_v42, %v18736_v9  ;;  %v26882_v51 = vpop.f32.mrb[173].mxu0  ;;  %v26915_v26 = vpop.f32.mrb[167].mxu1 }
0x4d46   :  { %v18893_v38 = vadd.f32 %v18892_v10, %v18816_v8  ;;  %v19079_v10 = vld [vmem:[#allocation2 + $0x14] sm:$0x3] }
0x4d4b   :  { %v18975_v31 = vpop.f32.mrb[174].mxu0 }
0x4d4c   :  { %v18976_v27 = vadd.f32 %v18975_v31, %v18893_v38  ;;  %v26904_v4 = vpop.f32.mrb[175].mxu0 }
0x4d4e   :  { %v19051_v61 = vadd.f32 %v19050_v34, %v18976_v27 }
0x4d50   :  { %v19054_v13 = vadd.f32 %v19051_v61, %v18563_v49 }
0x4d52   :  { %29614 = vtanh.f32 %v19054_v13  ;;  %v22750_v54 = vmul.f32 -1.442695, %v19054_v13 }
0x4d54   :  { %29616 = vpow2.f32 %v22750_v54 }
0x4d5c   :  { %v29615_v32 = vpop.eup %29614 }
0x4d5d   :  { %19064 = vrot.lane.b32.xlu0 %v29615_v32, %s29820_s9 }
0x4d5e   :  { %v29617_v39 = vpop.eup %29616 }
0x4d5f   :  { %v19058_v24 = vadd.f32 1.0, %v29617_v39 }
0x4d61   :  { %29618 = vrcp.f32 %v19058_v24 }
0x4d6b   :  { %v29619_v33 = vpop.eup %29618 }
0x4d6c   :  { %v19062_v19 = vmul.f32 %v29619_v33, %v32471_v28 }
0x4dcf   :  { %v19065_v0 = vpop.permute.xlu0 %19064 }
0x4dd0   :  { %v19067_v48 = vmul.f32 %v29619_v33, %v19065_v0 }
0x4dd2   :  { %19069 = vrot.lane.b32.xlu1 %v19067_v48, %s29821_s22 }
0x4e44   :  { %v19070_v37 = vpop.permute.xlu1 %19069 }
0x4e45   :  { %v32516_v14 = vadd.f32 %v19070_v37, %v19062_v19 }
0x4e47   :  { %29620 = vtanh.f32 %v32516_v14 }
0x4e51   :  { %v29621_v18 = vpop.eup %29620 }
0x4e52   :  { %19075 = vrot.lane.b32.xlu0 %v29621_v18, %s29820_s9 }
0x4ec4   :  { %v19076_v20 = vpop.permute.xlu0 %19075 }
0x4ec5   :  { %v19078_v22 = vmul.f32 %v29619_v33, %v19076_v20 }
0x4ec7   :  { %19081 = vrot.lane.b32.xlu1 %v19078_v22, %s29821_s22 }
0x4f39   :  { %v19082_v16 = vpop.permute.xlu1 %19081 }
0x4f3a   :  { %v19083_v35 = vsel %vm780_vm3, %v19082_v16, 0 }
0x4f3b   :  { %v19154_v25 = vand.u32 4294901760, %v19083_v35 }
0x4f3d   :  { %v19155_v30 = vsub.f32 %v19083_v35, %v19154_v25  ;;  %26936 = vmatmul.mubr.f32.vlgmr.msra.gmra.mrb[168].mxu1 %v19154_v25 }
0x4f3e   :  { %28982 = vmatpush3.bf16.msra.mxu1 %v31980_v55  ;;  %26957 = vmatprep.mubr.msk.f32.mxu1 %vm29819_vm12, %v32871_v60 }
0x4f3f   :  { %v19156_v40 = vand.u32 4294901760, %v19155_v30  ;;  %28983 = vmatprep.subr.bf16.mxu1 %v29818_v21 }
0x4f41   :  { %v19157_v50 = vsub.f32 %v19155_v30, %v19156_v40 }
0x4f42   :  { %28985 = vmatpush3.bf16.msra.mxu1 %v31987_v59 }
0x4f43   :  { %v19158_v52 = vand.u32 4294901760, %v19157_v50  ;;  %28992 = vmatprep.subr.bf16.mxu1 %v29818_v21 }
0x4f45   :  { %26958 = vmatmul.mubr.f32.vlgmr.msra.gmra.mrb[170].mxu1 %v19156_v40  ;;  %26925 = vmatmul.mubr.f32.vlgmr.msra.gmra.mrb[176].mxu0 %v19158_v52 }
0x4f46   :  { %28976 = vmatpush3.bf16.msra.mxu0 %v32012_v1  ;;  %28994 = vmatpush3.bf16.msra.mxu1 %v31980_v55 }
0x4f47   :  { %28977 = vmatprep.subr.bf16.mxu0 %v29818_v21  ;;  %28995 = vmatprep.subr.bf16.mxu1 %v29818_v21 }
0x4f48   :  { %26946 = vmatprep.mubr.msk.f32.mxu0 %vm29819_vm12, %v32871_v60  ;;  %26979 = vmatprep.mubr.msk.f32.mxu1 %vm29819_vm12, %v32871_v60 }
0x4f4a   :  { %28979 = vmatpush3.bf16.msra.mxu0 %v32022_v15  ;;  %28997 = vmatpush3.bf16.msra.mxu1 %v31987_v59 }
0x4f4b   :  { %28986 = vmatprep.subr.bf16.mxu0 %v29818_v21  ;;  %29004 = vmatprep.subr.bf16.mxu1 %v29818_v21 }
0x4f4d   :  { %26947 = vmatmul.mubr.f32.vlgmr.msra.gmra.mrb[178].mxu0 %v19155_v30  ;;  %26980 = vmatmul.mubr.f32.vlgmr.msra.gmra.mrb[172].mxu1 %v19154_v25 }
0x4f4e   :  { %28988 = vmatpush3.bf16.msra.mxu0 %v32046_v58  ;;  %26968 = vmatprep.mubr.msk.f32.mxu0 %vm29819_vm12, %v32871_v60 }
0x4f4f   :  { %28989 = vmatprep.subr.bf16.mxu0 %v29818_v21  ;;  %29006 = vmatpush3.bf16.msra.mxu1 %v31999_v12 }
0x4f50   :  { %29007 = vmatprep.subr.bf16.mxu1 %v29818_v21  ;;  %27001 = vmatprep.mubr.msk.f32.mxu1 %vm29819_vm12, %v32871_v60 }
0x4f52   :  { %28991 = vmatpush3.bf16.msra.mxu0 %v32053_v6 }
0x4f53   :  { %29009 = vmatpush3.bf16.msra.mxu1 %v32006_v44  ;;  %28998 = vmatprep.subr.bf16.mxu0 %v29818_v21 }
0x4f54   :  { %29016 = vmatprep.subr.bf16.mxu1 %v29818_v21 }
0x4f55   :  { %26969 = vmatmul.mubr.f32.vlgmr.msra.gmra.mrb[180].mxu0 %v19154_v25 }
0x4f56   :  { %29000 = vmatpush3.bf16.msra.mxu0 %v31980_v55  ;;  %26990 = vmatprep.mubr.msk.f32.mxu0 %vm29819_vm12, %v32871_v60 }
0x4f57   :  { %29001 = vmatprep.subr.bf16.mxu0 %v29818_v21 }
0x4f5a   :  { %29003 = vmatpush3.bf16.msra.mxu0 %v31987_v59 }
0x4f5b   :  { %29010 = vmatprep.subr.bf16.mxu0 %v29818_v21 }
0x5010   :  { %v19251_v41 = vpop.f32.mrb[168].mxu1 }
0x5011   :  { %v26937_v17 = vpop.f32.mrb[169].mxu1 }
0x5018   :  { %v19408_v57 = vpop.f32.mrb[170].mxu1  ;;  %v19160_v11 = vpop.f32.mrb[176].mxu0 }
0x5019   :  { %v19252_v28 = vadd.f32 %v19251_v41, %v19160_v11  ;;  %v26959_v29 = vpop.f32.mrb[171].mxu1  ;;  %v26926_v5 = vpop.f32.mrb[177].mxu0 }
0x5020   :  { %v19331_v2 = vpop.f32.mrb[178].mxu0  ;;  %v19566_v23 = vpop.f32.mrb[172].mxu1 }
0x5021   :  { %v19332_v46 = vadd.f32 %v19331_v2, %v19252_v28  ;;  %v26948_v56 = vpop.f32.mrb[179].mxu0  ;;  %v26981_v3 = vpop.f32.mrb[173].mxu1 }
0x5023   :  { %v19409_v45 = vadd.f32 %v19408_v57, %v19332_v46  ;;  %v19595_v57 = vld [vmem:[#allocation2 + $0x16] sm:$0x3] }
0x5028   :  { %v19491_v47 = vpop.f32.mrb[180].mxu0 }
0x5029   :  { %v19492_v36 = vadd.f32 %v19491_v47, %v19409_v45  ;;  %v26970_v63 = vpop.f32.mrb[181].mxu0 }
0x502b   :  { %v19567_v7 = vadd.f32 %v19566_v23, %v19492_v36 }
0x502d   :  { %v19570_v43 = vadd.f32 %v19567_v7, %v19079_v10 }
0x502f   :  { %29622 = vtanh.f32 %v19570_v43  ;;  %v22751_v62 = vmul.f32 -1.442695, %v19570_v43 }
0x5031   :  { %29624 = vpow2.f32 %v22751_v62 }
0x5039   :  { %v29623_v9 = vpop.eup %29622 }
0x503a   :  { %19580 = vrot.lane.b32.xlu0 %v29623_v9, %s29820_s9 }
0x503b   :  { %v29625_v53 = vpop.eup %29624 }
0x503c   :  { %v19574_v42 = vadd.f32 1.0, %v29625_v53 }
0x503e   :  { %29626 = vrcp.f32 %v19574_v42 }
0x5048   :  { %v29627_v34 = vpop.eup %29626 }
0x5049   :  { %v19578_v26 = vmul.f32 %v29627_v34, %v32516_v14 }
0x50ac   :  { %v19581_v8 = vpop.permute.xlu0 %19580 }
0x50ad   :  { %v19583_v51 = vmul.f32 %v29627_v34, %v19581_v8 }
0x50af   :  { %19585 = vrot.lane.b32.xlu1 %v19583_v51, %s29821_s22 }
0x5121   :  { %v19586_v38 = vpop.permute.xlu1 %19585 }
0x5122   :  { %v32561_v31 = vadd.f32 %v19586_v38, %v19578_v26 }
0x5124   :  { %29628 = vtanh.f32 %v32561_v31 }
0x512e   :  { %v29629_v27 = vpop.eup %29628 }
0x512f   :  { %19591 = vrot.lane.b32.xlu0 %v29629_v27, %s29820_s9 }
0x51a1   :  { %v19592_v4 = vpop.permute.xlu0 %19591 }
0x51a2   :  { %v19594_v61 = vmul.f32 %v29627_v34, %v19592_v4 }
0x51a4   :  { %19597 = vrot.lane.b32.xlu1 %v19594_v61, %s29821_s22 }
0x5216   :  { %v19598_v49 = vpop.permute.xlu1 %19597 }
0x5217   :  { %v19599_v13 = vsel %vm780_vm3, %v19598_v49, 0 }
0x5218   :  { %v19670_v32 = vand.u32 4294901760, %v19599_v13 }
0x521a   :  { %v19671_v54 = vsub.f32 %v19599_v13, %v19670_v32  ;;  %27002 = vmatmul.mubr.f32.vlgmr.msra.gmra.mrb[174].mxu1 %v19670_v32 }
0x521b   :  { %29018 = vmatpush3.bf16.msra.mxu1 %v31980_v55  ;;  %27023 = vmatprep.mubr.msk.f32.mxu1 %vm29819_vm12, %v32871_v60 }
0x521c   :  { %v19672_v39 = vand.u32 4294901760, %v19671_v54  ;;  %29019 = vmatprep.subr.bf16.mxu1 %v29818_v21 }
0x521e   :  { %v19673_v24 = vsub.f32 %v19671_v54, %v19672_v39 }
0x521f   :  { %29021 = vmatpush3.bf16.msra.mxu1 %v31987_v59 }
0x5220   :  { %v19674_v33 = vand.u32 4294901760, %v19673_v24  ;;  %29028 = vmatprep.subr.bf16.mxu1 %v29818_v21 }
0x5222   :  { %27024 = vmatmul.mubr.f32.vlgmr.msra.gmra.mrb[176].mxu1 %v19672_v39  ;;  %26991 = vmatmul.mubr.f32.vlgmr.msra.gmra.mrb[182].mxu0 %v19674_v33 }
0x5223   :  { %29012 = vmatpush3.bf16.msra.mxu0 %v32012_v1  ;;  %29030 = vmatpush3.bf16.msra.mxu1 %v31980_v55 }
0x5224   :  { %29013 = vmatprep.subr.bf16.mxu0 %v29818_v21  ;;  %29031 = vmatprep.subr.bf16.mxu1 %v29818_v21 }
0x5225   :  { %27012 = vmatprep.mubr.msk.f32.mxu0 %vm29819_vm12, %v32871_v60  ;;  %27045 = vmatprep.mubr.msk.f32.mxu1 %vm29819_vm12, %v32871_v60 }
0x5227   :  { %29015 = vmatpush3.bf16.msra.mxu0 %v32022_v15  ;;  %29033 = vmatpush3.bf16.msra.mxu1 %v31987_v59 }
0x5228   :  { %29022 = vmatprep.subr.bf16.mxu0 %v29818_v21  ;;  %29040 = vmatprep.subr.bf16.mxu1 %v29818_v21 }
0x522a   :  { %27013 = vmatmul.mubr.f32.vlgmr.msra.gmra.mrb[184].mxu0 %v19671_v54  ;;  %27046 = vmatmul.mubr.f32.vlgmr.msra.gmra.mrb[178].mxu1 %v19670_v32 }
0x522b   :  { %29024 = vmatpush3.bf16.msra.mxu0 %v32046_v58  ;;  %27034 = vmatprep.mubr.msk.f32.mxu0 %vm29819_vm12, %v32871_v60 }
0x522c   :  { %29025 = vmatprep.subr.bf16.mxu0 %v29818_v21  ;;  %29042 = vmatpush3.bf16.msra.mxu1 %v31999_v12 }
0x522d   :  { %29043 = vmatprep.subr.bf16.mxu1 %v29818_v21  ;;  %27067 = vmatprep.mubr.msk.f32.mxu1 %vm29819_vm12, %v32871_v60 }
0x522f   :  { %29027 = vmatpush3.bf16.msra.mxu0 %v32053_v6 }
0x5230   :  { %29045 = vmatpush3.bf16.msra.mxu1 %v32006_v44  ;;  %29034 = vmatprep.subr.bf16.mxu0 %v29818_v21 }
0x5231   :  { %29052 = vmatprep.subr.bf16.mxu1 %v29818_v21 }
0x5232   :  { %27035 = vmatmul.mubr.f32.vlgmr.msra.gmra.mrb[186].mxu0 %v19670_v32 }
0x5233   :  { %29036 = vmatpush3.bf16.msra.mxu0 %v31980_v55  ;;  %27056 = vmatprep.mubr.msk.f32.mxu0 %vm29819_vm12, %v32871_v60 }
0x5234   :  { %29037 = vmatprep.subr.bf16.mxu0 %v29818_v21 }
0x5237   :  { %29039 = vmatpush3.bf16.msra.mxu0 %v31987_v59 }
0x5238   :  { %29046 = vmatprep.subr.bf16.mxu0 %v29818_v21 }
0x52ed   :  { %v19767_v0 = vpop.f32.mrb[174].mxu1 }
0x52ee   :  { %v27003_v48 = vpop.f32.mrb[175].mxu1 }
0x52f5   :  { %v19924_v19 = vpop.f32.mrb[176].mxu1  ;;  %v19676_v37 = vpop.f32.mrb[182].mxu0 }
0x52f6   :  { %v19768_v14 = vadd.f32 %v19767_v0, %v19676_v37  ;;  %v27025_v18 = vpop.f32.mrb[177].mxu1  ;;  %v26992_v20 = vpop.f32.mrb[183].mxu0 }
0x52fd   :  { %v19847_v22 = vpop.f32.mrb[184].mxu0  ;;  %v20082_v16 = vpop.f32.mrb[178].mxu1 }
0x52fe   :  { %v19848_v35 = vadd.f32 %v19847_v22, %v19768_v14  ;;  %v27014_v25 = vpop.f32.mrb[185].mxu0  ;;  %v27047_v30 = vpop.f32.mrb[179].mxu1 }
0x5300   :  { %v19925_v40 = vadd.f32 %v19924_v19, %v19848_v35  ;;  %v20111_v19 = vld [vmem:[#allocation2 + $0x18] sm:$0x3] }
0x5305   :  { %v20007_v50 = vpop.f32.mrb[186].mxu0 }
0x5306   :  { %v20008_v52 = vadd.f32 %v20007_v50, %v19925_v40  ;;  %v27036_v41 = vpop.f32.mrb[187].mxu0 }
0x5308   :  { %v20083_v17 = vadd.f32 %v20082_v16, %v20008_v52 }
0x530a   :  { %v20086_v11 = vadd.f32 %v20083_v17, %v19595_v57 }
0x530c   :  { %29630 = vtanh.f32 %v20086_v11  ;;  %v22752_v29 = vmul.f32 -1.442695, %v20086_v11 }
0x530e   :  { %29632 = vpow2.f32 %v22752_v29 }
0x5316   :  { %v29631_v28 = vpop.eup %29630 }
0x5317   :  { %20096 = vrot.lane.b32.xlu0 %v29631_v28, %s29820_s9 }
0x5318   :  { %v29633_v5 = vpop.eup %29632 }
0x5319   :  { %v20090_v2 = vadd.f32 1.0, %v29633_v5 }
0x531b   :  { %29634 = vrcp.f32 %v20090_v2 }
0x5325   :  { %v29635_v23 = vpop.eup %29634 }
0x5326   :  { %v20094_v3 = vmul.f32 %v29635_v23, %v32561_v31 }
0x5389   :  { %v20097_v46 = vpop.permute.xlu0 %20096 }
0x538a   :  { %v20099_v56 = vmul.f32 %v29635_v23, %v20097_v46 }
0x538c   :  { %20101 = vrot.lane.b32.xlu1 %v20099_v56, %s29821_s22 }
0x53fe   :  { %v20102_v45 = vpop.permute.xlu1 %20101 }
0x53ff   :  { %v32606_v47 = vadd.f32 %v20102_v45, %v20094_v3 }
0x5401   :  { %29636 = vtanh.f32 %v32606_v47 }
0x540b   :  { %v29637_v36 = vpop.eup %29636 }
0x540c   :  { %20107 = vrot.lane.b32.xlu0 %v29637_v36, %s29820_s9 }
0x547e   :  { %v20108_v63 = vpop.permute.xlu0 %20107 }
0x547f   :  { %v20110_v7 = vmul.f32 %v29635_v23, %v20108_v63 }
0x5481   :  { %20113 = vrot.lane.b32.xlu1 %v20110_v7, %s29821_s22 }
0x54f3   :  { %v20114_v10 = vpop.permute.xlu1 %20113 }
0x54f4   :  { %v20115_v43 = vsel %vm780_vm3, %v20114_v10, 0 }
0x54f5   :  { %v20186_v9 = vand.u32 4294901760, %v20115_v43 }
0x54f7   :  { %v20187_v62 = vsub.f32 %v20115_v43, %v20186_v9  ;;  %27068 = vmatmul.mubr.f32.vlgmr.msra.gmra.mrb[180].mxu1 %v20186_v9 }
0x54f8   :  { %29054 = vmatpush3.bf16.msra.mxu1 %v31980_v55  ;;  %27089 = vmatprep.mubr.msk.f32.mxu1 %vm29819_vm12, %v32871_v60 }
0x54f9   :  { %v20188_v53 = vand.u32 4294901760, %v20187_v62  ;;  %29055 = vmatprep.subr.bf16.mxu1 %v29818_v21 }
0x54fb   :  { %v20189_v42 = vsub.f32 %v20187_v62, %v20188_v53 }
0x54fc   :  { %29057 = vmatpush3.bf16.msra.mxu1 %v31987_v59 }
0x54fd   :  { %v20190_v34 = vand.u32 4294901760, %v20189_v42  ;;  %29064 = vmatprep.subr.bf16.mxu1 %v29818_v21 }
0x54ff   :  { %27090 = vmatmul.mubr.f32.vlgmr.msra.gmra.mrb[182].mxu1 %v20188_v53  ;;  %27057 = vmatmul.mubr.f32.vlgmr.msra.gmra.mrb[188].mxu0 %v20190_v34 }
0x5500   :  { %29048 = vmatpush3.bf16.msra.mxu0 %v32012_v1  ;;  %29066 = vmatpush3.bf16.msra.mxu1 %v31980_v55 }
0x5501   :  { %29049 = vmatprep.subr.bf16.mxu0 %v29818_v21  ;;  %29067 = vmatprep.subr.bf16.mxu1 %v29818_v21 }
0x5502   :  { %27078 = vmatprep.mubr.msk.f32.mxu0 %vm29819_vm12, %v32871_v60  ;;  %27111 = vmatprep.mubr.msk.f32.mxu1 %vm29819_vm12, %v32871_v60 }
0x5504   :  { %29051 = vmatpush3.bf16.msra.mxu0 %v32022_v15  ;;  %29069 = vmatpush3.bf16.msra.mxu1 %v31987_v59 }
0x5505   :  { %29058 = vmatprep.subr.bf16.mxu0 %v29818_v21  ;;  %29076 = vmatprep.subr.bf16.mxu1 %v29818_v21 }
0x5507   :  { %27079 = vmatmul.mubr.f32.vlgmr.msra.gmra.mrb[190].mxu0 %v20187_v62  ;;  %27112 = vmatmul.mubr.f32.vlgmr.msra.gmra.mrb[184].mxu1 %v20186_v9 }
0x5508   :  { %29060 = vmatpush3.bf16.msra.mxu0 %v32046_v58  ;;  %27100 = vmatprep.mubr.msk.f32.mxu0 %vm29819_vm12, %v32871_v60 }
0x5509   :  { %29061 = vmatprep.subr.bf16.mxu0 %v29818_v21  ;;  %29078 = vmatpush3.bf16.msra.mxu1 %v31999_v12 }
0x550a   :  { %29079 = vmatprep.subr.bf16.mxu1 %v29818_v21  ;;  %27133 = vmatprep.mubr.msk.f32.mxu1 %vm29819_vm12, %v32871_v60 }
0x550c   :  { %29063 = vmatpush3.bf16.msra.mxu0 %v32053_v6 }
0x550d   :  { %29081 = vmatpush3.bf16.msra.mxu1 %v32006_v44  ;;  %29070 = vmatprep.subr.bf16.mxu0 %v29818_v21 }
0x550e   :  { %29088 = vmatprep.subr.bf16.mxu1 %v29818_v21 }
0x550f   :  { %27101 = vmatmul.mubr.f32.vlgmr.msra.gmra.mrb[192].mxu0 %v20186_v9 }
0x5510   :  { %29072 = vmatpush3.bf16.msra.mxu0 %v31980_v55  ;;  %27122 = vmatprep.mubr.msk.f32.mxu0 %vm29819_vm12, %v32871_v60 }
0x5511   :  { %29073 = vmatprep.subr.bf16.mxu0 %v29818_v21 }
0x5514   :  { %29075 = vmatpush3.bf16.msra.mxu0 %v31987_v59 }
0x5515   :  { %29082 = vmatprep.subr.bf16.mxu0 %v29818_v21 }
0x55ca   :  { %v20283_v8 = vpop.f32.mrb[180].mxu1 }
0x55cb   :  { %v27069_v51 = vpop.f32.mrb[181].mxu1 }
0x55d2   :  { %v20440_v26 = vpop.f32.mrb[182].mxu1  ;;  %v20192_v38 = vpop.f32.mrb[188].mxu0 }
0x55d3   :  { %v20284_v31 = vadd.f32 %v20283_v8, %v20192_v38  ;;  %v27091_v27 = vpop.f32.mrb[183].mxu1  ;;  %v27058_v4 = vpop.f32.mrb[189].mxu0 }
0x55da   :  { %v20363_v61 = vpop.f32.mrb[190].mxu0  ;;  %v20598_v49 = vpop.f32.mrb[184].mxu1 }
0x55db   :  { %v20364_v13 = vadd.f32 %v20363_v61, %v20284_v31  ;;  %v27080_v32 = vpop.f32.mrb[191].mxu0  ;;  %v27113_v54 = vpop.f32.mrb[185].mxu1 }
0x55dd   :  { %v20441_v39 = vadd.f32 %v20440_v26, %v20364_v13  ;;  %v20627_v26 = vld [vmem:[#allocation2 + $0x1a] sm:$0x3] }
0x55e2   :  { %v20523_v24 = vpop.f32.mrb[192].mxu0 }
0x55e3   :  { %v20524_v33 = vadd.f32 %v20523_v24, %v20441_v39  ;;  %v27102_v0 = vpop.f32.mrb[193].mxu0 }
0x55e5   :  { %v20599_v48 = vadd.f32 %v20598_v49, %v20524_v33 }
0x55e7   :  { %v20602_v37 = vadd.f32 %v20599_v48, %v20111_v19 }
0x55e9   :  { %29638 = vtanh.f32 %v20602_v37  ;;  %v22753_v18 = vmul.f32 -1.442695, %v20602_v37 }
0x55eb   :  { %29640 = vpow2.f32 %v22753_v18 }
0x55f3   :  { %v29639_v14 = vpop.eup %29638 }
0x55f4   :  { %20612 = vrot.lane.b32.xlu0 %v29639_v14, %s29820_s9 }
0x55f5   :  { %v29641_v20 = vpop.eup %29640 }
0x55f6   :  { %v20606_v22 = vadd.f32 1.0, %v29641_v20 }
0x55f8   :  { %29642 = vrcp.f32 %v20606_v22 }
0x5602   :  { %v29643_v16 = vpop.eup %29642 }
0x5603   :  { %v20610_v30 = vmul.f32 %v29643_v16, %v32606_v47 }
0x5666   :  { %v20613_v35 = vpop.permute.xlu0 %20612 }
0x5667   :  { %v20615_v25 = vmul.f32 %v29643_v16, %v20613_v35 }
0x5669   :  { %20617 = vrot.lane.b32.xlu1 %v20615_v25, %s29821_s22 }
0x56db   :  { %v20618_v40 = vpop.permute.xlu1 %20617 }
0x56dc   :  { %v32651_v50 = vadd.f32 %v20618_v40, %v20610_v30 }
0x56de   :  { %29644 = vtanh.f32 %v32651_v50 }
0x56e8   :  { %v29645_v52 = vpop.eup %29644 }
0x56e9   :  { %20623 = vrot.lane.b32.xlu0 %v29645_v52, %s29820_s9 }
0x575b   :  { %v20624_v41 = vpop.permute.xlu0 %20623 }
0x575c   :  { %v20626_v17 = vmul.f32 %v29643_v16, %v20624_v41 }
0x575e   :  { %20629 = vrot.lane.b32.xlu1 %v20626_v17, %s29821_s22 }
0x57d0   :  { %v20630_v57 = vpop.permute.xlu1 %20629 }
0x57d1   :  { %v20631_v11 = vsel %vm780_vm3, %v20630_v57, 0 }
0x57d2   :  { %v20702_v28 = vand.u32 4294901760, %v20631_v11 }
0x57d4   :  { %v20703_v29 = vsub.f32 %v20631_v11, %v20702_v28  ;;  %27134 = vmatmul.mubr.f32.vlgmr.msra.gmra.mrb[186].mxu1 %v20702_v28 }
0x57d5   :  { %29090 = vmatpush3.bf16.msra.mxu1 %v31980_v55  ;;  %27155 = vmatprep.mubr.msk.f32.mxu1 %vm29819_vm12, %v32871_v60 }
0x57d6   :  { %v20704_v5 = vand.u32 4294901760, %v20703_v29  ;;  %29091 = vmatprep.subr.bf16.mxu1 %v29818_v21 }
0x57d8   :  { %v20705_v2 = vsub.f32 %v20703_v29, %v20704_v5 }
0x57d9   :  { %29093 = vmatpush3.bf16.msra.mxu1 %v31987_v59 }
0x57da   :  { %v20706_v23 = vand.u32 4294901760, %v20705_v2  ;;  %29100 = vmatprep.subr.bf16.mxu1 %v29818_v21 }
0x57dc   :  { %27156 = vmatmul.mubr.f32.vlgmr.msra.gmra.mrb[188].mxu1 %v20704_v5  ;;  %27123 = vmatmul.mubr.f32.vlgmr.msra.gmra.mrb[194].mxu0 %v20706_v23 }
0x57dd   :  { %29084 = vmatpush3.bf16.msra.mxu0 %v32012_v1  ;;  %29102 = vmatpush3.bf16.msra.mxu1 %v31980_v55 }
0x57de   :  { %29085 = vmatprep.subr.bf16.mxu0 %v29818_v21  ;;  %29103 = vmatprep.subr.bf16.mxu1 %v29818_v21 }
0x57df   :  { %27144 = vmatprep.mubr.msk.f32.mxu0 %vm29819_vm12, %v32871_v60  ;;  %27177 = vmatprep.mubr.msk.f32.mxu1 %vm29819_vm12, %v32871_v60 }
0x57e1   :  { %29087 = vmatpush3.bf16.msra.mxu0 %v32022_v15  ;;  %29105 = vmatpush3.bf16.msra.mxu1 %v31987_v59 }
0x57e2   :  { %29094 = vmatprep.subr.bf16.mxu0 %v29818_v21  ;;  %29112 = vmatprep.subr.bf16.mxu1 %v29818_v21 }
0x57e4   :  { %27145 = vmatmul.mubr.f32.vlgmr.msra.gmra.mrb[196].mxu0 %v20703_v29  ;;  %27178 = vmatmul.mubr.f32.vlgmr.msra.gmra.mrb[190].mxu1 %v20702_v28 }
0x57e5   :  { %29096 = vmatpush3.bf16.msra.mxu0 %v32046_v58  ;;  %27166 = vmatprep.mubr.msk.f32.mxu0 %vm29819_vm12, %v32871_v60 }
0x57e6   :  { %29097 = vmatprep.subr.bf16.mxu0 %v29818_v21  ;;  %29114 = vmatpush3.bf16.msra.mxu1 %v31999_v12 }
0x57e7   :  { %29115 = vmatprep.subr.bf16.mxu1 %v29818_v21  ;;  %27199 = vmatprep.mubr.msk.f32.mxu1 %vm29819_vm12, %v32871_v60 }
0x57e9   :  { %29099 = vmatpush3.bf16.msra.mxu0 %v32053_v6 }
0x57ea   :  { %29117 = vmatpush3.bf16.msra.mxu1 %v32006_v44  ;;  %29106 = vmatprep.subr.bf16.mxu0 %v29818_v21 }
0x57eb   :  { %29124 = vmatprep.subr.bf16.mxu1 %v29818_v21 }
0x57ec   :  { %27167 = vmatmul.mubr.f32.vlgmr.msra.gmra.mrb[198].mxu0 %v20702_v28 }
0x57ed   :  { %29108 = vmatpush3.bf16.msra.mxu0 %v31980_v55  ;;  %27188 = vmatprep.mubr.msk.f32.mxu0 %vm29819_vm12, %v32871_v60 }
0x57ee   :  { %29109 = vmatprep.subr.bf16.mxu0 %v29818_v21 }
0x57f1   :  { %29111 = vmatpush3.bf16.msra.mxu0 %v31987_v59 }
0x57f2   :  { %29118 = vmatprep.subr.bf16.mxu0 %v29818_v21 }
0x58a7   :  { %v20799_v46 = vpop.f32.mrb[186].mxu1 }
0x58a8   :  { %v27135_v56 = vpop.f32.mrb[187].mxu1 }
0x58af   :  { %v20956_v3 = vpop.f32.mrb[188].mxu1  ;;  %v20708_v45 = vpop.f32.mrb[194].mxu0 }
0x58b0   :  { %v20800_v47 = vadd.f32 %v20799_v46, %v20708_v45  ;;  %v27157_v36 = vpop.f32.mrb[189].mxu1  ;;  %v27124_v63 = vpop.f32.mrb[195].mxu0  ;;  %v21143_v46 = vld [vmem:[#allocation2 + $0x1c] sm:$0x3] }
0x58b7   :  { %v20879_v7 = vpop.f32.mrb[196].mxu0  ;;  %v21114_v10 = vpop.f32.mrb[190].mxu1 }
0x58b8   :  { %v20880_v43 = vadd.f32 %v20879_v7, %v20800_v47  ;;  %v27146_v9 = vpop.f32.mrb[197].mxu0  ;;  %v27179_v62 = vpop.f32.mrb[191].mxu1 }
0x58ba   :  { %v20957_v53 = vadd.f32 %v20956_v3, %v20880_v43 }
0x58bf   :  { %v21039_v42 = vpop.f32.mrb[198].mxu0 }
0x58c0   :  { %v21040_v34 = vadd.f32 %v21039_v42, %v20957_v53  ;;  %v27168_v8 = vpop.f32.mrb[199].mxu0 }
0x58c2   :  { %v21115_v51 = vadd.f32 %v21114_v10, %v21040_v34 }
0x58c4   :  { %v21118_v38 = vadd.f32 %v21115_v51, %v20627_v26 }
0x58c6   :  { %29646 = vtanh.f32 %v21118_v38  ;;  %v22754_v27 = vmul.f32 -1.442695, %v21118_v38 }
0x58c8   :  { %29648 = vpow2.f32 %v22754_v27 }
0x58d0   :  { %v29647_v31 = vpop.eup %29646 }
0x58d1   :  { %21128 = vrot.lane.b32.xlu0 %v29647_v31, %s29820_s9 }
0x58d2   :  { %v29649_v4 = vpop.eup %29648 }
0x58d3   :  { %v21122_v61 = vadd.f32 1.0, %v29649_v4 }
0x58d5   :  { %29650 = vrcp.f32 %v21122_v61 }
0x58df   :  { %v29651_v49 = vpop.eup %29650 }
0x58e0   :  { %v21126_v54 = vmul.f32 %v29651_v49, %v32651_v50 }
0x5943   :  { %v21129_v13 = vpop.permute.xlu0 %21128 }
0x5944   :  { %v21131_v32 = vmul.f32 %v29651_v49, %v21129_v13 }
0x5946   :  { %21133 = vrot.lane.b32.xlu1 %v21131_v32, %s29821_s22 }
0x59b8   :  { %v21134_v39 = vpop.permute.xlu1 %21133 }
0x59b9   :  { %v32696_v24 = vadd.f32 %v21134_v39, %v21126_v54 }
0x59bb   :  { %29652 = vtanh.f32 %v32696_v24 }
0x59c5   :  { %v29653_v33 = vpop.eup %29652 }
0x59c6   :  { %21139 = vrot.lane.b32.xlu0 %v29653_v33, %s29820_s9 }
0x5a38   :  { %v21140_v0 = vpop.permute.xlu0 %21139 }
0x5a39   :  { %v21142_v48 = vmul.f32 %v29651_v49, %v21140_v0 }
0x5a3b   :  { %21145 = vrot.lane.b32.xlu1 %v21142_v48, %s29821_s22 }
0x5aad   :  { %v21146_v19 = vpop.permute.xlu1 %21145 }
0x5aae   :  { %v21147_v37 = vsel %vm780_vm3, %v21146_v19, 0 }
0x5aaf   :  { %v21218_v14 = vand.u32 4294901760, %v21147_v37 }
0x5ab1   :  { %v21219_v18 = vsub.f32 %v21147_v37, %v21218_v14  ;;  %27200 = vmatmul.mubr.f32.vlgmr.msra.gmra.mrb[192].mxu1 %v21218_v14  ;;  %v21659_v37 = vld [vmem:[#allocation2 + $0x1e] sm:$0x3] }
0x5ab2   :  { %29126 = vmatpush3.bf16.msra.mxu1 %v31980_v55  ;;  %27221 = vmatprep.mubr.msk.f32.mxu1 %vm29819_vm12, %v32871_v60 }
0x5ab3   :  { %v21220_v20 = vand.u32 4294901760, %v21219_v18  ;;  %29127 = vmatprep.subr.bf16.mxu1 %v29818_v21 }
0x5ab5   :  { %v21221_v22 = vsub.f32 %v21219_v18, %v21220_v20 }
0x5ab6   :  { %29129 = vmatpush3.bf16.msra.mxu1 %v31987_v59 }
0x5ab7   :  { %v21222_v16 = vand.u32 4294901760, %v21221_v22  ;;  %29136 = vmatprep.subr.bf16.mxu1 %v29818_v21 }
0x5ab9   :  { %27222 = vmatmul.mubr.f32.vlgmr.msra.gmra.mrb[194].mxu1 %v21220_v20  ;;  %27189 = vmatmul.mubr.f32.vlgmr.msra.gmra.mrb[200].mxu0 %v21222_v16 }
0x5aba   :  { %29120 = vmatpush3.bf16.msra.mxu0 %v32012_v1  ;;  %29138 = vmatpush3.bf16.msra.mxu1 %v31980_v55 }
0x5abb   :  { %29121 = vmatprep.subr.bf16.mxu0 %v29818_v21  ;;  %29139 = vmatprep.subr.bf16.mxu1 %v29818_v21 }
0x5abc   :  { %27210 = vmatprep.mubr.msk.f32.mxu0 %vm29819_vm12, %v32871_v60  ;;  %27243 = vmatprep.mubr.msk.f32.mxu1 %vm29819_vm12, %v32871_v60 }
0x5abe   :  { %29123 = vmatpush3.bf16.msra.mxu0 %v32022_v15  ;;  %29141 = vmatpush3.bf16.msra.mxu1 %v31987_v59 }
0x5abf   :  { %29130 = vmatprep.subr.bf16.mxu0 %v29818_v21  ;;  %29148 = vmatprep.subr.bf16.mxu1 %v29818_v21 }
0x5ac1   :  { %27211 = vmatmul.mubr.f32.vlgmr.msra.gmra.mrb[202].mxu0 %v21219_v18  ;;  %27244 = vmatmul.mubr.f32.vlgmr.msra.gmra.mrb[196].mxu1 %v21218_v14 }
0x5ac2   :  { %29132 = vmatpush3.bf16.msra.mxu0 %v32046_v58  ;;  %27232 = vmatprep.mubr.msk.f32.mxu0 %vm29819_vm12, %v32871_v60 }
0x5ac3   :  { %29133 = vmatprep.subr.bf16.mxu0 %v29818_v21  ;;  %29150 = vmatpush3.bf16.msra.mxu1 %v31999_v12 }
0x5ac4   :  { %29151 = vmatprep.subr.bf16.mxu1 %v29818_v21  ;;  %27265 = vmatprep.mubr.msk.f32.mxu1 %vm29819_vm12, %v32871_v60 }
0x5ac6   :  { %29135 = vmatpush3.bf16.msra.mxu0 %v32053_v6 }
0x5ac7   :  { %29153 = vmatpush3.bf16.msra.mxu1 %v32006_v44  ;;  %29142 = vmatprep.subr.bf16.mxu0 %v29818_v21 }
0x5ac8   :  { %29160 = vmatprep.subr.bf16.mxu1 %v29818_v21 }
0x5ac9   :  { %27233 = vmatmul.mubr.f32.vlgmr.msra.gmra.mrb[204].mxu0 %v21218_v14 }
0x5aca   :  { %29144 = vmatpush3.bf16.msra.mxu0 %v31980_v55  ;;  %27254 = vmatprep.mubr.msk.f32.mxu0 %vm29819_vm12, %v32871_v60 }
0x5acb   :  { %29145 = vmatprep.subr.bf16.mxu0 %v29818_v21 }
0x5ace   :  { %29147 = vmatpush3.bf16.msra.mxu0 %v31987_v59 }
0x5acf   :  { %29154 = vmatprep.subr.bf16.mxu0 %v29818_v21 }
0x5b84   :  { %v21315_v12 = vpop.f32.mrb[192].mxu1 }
0x5b85   :  { %v27201_v35 = vpop.f32.mrb[193].mxu1 }
0x5b8c   :  { %v21472_v25 = vpop.f32.mrb[194].mxu1  ;;  %v21224_v44 = vpop.f32.mrb[200].mxu0 }
0x5b8d   :  { %v21316_v30 = vadd.f32 %v21315_v12, %v21224_v44  ;;  %v27223_v40 = vpop.f32.mrb[195].mxu1  ;;  %v27190_v50 = vpop.f32.mrb[201].mxu0 }
0x5b94   :  { %v21395_v52 = vpop.f32.mrb[202].mxu0  ;;  %v21630_v41 = vpop.f32.mrb[196].mxu1 }
0x5b95   :  { %v21396_v17 = vadd.f32 %v21395_v52, %v21316_v30  ;;  %v27212_v57 = vpop.f32.mrb[203].mxu0  ;;  %v27245_v11 = vpop.f32.mrb[197].mxu1  ;;  %v22175_v52 = vld [vmem:[%s32844_s13] sm:$0xff] }
0x5b97   :  { %v21473_v28 = vadd.f32 %v21472_v25, %v21396_v17  ;;  %v22192_v17 = vand.u32 4294901760, %v22175_v52 }
0x5b9c   :  { %v21555_v29 = vpop.f32.mrb[204].mxu0 }
0x5b9d   :  { %v21556_v5 = vadd.f32 %v21555_v29, %v21473_v28  ;;  %v27234_v2 = vpop.f32.mrb[205].mxu0  ;;  %v22272_v28 = vsub.f32 %v22175_v52, %v22192_v17 }
0x5b9e   :  { %v22178_v2 = vld [vmem:[%s32844_s13 + $0x18] sm:$0xff] }
0x5b9f   :  { %v21631_v23 = vadd.f32 %v21630_v41, %v21556_v5  ;;  %v22176_v41 = vld [vmem:[%s32844_s13 + $0x8] sm:$0xff]  ;;  %v22177_v5 = vld [vmem:[%s32844_s13 + $0x10] sm:$0xff] }
0x5ba0   :  { %v22195_v57 = vand.u32 4294901760, %v22176_v41 }
0x5ba1   :  { %v21634_v56 = vadd.f32 %v21631_v23, %v21143_v46  ;;  %v22198_v23 = vand.u32 4294901760, %v22177_v5  ;;  %v22201_v46 = vand.u32 4294901760, %v22178_v2 }
0x5ba2   :  { %v32782_v11 = vpack.c.bf16 %v22195_v57, %v22192_v17  ;;  %v22279_v29 = vsub.f32 %v22176_v41, %v22195_v57 }
0x5ba3   :  { %29654 = vtanh.f32 %v21634_v56  ;;  %v22755_v45 = vmul.f32 -1.442695, %v21634_v56  ;;  %v22273_v56 = vand.u32 4294901760, %v22272_v28 }
0x5ba5   :  { %29656 = vpow2.f32 %v22755_v45  ;;  %v29182_v45 = vpack.c.bf16 %v22201_v46, %v22198_v23 }
0x5bad   :  { %v29655_v3 = vpop.eup %29654 }
0x5bae   :  { %21644 = vrot.lane.b32.xlu0 %v29655_v3, %s29820_s9  ;;  %v22280_v3 = vand.u32 4294901760, %v22279_v29 }
0x5baf   :  { %v29657_v47 = vpop.eup %29656 }
0x5bb0   :  { %v21638_v36 = vadd.f32 1.0, %v29657_v47  ;;  %v22286_v47 = vsub.f32 %v22177_v5, %v22198_v23 }
0x5bb2   :  { %29658 = vrcp.f32 %v21638_v36  ;;  %v22293_v36 = vsub.f32 %v22178_v2, %v22201_v46 }
0x5bbc   :  { %v29659_v63 = vpop.eup %29658 }
0x5bbd   :  { %v21642_v43 = vmul.f32 %v29659_v63, %v32696_v24 }
0x5c20   :  { %v21645_v7 = vpop.permute.xlu0 %21644 }
0x5c21   :  { %v21647_v10 = vmul.f32 %v29659_v63, %v21645_v7  ;;  %v22281_v7 = vsub.f32 %v22279_v29, %v22280_v3 }
0x5c23   :  { %21649 = vrot.lane.b32.xlu1 %v21647_v10, %s29821_s22 }
0x5c95   :  { %v21650_v9 = vpop.permute.xlu1 %21649 }
0x5c96   :  { %v32741_v62 = vadd.f32 %v21650_v9, %v21642_v43  ;;  %v22287_v43 = vand.u32 4294901760, %v22286_v47  ;;  %v22294_v9 = vand.u32 4294901760, %v22293_v36 }
0x5c98   :  { %29660 = vtanh.f32 %v32741_v62 }
0x5ca2   :  { %v29661_v53 = vpop.eup %29660 }
0x5ca3   :  { %21655 = vrot.lane.b32.xlu0 %v29661_v53, %s29820_s9 }
0x5d15   :  { %v21656_v42 = vpop.permute.xlu0 %21655 }
0x5d16   :  { %v21658_v34 = vmul.f32 %v29659_v63, %v21656_v42  ;;  %v22274_v63 = vsub.f32 %v22272_v28, %v22273_v56  ;;  %v22288_v42 = vsub.f32 %v22286_v47, %v22287_v43 }
0x5d18   :  { %21661 = vrot.lane.b32.xlu1 %v21658_v34, %s29821_s22  ;;  %v22275_v10 = vand.u32 4294901760, %v22274_v63  ;;  %v22295_v34 = vsub.f32 %v22293_v36, %v22294_v9 }
0x5d8a   :  { %v21662_v8 = vpop.permute.xlu1 %21661 }
0x5d8b   :  { %v21663_v51 = vsel %vm780_vm3, %v21662_v8, 0 }
0x5d8c   :  { %v21734_v26 = vand.u32 4294901760, %v21663_v51 }
0x5d8e   :  { %v21735_v38 = vsub.f32 %v21663_v51, %v21734_v26  ;;  %27266 = vmatmul.mubr.f32.vlgmr.msra.gmra.mrb[198].mxu1 %v21734_v26 }
0x5d8f   :  { %29162 = vmatpush3.bf16.msra.mxu1 %v31980_v55  ;;  %27287 = vmatprep.mubr.msk.f32.mxu1 %vm29819_vm12, %v32871_v60 }
0x5d90   :  { %v21736_v31 = vand.u32 4294901760, %v21735_v38  ;;  %29163 = vmatprep.subr.bf16.mxu1 %v29818_v21 }
0x5d92   :  { %v21737_v27 = vsub.f32 %v21735_v38, %v21736_v31 }
0x5d93   :  { %29165 = vmatpush3.bf16.msra.mxu1 %v31987_v59 }
0x5d94   :  { %v21738_v4 = vand.u32 4294901760, %v21737_v27  ;;  %29172 = vmatprep.subr.bf16.mxu1 %v29818_v21  ;;  %v29191_v27 = vpack.c.bf16 %v22279_v29, %v22272_v28 }
0x5d96   :  { %27288 = vmatmul.mubr.f32.vlgmr.msra.gmra.mrb[200].mxu1 %v21736_v31  ;;  %27255 = vmatmul.mubr.f32.vlgmr.msra.gmra.mrb[206].mxu0 %v21738_v4  ;;  %v29194_v4 = vpack.c.bf16 %v22293_v36, %v22286_v47 }
0x5d97   :  { %29156 = vmatpush3.bf16.msra.mxu0 %v32012_v1  ;;  %29174 = vmatpush3.bf16.msra.mxu1 %v31980_v55 }
0x5d98   :  { %29157 = vmatprep.subr.bf16.mxu0 %v29818_v21  ;;  %29175 = vmatprep.subr.bf16.mxu1 %v29818_v21 }
0x5d99   :  { %27276 = vmatprep.mubr.msk.f32.mxu0 %vm29819_vm12, %v32871_v60  ;;  %27309 = vmatprep.mubr.msk.f32.mxu1 %vm29819_vm12, %v32871_v60 }
0x5d9b   :  { %29159 = vmatpush3.bf16.msra.mxu0 %v32022_v15  ;;  %29177 = vmatpush3.bf16.msra.mxu1 %v31987_v59 }
0x5d9c   :  { %29166 = vmatprep.subr.bf16.mxu0 %v29818_v21 }
0x5d9e   :  { %27277 = vmatmul.mubr.f32.vlgmr.msra.gmra.mrb[208].mxu0 %v21735_v38  ;;  %27310 = vmatmul.mubr.f32.vlgmr.msra.gmra.mrb[202].mxu1 %v21734_v26  ;;  %v22296_v38 = vand.u32 4294901760, %v22295_v34 }
0x5d9f   :  { %29168 = vmatpush3.bf16.msra.mxu0 %v32046_v58  ;;  %27298 = vmatprep.mubr.msk.f32.mxu0 %vm29819_vm12, %v32871_v60 }
0x5da0   :  { %29169 = vmatprep.subr.bf16.mxu0 %v29818_v21 }
0x5da3   :  { %29171 = vmatpush3.bf16.msra.mxu0 %v32053_v6 }
0x5da4   :  { %29178 = vmatprep.subr.bf16.mxu0 %v29818_v21 }
0x5da6   :  { %27299 = vmatmul.mubr.f32.vlgmr.msra.gmra.mrb[210].mxu0 %v21734_v26  ;;  %v22289_v26 = vand.u32 4294901760, %v22288_v42 }
0x5da7   :  { %27320 = vmatprep.mubr.msk.f32.mxu0 %vm29819_vm12, %v32871_v60  ;;  %29180 = vmatpush3.bf16.msra.mxu0 %v32782_v11 }
0x5da8   :  { %29181 = vmatprep.subr.bf16.mxu0 %v29818_v21  ;;  %v29188_v31 = vpack.c.bf16 %v22296_v38, %v22289_v26 }
0x5dab   :  { %29183 = vmatpush3.bf16.msra.mxu0 %v29182_v45 }
0x5dac   :  { %29184 = vmatprep.subr.bf16.mxu0 %v29818_v21 }
0x5e61   :  { %v21831_v55 = vpop.f32.mrb[198].mxu1 }
0x5e62   :  { %v27267_v59 = vpop.f32.mrb[199].mxu1 }
0x5e63   :  { %v29206_v59 = vpack.c.bf16 %v22294_v9, %v22287_v43 }
0x5e69   :  { %v21988_v1 = vpop.f32.mrb[200].mxu1  ;;  %v21740_v15 = vpop.f32.mrb[206].mxu0 }
0x5e6a   :  { %v21832_v61 = vadd.f32 %v21831_v55, %v21740_v15  ;;  %v27289_v49 = vpop.f32.mrb[201].mxu1  ;;  %v27256_v58 = vpop.f32.mrb[207].mxu0  ;;  %v29203_v55 = vpack.c.bf16 %v22280_v3, %v22273_v56 }
0x5e71   :  { %v21911_v13 = vpop.f32.mrb[208].mxu0  ;;  %v22146_v32 = vpop.f32.mrb[202].mxu1 }
0x5e72   :  { %v21912_v54 = vadd.f32 %v21911_v13, %v21832_v61  ;;  %v27278_v39 = vpop.f32.mrb[209].mxu0  ;;  %v27311_v24 = vpop.f32.mrb[203].mxu1 }
0x5e74   :  { %v21989_v33 = vadd.f32 %v21988_v1, %v21912_v54  ;;  %v22757_v54 = vld [vmem:[%s32845_s14] ss:$0 sm:$0xff] }
0x5e79   :  { %v22071_v6 = vpop.f32.mrb[210].mxu0 }
0x5e7a   :  { %v22072_v0 = vadd.f32 %v22071_v6, %v21989_v33  ;;  %v27300_v48 = vpop.f32.mrb[211].mxu0 }
0x5e7c   :  { %v22147_v19 = vadd.f32 %v22146_v32, %v22072_v0 }
0x5e7e   :  { %v22150_v14 = vadd.f32 %v22147_v19, %v21659_v37 }
0x5e80   :  { %29662 = vtanh.f32 %v22150_v14  ;;  %v22756_v20 = vmul.f32 -1.442695, %v22150_v14 }
0x5e82   :  { %29664 = vpow2.f32 %v22756_v20 }
0x5e8a   :  { %v29663_v18 = vpop.eup %29662 }
0x5e8b   :  { %22160 = vrot.lane.b32.xlu0 %v29663_v18, %s29820_s9 }
0x5e8c   :  { %v29665_v22 = vpop.eup %29664 }
0x5e8d   :  { %v22154_v16 = vadd.f32 1.0, %v29665_v22 }
0x5e8f   :  { %29666 = vrcp.f32 %v22154_v16 }
0x5e99   :  { %v29667_v12 = vpop.eup %29666 }
0x5e9a   :  { %v22158_v44 = vmul.f32 %v29667_v12, %v32741_v62  ;;  %v22282_v62 = vand.u32 4294901760, %v22281_v7 }
0x5e9c   :  { %v29185_v51 = vpack.c.bf16 %v22282_v62, %v22275_v10 }
0x5efd   :  { %v22161_v35 = vpop.permute.xlu0 %22160 }
0x5efe   :  { %v22163_v25 = vmul.f32 %v29667_v12, %v22161_v35 }
0x5f00   :  { %22165 = vrot.lane.b32.xlu1 %v22163_v25, %s29821_s22 }
0x5f72   :  { %v22166_v30 = vpop.permute.xlu1 %22165 }
0x5f73   :  { %v22168_v40 = vadd.f32 %v22166_v30, %v22158_v44 }
0x5f75   :  { %29668 = vtanh.f32 %v22168_v40 }
0x5f7f   :  { %v29669_v50 = vpop.eup %29668 }
0x5f80   :  { %22171 = vrot.lane.b32.xlu0 %v29669_v50, %s29820_s9 }
0x5ff2   :  { %v22172_v53 = vpop.permute.xlu0 %22171 }
0x5ff3   :  { %v22174_v8 = vmul.f32 %v29667_v12, %v22172_v53 }
0x5ff5   :  { %22187 = vrot.lane.b32.xlu1 %v22174_v8, %s29821_s22 }
0x6067   :  { %v22188_v1 = vpop.permute.xlu1 %22187 }
0x6068   :  { %v22189_v15 = vsel %vm780_vm3, %v22188_v1, 0 }
0x6069   :  { %v22260_v61 = vand.u32 4294901760, %v22189_v15 }
0x606b   :  { %v22261_v49 = vsub.f32 %v22189_v15, %v22260_v61 }
0x606d   :  { %v22262_v58 = vand.u32 4294901760, %v22261_v49 }
0x606f   :  { %v22263_v13 = vsub.f32 %v22261_v49, %v22262_v58 }
0x6071   :  { %v22264_v32 = vand.u32 4294901760, %v22263_v13 }
0x6073   :  { %27321 = vmatmul.mubr.f32.vlgmr.msra.gmra.mrb[212].mxu0 %v22264_v32 }
0x6074   :  { %29186 = vmatpush3.bf16.msra.mxu0 %v29185_v51  ;;  %27331 = vmatprep.mubr.msk.f32.mxu0 %vm29819_vm12, %v32871_v60 }
0x6075   :  { %29187 = vmatprep.subr.bf16.mxu0 %v29818_v21 }
0x6078   :  { %29189 = vmatpush3.bf16.msra.mxu0 %v29188_v31 }
0x6079   :  { %29190 = vmatprep.subr.bf16.mxu0 %v29818_v21 }
0x607b   :  { %27332 = vmatmul.mubr.f32.vlgmr.msra.gmra.mrb[212].mxu0 %v22260_v61 }
0x607c   :  { %29192 = vmatpush3.bf16.msra.mxu0 %v29191_v27  ;;  %27342 = vmatprep.mubr.msk.f32.mxu0 %vm29819_vm12, %v32871_v60 }
0x607d   :  { %29193 = vmatprep.subr.bf16.mxu0 %v29818_v21 }
0x6080   :  { %29195 = vmatpush3.bf16.msra.mxu0 %v29194_v4 }
0x6081   :  { %29196 = vmatprep.subr.bf16.mxu0 %v29818_v21 }
0x6083   :  { %27343 = vmatmul.mubr.f32.vlgmr.msra.gmra.mrb[212].mxu0 %v22261_v49 }
0x6084   :  { %29198 = vmatpush3.bf16.msra.mxu0 %v32782_v11  ;;  %27353 = vmatprep.mubr.msk.f32.mxu0 %vm29819_vm12, %v32871_v60 }
0x6085   :  { %29199 = vmatprep.subr.bf16.mxu0 %v29818_v21 }
0x6088   :  { %29201 = vmatpush3.bf16.msra.mxu0 %v29182_v45 }
0x6089   :  { %29202 = vmatprep.subr.bf16.mxu0 %v29818_v21 }
0x608b   :  { %27354 = vmatmul.mubr.f32.vlgmr.msra.gmra.mrb[212].mxu0 %v22262_v58 }
0x608c   :  { %29204 = vmatpush3.bf16.msra.mxu0 %v29203_v55  ;;  %27364 = vmatprep.mubr.msk.f32.mxu0 %vm29819_vm12, %v32871_v60 }
0x608d   :  { %29205 = vmatprep.subr.bf16.mxu0 %v29818_v21 }
0x6090   :  { %29207 = vmatpush3.bf16.msra.mxu0 %v29206_v59 }
0x6091   :  { %29208 = vmatprep.subr.bf16.mxu0 %v29818_v21 }
0x6093   :  { %27365 = vmatmul.mubr.f32.vlgmr.msra.gmra.mrb[212].mxu0 %v22260_v61 }
0x6094   :  { %29210 = vmatpush3.bf16.msra.mxu0 %v32782_v11  ;;  %27375 = vmatprep.mubr.msk.f32.mxu0 %vm29819_vm12, %v32871_v60 }
0x6095   :  { %29211 = vmatprep.subr.bf16.mxu0 %v29818_v21 }
0x6098   :  { %29213 = vmatpush3.bf16.msra.mxu0 %v29182_v45 }
0x609b   :  { %27376 = vmatmul.mubr.f32.vlgmr.msra.gmra.mrb[212].mxu0 %v22260_v61 }
0x616e   :  { %v22672_v39 = vpop.f32.mrb[212].mxu0 }
0x616f   :  { %v29230_v24 = vadd.f32 %v22757_v54, %v22672_v39  ;;  %v27377_v33 = vpop.f32.mrb[213].mxu0 }
0x6171   :  { %22677 = vst.msk [vmem:[#allocation13] sm:$0x3] %vm22676_vm14, %v29230_v24 }
0x6172   :  { %29791 = shalt.err (!%p29788_p2)
}
0x6173   :  { %s29792_s16 = scalar_lea.hbm %s32846_s15, 32 }
0x6174   :  { %p29793_p3 = scmp.ne.s32.totalorder %s32846_s15, %s29792_s16  ;;  %p29796_p4 = scmp.lt.u32.totalorder %s29792_s16, %s32846_s15 }
0x6176   :  { %p29798_p5 = pnand %p29796_p4, %p29793_p3 }
0x6178   :  { %29801 = shalt.err (!%p29798_p5)
}
0x6179   :  { %22687 = dma.vmem_to_hbm [thread:$0]  %s22685_s8, 32, %s32846_s15, [#allocation6]  }
0x617a   :  { %29808 = dma.done.wait [#allocation6], 32  }
0x617b   :  { %29809 = vsyncadd [#allocation6], 4294967264 }
0x617c   :  { %22691 = vsyncpa [#allocation5], 1 }
0x617d   :  { %22692 = vsyncpa [#allocation8], 1 }
0x617e   :  { %22693 = vsyncpa [#allocation11], 1 }
0x617f   :  { %22694 = vsyncpa [#allocation6], 1 }

</bundles_post_ra>
